<compile_context>
chip_gen: v7x
topology: tpu7x:2x2x1
jax: 0.10.0
libtpu: 0.0.40
codegen_flags: <defaults>
</compile_context>

<pallas_src>
import functools

import jax
import jax.numpy as jnp
from jax.experimental import pallas as pl
from jax.experimental.pallas import tpu as pltpu


def round_up(x, m):
    return (x + m - 1) // m * m


# ---------------------------------------------------------------------------
# Pallas kernel: matmul + bias + activation (bf16 MXU inputs, f32 accumulate)
# ---------------------------------------------------------------------------

def _mm_bias_act_kernel(a_ref, b_ref, bias_ref, o_ref, *, act):
    y = jnp.dot(a_ref[...], b_ref[...], preferred_element_type=jnp.float32)
    y = y + bias_ref[...]
    if act == "relu":
        y = jnp.maximum(y, 0.0)
    elif act == "sigmoid":
        y = jax.nn.sigmoid(y)
    o_ref[...] = y.astype(o_ref.dtype)


def matmul_bias_act(a, b, bias, act="none", out_dtype=jnp.float32):
    """act(a @ b + bias).  M is tiled (padded up to the tile), N is padded to a
    multiple of 128 for lane-dense stores; MXU inputs are bf16, epilogue f32."""
    M, K = a.shape
    K2, N = b.shape
    assert K == K2
    Np = round_up(N, 128)
    tm = min(512, round_up(M, 128))
    Mp = round_up(M, tm)
    a_p = jnp.pad(a, ((0, Mp - M), (0, 0))).astype(jnp.bfloat16)
    b_p = jnp.pad(b, ((0, 0), (0, Np - N))).astype(jnp.bfloat16)
    bias_p = jnp.pad(bias, (0, Np - N)).reshape(1, Np).astype(jnp.float32)
    # NOTE: K is kept whole (fits VMEM comfortably for this model's sizes); a
    # K-grid axis with a VMEM accumulator would be needed for much larger K.
    out = pl.pallas_call(
        functools.partial(_mm_bias_act_kernel, act=act),
        out_shape=jax.ShapeDtypeStruct((Mp, Np), out_dtype),
        grid=(Mp // tm,),
        in_specs=[
            pl.BlockSpec((tm, K), lambda i: (i, 0)),
            pl.BlockSpec((K, Np), lambda i: (0, 0)),
            pl.BlockSpec((1, Np), lambda i: (0, 0)),
        ],
        out_specs=pl.BlockSpec((tm, Np), lambda i: (i, 0)),
        compiler_params=pltpu.CompilerParams(
            dimension_semantics=("parallel",),
            vmem_limit_bytes=32 * 1024 * 1024),
    )(a_p, b_p, bias_p)
    return out[:M, :N]


# ---------------------------------------------------------------------------
# Pallas kernel: fused Conv2d(3x3, pad=1) -> ReLU -> BatchNorm (eval), NHWC
# ---------------------------------------------------------------------------

def _conv3x3_kernel(x_ref, w_ref, bss_ref, o_ref, *, H, W):
    # x_ref:  (1, (H+2)*(W+2)+2, Cin)  flattened padded input (bf16)
    # w_ref:  (9, Cin, Cout)           taps k = dh*3+dw (bf16)
    # bss_ref:(3, Cout)                rows = bias, bn_scale, bn_shift (f32)
    # o_ref:  (1, H*(W+2), Cout)       flattened output incl. 2 junk cols/row
    Wp = W + 2
    Rout = H * Wp
    Cin = x_ref.shape[2]
    Cout = o_ref.shape[2]
    acc = jnp.zeros((Rout, Cout), jnp.float32)
    for dh in range(3):
        for dw in range(3):
            k = dh * 3 + dw
            off = dh * Wp + dw
            tap = x_ref[0, off:off + Rout, :]          # (Rout, Cin)
            wk = w_ref[k]                              # (Cin, Cout)
            if Cin == 1:
                acc = acc + tap.astype(jnp.float32) * wk.astype(jnp.float32)
            else:
                acc = acc + jnp.dot(tap, wk, preferred_element_type=jnp.float32)
    bias = bss_ref[0:1, :]
    scale = bss_ref[1:2, :]
    shift = bss_ref[2:3, :]
    # Module order is Conv -> ReLU -> BatchNorm(eval) -> affine after the ReLU.
    y = jnp.maximum(acc + bias, 0.0) * scale + shift
    o_ref[0] = y.astype(o_ref.dtype)


def conv3x3_relu_bn(x_nhwc, w, b, gamma, beta, rmean, rvar, eps=1e-5):
    """x_nhwc: (B, H, W, Cin_x) (Cin_x >= w's Cin; extra input channels are
    zero-padding).  Returns (B, H, W, Cout_p) bf16 with Cout padded to a
    multiple of 128 (padded channels are exactly zero)."""
    B, H, W, Cin_x = x_nhwc.shape
    Cout, Cin, _, _ = w.shape
    Cout_p = round_up(Cout, 128)

    wt = jnp.transpose(w, (2, 3, 1, 0)).reshape(9, Cin, Cout)
    wt = jnp.pad(wt, ((0, 0), (0, Cin_x - Cin), (0, Cout_p - Cout))).astype(jnp.bfloat16)
    scale = gamma / jnp.sqrt(rvar + eps)
    shift = beta - rmean * scale
    bss = jnp.stack([
        jnp.pad(b, (0, Cout_p - Cout)),
        jnp.pad(scale, (0, Cout_p - Cout)),
        jnp.pad(shift, (0, Cout_p - Cout)),
    ]).astype(jnp.float32)                                    # (3, Cout_p)

    # Spatial zero-pad, then flatten rows so every 3x3 tap is a row offset.
    Wp = W + 2
    xp = jnp.pad(x_nhwc, ((0, 0), (1, 1), (1, 1), (0, 0)))    # (B, H+2, Wp, Cin_x)
    xflat = xp.reshape(B, (H + 2) * Wp, Cin_x)
    xflat = jnp.pad(xflat, ((0, 0), (0, 2), (0, 0))).astype(jnp.bfloat16)
    Rin = (H + 2) * Wp + 2
    Rout = H * Wp

    # NOTE: one batch element per grid step keeps the whole (small) feature map
    # in VMEM; very long time axes would additionally need W tiling with halos.
    yflat = pl.pallas_call(
        functools.partial(_conv3x3_kernel, H=H, W=W),
        out_shape=jax.ShapeDtypeStruct((B, Rout, Cout_p), jnp.bfloat16),
        grid=(B,),
        in_specs=[
            pl.BlockSpec((1, Rin, Cin_x), lambda bb: (bb, 0, 0)),
            pl.BlockSpec((9, Cin_x, Cout_p), lambda bb: (0, 0, 0)),
            pl.BlockSpec((3, Cout_p), lambda bb: (0, 0)),
        ],
        out_specs=pl.BlockSpec((1, Rout, Cout_p), lambda bb: (bb, 0, 0)),
        compiler_params=pltpu.CompilerParams(
            dimension_semantics=("parallel",),
            vmem_limit_bytes=32 * 1024 * 1024),
    )(xflat, wt, bss)
    # Drop the 2 junk columns per row -> (B, H, W, Cout_p).
    return yflat.reshape(B, H, Wp, Cout_p)[:, :, :W, :]


# ---------------------------------------------------------------------------
# Pallas kernel: MaxPool (2, 1) over the freq (H) axis, NHWC
# ---------------------------------------------------------------------------

def _max_kernel(a_ref, b_ref, o_ref):
    o_ref[...] = jnp.maximum(a_ref[...], b_ref[...])


def maxpool_h2(x):
    B, H, W, C = x.shape
    Ho = H // 2
    a = x[:, 0:2 * Ho:2]
    b = x[:, 1:2 * Ho:2]
    return pl.pallas_call(
        _max_kernel,
        out_shape=jax.ShapeDtypeStruct((B, Ho, W, C), x.dtype),
        grid=(B,),
        in_specs=[pl.BlockSpec((1, Ho, W, C), lambda i: (i, 0, 0, 0)),
                  pl.BlockSpec((1, Ho, W, C), lambda i: (i, 0, 0, 0))],
        out_specs=pl.BlockSpec((1, Ho, W, C), lambda i: (i, 0, 0, 0)),
        compiler_params=pltpu.CompilerParams(dimension_semantics=("parallel",)),
    )(a, b)


# ---------------------------------------------------------------------------
# Pallas kernel: fused bidirectional LSTM recurrence (both directions, whole
# sequence, one invocation; h/c carried in registers by lax.fori_loop)
# ---------------------------------------------------------------------------

def _bilstm_kernel(xg_ref, whh_ref, hf_ref, hb_ref):
    # xg_ref: (T, B, 8H)  precomputed x@W_ih.T + b for [fwd | bwd] directions
    # whh_ref: (2, H, 4H) recurrent weights (fwd, bwd)
    # hf_ref/hb_ref: (T, B, H) hidden-state outputs per direction
    T = xg_ref.shape[0]
    B = xg_ref.shape[1]
    H = whh_ref.shape[1]
    whh_f = whh_ref[0]
    whh_b = whh_ref[1]

    def cell(gates, c_prev):
        i = jax.nn.sigmoid(gates[:, 0 * H:1 * H])
        f = jax.nn.sigmoid(gates[:, 1 * H:2 * H])
        g = jnp.tanh(gates[:, 2 * H:3 * H])
        o = jax.nn.sigmoid(gates[:, 3 * H:4 * H])
        c = f * c_prev + i * g
        h = o * jnp.tanh(c)
        return h, c

    def step(s, carry):
        h_f, c_f, h_b, c_b = carry
        sb = T - 1 - s
        xrow_f = xg_ref[s]                       # (B, 8H)
        xrow_b = xg_ref[sb]
        g_f = xrow_f[:, :4 * H] + jnp.dot(h_f, whh_f, preferred_element_type=jnp.float32)
        g_b = xrow_b[:, 4 * H:] + jnp.dot(h_b, whh_b, preferred_element_type=jnp.float32)
        h_f, c_f = cell(g_f, c_f)
        h_b, c_b = cell(g_b, c_b)
        hf_ref[s] = h_f
        hb_ref[sb] = h_b
        return h_f, c_f, h_b, c_b

    zeros = jnp.zeros((B, H), jnp.float32)
    jax.lax.fori_loop(0, T, step, (zeros, zeros, zeros, zeros))


def bilstm_layer(x_tbd, layer_params, hidden):
    """x_tbd: (T, B, D) -> (T, B, 2H) (time-major in and out, no relayouts)."""
    T, B, D = x_tbd.shape
    (wi_f, wh_f, bi_f, bh_f), (wi_b, wh_b, bi_b, bh_b) = layer_params
    # One lane-dense gate matmul for both directions: N = 8H.
    w_cat = jnp.concatenate([wi_f, wi_b], axis=0).T           # (D, 8H)
    b_cat = jnp.concatenate([bi_f + bh_f, bi_b + bh_b])       # (8H,)
    xg = matmul_bias_act(x_tbd.reshape(T * B, D), w_cat, b_cat,
                         act="none", out_dtype=jnp.float32)
    xg = xg.reshape(T, B, 8 * hidden)
    whh = jnp.stack([wh_f.T, wh_b.T]).astype(jnp.float32)     # (2, H, 4H)
    hf, hb = pl.pallas_call(
        _bilstm_kernel,
        out_shape=(jax.ShapeDtypeStruct((T, B, hidden), jnp.float32),
                   jax.ShapeDtypeStruct((T, B, hidden), jnp.float32)),
    )(xg, whh)
    return jnp.concatenate([hf, hb], axis=-1)                 # (T, B, 2H)


# ---------------------------------------------------------------------------
# Forward pass
# ---------------------------------------------------------------------------

def guitar_transcription_forward(x, params):
    # x: (B, F, T)  ->  (B, output_dim, T)
    B, F, T = x.shape
    h = x.reshape(B, F, T, 1)                     # NHWC: H=freq, W=time, C=1
    h = conv3x3_relu_bn(h, *params["conv1"])
    h = conv3x3_relu_bn(h, *params["conv2"])
    h = maxpool_h2(h)
    h = conv3x3_relu_bn(h, *params["conv3"])
    h = conv3x3_relu_bn(h, *params["conv4"])
    h = maxpool_h2(h)                             # (B, F//4, T, 256)
    Bc, Hf, W, C = h.shape
    # (B, Hf, T, C) -> (T, B, C*Hf); channel-major feature ordering matches
    # the PyTorch permute(0,3,1,2).reshape(batch, width, channels*height).
    h = jnp.transpose(h, (2, 0, 3, 1)).reshape(W, B, C * Hf)

    hidden = params["hidden_dim"]
    h = bilstm_layer(h, params["lstm"][0], hidden)
    # TODO(synk): inter-layer LSTM dropout (p=0.3) and the head Dropout(0.3)
    # are eval-mode identities here; train-mode stochastic dropout not modeled.
    h = bilstm_layer(h, params["lstm"][1], hidden)

    out_dim = params["b2"].shape[0]
    h2 = matmul_bias_act(h.reshape(T * B, 2 * hidden), params["w1"].T, params["b1"],
                         act="relu", out_dtype=jnp.float32)
    h2 = matmul_bias_act(h2, params["w2"].T, params["b2"],
                         act="sigmoid", out_dtype=jnp.float32)
    out = h2.reshape(T, B, out_dim)
    return jnp.transpose(out, (1, 2, 0))          # (B, output_dim, T)


# ---------------------------------------------------------------------------
# Deterministic parameter initialization (PyTorch-like uniform bounds)
# ---------------------------------------------------------------------------

def init_params(key, input_dim, hidden_dim, output_dim):
    keys = iter(jax.random.split(key, 96))

    def nk():
        return next(keys)

    def uni(shape, fan_in):
        b = float(fan_in) ** -0.5
        return jax.random.uniform(nk(), shape, jnp.float32, -b, b)

    params = {"hidden_dim": hidden_dim}

    conv_channels = [(1, 32), (32, 64), (64, 128), (128, 256)]
    for idx, (cin, cout) in enumerate(conv_channels, start=1):
        fan = cin * 9
        w = uni((cout, cin, 3, 3), fan)
        b = uni((cout,), fan)
        gamma = 1.0 + 0.1 * jax.random.uniform(nk(), (cout,), jnp.float32, -1.0, 1.0)
        beta = 0.1 * jax.random.uniform(nk(), (cout,), jnp.float32, -1.0, 1.0)
        rmean = 0.1 * jax.random.uniform(nk(), (cout,), jnp.float32, -1.0, 1.0)
        rvar = 1.0 + 0.1 * jax.random.uniform(nk(), (cout,), jnp.float32, 0.0, 1.0)
        params[f"conv{idx}"] = (w, b, gamma, beta, rmean, rvar)

    lstm = []
    d_in = 256 * (input_dim // 4)
    for _layer in range(2):
        dirs = []
        for _direction in range(2):
            fan = hidden_dim
            w_ih = uni((4 * hidden_dim, d_in), fan)
            w_hh = uni((4 * hidden_dim, hidden_dim), fan)
            b_ih = uni((4 * hidden_dim,), fan)
            b_hh = uni((4 * hidden_dim,), fan)
            dirs.append((w_ih, w_hh, b_ih, b_hh))
        lstm.append(dirs)
        d_in = 2 * hidden_dim
    params["lstm"] = lstm

    params["w1"] = uni((hidden_dim, 2 * hidden_dim), 2 * hidden_dim)
    params["b1"] = uni((hidden_dim,), 2 * hidden_dim)
    params["w2"] = uni((output_dim, hidden_dim), hidden_dim)
    params["b2"] = uni((output_dim,), hidden_dim)
    return params


# ---------------------------------------------------------------------------
# Main
# ---------------------------------------------------------------------------

if __name__ == "__main__":
    # Small shapes consistent with the module: x is (batch, input_dim, time_frames).
    B, F, T = 2, 16, 8
    hidden_dim, output_dim = 32, 16

    root = jax.random.PRNGKey(0)
    pkey, xkey = jax.random.split(root)
    params = init_params(pkey, input_dim=F, hidden_dim=hidden_dim, output_dim=output_dim)
    x = jax.random.normal(xkey, (B, F, T), jnp.float32)

    fwd = jax.jit(lambda inp: guitar_transcription_forward(inp, params))
    out = jax.block_until_ready(fwd(x))

    assert out.shape == (B, output_dim, T), out.shape
    assert bool(jnp.all(jnp.isfinite(out)))
    assert bool(jnp.all((out >= 0.0) & (out <= 1.0)))   # sigmoid output range
    print("KERNEL_OK")
</pallas_src>

<mosaic_0001>
module attributes {stable_mosaic.version = 11 : i64} {
  func.func @_conv3x3_kernel(%arg0: i32, %arg1: memref<1x182x1xbf16, #tpu.memory_space<vmem>>, %arg2: memref<9x1x128xbf16, #tpu.memory_space<vmem>>, %arg3: memref<3x128xf32, #tpu.memory_space<vmem>>, %arg4: memref<1x160x128xbf16, #tpu.memory_space<vmem>>) attributes {dimension_semantics = [#tpu.dimension_semantics<parallel>], iteration_bounds = array<i64: 2>, scalar_prefetch = 0 : i64, scratch_operands = 0 : i64, tpu.core_type = #tpu.core_type<tc>, window_params = [{transform_indices = @transform_0, window_bounds = array<i64: 1, 182, 1>}, {pipeline_mode = #tpu.pipeline_mode<synchronous>, transform_indices = @transform_1, window_bounds = array<i64: 9, 1, 128>}, {pipeline_mode = #tpu.pipeline_mode<synchronous>, transform_indices = @transform_2, window_bounds = array<i64: 3, 128>}, {transform_indices = @transform_3, window_bounds = array<i64: 1, 160, 128>}]} {
    %cst = arith.constant 0.000000e+00 : f32
    %0 = vector.broadcast %cst : f32 to vector<160x128xf32>
    %c0 = arith.constant 0 : index
    %c0_0 = arith.constant 0 : index
    %c0_1 = arith.constant 0 : index
    %1 = vector.load %arg1[%c0, %c0_0, %c0_1] : memref<1x182x1xbf16, #tpu.memory_space<vmem>>, vector<1x160x1xbf16>
    %2 = vector.shape_cast %1 : vector<1x160x1xbf16> to vector<160x1xbf16>
    %c0_2 = arith.constant 0 : index
    %c0_3 = arith.constant 0 : index
    %c0_4 = arith.constant 0 : index
    %3 = vector.load %arg2[%c0_2, %c0_3, %c0_4] : memref<9x1x128xbf16, #tpu.memory_space<vmem>>, vector<1x1x128xbf16>
    %4 = vector.shape_cast %3 : vector<1x1x128xbf16> to vector<1x128xbf16>
    %5 = arith.extf %2 : vector<160x1xbf16> to vector<160x1xf32>
    %6 = arith.extf %4 : vector<1x128xbf16> to vector<1x128xf32>
    %7 = vector.broadcast %5 : vector<160x1xf32> to vector<160x128xf32>
    %8 = vector.broadcast %6 : vector<1x128xf32> to vector<160x128xf32>
    %9 = arith.mulf %7, %8 : vector<160x128xf32>
    %10 = arith.addf %0, %9 : vector<160x128xf32>
    %c0_5 = arith.constant 0 : index
    %c1 = arith.constant 1 : index
    %c0_6 = arith.constant 0 : index
    %11 = vector.load %arg1[%c0_5, %c1, %c0_6] : memref<1x182x1xbf16, #tpu.memory_space<vmem>>, vector<1x160x1xbf16>
    %12 = vector.shape_cast %11 : vector<1x160x1xbf16> to vector<160x1xbf16>
    %c1_7 = arith.constant 1 : index
    %c0_8 = arith.constant 0 : index
    %c0_9 = arith.constant 0 : index
    %13 = vector.load %arg2[%c1_7, %c0_8, %c0_9] : memref<9x1x128xbf16, #tpu.memory_space<vmem>>, vector<1x1x128xbf16>
    %14 = vector.shape_cast %13 : vector<1x1x128xbf16> to vector<1x128xbf16>
    %15 = arith.extf %12 : vector<160x1xbf16> to vector<160x1xf32>
    %16 = arith.extf %14 : vector<1x128xbf16> to vector<1x128xf32>
    %17 = vector.broadcast %15 : vector<160x1xf32> to vector<160x128xf32>
    %18 = vector.broadcast %16 : vector<1x128xf32> to vector<160x128xf32>
    %19 = arith.mulf %17, %18 : vector<160x128xf32>
    %20 = arith.addf %10, %19 : vector<160x128xf32>
    %c0_10 = arith.constant 0 : index
    %c2 = arith.constant 2 : index
    %c0_11 = arith.constant 0 : index
    %21 = vector.load %arg1[%c0_10, %c2, %c0_11] : memref<1x182x1xbf16, #tpu.memory_space<vmem>>, vector<1x160x1xbf16>
    %22 = vector.shape_cast %21 : vector<1x160x1xbf16> to vector<160x1xbf16>
    %c2_12 = arith.constant 2 : index
    %c0_13 = arith.constant 0 : index
    %c0_14 = arith.constant 0 : index
    %23 = vector.load %arg2[%c2_12, %c0_13, %c0_14] : memref<9x1x128xbf16, #tpu.memory_space<vmem>>, vector<1x1x128xbf16>
    %24 = vector.shape_cast %23 : vector<1x1x128xbf16> to vector<1x128xbf16>
    %25 = arith.extf %22 : vector<160x1xbf16> to vector<160x1xf32>
    %26 = arith.extf %24 : vector<1x128xbf16> to vector<1x128xf32>
    %27 = vector.broadcast %25 : vector<160x1xf32> to vector<160x128xf32>
    %28 = vector.broadcast %26 : vector<1x128xf32> to vector<160x128xf32>
    %29 = arith.mulf %27, %28 : vector<160x128xf32>
    %30 = arith.addf %20, %29 : vector<160x128xf32>
    %c0_15 = arith.constant 0 : index
    %c10 = arith.constant 10 : index
    %c0_16 = arith.constant 0 : index
    %31 = vector.load %arg1[%c0_15, %c10, %c0_16] : memref<1x182x1xbf16, #tpu.memory_space<vmem>>, vector<1x160x1xbf16>
    %32 = vector.shape_cast %31 : vector<1x160x1xbf16> to vector<160x1xbf16>
    %c3 = arith.constant 3 : index
    %c0_17 = arith.constant 0 : index
    %c0_18 = arith.constant 0 : index
    %33 = vector.load %arg2[%c3, %c0_17, %c0_18] : memref<9x1x128xbf16, #tpu.memory_space<vmem>>, vector<1x1x128xbf16>
    %34 = vector.shape_cast %33 : vector<1x1x128xbf16> to vector<1x128xbf16>
    %35 = arith.extf %32 : vector<160x1xbf16> to vector<160x1xf32>
    %36 = arith.extf %34 : vector<1x128xbf16> to vector<1x128xf32>
    %37 = vector.broadcast %35 : vector<160x1xf32> to vector<160x128xf32>
    %38 = vector.broadcast %36 : vector<1x128xf32> to vector<160x128xf32>
    %39 = arith.mulf %37, %38 : vector<160x128xf32>
    %40 = arith.addf %30, %39 : vector<160x128xf32>
    %c0_19 = arith.constant 0 : index
    %c11 = arith.constant 11 : index
    %c0_20 = arith.constant 0 : index
    %41 = vector.load %arg1[%c0_19, %c11, %c0_20] : memref<1x182x1xbf16, #tpu.memory_space<vmem>>, vector<1x160x1xbf16>
    %42 = vector.shape_cast %41 : vector<1x160x1xbf16> to vector<160x1xbf16>
    %c4 = arith.constant 4 : index
    %c0_21 = arith.constant 0 : index
    %c0_22 = arith.constant 0 : index
    %43 = vector.load %arg2[%c4, %c0_21, %c0_22] : memref<9x1x128xbf16, #tpu.memory_space<vmem>>, vector<1x1x128xbf16>
    %44 = vector.shape_cast %43 : vector<1x1x128xbf16> to vector<1x128xbf16>
    %45 = arith.extf %42 : vector<160x1xbf16> to vector<160x1xf32>
    %46 = arith.extf %44 : vector<1x128xbf16> to vector<1x128xf32>
    %47 = vector.broadcast %45 : vector<160x1xf32> to vector<160x128xf32>
    %48 = vector.broadcast %46 : vector<1x128xf32> to vector<160x128xf32>
    %49 = arith.mulf %47, %48 : vector<160x128xf32>
    %50 = arith.addf %40, %49 : vector<160x128xf32>
    %c0_23 = arith.constant 0 : index
    %c12 = arith.constant 12 : index
    %c0_24 = arith.constant 0 : index
    %51 = vector.load %arg1[%c0_23, %c12, %c0_24] : memref<1x182x1xbf16, #tpu.memory_space<vmem>>, vector<1x160x1xbf16>
    %52 = vector.shape_cast %51 : vector<1x160x1xbf16> to vector<160x1xbf16>
    %c5 = arith.constant 5 : index
    %c0_25 = arith.constant 0 : index
    %c0_26 = arith.constant 0 : index
    %53 = vector.load %arg2[%c5, %c0_25, %c0_26] : memref<9x1x128xbf16, #tpu.memory_space<vmem>>, vector<1x1x128xbf16>
    %54 = vector.shape_cast %53 : vector<1x1x128xbf16> to vector<1x128xbf16>
    %55 = arith.extf %52 : vector<160x1xbf16> to vector<160x1xf32>
    %56 = arith.extf %54 : vector<1x128xbf16> to vector<1x128xf32>
    %57 = vector.broadcast %55 : vector<160x1xf32> to vector<160x128xf32>
    %58 = vector.broadcast %56 : vector<1x128xf32> to vector<160x128xf32>
    %59 = arith.mulf %57, %58 : vector<160x128xf32>
    %60 = arith.addf %50, %59 : vector<160x128xf32>
    %c0_27 = arith.constant 0 : index
    %c20 = arith.constant 20 : index
    %c0_28 = arith.constant 0 : index
    %61 = vector.load %arg1[%c0_27, %c20, %c0_28] : memref<1x182x1xbf16, #tpu.memory_space<vmem>>, vector<1x160x1xbf16>
    %62 = vector.shape_cast %61 : vector<1x160x1xbf16> to vector<160x1xbf16>
    %c6 = arith.constant 6 : index
    %c0_29 = arith.constant 0 : index
    %c0_30 = arith.constant 0 : index
    %63 = vector.load %arg2[%c6, %c0_29, %c0_30] : memref<9x1x128xbf16, #tpu.memory_space<vmem>>, vector<1x1x128xbf16>
    %64 = vector.shape_cast %63 : vector<1x1x128xbf16> to vector<1x128xbf16>
    %65 = arith.extf %62 : vector<160x1xbf16> to vector<160x1xf32>
    %66 = arith.extf %64 : vector<1x128xbf16> to vector<1x128xf32>
    %67 = vector.broadcast %65 : vector<160x1xf32> to vector<160x128xf32>
    %68 = vector.broadcast %66 : vector<1x128xf32> to vector<160x128xf32>
    %69 = arith.mulf %67, %68 : vector<160x128xf32>
    %70 = arith.addf %60, %69 : vector<160x128xf32>
    %c0_31 = arith.constant 0 : index
    %c21 = arith.constant 21 : index
    %c0_32 = arith.constant 0 : index
    %71 = vector.load %arg1[%c0_31, %c21, %c0_32] : memref<1x182x1xbf16, #tpu.memory_space<vmem>>, vector<1x160x1xbf16>
    %72 = vector.shape_cast %71 : vector<1x160x1xbf16> to vector<160x1xbf16>
    %c7 = arith.constant 7 : index
    %c0_33 = arith.constant 0 : index
    %c0_34 = arith.constant 0 : index
    %73 = vector.load %arg2[%c7, %c0_33, %c0_34] : memref<9x1x128xbf16, #tpu.memory_space<vmem>>, vector<1x1x128xbf16>
    %74 = vector.shape_cast %73 : vector<1x1x128xbf16> to vector<1x128xbf16>
    %75 = arith.extf %72 : vector<160x1xbf16> to vector<160x1xf32>
    %76 = arith.extf %74 : vector<1x128xbf16> to vector<1x128xf32>
    %77 = vector.broadcast %75 : vector<160x1xf32> to vector<160x128xf32>
    %78 = vector.broadcast %76 : vector<1x128xf32> to vector<160x128xf32>
    %79 = arith.mulf %77, %78 : vector<160x128xf32>
    %80 = arith.addf %70, %79 : vector<160x128xf32>
    %c0_35 = arith.constant 0 : index
    %c22 = arith.constant 22 : index
    %c0_36 = arith.constant 0 : index
    %81 = vector.load %arg1[%c0_35, %c22, %c0_36] : memref<1x182x1xbf16, #tpu.memory_space<vmem>>, vector<1x160x1xbf16>
    %82 = vector.shape_cast %81 : vector<1x160x1xbf16> to vector<160x1xbf16>
    %c8 = arith.constant 8 : index
    %c0_37 = arith.constant 0 : index
    %c0_38 = arith.constant 0 : index
    %83 = vector.load %arg2[%c8, %c0_37, %c0_38] : memref<9x1x128xbf16, #tpu.memory_space<vmem>>, vector<1x1x128xbf16>
    %84 = vector.shape_cast %83 : vector<1x1x128xbf16> to vector<1x128xbf16>
    %85 = arith.extf %82 : vector<160x1xbf16> to vector<160x1xf32>
    %86 = arith.extf %84 : vector<1x128xbf16> to vector<1x128xf32>
    %87 = vector.broadcast %85 : vector<160x1xf32> to vector<160x128xf32>
    %88 = vector.broadcast %86 : vector<1x128xf32> to vector<160x128xf32>
    %89 = arith.mulf %87, %88 : vector<160x128xf32>
    %90 = arith.addf %80, %89 : vector<160x128xf32>
    %c0_39 = arith.constant 0 : index
    %c0_40 = arith.constant 0 : index
    %91 = vector.load %arg3[%c0_39, %c0_40] : memref<3x128xf32, #tpu.memory_space<vmem>>, vector<1x128xf32>
    %c1_41 = arith.constant 1 : index
    %c0_42 = arith.constant 0 : index
    %92 = vector.load %arg3[%c1_41, %c0_42] : memref<3x128xf32, #tpu.memory_space<vmem>>, vector<1x128xf32>
    %c2_43 = arith.constant 2 : index
    %c0_44 = arith.constant 0 : index
    %93 = vector.load %arg3[%c2_43, %c0_44] : memref<3x128xf32, #tpu.memory_space<vmem>>, vector<1x128xf32>
    %94 = vector.broadcast %91 : vector<1x128xf32> to vector<160x128xf32>
    %95 = arith.addf %90, %94 : vector<160x128xf32>
    %cst_45 = arith.constant 0.000000e+00 : f32
    %96 = vector.broadcast %cst_45 : f32 to vector<160x128xf32>
    %97 = arith.maximumf %95, %96 : vector<160x128xf32>
    %98 = vector.broadcast %92 : vector<1x128xf32> to vector<160x128xf32>
    %99 = arith.mulf %97, %98 : vector<160x128xf32>
    %100 = vector.broadcast %93 : vector<1x128xf32> to vector<160x128xf32>
    %101 = arith.addf %99, %100 : vector<160x128xf32>
    %102 = arith.truncf %101 : vector<160x128xf32> to vector<160x128xbf16>
    %c0_46 = arith.constant 0 : index
    %c0_47 = arith.constant 0 : index
    %c0_48 = arith.constant 0 : index
    %103 = vector.load %arg4[%c0_46, %c0_47, %c0_48] : memref<1x160x128xbf16, #tpu.memory_space<vmem>>, vector<1x160x128xbf16>
    %104 = vector.shape_cast %103 : vector<1x160x128xbf16> to vector<160x128xbf16>
    %105 = vector.shape_cast %102 : vector<160x128xbf16> to vector<1x160x128xbf16>
    tpu.vector_store %arg4[%c0_46, %c0_47, %c0_48], %105 {strides = array<i32>} : memref<1x160x128xbf16, #tpu.memory_space<vmem>>, vector<1x160x128xbf16>,
    return
  }
  func.func @transform_0(%arg0: i32) -> (i32, i32, i32) {
    %c0_i32 = arith.constant 0 : i32
    %c0_i32_0 = arith.constant 0 : i32
    %c0_i32_1 = arith.constant 0 : i32
    return %arg0, %c0_i32, %c0_i32_0 : i32, i32, i32
  }
  func.func @transform_1(%arg0: i32) -> (i32, i32, i32) {
    %c0_i32 = arith.constant 0 : i32
    %c0_i32_0 = arith.constant 0 : i32
    %c0_i32_1 = arith.constant 0 : i32
    %c0_i32_2 = arith.constant 0 : i32
    return %c0_i32, %c0_i32_0, %c0_i32_1 : i32, i32, i32
  }
  func.func @transform_2(%arg0: i32) -> (i32, i32) {
    %c0_i32 = arith.constant 0 : i32
    %c0_i32_0 = arith.constant 0 : i32
    %c0_i32_1 = arith.constant 0 : i32
    return %c0_i32, %c0_i32_0 : i32, i32
  }
  func.func @transform_3(%arg0: i32) -> (i32, i32, i32) {
    %c0_i32 = arith.constant 0 : i32
    %c0_i32_0 = arith.constant 0 : i32
    %c0_i32_1 = arith.constant 0 : i32
    return %arg0, %c0_i32, %c0_i32_0 : i32, i32, i32
  }
}

module attributes {stable_mosaic.version = 11 : i64} {
  func.func @_conv3x3_kernel(%arg0: i32, %arg1: memref<1x182x128xbf16, #tpu.memory_space<vmem>>, %arg2: memref<9x128x128xbf16, #tpu.memory_space<vmem>>, %arg3: memref<3x128xf32, #tpu.memory_space<vmem>>, %arg4: memref<1x160x128xbf16, #tpu.memory_space<vmem>>) attributes {dimension_semantics = [#tpu.dimension_semantics<parallel>], iteration_bounds = array<i64: 2>, scalar_prefetch = 0 : i64, scratch_operands = 0 : i64, tpu.core_type = #tpu.core_type<tc>, window_params = [{transform_indices = @transform_0, window_bounds = array<i64: 1, 182, 128>}, {pipeline_mode = #tpu.pipeline_mode<synchronous>, transform_indices = @transform_1, window_bounds = array<i64: 9, 128, 128>}, {pipeline_mode = #tpu.pipeline_mode<synchronous>, transform_indices = @transform_2, window_bounds = array<i64: 3, 128>}, {transform_indices = @transform_3, window_bounds = array<i64: 1, 160, 128>}]} {
    %cst = arith.constant 0.000000e+00 : f32
    %0 = vector.broadcast %cst : f32 to vector<160x128xf32>
    %c0 = arith.constant 0 : index
    %c0_0 = arith.constant 0 : index
    %c0_1 = arith.constant 0 : index
    %1 = vector.load %arg1[%c0, %c0_0, %c0_1] : memref<1x182x128xbf16, #tpu.memory_space<vmem>>, vector<1x160x128xbf16>
    %2 = vector.shape_cast %1 : vector<1x160x128xbf16> to vector<160x128xbf16>
    %c0_2 = arith.constant 0 : index
    %c0_3 = arith.constant 0 : index
    %c0_4 = arith.constant 0 : index
    %3 = vector.load %arg2[%c0_2, %c0_3, %c0_4] : memref<9x128x128xbf16, #tpu.memory_space<vmem>>, vector<1x128x128xbf16>
    %4 = vector.shape_cast %3 : vector<1x128x128xbf16> to vector<128x128xbf16>
    %cst_5 = arith.constant dense<0.000000e+00> : vector<160x128xf32>
    %5 = tpu.matmul %2, %4, %cst_5 {dimension_numbers = #tpu.dot_dimension_numbers<[1], [0], [0], [1], [0, 0, 1, 1], [], []>} : vector<160x128xbf16>, vector<128x128xbf16>, vector<160x128xf32> -> vector<160x128xf32>
    %6 = arith.addf %0, %5 : vector<160x128xf32>
    %c0_6 = arith.constant 0 : index
    %c1 = arith.constant 1 : index
    %c0_7 = arith.constant 0 : index
    %7 = vector.load %arg1[%c0_6, %c1, %c0_7] : memref<1x182x128xbf16, #tpu.memory_space<vmem>>, vector<1x160x128xbf16>
    %8 = vector.shape_cast %7 : vector<1x160x128xbf16> to vector<160x128xbf16>
    %c1_8 = arith.constant 1 : index
    %c0_9 = arith.constant 0 : index
    %c0_10 = arith.constant 0 : index
    %9 = vector.load %arg2[%c1_8, %c0_9, %c0_10] : memref<9x128x128xbf16, #tpu.memory_space<vmem>>, vector<1x128x128xbf16>
    %10 = vector.shape_cast %9 : vector<1x128x128xbf16> to vector<128x128xbf16>
    %cst_11 = arith.constant dense<0.000000e+00> : vector<160x128xf32>
    %11 = tpu.matmul %8, %10, %cst_11 {dimension_numbers = #tpu.dot_dimension_numbers<[1], [0], [0], [1], [0, 0, 1, 1], [], []>} : vector<160x128xbf16>, vector<128x128xbf16>, vector<160x128xf32> -> vector<160x128xf32>
    %12 = arith.addf %6, %11 : vector<160x128xf32>
    %c0_12 = arith.constant 0 : index
    %c2 = arith.constant 2 : index
    %c0_13 = arith.constant 0 : index
    %13 = vector.load %arg1[%c0_12, %c2, %c0_13] : memref<1x182x128xbf16, #tpu.memory_space<vmem>>, vector<1x160x128xbf16>
    %14 = vector.shape_cast %13 : vector<1x160x128xbf16> to vector<160x128xbf16>
    %c2_14 = arith.constant 2 : index
    %c0_15 = arith.constant 0 : index
    %c0_16 = arith.constant 0 : index
    %15 = vector.load %arg2[%c2_14, %c0_15, %c0_16] : memref<9x128x128xbf16, #tpu.memory_space<vmem>>, vector<1x128x128xbf16>
    %16 = vector.shape_cast %15 : vector<1x128x128xbf16> to vector<128x128xbf16>
    %cst_17 = arith.constant dense<0.000000e+00> : vector<160x128xf32>
    %17 = tpu.matmul %14, %16, %cst_17 {dimension_numbers = #tpu.dot_dimension_numbers<[1], [0], [0], [1], [0, 0, 1, 1], [], []>} : vector<160x128xbf16>, vector<128x128xbf16>, vector<160x128xf32> -> vector<160x128xf32>
    %18 = arith.addf %12, %17 : vector<160x128xf32>
    %c0_18 = arith.constant 0 : index
    %c10 = arith.constant 10 : index
    %c0_19 = arith.constant 0 : index
    %19 = vector.load %arg1[%c0_18, %c10, %c0_19] : memref<1x182x128xbf16, #tpu.memory_space<vmem>>, vector<1x160x128xbf16>
    %20 = vector.shape_cast %19 : vector<1x160x128xbf16> to vector<160x128xbf16>
    %c3 = arith.constant 3 : index
    %c0_20 = arith.constant 0 : index
    %c0_21 = arith.constant 0 : index
    %21 = vector.load %arg2[%c3, %c0_20, %c0_21] : memref<9x128x128xbf16, #tpu.memory_space<vmem>>, vector<1x128x128xbf16>
    %22 = vector.shape_cast %21 : vector<1x128x128xbf16> to vector<128x128xbf16>
    %cst_22 = arith.constant dense<0.000000e+00> : vector<160x128xf32>
    %23 = tpu.matmul %20, %22, %cst_22 {dimension_numbers = #tpu.dot_dimension_numbers<[1], [0], [0], [1], [0, 0, 1, 1], [], []>} : vector<160x128xbf16>, vector<128x128xbf16>, vector<160x128xf32> -> vector<160x128xf32>
    %24 = arith.addf %18, %23 : vector<160x128xf32>
    %c0_23 = arith.constant 0 : index
    %c11 = arith.constant 11 : index
    %c0_24 = arith.constant 0 : index
    %25 = vector.load %arg1[%c0_23, %c11, %c0_24] : memref<1x182x128xbf16, #tpu.memory_space<vmem>>, vector<1x160x128xbf16>
    %26 = vector.shape_cast %25 : vector<1x160x128xbf16> to vector<160x128xbf16>
    %c4 = arith.constant 4 : index
    %c0_25 = arith.constant 0 : index
    %c0_26 = arith.constant 0 : index
    %27 = vector.load %arg2[%c4, %c0_25, %c0_26] : memref<9x128x128xbf16, #tpu.memory_space<vmem>>, vector<1x128x128xbf16>
    %28 = vector.shape_cast %27 : vector<1x128x128xbf16> to vector<128x128xbf16>
    %cst_27 = arith.constant dense<0.000000e+00> : vector<160x128xf32>
    %29 = tpu.matmul %26, %28, %cst_27 {dimension_numbers = #tpu.dot_dimension_numbers<[1], [0], [0], [1], [0, 0, 1, 1], [], []>} : vector<160x128xbf16>, vector<128x128xbf16>, vector<160x128xf32> -> vector<160x128xf32>
    %30 = arith.addf %24, %29 : vector<160x128xf32>
    %c0_28 = arith.constant 0 : index
    %c12 = arith.constant 12 : index
    %c0_29 = arith.constant 0 : index
    %31 = vector.load %arg1[%c0_28, %c12, %c0_29] : memref<1x182x128xbf16, #tpu.memory_space<vmem>>, vector<1x160x128xbf16>
    %32 = vector.shape_cast %31 : vector<1x160x128xbf16> to vector<160x128xbf16>
    %c5 = arith.constant 5 : index
    %c0_30 = arith.constant 0 : index
    %c0_31 = arith.constant 0 : index
    %33 = vector.load %arg2[%c5, %c0_30, %c0_31] : memref<9x128x128xbf16, #tpu.memory_space<vmem>>, vector<1x128x128xbf16>
    %34 = vector.shape_cast %33 : vector<1x128x128xbf16> to vector<128x128xbf16>
    %cst_32 = arith.constant dense<0.000000e+00> : vector<160x128xf32>
    %35 = tpu.matmul %32, %34, %cst_32 {dimension_numbers = #tpu.dot_dimension_numbers<[1], [0], [0], [1], [0, 0, 1, 1], [], []>} : vector<160x128xbf16>, vector<128x128xbf16>, vector<160x128xf32> -> vector<160x128xf32>
    %36 = arith.addf %30, %35 : vector<160x128xf32>
    %c0_33 = arith.constant 0 : index
    %c20 = arith.constant 20 : index
    %c0_34 = arith.constant 0 : index
    %37 = vector.load %arg1[%c0_33, %c20, %c0_34] : memref<1x182x128xbf16, #tpu.memory_space<vmem>>, vector<1x160x128xbf16>
    %38 = vector.shape_cast %37 : vector<1x160x128xbf16> to vector<160x128xbf16>
    %c6 = arith.constant 6 : index
    %c0_35 = arith.constant 0 : index
    %c0_36 = arith.constant 0 : index
    %39 = vector.load %arg2[%c6, %c0_35, %c0_36] : memref<9x128x128xbf16, #tpu.memory_space<vmem>>, vector<1x128x128xbf16>
    %40 = vector.shape_cast %39 : vector<1x128x128xbf16> to vector<128x128xbf16>
    %cst_37 = arith.constant dense<0.000000e+00> : vector<160x128xf32>
    %41 = tpu.matmul %38, %40, %cst_37 {dimension_numbers = #tpu.dot_dimension_numbers<[1], [0], [0], [1], [0, 0, 1, 1], [], []>} : vector<160x128xbf16>, vector<128x128xbf16>, vector<160x128xf32> -> vector<160x128xf32>
    %42 = arith.addf %36, %41 : vector<160x128xf32>
    %c0_38 = arith.constant 0 : index
    %c21 = arith.constant 21 : index
    %c0_39 = arith.constant 0 : index
    %43 = vector.load %arg1[%c0_38, %c21, %c0_39] : memref<1x182x128xbf16, #tpu.memory_space<vmem>>, vector<1x160x128xbf16>
    %44 = vector.shape_cast %43 : vector<1x160x128xbf16> to vector<160x128xbf16>
    %c7 = arith.constant 7 : index
    %c0_40 = arith.constant 0 : index
    %c0_41 = arith.constant 0 : index
    %45 = vector.load %arg2[%c7, %c0_40, %c0_41] : memref<9x128x128xbf16, #tpu.memory_space<vmem>>, vector<1x128x128xbf16>
    %46 = vector.shape_cast %45 : vector<1x128x128xbf16> to vector<128x128xbf16>
    %cst_42 = arith.constant dense<0.000000e+00> : vector<160x128xf32>
    %47 = tpu.matmul %44, %46, %cst_42 {dimension_numbers = #tpu.dot_dimension_numbers<[1], [0], [0], [1], [0, 0, 1, 1], [], []>} : vector<160x128xbf16>, vector<128x128xbf16>, vector<160x128xf32> -> vector<160x128xf32>
    %48 = arith.addf %42, %47 : vector<160x128xf32>
    %c0_43 = arith.constant 0 : index
    %c22 = arith.constant 22 : index
    %c0_44 = arith.constant 0 : index
    %49 = vector.load %arg1[%c0_43, %c22, %c0_44] : memref<1x182x128xbf16, #tpu.memory_space<vmem>>, vector<1x160x128xbf16>
    %50 = vector.shape_cast %49 : vector<1x160x128xbf16> to vector<160x128xbf16>
    %c8 = arith.constant 8 : index
    %c0_45 = arith.constant 0 : index
    %c0_46 = arith.constant 0 : index
    %51 = vector.load %arg2[%c8, %c0_45, %c0_46] : memref<9x128x128xbf16, #tpu.memory_space<vmem>>, vector<1x128x128xbf16>
    %52 = vector.shape_cast %51 : vector<1x128x128xbf16> to vector<128x128xbf16>
    %cst_47 = arith.constant dense<0.000000e+00> : vector<160x128xf32>
    %53 = tpu.matmul %50, %52, %cst_47 {dimension_numbers = #tpu.dot_dimension_numbers<[1], [0], [0], [1], [0, 0, 1, 1], [], []>} : vector<160x128xbf16>, vector<128x128xbf16>, vector<160x128xf32> -> vector<160x128xf32>
    %54 = arith.addf %48, %53 : vector<160x128xf32>
    %c0_48 = arith.constant 0 : index
    %c0_49 = arith.constant 0 : index
    %55 = vector.load %arg3[%c0_48, %c0_49] : memref<3x128xf32, #tpu.memory_space<vmem>>, vector<1x128xf32>
    %c1_50 = arith.constant 1 : index
    %c0_51 = arith.constant 0 : index
    %56 = vector.load %arg3[%c1_50, %c0_51] : memref<3x128xf32, #tpu.memory_space<vmem>>, vector<1x128xf32>
    %c2_52 = arith.constant 2 : index
    %c0_53 = arith.constant 0 : index
    %57 = vector.load %arg3[%c2_52, %c0_53] : memref<3x128xf32, #tpu.memory_space<vmem>>, vector<1x128xf32>
    %58 = vector.broadcast %55 : vector<1x128xf32> to vector<160x128xf32>
    %59 = arith.addf %54, %58 : vector<160x128xf32>
    %cst_54 = arith.constant 0.000000e+00 : f32
    %60 = vector.broadcast %cst_54 : f32 to vector<160x128xf32>
    %61 = arith.maximumf %59, %60 : vector<160x128xf32>
    %62 = vector.broadcast %56 : vector<1x128xf32> to vector<160x128xf32>
    %63 = arith.mulf %61, %62 : vector<160x128xf32>
    %64 = vector.broadcast %57 : vector<1x128xf32> to vector<160x128xf32>
    %65 = arith.addf %63, %64 : vector<160x128xf32>
    %66 = arith.truncf %65 : vector<160x128xf32> to vector<160x128xbf16>
    %c0_55 = arith.constant 0 : index
    %c0_56 = arith.constant 0 : index
    %c0_57 = arith.constant 0 : index
    %67 = vector.load %arg4[%c0_55, %c0_56, %c0_57] : memref<1x160x128xbf16, #tpu.memory_space<vmem>>, vector<1x160x128xbf16>
    %68 = vector.shape_cast %67 : vector<1x160x128xbf16> to vector<160x128xbf16>
    %69 = vector.shape_cast %66 : vector<160x128xbf16> to vector<1x160x128xbf16>
    tpu.vector_store %arg4[%c0_55, %c0_56, %c0_57], %69 {strides = array<i32>} : memref<1x160x128xbf16, #tpu.memory_space<vmem>>, vector<1x160x128xbf16>,
    return
  }
  func.func @transform_0(%arg0: i32) -> (i32, i32, i32) {
    %c0_i32 = arith.constant 0 : i32
    %c0_i32_0 = arith.constant 0 : i32
    %c0_i32_1 = arith.constant 0 : i32
    return %arg0, %c0_i32, %c0_i32_0 : i32, i32, i32
  }
  func.func @transform_1(%arg0: i32) -> (i32, i32, i32) {
    %c0_i32 = arith.constant 0 : i32
    %c0_i32_0 = arith.constant 0 : i32
    %c0_i32_1 = arith.constant 0 : i32
    %c0_i32_2 = arith.constant 0 : i32
    return %c0_i32, %c0_i32_0, %c0_i32_1 : i32, i32, i32
  }
  func.func @transform_2(%arg0: i32) -> (i32, i32) {
    %c0_i32 = arith.constant 0 : i32
    %c0_i32_0 = arith.constant 0 : i32
    %c0_i32_1 = arith.constant 0 : i32
    return %c0_i32, %c0_i32_0 : i32, i32
  }
  func.func @transform_3(%arg0: i32) -> (i32, i32, i32) {
    %c0_i32 = arith.constant 0 : i32
    %c0_i32_0 = arith.constant 0 : i32
    %c0_i32_1 = arith.constant 0 : i32
    return %arg0, %c0_i32, %c0_i32_0 : i32, i32, i32
  }
}

module attributes {stable_mosaic.version = 11 : i64} {
  func.func @_max_kernel(%arg0: i32, %arg1: memref<1x8x8x128xbf16, #tpu.memory_space<vmem>>, %arg2: memref<1x8x8x128xbf16, #tpu.memory_space<vmem>>, %arg3: memref<1x8x8x128xbf16, #tpu.memory_space<vmem>>) attributes {dimension_semantics = [#tpu.dimension_semantics<parallel>], iteration_bounds = array<i64: 2>, scalar_prefetch = 0 : i64, scratch_operands = 0 : i64, tpu.core_type = #tpu.core_type<tc>, window_params = [{transform_indices = @transform_0, window_bounds = array<i64: 1, 8, 8, 128>}, {transform_indices = @transform_1, window_bounds = array<i64: 1, 8, 8, 128>}, {transform_indices = @transform_2, window_bounds = array<i64: 1, 8, 8, 128>}]} {
    %c0 = arith.constant 0 : index
    %c0_0 = arith.constant 0 : index
    %c0_1 = arith.constant 0 : index
    %c0_2 = arith.constant 0 : index
    %0 = vector.load %arg1[%c0, %c0_0, %c0_1, %c0_2] : memref<1x8x8x128xbf16, #tpu.memory_space<vmem>>, vector<1x8x8x128xbf16>
    %c0_3 = arith.constant 0 : index
    %c0_4 = arith.constant 0 : index
    %c0_5 = arith.constant 0 : index
    %c0_6 = arith.constant 0 : index
    %1 = vector.load %arg2[%c0_3, %c0_4, %c0_5, %c0_6] : memref<1x8x8x128xbf16, #tpu.memory_space<vmem>>, vector<1x8x8x128xbf16>
    %2 = arith.maximumf %0, %1 : vector<1x8x8x128xbf16>
    %c0_7 = arith.constant 0 : index
    %c0_8 = arith.constant 0 : index
    %c0_9 = arith.constant 0 : index
    %c0_10 = arith.constant 0 : index
    %3 = vector.load %arg3[%c0_7, %c0_8, %c0_9, %c0_10] : memref<1x8x8x128xbf16, #tpu.memory_space<vmem>>, vector<1x8x8x128xbf16>
    tpu.vector_store %arg3[%c0_7, %c0_8, %c0_9, %c0_10], %2 {strides = array<i32>} : memref<1x8x8x128xbf16, #tpu.memory_space<vmem>>, vector<1x8x8x128xbf16>,
    return
  }
  func.func @transform_0(%arg0: i32) -> (i32, i32, i32, i32) {
    %c0_i32 = arith.constant 0 : i32
    %c0_i32_0 = arith.constant 0 : i32
    %c0_i32_1 = arith.constant 0 : i32
    %c0_i32_2 = arith.constant 0 : i32
    return %arg0, %c0_i32, %c0_i32_0, %c0_i32_1 : i32, i32, i32, i32
  }
  func.func @transform_1(%arg0: i32) -> (i32, i32, i32, i32) {
    %c0_i32 = arith.constant 0 : i32
    %c0_i32_0 = arith.constant 0 : i32
    %c0_i32_1 = arith.constant 0 : i32
    %c0_i32_2 = arith.constant 0 : i32
    return %arg0, %c0_i32, %c0_i32_0, %c0_i32_1 : i32, i32, i32, i32
  }
  func.func @transform_2(%arg0: i32) -> (i32, i32, i32, i32) {
    %c0_i32 = arith.constant 0 : i32
    %c0_i32_0 = arith.constant 0 : i32
    %c0_i32_1 = arith.constant 0 : i32
    %c0_i32_2 = arith.constant 0 : i32
    return %arg0, %c0_i32, %c0_i32_0, %c0_i32_1 : i32, i32, i32, i32
  }
}

module attributes {stable_mosaic.version = 11 : i64} {
  func.func @_conv3x3_kernel(%arg0: i32, %arg1: memref<1x102x128xbf16, #tpu.memory_space<vmem>>, %arg2: memref<9x128x128xbf16, #tpu.memory_space<vmem>>, %arg3: memref<3x128xf32, #tpu.memory_space<vmem>>, %arg4: memref<1x80x128xbf16, #tpu.memory_space<vmem>>) attributes {dimension_semantics = [#tpu.dimension_semantics<parallel>], iteration_bounds = array<i64: 2>, scalar_prefetch = 0 : i64, scratch_operands = 0 : i64, tpu.core_type = #tpu.core_type<tc>, window_params = [{transform_indices = @transform_0, window_bounds = array<i64: 1, 102, 128>}, {pipeline_mode = #tpu.pipeline_mode<synchronous>, transform_indices = @transform_1, window_bounds = array<i64: 9, 128, 128>}, {pipeline_mode = #tpu.pipeline_mode<synchronous>, transform_indices = @transform_2, window_bounds = array<i64: 3, 128>}, {transform_indices = @transform_3, window_bounds = array<i64: 1, 80, 128>}]} {
    %cst = arith.constant 0.000000e+00 : f32
    %0 = vector.broadcast %cst : f32 to vector<80x128xf32>
    %c0 = arith.constant 0 : index
    %c0_0 = arith.constant 0 : index
    %c0_1 = arith.constant 0 : index
    %1 = vector.load %arg1[%c0, %c0_0, %c0_1] : memref<1x102x128xbf16, #tpu.memory_space<vmem>>, vector<1x80x128xbf16>
    %2 = vector.shape_cast %1 : vector<1x80x128xbf16> to vector<80x128xbf16>
    %c0_2 = arith.constant 0 : index
    %c0_3 = arith.constant 0 : index
    %c0_4 = arith.constant 0 : index
    %3 = vector.load %arg2[%c0_2, %c0_3, %c0_4] : memref<9x128x128xbf16, #tpu.memory_space<vmem>>, vector<1x128x128xbf16>
    %4 = vector.shape_cast %3 : vector<1x128x128xbf16> to vector<128x128xbf16>
    %cst_5 = arith.constant dense<0.000000e+00> : vector<80x128xf32>
    %5 = tpu.matmul %2, %4, %cst_5 {dimension_numbers = #tpu.dot_dimension_numbers<[1], [0], [0], [1], [0, 0, 1, 1], [], []>} : vector<80x128xbf16>, vector<128x128xbf16>, vector<80x128xf32> -> vector<80x128xf32>
    %6 = arith.addf %0, %5 : vector<80x128xf32>
    %c0_6 = arith.constant 0 : index
    %c1 = arith.constant 1 : index
    %c0_7 = arith.constant 0 : index
    %7 = vector.load %arg1[%c0_6, %c1, %c0_7] : memref<1x102x128xbf16, #tpu.memory_space<vmem>>, vector<1x80x128xbf16>
    %8 = vector.shape_cast %7 : vector<1x80x128xbf16> to vector<80x128xbf16>
    %c1_8 = arith.constant 1 : index
    %c0_9 = arith.constant 0 : index
    %c0_10 = arith.constant 0 : index
    %9 = vector.load %arg2[%c1_8, %c0_9, %c0_10] : memref<9x128x128xbf16, #tpu.memory_space<vmem>>, vector<1x128x128xbf16>
    %10 = vector.shape_cast %9 : vector<1x128x128xbf16> to vector<128x128xbf16>
    %cst_11 = arith.constant dense<0.000000e+00> : vector<80x128xf32>
    %11 = tpu.matmul %8, %10, %cst_11 {dimension_numbers = #tpu.dot_dimension_numbers<[1], [0], [0], [1], [0, 0, 1, 1], [], []>} : vector<80x128xbf16>, vector<128x128xbf16>, vector<80x128xf32> -> vector<80x128xf32>
    %12 = arith.addf %6, %11 : vector<80x128xf32>
    %c0_12 = arith.constant 0 : index
    %c2 = arith.constant 2 : index
    %c0_13 = arith.constant 0 : index
    %13 = vector.load %arg1[%c0_12, %c2, %c0_13] : memref<1x102x128xbf16, #tpu.memory_space<vmem>>, vector<1x80x128xbf16>
    %14 = vector.shape_cast %13 : vector<1x80x128xbf16> to vector<80x128xbf16>
    %c2_14 = arith.constant 2 : index
    %c0_15 = arith.constant 0 : index
    %c0_16 = arith.constant 0 : index
    %15 = vector.load %arg2[%c2_14, %c0_15, %c0_16] : memref<9x128x128xbf16, #tpu.memory_space<vmem>>, vector<1x128x128xbf16>
    %16 = vector.shape_cast %15 : vector<1x128x128xbf16> to vector<128x128xbf16>
    %cst_17 = arith.constant dense<0.000000e+00> : vector<80x128xf32>
    %17 = tpu.matmul %14, %16, %cst_17 {dimension_numbers = #tpu.dot_dimension_numbers<[1], [0], [0], [1], [0, 0, 1, 1], [], []>} : vector<80x128xbf16>, vector<128x128xbf16>, vector<80x128xf32> -> vector<80x128xf32>
    %18 = arith.addf %12, %17 : vector<80x128xf32>
    %c0_18 = arith.constant 0 : index
    %c10 = arith.constant 10 : index
    %c0_19 = arith.constant 0 : index
    %19 = vector.load %arg1[%c0_18, %c10, %c0_19] : memref<1x102x128xbf16, #tpu.memory_space<vmem>>, vector<1x80x128xbf16>
    %20 = vector.shape_cast %19 : vector<1x80x128xbf16> to vector<80x128xbf16>
    %c3 = arith.constant 3 : index
    %c0_20 = arith.constant 0 : index
    %c0_21 = arith.constant 0 : index
    %21 = vector.load %arg2[%c3, %c0_20, %c0_21] : memref<9x128x128xbf16, #tpu.memory_space<vmem>>, vector<1x128x128xbf16>
    %22 = vector.shape_cast %21 : vector<1x128x128xbf16> to vector<128x128xbf16>
    %cst_22 = arith.constant dense<0.000000e+00> : vector<80x128xf32>
    %23 = tpu.matmul %20, %22, %cst_22 {dimension_numbers = #tpu.dot_dimension_numbers<[1], [0], [0], [1], [0, 0, 1, 1], [], []>} : vector<80x128xbf16>, vector<128x128xbf16>, vector<80x128xf32> -> vector<80x128xf32>
    %24 = arith.addf %18, %23 : vector<80x128xf32>
    %c0_23 = arith.constant 0 : index
    %c11 = arith.constant 11 : index
    %c0_24 = arith.constant 0 : index
    %25 = vector.load %arg1[%c0_23, %c11, %c0_24] : memref<1x102x128xbf16, #tpu.memory_space<vmem>>, vector<1x80x128xbf16>
    %26 = vector.shape_cast %25 : vector<1x80x128xbf16> to vector<80x128xbf16>
    %c4 = arith.constant 4 : index
    %c0_25 = arith.constant 0 : index
    %c0_26 = arith.constant 0 : index
    %27 = vector.load %arg2[%c4, %c0_25, %c0_26] : memref<9x128x128xbf16, #tpu.memory_space<vmem>>, vector<1x128x128xbf16>
    %28 = vector.shape_cast %27 : vector<1x128x128xbf16> to vector<128x128xbf16>
    %cst_27 = arith.constant dense<0.000000e+00> : vector<80x128xf32>
    %29 = tpu.matmul %26, %28, %cst_27 {dimension_numbers = #tpu.dot_dimension_numbers<[1], [0], [0], [1], [0, 0, 1, 1], [], []>} : vector<80x128xbf16>, vector<128x128xbf16>, vector<80x128xf32> -> vector<80x128xf32>
    %30 = arith.addf %24, %29 : vector<80x128xf32>
    %c0_28 = arith.constant 0 : index
    %c12 = arith.constant 12 : index
    %c0_29 = arith.constant 0 : index
    %31 = vector.load %arg1[%c0_28, %c12, %c0_29] : memref<1x102x128xbf16, #tpu.memory_space<vmem>>, vector<1x80x128xbf16>
    %32 = vector.shape_cast %31 : vector<1x80x128xbf16> to vector<80x128xbf16>
    %c5 = arith.constant 5 : index
    %c0_30 = arith.constant 0 : index
    %c0_31 = arith.constant 0 : index
    %33 = vector.load %arg2[%c5, %c0_30, %c0_31] : memref<9x128x128xbf16, #tpu.memory_space<vmem>>, vector<1x128x128xbf16>
    %34 = vector.shape_cast %33 : vector<1x128x128xbf16> to vector<128x128xbf16>
    %cst_32 = arith.constant dense<0.000000e+00> : vector<80x128xf32>
    %35 = tpu.matmul %32, %34, %cst_32 {dimension_numbers = #tpu.dot_dimension_numbers<[1], [0], [0], [1], [0, 0, 1, 1], [], []>} : vector<80x128xbf16>, vector<128x128xbf16>, vector<80x128xf32> -> vector<80x128xf32>
    %36 = arith.addf %30, %35 : vector<80x128xf32>
    %c0_33 = arith.constant 0 : index
    %c20 = arith.constant 20 : index
    %c0_34 = arith.constant 0 : index
    %37 = vector.load %arg1[%c0_33, %c20, %c0_34] : memref<1x102x128xbf16, #tpu.memory_space<vmem>>, vector<1x80x128xbf16>
    %38 = vector.shape_cast %37 : vector<1x80x128xbf16> to vector<80x128xbf16>
    %c6 = arith.constant 6 : index
    %c0_35 = arith.constant 0 : index
    %c0_36 = arith.constant 0 : index
    %39 = vector.load %arg2[%c6, %c0_35, %c0_36] : memref<9x128x128xbf16, #tpu.memory_space<vmem>>, vector<1x128x128xbf16>
    %40 = vector.shape_cast %39 : vector<1x128x128xbf16> to vector<128x128xbf16>
    %cst_37 = arith.constant dense<0.000000e+00> : vector<80x128xf32>
    %41 = tpu.matmul %38, %40, %cst_37 {dimension_numbers = #tpu.dot_dimension_numbers<[1], [0], [0], [1], [0, 0, 1, 1], [], []>} : vector<80x128xbf16>, vector<128x128xbf16>, vector<80x128xf32> -> vector<80x128xf32>
    %42 = arith.addf %36, %41 : vector<80x128xf32>
    %c0_38 = arith.constant 0 : index
    %c21 = arith.constant 21 : index
    %c0_39 = arith.constant 0 : index
    %43 = vector.load %arg1[%c0_38, %c21, %c0_39] : memref<1x102x128xbf16, #tpu.memory_space<vmem>>, vector<1x80x128xbf16>
    %44 = vector.shape_cast %43 : vector<1x80x128xbf16> to vector<80x128xbf16>
    %c7 = arith.constant 7 : index
    %c0_40 = arith.constant 0 : index
    %c0_41 = arith.constant 0 : index
    %45 = vector.load %arg2[%c7, %c0_40, %c0_41] : memref<9x128x128xbf16, #tpu.memory_space<vmem>>, vector<1x128x128xbf16>
    %46 = vector.shape_cast %45 : vector<1x128x128xbf16> to vector<128x128xbf16>
    %cst_42 = arith.constant dense<0.000000e+00> : vector<80x128xf32>
    %47 = tpu.matmul %44, %46, %cst_42 {dimension_numbers = #tpu.dot_dimension_numbers<[1], [0], [0], [1], [0, 0, 1, 1], [], []>} : vector<80x128xbf16>, vector<128x128xbf16>, vector<80x128xf32> -> vector<80x128xf32>
    %48 = arith.addf %42, %47 : vector<80x128xf32>
    %c0_43 = arith.constant 0 : index
    %c22 = arith.constant 22 : index
    %c0_44 = arith.constant 0 : index
    %49 = vector.load %arg1[%c0_43, %c22, %c0_44] : memref<1x102x128xbf16, #tpu.memory_space<vmem>>, vector<1x80x128xbf16>
    %50 = vector.shape_cast %49 : vector<1x80x128xbf16> to vector<80x128xbf16>
    %c8 = arith.constant 8 : index
    %c0_45 = arith.constant 0 : index
    %c0_46 = arith.constant 0 : index
    %51 = vector.load %arg2[%c8, %c0_45, %c0_46] : memref<9x128x128xbf16, #tpu.memory_space<vmem>>, vector<1x128x128xbf16>
    %52 = vector.shape_cast %51 : vector<1x128x128xbf16> to vector<128x128xbf16>
    %cst_47 = arith.constant dense<0.000000e+00> : vector<80x128xf32>
    %53 = tpu.matmul %50, %52, %cst_47 {dimension_numbers = #tpu.dot_dimension_numbers<[1], [0], [0], [1], [0, 0, 1, 1], [], []>} : vector<80x128xbf16>, vector<128x128xbf16>, vector<80x128xf32> -> vector<80x128xf32>
    %54 = arith.addf %48, %53 : vector<80x128xf32>
    %c0_48 = arith.constant 0 : index
    %c0_49 = arith.constant 0 : index
    %55 = vector.load %arg3[%c0_48, %c0_49] : memref<3x128xf32, #tpu.memory_space<vmem>>, vector<1x128xf32>
    %c1_50 = arith.constant 1 : index
    %c0_51 = arith.constant 0 : index
    %56 = vector.load %arg3[%c1_50, %c0_51] : memref<3x128xf32, #tpu.memory_space<vmem>>, vector<1x128xf32>
    %c2_52 = arith.constant 2 : index
    %c0_53 = arith.constant 0 : index
    %57 = vector.load %arg3[%c2_52, %c0_53] : memref<3x128xf32, #tpu.memory_space<vmem>>, vector<1x128xf32>
    %58 = vector.broadcast %55 : vector<1x128xf32> to vector<80x128xf32>
    %59 = arith.addf %54, %58 : vector<80x128xf32>
    %cst_54 = arith.constant 0.000000e+00 : f32
    %60 = vector.broadcast %cst_54 : f32 to vector<80x128xf32>
    %61 = arith.maximumf %59, %60 : vector<80x128xf32>
    %62 = vector.broadcast %56 : vector<1x128xf32> to vector<80x128xf32>
    %63 = arith.mulf %61, %62 : vector<80x128xf32>
    %64 = vector.broadcast %57 : vector<1x128xf32> to vector<80x128xf32>
    %65 = arith.addf %63, %64 : vector<80x128xf32>
    %66 = arith.truncf %65 : vector<80x128xf32> to vector<80x128xbf16>
    %c0_55 = arith.constant 0 : index
    %c0_56 = arith.constant 0 : index
    %c0_57 = arith.constant 0 : index
    %67 = vector.load %arg4[%c0_55, %c0_56, %c0_57] : memref<1x80x128xbf16, #tpu.memory_space<vmem>>, vector<1x80x128xbf16>
    %68 = vector.shape_cast %67 : vector<1x80x128xbf16> to vector<80x128xbf16>
    %69 = vector.shape_cast %66 : vector<80x128xbf16> to vector<1x80x128xbf16>
    tpu.vector_store %arg4[%c0_55, %c0_56, %c0_57], %69 {strides = array<i32>} : memref<1x80x128xbf16, #tpu.memory_space<vmem>>, vector<1x80x128xbf16>,
    return
  }
  func.func @transform_0(%arg0: i32) -> (i32, i32, i32) {
    %c0_i32 = arith.constant 0 : i32
    %c0_i32_0 = arith.constant 0 : i32
    %c0_i32_1 = arith.constant 0 : i32
    return %arg0, %c0_i32, %c0_i32_0 : i32, i32, i32
  }
  func.func @transform_1(%arg0: i32) -> (i32, i32, i32) {
    %c0_i32 = arith.constant 0 : i32
    %c0_i32_0 = arith.constant 0 : i32
    %c0_i32_1 = arith.constant 0 : i32
    %c0_i32_2 = arith.constant 0 : i32
    return %c0_i32, %c0_i32_0, %c0_i32_1 : i32, i32, i32
  }
  func.func @transform_2(%arg0: i32) -> (i32, i32) {
    %c0_i32 = arith.constant 0 : i32
    %c0_i32_0 = arith.constant 0 : i32
    %c0_i32_1 = arith.constant 0 : i32
    return %c0_i32, %c0_i32_0 : i32, i32
  }
  func.func @transform_3(%arg0: i32) -> (i32, i32, i32) {
    %c0_i32 = arith.constant 0 : i32
    %c0_i32_0 = arith.constant 0 : i32
    %c0_i32_1 = arith.constant 0 : i32
    return %arg0, %c0_i32, %c0_i32_0 : i32, i32, i32
  }
}

module attributes {stable_mosaic.version = 11 : i64} {
  func.func @_conv3x3_kernel(%arg0: i32, %arg1: memref<1x102x128xbf16, #tpu.memory_space<vmem>>, %arg2: memref<9x128x256xbf16, #tpu.memory_space<vmem>>, %arg3: memref<3x256xf32, #tpu.memory_space<vmem>>, %arg4: memref<1x80x256xbf16, #tpu.memory_space<vmem>>) attributes {dimension_semantics = [#tpu.dimension_semantics<parallel>], iteration_bounds = array<i64: 2>, scalar_prefetch = 0 : i64, scratch_operands = 0 : i64, tpu.core_type = #tpu.core_type<tc>, window_params = [{transform_indices = @transform_0, window_bounds = array<i64: 1, 102, 128>}, {pipeline_mode = #tpu.pipeline_mode<synchronous>, transform_indices = @transform_1, window_bounds = array<i64: 9, 128, 256>}, {pipeline_mode = #tpu.pipeline_mode<synchronous>, transform_indices = @transform_2, window_bounds = array<i64: 3, 256>}, {transform_indices = @transform_3, window_bounds = array<i64: 1, 80, 256>}]} {
    %cst = arith.constant 0.000000e+00 : f32
    %0 = vector.broadcast %cst : f32 to vector<80x256xf32>
    %c0 = arith.constant 0 : index
    %c0_0 = arith.constant 0 : index
    %c0_1 = arith.constant 0 : index
    %1 = vector.load %arg1[%c0, %c0_0, %c0_1] : memref<1x102x128xbf16, #tpu.memory_space<vmem>>, vector<1x80x128xbf16>
    %2 = vector.shape_cast %1 : vector<1x80x128xbf16> to vector<80x128xbf16>
    %c0_2 = arith.constant 0 : index
    %c0_3 = arith.constant 0 : index
    %c0_4 = arith.constant 0 : index
    %3 = vector.load %arg2[%c0_2, %c0_3, %c0_4] : memref<9x128x256xbf16, #tpu.memory_space<vmem>>, vector<1x128x256xbf16>
    %4 = vector.shape_cast %3 : vector<1x128x256xbf16> to vector<128x256xbf16>
    %cst_5 = arith.constant dense<0.000000e+00> : vector<80x256xf32>
    %5 = tpu.matmul %2, %4, %cst_5 {dimension_numbers = #tpu.dot_dimension_numbers<[1], [0], [0], [1], [0, 0, 1, 1], [], []>} : vector<80x128xbf16>, vector<128x256xbf16>, vector<80x256xf32> -> vector<80x256xf32>
    %6 = arith.addf %0, %5 : vector<80x256xf32>
    %c0_6 = arith.constant 0 : index
    %c1 = arith.constant 1 : index
    %c0_7 = arith.constant 0 : index
    %7 = vector.load %arg1[%c0_6, %c1, %c0_7] : memref<1x102x128xbf16, #tpu.memory_space<vmem>>, vector<1x80x128xbf16>
    %8 = vector.shape_cast %7 : vector<1x80x128xbf16> to vector<80x128xbf16>
    %c1_8 = arith.constant 1 : index
    %c0_9 = arith.constant 0 : index
    %c0_10 = arith.constant 0 : index
    %9 = vector.load %arg2[%c1_8, %c0_9, %c0_10] : memref<9x128x256xbf16, #tpu.memory_space<vmem>>, vector<1x128x256xbf16>
    %10 = vector.shape_cast %9 : vector<1x128x256xbf16> to vector<128x256xbf16>
    %cst_11 = arith.constant dense<0.000000e+00> : vector<80x256xf32>
    %11 = tpu.matmul %8, %10, %cst_11 {dimension_numbers = #tpu.dot_dimension_numbers<[1], [0], [0], [1], [0, 0, 1, 1], [], []>} : vector<80x128xbf16>, vector<128x256xbf16>, vector<80x256xf32> -> vector<80x256xf32>
    %12 = arith.addf %6, %11 : vector<80x256xf32>
    %c0_12 = arith.constant 0 : index
    %c2 = arith.constant 2 : index
    %c0_13 = arith.constant 0 : index
    %13 = vector.load %arg1[%c0_12, %c2, %c0_13] : memref<1x102x128xbf16, #tpu.memory_space<vmem>>, vector<1x80x128xbf16>
    %14 = vector.shape_cast %13 : vector<1x80x128xbf16> to vector<80x128xbf16>
    %c2_14 = arith.constant 2 : index
    %c0_15 = arith.constant 0 : index
    %c0_16 = arith.constant 0 : index
    %15 = vector.load %arg2[%c2_14, %c0_15, %c0_16] : memref<9x128x256xbf16, #tpu.memory_space<vmem>>, vector<1x128x256xbf16>
    %16 = vector.shape_cast %15 : vector<1x128x256xbf16> to vector<128x256xbf16>
    %cst_17 = arith.constant dense<0.000000e+00> : vector<80x256xf32>
    %17 = tpu.matmul %14, %16, %cst_17 {dimension_numbers = #tpu.dot_dimension_numbers<[1], [0], [0], [1], [0, 0, 1, 1], [], []>} : vector<80x128xbf16>, vector<128x256xbf16>, vector<80x256xf32> -> vector<80x256xf32>
    %18 = arith.addf %12, %17 : vector<80x256xf32>
    %c0_18 = arith.constant 0 : index
    %c10 = arith.constant 10 : index
    %c0_19 = arith.constant 0 : index
    %19 = vector.load %arg1[%c0_18, %c10, %c0_19] : memref<1x102x128xbf16, #tpu.memory_space<vmem>>, vector<1x80x128xbf16>
    %20 = vector.shape_cast %19 : vector<1x80x128xbf16> to vector<80x128xbf16>
    %c3 = arith.constant 3 : index
    %c0_20 = arith.constant 0 : index
    %c0_21 = arith.constant 0 : index
    %21 = vector.load %arg2[%c3, %c0_20, %c0_21] : memref<9x128x256xbf16, #tpu.memory_space<vmem>>, vector<1x128x256xbf16>
    %22 = vector.shape_cast %21 : vector<1x128x256xbf16> to vector<128x256xbf16>
    %cst_22 = arith.constant dense<0.000000e+00> : vector<80x256xf32>
    %23 = tpu.matmul %20, %22, %cst_22 {dimension_numbers = #tpu.dot_dimension_numbers<[1], [0], [0], [1], [0, 0, 1, 1], [], []>} : vector<80x128xbf16>, vector<128x256xbf16>, vector<80x256xf32> -> vector<80x256xf32>
    %24 = arith.addf %18, %23 : vector<80x256xf32>
    %c0_23 = arith.constant 0 : index
    %c11 = arith.constant 11 : index
    %c0_24 = arith.constant 0 : index
    %25 = vector.load %arg1[%c0_23, %c11, %c0_24] : memref<1x102x128xbf16, #tpu.memory_space<vmem>>, vector<1x80x128xbf16>
    %26 = vector.shape_cast %25 : vector<1x80x128xbf16> to vector<80x128xbf16>
    %c4 = arith.constant 4 : index
    %c0_25 = arith.constant 0 : index
    %c0_26 = arith.constant 0 : index
    %27 = vector.load %arg2[%c4, %c0_25, %c0_26] : memref<9x128x256xbf16, #tpu.memory_space<vmem>>, vector<1x128x256xbf16>
    %28 = vector.shape_cast %27 : vector<1x128x256xbf16> to vector<128x256xbf16>
    %cst_27 = arith.constant dense<0.000000e+00> : vector<80x256xf32>
    %29 = tpu.matmul %26, %28, %cst_27 {dimension_numbers = #tpu.dot_dimension_numbers<[1], [0], [0], [1], [0, 0, 1, 1], [], []>} : vector<80x128xbf16>, vector<128x256xbf16>, vector<80x256xf32> -> vector<80x256xf32>
    %30 = arith.addf %24, %29 : vector<80x256xf32>
    %c0_28 = arith.constant 0 : index
    %c12 = arith.constant 12 : index
    %c0_29 = arith.constant 0 : index
    %31 = vector.load %arg1[%c0_28, %c12, %c0_29] : memref<1x102x128xbf16, #tpu.memory_space<vmem>>, vector<1x80x128xbf16>
    %32 = vector.shape_cast %31 : vector<1x80x128xbf16> to vector<80x128xbf16>
    %c5 = arith.constant 5 : index
    %c0_30 = arith.constant 0 : index
    %c0_31 = arith.constant 0 : index
    %33 = vector.load %arg2[%c5, %c0_30, %c0_31] : memref<9x128x256xbf16, #tpu.memory_space<vmem>>, vector<1x128x256xbf16>
    %34 = vector.shape_cast %33 : vector<1x128x256xbf16> to vector<128x256xbf16>
    %cst_32 = arith.constant dense<0.000000e+00> : vector<80x256xf32>
    %35 = tpu.matmul %32, %34, %cst_32 {dimension_numbers = #tpu.dot_dimension_numbers<[1], [0], [0], [1], [0, 0, 1, 1], [], []>} : vector<80x128xbf16>, vector<128x256xbf16>, vector<80x256xf32> -> vector<80x256xf32>
    %36 = arith.addf %30, %35 : vector<80x256xf32>
    %c0_33 = arith.constant 0 : index
    %c20 = arith.constant 20 : index
    %c0_34 = arith.constant 0 : index
    %37 = vector.load %arg1[%c0_33, %c20, %c0_34] : memref<1x102x128xbf16, #tpu.memory_space<vmem>>, vector<1x80x128xbf16>
    %38 = vector.shape_cast %37 : vector<1x80x128xbf16> to vector<80x128xbf16>
    %c6 = arith.constant 6 : index
    %c0_35 = arith.constant 0 : index
    %c0_36 = arith.constant 0 : index
    %39 = vector.load %arg2[%c6, %c0_35, %c0_36] : memref<9x128x256xbf16, #tpu.memory_space<vmem>>, vector<1x128x256xbf16>
    %40 = vector.shape_cast %39 : vector<1x128x256xbf16> to vector<128x256xbf16>
    %cst_37 = arith.constant dense<0.000000e+00> : vector<80x256xf32>
    %41 = tpu.matmul %38, %40, %cst_37 {dimension_numbers = #tpu.dot_dimension_numbers<[1], [0], [0], [1], [0, 0, 1, 1], [], []>} : vector<80x128xbf16>, vector<128x256xbf16>, vector<80x256xf32> -> vector<80x256xf32>
    %42 = arith.addf %36, %41 : vector<80x256xf32>
    %c0_38 = arith.constant 0 : index
    %c21 = arith.constant 21 : index
    %c0_39 = arith.constant 0 : index
    %43 = vector.load %arg1[%c0_38, %c21, %c0_39] : memref<1x102x128xbf16, #tpu.memory_space<vmem>>, vector<1x80x128xbf16>
    %44 = vector.shape_cast %43 : vector<1x80x128xbf16> to vector<80x128xbf16>
    %c7 = arith.constant 7 : index
    %c0_40 = arith.constant 0 : index
    %c0_41 = arith.constant 0 : index
    %45 = vector.load %arg2[%c7, %c0_40, %c0_41] : memref<9x128x256xbf16, #tpu.memory_space<vmem>>, vector<1x128x256xbf16>
    %46 = vector.shape_cast %45 : vector<1x128x256xbf16> to vector<128x256xbf16>
    %cst_42 = arith.constant dense<0.000000e+00> : vector<80x256xf32>
    %47 = tpu.matmul %44, %46, %cst_42 {dimension_numbers = #tpu.dot_dimension_numbers<[1], [0], [0], [1], [0, 0, 1, 1], [], []>} : vector<80x128xbf16>, vector<128x256xbf16>, vector<80x256xf32> -> vector<80x256xf32>
    %48 = arith.addf %42, %47 : vector<80x256xf32>
    %c0_43 = arith.constant 0 : index
    %c22 = arith.constant 22 : index
    %c0_44 = arith.constant 0 : index
    %49 = vector.load %arg1[%c0_43, %c22, %c0_44] : memref<1x102x128xbf16, #tpu.memory_space<vmem>>, vector<1x80x128xbf16>
    %50 = vector.shape_cast %49 : vector<1x80x128xbf16> to vector<80x128xbf16>
    %c8 = arith.constant 8 : index
    %c0_45 = arith.constant 0 : index
    %c0_46 = arith.constant 0 : index
    %51 = vector.load %arg2[%c8, %c0_45, %c0_46] : memref<9x128x256xbf16, #tpu.memory_space<vmem>>, vector<1x128x256xbf16>
    %52 = vector.shape_cast %51 : vector<1x128x256xbf16> to vector<128x256xbf16>
    %cst_47 = arith.constant dense<0.000000e+00> : vector<80x256xf32>
    %53 = tpu.matmul %50, %52, %cst_47 {dimension_numbers = #tpu.dot_dimension_numbers<[1], [0], [0], [1], [0, 0, 1, 1], [], []>} : vector<80x128xbf16>, vector<128x256xbf16>, vector<80x256xf32> -> vector<80x256xf32>
    %54 = arith.addf %48, %53 : vector<80x256xf32>
    %c0_48 = arith.constant 0 : index
    %c0_49 = arith.constant 0 : index
    %55 = vector.load %arg3[%c0_48, %c0_49] : memref<3x256xf32, #tpu.memory_space<vmem>>, vector<1x256xf32>
    %c1_50 = arith.constant 1 : index
    %c0_51 = arith.constant 0 : index
    %56 = vector.load %arg3[%c1_50, %c0_51] : memref<3x256xf32, #tpu.memory_space<vmem>>, vector<1x256xf32>
    %c2_52 = arith.constant 2 : index
    %c0_53 = arith.constant 0 : index
    %57 = vector.load %arg3[%c2_52, %c0_53] : memref<3x256xf32, #tpu.memory_space<vmem>>, vector<1x256xf32>
    %58 = vector.broadcast %55 : vector<1x256xf32> to vector<80x256xf32>
    %59 = arith.addf %54, %58 : vector<80x256xf32>
    %cst_54 = arith.constant 0.000000e+00 : f32
    %60 = vector.broadcast %cst_54 : f32 to vector<80x256xf32>
    %61 = arith.maximumf %59, %60 : vector<80x256xf32>
    %62 = vector.broadcast %56 : vector<1x256xf32> to vector<80x256xf32>
    %63 = arith.mulf %61, %62 : vector<80x256xf32>
    %64 = vector.broadcast %57 : vector<1x256xf32> to vector<80x256xf32>
    %65 = arith.addf %63, %64 : vector<80x256xf32>
    %66 = arith.truncf %65 : vector<80x256xf32> to vector<80x256xbf16>
    %c0_55 = arith.constant 0 : index
    %c0_56 = arith.constant 0 : index
    %c0_57 = arith.constant 0 : index
    %67 = vector.load %arg4[%c0_55, %c0_56, %c0_57] : memref<1x80x256xbf16, #tpu.memory_space<vmem>>, vector<1x80x256xbf16>
    %68 = vector.shape_cast %67 : vector<1x80x256xbf16> to vector<80x256xbf16>
    %69 = vector.shape_cast %66 : vector<80x256xbf16> to vector<1x80x256xbf16>
    tpu.vector_store %arg4[%c0_55, %c0_56, %c0_57], %69 {strides = array<i32>} : memref<1x80x256xbf16, #tpu.memory_space<vmem>>, vector<1x80x256xbf16>,
    return
  }
  func.func @transform_0(%arg0: i32) -> (i32, i32, i32) {
    %c0_i32 = arith.constant 0 : i32
    %c0_i32_0 = arith.constant 0 : i32
    %c0_i32_1 = arith.constant 0 : i32
    return %arg0, %c0_i32, %c0_i32_0 : i32, i32, i32
  }
  func.func @transform_1(%arg0: i32) -> (i32, i32, i32) {
    %c0_i32 = arith.constant 0 : i32
    %c0_i32_0 = arith.constant 0 : i32
    %c0_i32_1 = arith.constant 0 : i32
    %c0_i32_2 = arith.constant 0 : i32
    return %c0_i32, %c0_i32_0, %c0_i32_1 : i32, i32, i32
  }
  func.func @transform_2(%arg0: i32) -> (i32, i32) {
    %c0_i32 = arith.constant 0 : i32
    %c0_i32_0 = arith.constant 0 : i32
    %c0_i32_1 = arith.constant 0 : i32
    return %c0_i32, %c0_i32_0 : i32, i32
  }
  func.func @transform_3(%arg0: i32) -> (i32, i32, i32) {
    %c0_i32 = arith.constant 0 : i32
    %c0_i32_0 = arith.constant 0 : i32
    %c0_i32_1 = arith.constant 0 : i32
    return %arg0, %c0_i32, %c0_i32_0 : i32, i32, i32
  }
}

module attributes {stable_mosaic.version = 11 : i64} {
  func.func @_max_kernel(%arg0: i32, %arg1: memref<1x4x8x256xbf16, #tpu.memory_space<vmem>>, %arg2: memref<1x4x8x256xbf16, #tpu.memory_space<vmem>>, %arg3: memref<1x4x8x256xbf16, #tpu.memory_space<vmem>>) attributes {dimension_semantics = [#tpu.dimension_semantics<parallel>], iteration_bounds = array<i64: 2>, scalar_prefetch = 0 : i64, scratch_operands = 0 : i64, tpu.core_type = #tpu.core_type<tc>, window_params = [{transform_indices = @transform_0, window_bounds = array<i64: 1, 4, 8, 256>}, {transform_indices = @transform_1, window_bounds = array<i64: 1, 4, 8, 256>}, {transform_indices = @transform_2, window_bounds = array<i64: 1, 4, 8, 256>}]} {
    %c0 = arith.constant 0 : index
    %c0_0 = arith.constant 0 : index
    %c0_1 = arith.constant 0 : index
    %c0_2 = arith.constant 0 : index
    %0 = vector.load %arg1[%c0, %c0_0, %c0_1, %c0_2] : memref<1x4x8x256xbf16, #tpu.memory_space<vmem>>, vector<1x4x8x256xbf16>
    %c0_3 = arith.constant 0 : index
    %c0_4 = arith.constant 0 : index
    %c0_5 = arith.constant 0 : index
    %c0_6 = arith.constant 0 : index
    %1 = vector.load %arg2[%c0_3, %c0_4, %c0_5, %c0_6] : memref<1x4x8x256xbf16, #tpu.memory_space<vmem>>, vector<1x4x8x256xbf16>
    %2 = arith.maximumf %0, %1 : vector<1x4x8x256xbf16>
    %c0_7 = arith.constant 0 : index
    %c0_8 = arith.constant 0 : index
    %c0_9 = arith.constant 0 : index
    %c0_10 = arith.constant 0 : index
    %3 = vector.load %arg3[%c0_7, %c0_8, %c0_9, %c0_10] : memref<1x4x8x256xbf16, #tpu.memory_space<vmem>>, vector<1x4x8x256xbf16>
    tpu.vector_store %arg3[%c0_7, %c0_8, %c0_9, %c0_10], %2 {strides = array<i32>} : memref<1x4x8x256xbf16, #tpu.memory_space<vmem>>, vector<1x4x8x256xbf16>,
    return
  }
  func.func @transform_0(%arg0: i32) -> (i32, i32, i32, i32) {
    %c0_i32 = arith.constant 0 : i32
    %c0_i32_0 = arith.constant 0 : i32
    %c0_i32_1 = arith.constant 0 : i32
    %c0_i32_2 = arith.constant 0 : i32
    return %arg0, %c0_i32, %c0_i32_0, %c0_i32_1 : i32, i32, i32, i32
  }
  func.func @transform_1(%arg0: i32) -> (i32, i32, i32, i32) {
    %c0_i32 = arith.constant 0 : i32
    %c0_i32_0 = arith.constant 0 : i32
    %c0_i32_1 = arith.constant 0 : i32
    %c0_i32_2 = arith.constant 0 : i32
    return %arg0, %c0_i32, %c0_i32_0, %c0_i32_1 : i32, i32, i32, i32
  }
  func.func @transform_2(%arg0: i32) -> (i32, i32, i32, i32) {
    %c0_i32 = arith.constant 0 : i32
    %c0_i32_0 = arith.constant 0 : i32
    %c0_i32_1 = arith.constant 0 : i32
    %c0_i32_2 = arith.constant 0 : i32
    return %arg0, %c0_i32, %c0_i32_0, %c0_i32_1 : i32, i32, i32, i32
  }
}

module attributes {stable_mosaic.version = 11 : i64} {
  func.func @_mm_bias_act_kernel(%arg0: i32, %arg1: memref<128x1024xbf16, #tpu.memory_space<vmem>>, %arg2: memref<1024x256xbf16, #tpu.memory_space<vmem>>, %arg3: memref<1x256xf32, #tpu.memory_space<vmem>>, %arg4: memref<128x256xf32, #tpu.memory_space<vmem>>) attributes {dimension_semantics = [#tpu.dimension_semantics<parallel>], iteration_bounds = array<i64: 1>, scalar_prefetch = 0 : i64, scratch_operands = 0 : i64, tpu.core_type = #tpu.core_type<tc>, window_params = [{transform_indices = @transform_0, window_bounds = array<i64: 128, 1024>}, {pipeline_mode = #tpu.pipeline_mode<synchronous>, transform_indices = @transform_1, window_bounds = array<i64: 1024, 256>}, {pipeline_mode = #tpu.pipeline_mode<synchronous>, transform_indices = @transform_2, window_bounds = array<i64: 1, 256>}, {transform_indices = @transform_3, window_bounds = array<i64: 128, 256>}]} {
    %c0 = arith.constant 0 : index
    %c0_0 = arith.constant 0 : index
    %0 = vector.load %arg1[%c0, %c0_0] : memref<128x1024xbf16, #tpu.memory_space<vmem>>, vector<128x1024xbf16>
    %c0_1 = arith.constant 0 : index
    %c0_2 = arith.constant 0 : index
    %1 = vector.load %arg2[%c0_1, %c0_2] : memref<1024x256xbf16, #tpu.memory_space<vmem>>, vector<1024x256xbf16>
    %cst = arith.constant dense<0.000000e+00> : vector<128x256xf32>
    %2 = tpu.matmul %0, %1, %cst {dimension_numbers = #tpu.dot_dimension_numbers<[1], [0], [0], [1], [0, 0, 1, 1], [], []>} : vector<128x1024xbf16>, vector<1024x256xbf16>, vector<128x256xf32> -> vector<128x256xf32>
    %c0_3 = arith.constant 0 : index
    %c0_4 = arith.constant 0 : index
    %3 = vector.load %arg3[%c0_3, %c0_4] : memref<1x256xf32, #tpu.memory_space<vmem>>, vector<1x256xf32>
    %4 = vector.broadcast %3 : vector<1x256xf32> to vector<128x256xf32>
    %5 = arith.addf %2, %4 : vector<128x256xf32>
    %c0_5 = arith.constant 0 : index
    %c0_6 = arith.constant 0 : index
    %6 = vector.load %arg4[%c0_5, %c0_6] : memref<128x256xf32, #tpu.memory_space<vmem>>, vector<128x256xf32>
    tpu.vector_store %arg4[%c0_5, %c0_6], %5 {strides = array<i32>} : memref<128x256xf32, #tpu.memory_space<vmem>>, vector<128x256xf32>,
    return
  }
  func.func @transform_0(%arg0: i32) -> (i32, i32) {
    %c0_i32 = arith.constant 0 : i32
    %c0_i32_0 = arith.constant 0 : i32
    return %arg0, %c0_i32 : i32, i32
  }
  func.func @transform_1(%arg0: i32) -> (i32, i32) {
    %c0_i32 = arith.constant 0 : i32
    %c0_i32_0 = arith.constant 0 : i32
    %c0_i32_1 = arith.constant 0 : i32
    return %c0_i32, %c0_i32_0 : i32, i32
  }
  func.func @transform_2(%arg0: i32) -> (i32, i32) {
    %c0_i32 = arith.constant 0 : i32
    %c0_i32_0 = arith.constant 0 : i32
    %c0_i32_1 = arith.constant 0 : i32
    return %c0_i32, %c0_i32_0 : i32, i32
  }
  func.func @transform_3(%arg0: i32) -> (i32, i32) {
    %c0_i32 = arith.constant 0 : i32
    %c0_i32_0 = arith.constant 0 : i32
    return %arg0, %c0_i32 : i32, i32
  }
}

module attributes {stable_mosaic.version = 11 : i64} {
  func.func @_bilstm_kernel(%arg0: memref<8x2x256xf32, #tpu.memory_space<vmem>>, %arg1: memref<2x32x128xf32, #tpu.memory_space<vmem>>, %arg2: memref<8x2x32xf32, #tpu.memory_space<vmem>>, %arg3: memref<8x2x32xf32, #tpu.memory_space<vmem>>) attributes {dimension_semantics = [], scalar_prefetch = 0 : i64, scratch_operands = 0 : i64, tpu.core_type = #tpu.core_type<tc>} {
    %c0 = arith.constant 0 : index
    %c0_0 = arith.constant 0 : index
    %c0_1 = arith.constant 0 : index
    %0 = vector.load %arg1[%c0, %c0_0, %c0_1] : memref<2x32x128xf32, #tpu.memory_space<vmem>>, vector<1x32x128xf32>
    %1 = vector.shape_cast %0 : vector<1x32x128xf32> to vector<32x128xf32>
    %c1 = arith.constant 1 : index
    %c0_2 = arith.constant 0 : index
    %c0_3 = arith.constant 0 : index
    %2 = vector.load %arg1[%c1, %c0_2, %c0_3] : memref<2x32x128xf32, #tpu.memory_space<vmem>>, vector<1x32x128xf32>
    %3 = vector.shape_cast %2 : vector<1x32x128xf32> to vector<32x128xf32>
    %cst = arith.constant 0.000000e+00 : f32
    %4 = vector.broadcast %cst : f32 to vector<2x32xf32>
    %c0_i32 = arith.constant 0 : i32
    %c8_i32 = arith.constant 8 : i32
    %5 = arith.addi %c0_i32, %c8_i32 : i32
    %c1_i32 = arith.constant 1 : i32
    %6:4 = scf.for %arg4 = %c0_i32 to %5 step %c1_i32 iter_args(%arg5 = %4, %arg6 = %4, %arg7 = %4, %arg8 = %4) -> (vector<2x32xf32>, vector<2x32xf32>, vector<2x32xf32>, vector<2x32xf32>)  : i32 {
      %c7_i32 = arith.constant 7 : i32
      %7 = arith.subi %c7_i32, %arg4 : i32
      %8 = arith.index_cast %arg4 : i32 to index
      %c0_5 = arith.constant 0 : index
      %c0_6 = arith.constant 0 : index
      %9 = vector.load %arg0[%8, %c0_5, %c0_6] : memref<8x2x256xf32, #tpu.memory_space<vmem>>, vector<1x2x256xf32>
      %10 = vector.shape_cast %9 : vector<1x2x256xf32> to vector<2x256xf32>
      %11 = arith.index_cast %7 : i32 to index
      %c0_7 = arith.constant 0 : index
      %c0_8 = arith.constant 0 : index
      %12 = vector.load %arg0[%11, %c0_7, %c0_8] : memref<8x2x256xf32, #tpu.memory_space<vmem>>, vector<1x2x256xf32>
      %13 = vector.shape_cast %12 : vector<1x2x256xf32> to vector<2x256xf32>
      %14 = vector.extract_strided_slice %10 {offsets = [0, 0], sizes = [2, 128], strides = [1, 1]} : vector<2x256xf32> to vector<2x128xf32>
      %cst_9 = arith.constant dense<0.000000e+00> : vector<2x128xf32>
      %15 = tpu.matmul %arg5, %1, %cst_9 {dimension_numbers = #tpu.dot_dimension_numbers<[1], [0], [0], [1], [0, 0, 1, 1], [], []>} : vector<2x32xf32>, vector<32x128xf32>, vector<2x128xf32> -> vector<2x128xf32>
      %16 = arith.addf %14, %15 : vector<2x128xf32>
      %17 = vector.extract_strided_slice %13 {offsets = [0, 128], sizes = [2, 128], strides = [1, 1]} : vector<2x256xf32> to vector<2x128xf32>
      %cst_10 = arith.constant dense<0.000000e+00> : vector<2x128xf32>
      %18 = tpu.matmul %arg7, %3, %cst_10 {dimension_numbers = #tpu.dot_dimension_numbers<[1], [0], [0], [1], [0, 0, 1, 1], [], []>} : vector<2x32xf32>, vector<32x128xf32>, vector<2x128xf32> -> vector<2x128xf32>
      %19 = arith.addf %17, %18 : vector<2x128xf32>
      %20 = vector.extract_strided_slice %16 {offsets = [0, 0], sizes = [2, 32], strides = [1, 1]} : vector<2x128xf32> to vector<2x32xf32>
      %21 = arith.negf %20 : vector<2x32xf32>
      %22 = math.exp %21 : vector<2x32xf32>
      %cst_11 = arith.constant 1.000000e+00 : f32
      %23 = vector.broadcast %cst_11 : f32 to vector<2x32xf32>
      %24 = arith.addf %23, %22 : vector<2x32xf32>
      %25 = arith.divf %23, %24 : vector<2x32xf32>
      %26 = vector.extract_strided_slice %16 {offsets = [0, 32], sizes = [2, 32], strides = [1, 1]} : vector<2x128xf32> to vector<2x32xf32>
      %27 = arith.negf %26 : vector<2x32xf32>
      %28 = math.exp %27 : vector<2x32xf32>
      %cst_12 = arith.constant 1.000000e+00 : f32
      %29 = vector.broadcast %cst_12 : f32 to vector<2x32xf32>
      %30 = arith.addf %29, %28 : vector<2x32xf32>
      %31 = arith.divf %29, %30 : vector<2x32xf32>
      %32 = vector.extract_strided_slice %16 {offsets = [0, 64], sizes = [2, 32], strides = [1, 1]} : vector<2x128xf32> to vector<2x32xf32>
      %33 = math.tanh %32 : vector<2x32xf32>
      %34 = vector.extract_strided_slice %16 {offsets = [0, 96], sizes = [2, 32], strides = [1, 1]} : vector<2x128xf32> to vector<2x32xf32>
      %35 = arith.negf %34 : vector<2x32xf32>
      %36 = math.exp %35 : vector<2x32xf32>
      %cst_13 = arith.constant 1.000000e+00 : f32
      %37 = vector.broadcast %cst_13 : f32 to vector<2x32xf32>
      %38 = arith.addf %37, %36 : vector<2x32xf32>
      %39 = arith.divf %37, %38 : vector<2x32xf32>
      %40 = arith.mulf %31, %arg6 : vector<2x32xf32>
      %41 = arith.mulf %25, %33 : vector<2x32xf32>
      %42 = arith.addf %40, %41 : vector<2x32xf32>
      %43 = math.tanh %42 : vector<2x32xf32>
      %44 = arith.mulf %39, %43 : vector<2x32xf32>
      %45 = vector.extract_strided_slice %19 {offsets = [0, 0], sizes = [2, 32], strides = [1, 1]} : vector<2x128xf32> to vector<2x32xf32>
      %46 = arith.negf %45 : vector<2x32xf32>
      %47 = math.exp %46 : vector<2x32xf32>
      %cst_14 = arith.constant 1.000000e+00 : f32
      %48 = vector.broadcast %cst_14 : f32 to vector<2x32xf32>
      %49 = arith.addf %48, %47 : vector<2x32xf32>
      %50 = arith.divf %48, %49 : vector<2x32xf32>
      %51 = vector.extract_strided_slice %19 {offsets = [0, 32], sizes = [2, 32], strides = [1, 1]} : vector<2x128xf32> to vector<2x32xf32>
      %52 = arith.negf %51 : vector<2x32xf32>
      %53 = math.exp %52 : vector<2x32xf32>
      %cst_15 = arith.constant 1.000000e+00 : f32
      %54 = vector.broadcast %cst_15 : f32 to vector<2x32xf32>
      %55 = arith.addf %54, %53 : vector<2x32xf32>
      %56 = arith.divf %54, %55 : vector<2x32xf32>
      %57 = vector.extract_strided_slice %19 {offsets = [0, 64], sizes = [2, 32], strides = [1, 1]} : vector<2x128xf32> to vector<2x32xf32>
      %58 = math.tanh %57 : vector<2x32xf32>
      %59 = vector.extract_strided_slice %19 {offsets = [0, 96], sizes = [2, 32], strides = [1, 1]} : vector<2x128xf32> to vector<2x32xf32>
      %60 = arith.negf %59 : vector<2x32xf32>
      %61 = math.exp %60 : vector<2x32xf32>
      %cst_16 = arith.constant 1.000000e+00 : f32
      %62 = vector.broadcast %cst_16 : f32 to vector<2x32xf32>
      %63 = arith.addf %62, %61 : vector<2x32xf32>
      %64 = arith.divf %62, %63 : vector<2x32xf32>
      %65 = arith.mulf %56, %arg8 : vector<2x32xf32>
      %66 = arith.mulf %50, %58 : vector<2x32xf32>
      %67 = arith.addf %65, %66 : vector<2x32xf32>
      %68 = math.tanh %67 : vector<2x32xf32>
      %69 = arith.mulf %64, %68 : vector<2x32xf32>
      %70 = arith.index_cast %arg4 : i32 to index
      %c0_17 = arith.constant 0 : index
      %c0_18 = arith.constant 0 : index
      %71 = vector.load %arg2[%70, %c0_17, %c0_18] : memref<8x2x32xf32, #tpu.memory_space<vmem>>, vector<1x2x32xf32>
      %72 = vector.shape_cast %71 : vector<1x2x32xf32> to vector<2x32xf32>
      %73 = vector.shape_cast %44 : vector<2x32xf32> to vector<1x2x32xf32>
      tpu.vector_store %arg2[%70, %c0_17, %c0_18], %73 {strides = array<i32>} : memref<8x2x32xf32, #tpu.memory_space<vmem>>, vector<1x2x32xf32>,
      %74 = arith.index_cast %7 : i32 to index
      %c0_19 = arith.constant 0 : index
      %c0_20 = arith.constant 0 : index
      %75 = vector.load %arg3[%74, %c0_19, %c0_20] : memref<8x2x32xf32, #tpu.memory_space<vmem>>, vector<1x2x32xf32>
      %76 = vector.shape_cast %75 : vector<1x2x32xf32> to vector<2x32xf32>
      %77 = vector.shape_cast %69 : vector<2x32xf32> to vector<1x2x32xf32>
      tpu.vector_store %arg3[%74, %c0_19, %c0_20], %77 {strides = array<i32>} : memref<8x2x32xf32, #tpu.memory_space<vmem>>, vector<1x2x32xf32>,
      scf.yield %44, %42, %69, %67 : vector<2x32xf32>, vector<2x32xf32>, vector<2x32xf32>, vector<2x32xf32>
    }
    %c8_i32_4 = arith.constant 8 : i32
    return
  }
}

module attributes {stable_mosaic.version = 11 : i64} {
  func.func @_mm_bias_act_kernel(%arg0: i32, %arg1: memref<128x64xbf16, #tpu.memory_space<vmem>>, %arg2: memref<64x256xbf16, #tpu.memory_space<vmem>>, %arg3: memref<1x256xf32, #tpu.memory_space<vmem>>, %arg4: memref<128x256xf32, #tpu.memory_space<vmem>>) attributes {dimension_semantics = [#tpu.dimension_semantics<parallel>], iteration_bounds = array<i64: 1>, scalar_prefetch = 0 : i64, scratch_operands = 0 : i64, tpu.core_type = #tpu.core_type<tc>, window_params = [{transform_indices = @transform_0, window_bounds = array<i64: 128, 64>}, {pipeline_mode = #tpu.pipeline_mode<synchronous>, transform_indices = @transform_1, window_bounds = array<i64: 64, 256>}, {pipeline_mode = #tpu.pipeline_mode<synchronous>, transform_indices = @transform_2, window_bounds = array<i64: 1, 256>}, {transform_indices = @transform_3, window_bounds = array<i64: 128, 256>}]} {
    %c0 = arith.constant 0 : index
    %c0_0 = arith.constant 0 : index
    %0 = vector.load %arg1[%c0, %c0_0] : memref<128x64xbf16, #tpu.memory_space<vmem>>, vector<128x64xbf16>
    %c0_1 = arith.constant 0 : index
    %c0_2 = arith.constant 0 : index
    %1 = vector.load %arg2[%c0_1, %c0_2] : memref<64x256xbf16, #tpu.memory_space<vmem>>, vector<64x256xbf16>
    %cst = arith.constant dense<0.000000e+00> : vector<128x256xf32>
    %2 = tpu.matmul %0, %1, %cst {dimension_numbers = #tpu.dot_dimension_numbers<[1], [0], [0], [1], [0, 0, 1, 1], [], []>} : vector<128x64xbf16>, vector<64x256xbf16>, vector<128x256xf32> -> vector<128x256xf32>
    %c0_3 = arith.constant 0 : index
    %c0_4 = arith.constant 0 : index
    %3 = vector.load %arg3[%c0_3, %c0_4] : memref<1x256xf32, #tpu.memory_space<vmem>>, vector<1x256xf32>
    %4 = vector.broadcast %3 : vector<1x256xf32> to vector<128x256xf32>
    %5 = arith.addf %2, %4 : vector<128x256xf32>
    %c0_5 = arith.constant 0 : index
    %c0_6 = arith.constant 0 : index
    %6 = vector.load %arg4[%c0_5, %c0_6] : memref<128x256xf32, #tpu.memory_space<vmem>>, vector<128x256xf32>
    tpu.vector_store %arg4[%c0_5, %c0_6], %5 {strides = array<i32>} : memref<128x256xf32, #tpu.memory_space<vmem>>, vector<128x256xf32>,
    return
  }
  func.func @transform_0(%arg0: i32) -> (i32, i32) {
    %c0_i32 = arith.constant 0 : i32
    %c0_i32_0 = arith.constant 0 : i32
    return %arg0, %c0_i32 : i32, i32
  }
  func.func @transform_1(%arg0: i32) -> (i32, i32) {
    %c0_i32 = arith.constant 0 : i32
    %c0_i32_0 = arith.constant 0 : i32
    %c0_i32_1 = arith.constant 0 : i32
    return %c0_i32, %c0_i32_0 : i32, i32
  }
  func.func @transform_2(%arg0: i32) -> (i32, i32) {
    %c0_i32 = arith.constant 0 : i32
    %c0_i32_0 = arith.constant 0 : i32
    %c0_i32_1 = arith.constant 0 : i32
    return %c0_i32, %c0_i32_0 : i32, i32
  }
  func.func @transform_3(%arg0: i32) -> (i32, i32) {
    %c0_i32 = arith.constant 0 : i32
    %c0_i32_0 = arith.constant 0 : i32
    return %arg0, %c0_i32 : i32, i32
  }
}

module attributes {stable_mosaic.version = 11 : i64} {
  func.func @_mm_bias_act_kernel(%arg0: i32, %arg1: memref<128x64xbf16, #tpu.memory_space<vmem>>, %arg2: memref<64x128xbf16, #tpu.memory_space<vmem>>, %arg3: memref<1x128xf32, #tpu.memory_space<vmem>>, %arg4: memref<128x128xf32, #tpu.memory_space<vmem>>) attributes {dimension_semantics = [#tpu.dimension_semantics<parallel>], iteration_bounds = array<i64: 1>, scalar_prefetch = 0 : i64, scratch_operands = 0 : i64, tpu.core_type = #tpu.core_type<tc>, window_params = [{transform_indices = @transform_0, window_bounds = array<i64: 128, 64>}, {pipeline_mode = #tpu.pipeline_mode<synchronous>, transform_indices = @transform_1, window_bounds = array<i64: 64, 128>}, {pipeline_mode = #tpu.pipeline_mode<synchronous>, transform_indices = @transform_2, window_bounds = array<i64: 1, 128>}, {transform_indices = @transform_3, window_bounds = array<i64: 128, 128>}]} {
    %c0 = arith.constant 0 : index
    %c0_0 = arith.constant 0 : index
    %0 = vector.load %arg1[%c0, %c0_0] : memref<128x64xbf16, #tpu.memory_space<vmem>>, vector<128x64xbf16>
    %c0_1 = arith.constant 0 : index
    %c0_2 = arith.constant 0 : index
    %1 = vector.load %arg2[%c0_1, %c0_2] : memref<64x128xbf16, #tpu.memory_space<vmem>>, vector<64x128xbf16>
    %cst = arith.constant dense<0.000000e+00> : vector<128x128xf32>
    %2 = tpu.matmul %0, %1, %cst {dimension_numbers = #tpu.dot_dimension_numbers<[1], [0], [0], [1], [0, 0, 1, 1], [], []>} : vector<128x64xbf16>, vector<64x128xbf16>, vector<128x128xf32> -> vector<128x128xf32>
    %c0_3 = arith.constant 0 : index
    %c0_4 = arith.constant 0 : index
    %3 = vector.load %arg3[%c0_3, %c0_4] : memref<1x128xf32, #tpu.memory_space<vmem>>, vector<1x128xf32>
    %4 = vector.broadcast %3 : vector<1x128xf32> to vector<128x128xf32>
    %5 = arith.addf %2, %4 : vector<128x128xf32>
    %cst_5 = arith.constant 0.000000e+00 : f32
    %6 = vector.broadcast %cst_5 : f32 to vector<128x128xf32>
    %7 = arith.maximumf %5, %6 : vector<128x128xf32>
    %c0_6 = arith.constant 0 : index
    %c0_7 = arith.constant 0 : index
    %8 = vector.load %arg4[%c0_6, %c0_7] : memref<128x128xf32, #tpu.memory_space<vmem>>, vector<128x128xf32>
    tpu.vector_store %arg4[%c0_6, %c0_7], %7 {strides = array<i32>} : memref<128x128xf32, #tpu.memory_space<vmem>>, vector<128x128xf32>,
    return
  }
  func.func @transform_0(%arg0: i32) -> (i32, i32) {
    %c0_i32 = arith.constant 0 : i32
    %c0_i32_0 = arith.constant 0 : i32
    return %arg0, %c0_i32 : i32, i32
  }
  func.func @transform_1(%arg0: i32) -> (i32, i32) {
    %c0_i32 = arith.constant 0 : i32
    %c0_i32_0 = arith.constant 0 : i32
    %c0_i32_1 = arith.constant 0 : i32
    return %c0_i32, %c0_i32_0 : i32, i32
  }
  func.func @transform_2(%arg0: i32) -> (i32, i32) {
    %c0_i32 = arith.constant 0 : i32
    %c0_i32_0 = arith.constant 0 : i32
    %c0_i32_1 = arith.constant 0 : i32
    return %c0_i32, %c0_i32_0 : i32, i32
  }
  func.func @transform_3(%arg0: i32) -> (i32, i32) {
    %c0_i32 = arith.constant 0 : i32
    %c0_i32_0 = arith.constant 0 : i32
    return %arg0, %c0_i32 : i32, i32
  }
}

module attributes {stable_mosaic.version = 11 : i64} {
  func.func @_mm_bias_act_kernel(%arg0: i32, %arg1: memref<128x32xbf16, #tpu.memory_space<vmem>>, %arg2: memref<32x128xbf16, #tpu.memory_space<vmem>>, %arg3: memref<1x128xf32, #tpu.memory_space<vmem>>, %arg4: memref<128x128xf32, #tpu.memory_space<vmem>>) attributes {dimension_semantics = [#tpu.dimension_semantics<parallel>], iteration_bounds = array<i64: 1>, scalar_prefetch = 0 : i64, scratch_operands = 0 : i64, tpu.core_type = #tpu.core_type<tc>, window_params = [{transform_indices = @transform_0, window_bounds = array<i64: 128, 32>}, {pipeline_mode = #tpu.pipeline_mode<synchronous>, transform_indices = @transform_1, window_bounds = array<i64: 32, 128>}, {pipeline_mode = #tpu.pipeline_mode<synchronous>, transform_indices = @transform_2, window_bounds = array<i64: 1, 128>}, {transform_indices = @transform_3, window_bounds = array<i64: 128, 128>}]} {
    %c0 = arith.constant 0 : index
    %c0_0 = arith.constant 0 : index
    %0 = vector.load %arg1[%c0, %c0_0] : memref<128x32xbf16, #tpu.memory_space<vmem>>, vector<128x32xbf16>
    %c0_1 = arith.constant 0 : index
    %c0_2 = arith.constant 0 : index
    %1 = vector.load %arg2[%c0_1, %c0_2] : memref<32x128xbf16, #tpu.memory_space<vmem>>, vector<32x128xbf16>
    %cst = arith.constant dense<0.000000e+00> : vector<128x128xf32>
    %2 = tpu.matmul %0, %1, %cst {dimension_numbers = #tpu.dot_dimension_numbers<[1], [0], [0], [1], [0, 0, 1, 1], [], []>} : vector<128x32xbf16>, vector<32x128xbf16>, vector<128x128xf32> -> vector<128x128xf32>
    %c0_3 = arith.constant 0 : index
    %c0_4 = arith.constant 0 : index
    %3 = vector.load %arg3[%c0_3, %c0_4] : memref<1x128xf32, #tpu.memory_space<vmem>>, vector<1x128xf32>
    %4 = vector.broadcast %3 : vector<1x128xf32> to vector<128x128xf32>
    %5 = arith.addf %2, %4 : vector<128x128xf32>
    %6 = arith.negf %5 : vector<128x128xf32>
    %7 = math.exp %6 : vector<128x128xf32>
    %cst_5 = arith.constant 1.000000e+00 : f32
    %8 = vector.broadcast %cst_5 : f32 to vector<128x128xf32>
    %9 = arith.addf %8, %7 : vector<128x128xf32>
    %10 = arith.divf %8, %9 : vector<128x128xf32>
    %c0_6 = arith.constant 0 : index
    %c0_7 = arith.constant 0 : index
    %11 = vector.load %arg4[%c0_6, %c0_7] : memref<128x128xf32, #tpu.memory_space<vmem>>, vector<128x128xf32>
    tpu.vector_store %arg4[%c0_6, %c0_7], %10 {strides = array<i32>} : memref<128x128xf32, #tpu.memory_space<vmem>>, vector<128x128xf32>,
    return
  }
  func.func @transform_0(%arg0: i32) -> (i32, i32) {
    %c0_i32 = arith.constant 0 : i32
    %c0_i32_0 = arith.constant 0 : i32
    return %arg0, %c0_i32 : i32, i32
  }
  func.func @transform_1(%arg0: i32) -> (i32, i32) {
    %c0_i32 = arith.constant 0 : i32
    %c0_i32_0 = arith.constant 0 : i32
    %c0_i32_1 = arith.constant 0 : i32
    return %c0_i32, %c0_i32_0 : i32, i32
  }
  func.func @transform_2(%arg0: i32) -> (i32, i32) {
    %c0_i32 = arith.constant 0 : i32
    %c0_i32_0 = arith.constant 0 : i32
    %c0_i32_1 = arith.constant 0 : i32
    return %c0_i32, %c0_i32_0 : i32, i32
  }
  func.func @transform_3(%arg0: i32) -> (i32, i32) {
    %c0_i32 = arith.constant 0 : i32
    %c0_i32_0 = arith.constant 0 : i32
    return %arg0, %c0_i32 : i32, i32
  }
}

</mosaic_0001>

<bundles_post_ra>
// kernel: _lambda_.14
= control target key start
LH: loop header
LB: loop body
LE: loop exit
PB: predicated region body
PF: predicated region fallthrough
CT: control target
= control target key end

     0   :  { %s337_s9 = smov 0   ;;  %s357_s0 = inlined_call_operand.vmem [shape: bf16[2,8,8,128], index: 0, kind: input, shape index: {}]   ;;  %s358_s1 = inlined_call_operand.vmem [shape: bf16[2,8,8,128], index: 1, kind: input, shape index: {}]   ;;  %s359_s2 = inlined_call_operand.vmem [shape: bf16[2,8,8,128], index: 2, kind: output, shape index: {}]  }
   0x1 LB: > { %s263_s10 = sadd.s32 4294967295, %s320_s9   ;;  %p267_p0 = scmp.ge.s32.totalorder %s320_s9, 1  ;;  %s320_s9 = sphi %s337_s9, %s12_s9  }
   0x2   : > { %p122_p1 = scmp.lt.s32.totalorder %s320_s9, 3 }
   0x4   : > { %p123_p2 = pnand %p267_p0, %p122_p1 }
   0x5   : > { %p149_p3 = scmp.lt.s32.totalorder (!%p123_p2), %s263_s10, 1 }
   0x6   : > { %126 = sbr.rel (%p123_p2) target bundleno = 27 (0x1b), region = 28 }
   0xd   : > { %s361_s10 = smov (!%p149_p3, %s263_s10), 1 }
   0xe   : > { %s276_s11 = sshll.u32 %s361_s10, 5 }
   0xf   : > { %s153_s14 = scalar_lea.vmem %s357_s0, %s276_s11  ;;  %s158_s17 = scalar_lea.vmem %s358_s1, %s276_s11 }
  0x10   : > { %v164_v0 = vld [vmem:[%s153_s14] sm:$0xf]  ;;  %v165_v1 = vld [vmem:[%s153_s14 + $0x4] sm:$0xf]  ;;  %v166_v5 = vld [vmem:[%s153_s14 + $0x8] sm:$0xf]  ;;  %s163_s20 = scalar_lea.vmem %s359_s2, %s276_s11 }
  0x11   : > { %v172_v2 = vld [vmem:[%s158_s17] sm:$0xf]  ;;  %v173_v3 = vld [vmem:[%s158_s17 + $0x4] sm:$0xf]  ;;  %v167_v6 = vld [vmem:[%s153_s14 + $0xc] sm:$0xf] }
  0x12   : > { %v180_v4 = vmax.bf16 %v172_v2, %v164_v0  ;;  %v181_v7 = vmax.bf16 %v173_v3, %v165_v1  ;;  %v174_v8 = vld [vmem:[%s158_s17 + $0x8] sm:$0xf]  ;;  %v175_v9 = vld [vmem:[%s158_s17 + $0xc] sm:$0xf]  ;;  %v168_v10 = vld [vmem:[%s153_s14 + $0x10] sm:$0xf] }
  0x13   : > { %v182_v11 = vmax.bf16 %v174_v8, %v166_v5  ;;  %v183_v12 = vmax.bf16 %v175_v9, %v167_v6  ;;  %v169_v13 = vld [vmem:[%s153_s14 + $0x14] sm:$0xf]  ;;  %v176_v14 = vld [vmem:[%s158_s17 + $0x10] sm:$0xf]  ;;  %v170_v19 = vld [vmem:[%s153_s14 + $0x18] sm:$0xf] }
  0x14   : > { %v177_v15 = vld [vmem:[%s158_s17 + $0x14] sm:$0xf]  ;;  %v299_v16 = vcombine.low %v180_v4, %v181_v7  ;;  %v184_v17 = vmax.bf16 %v176_v14, %v168_v10  ;;  %v171_v20 = vld [vmem:[%s153_s14 + $0x1c] sm:$0xf]  ;;  %v178_v21 = vld [vmem:[%s158_s17 + $0x18] sm:$0xf] }
  0x15   : > { %v185_v18 = vmax.bf16 %v177_v15, %v169_v13  ;;  %v300_v22 = vcombine.low %v182_v11, %v183_v12  ;;  %v179_v23 = vld [vmem:[%s158_s17 + $0x1c] sm:$0xf]  ;;  %v186_v24 = vmax.bf16 %v178_v21, %v170_v19 }
  0x16   : > { %283 = vst [vmem:[%s163_s20] sm:$0xff] %v299_v16   ;;  %v187_v26 = vmax.bf16 %v179_v23, %v171_v20 }
  0x17   : > { %v302_v25 = vcombine.low %v184_v17, %v185_v18  ;;  %301 = vst [vmem:[%s163_s20 + $0x8] sm:$0xff] %v300_v22  }
  0x18   : > { %v304_v27 = vcombine.low %v186_v24, %v187_v26 }
  0x19   : > { %303 = vst [vmem:[%s163_s20 + $0x10] sm:$0xff] %v302_v25  }
  0x1a   : > { %305 = vst [vmem:[%s163_s20 + $0x18] sm:$0xff] %v304_v27  }
  0x1b PF: > { %s12_s9 = sadd.s32 1, %s320_s9  }
  0x1c   : > { %p9_p4 = scmp.ge.s32.totalorder %s12_s9, 4  }
  0x1e   :  { %11 = sbr.rel (!%p9_p4) target bundleno = 1 (0x1), region = 61 }

// kernel: _lambda_.12
= control target key start
LH: loop header
LB: loop body
LE: loop exit
PB: predicated region body
PF: predicated region fallthrough
CT: control target
= control target key end

     0   :  { %s2693_s12 = smov 0   ;;  %s3764_s0 = inlined_call_operand.vmem [shape: bf16[2,182,1], index: 0, kind: input, shape index: {}]   ;;  %s3765_s1 = inlined_call_operand.vmem [shape: bf16[9,1,128], index: 1, kind: input, shape index: {}]   ;;  %s3766_s2 = inlined_call_operand.vmem [shape: f32[3,128], index: 2, kind: input, shape index: {}]   ;;  %s3767_s3 = inlined_call_operand.vmem [shape: bf16[2,160,128], index: 3, kind: output, shape index: {}]  }
   0x1 LB: > { %s2129_s13 = sadd.s32 4294967295, %s2670_s12   ;;  %p2133_p0 = scmp.ge.s32.totalorder %s2670_s12, 1  ;;  %s2670_s12 = sphi %s2693_s12, %s13_s12  }
   0x2   : > { %p137_p1 = scmp.lt.s32.totalorder %s2670_s12, 3 }
   0x4   : > { %p138_p2 = pnand %p2133_p0, %p137_p1 }
   0x5   : > { %p161_p3 = scmp.lt.s32.totalorder (!%p138_p2), %s2129_s13, 1  ;;  %v2672_v0 = vmov (!%p138_p2), 0   ;;  %vm553_vm0 = vcmask (!%p138_p2), 1046528   ;;  %vm691_vm1 = vcmask (!%p138_p2), 1045504   ;;  %vm1106_vm2 = vcmask (!%p138_p2), 1044480  }
   0x6   : > { %141 = sbr.rel (%p138_p2) target bundleno = 384 (0x180), region = 32  ;;  %2458 = vset.pattern.permute.xlu1 (!%p138_p2), %v2672_v0  ;;  %2447 = vset.pattern.permute.xlu0 (!%p138_p2), %v2672_v0  ;;  %vm1244_vm3 = vcmask (!%p138_p2), 1043456   ;;  %vm1659_vm4 = vcmask (!%p138_p2), 1042432   ;;  %vm1797_vm5 = vcmask (!%p138_p2), 1041408  }
   0xd   : > { %s3775_s13 = smov (!%p161_p3, %s2129_s13), 1 }
   0xe   : > { %s2436_s14 = smul.u32 92, %s3775_s13 }
  0x10   : > { %s2707_s17 = scalar_lea.vmem %s3764_s0, %s2436_s14 }
  0x11   : > { %v2392_v1 = vld [vmem:[%s2707_s17 + $0x10] sm:$0xff]   ;;  %v2190_v2 = vld [vmem:[%s2707_s17] sm:$0xff]   ;;  %v2712_v3 = vld [vmem:[%s2707_s17 + $0x18] sm:$0xff]  }
  0x12   : > { %v2714_v4 = vunpack.c.l.bf16 %v2392_v1  ;;  %v2200_v5 = vunpack.c.h.bf16 %v2392_v1  ;;  %v2191_v6 = vunpack.c.l.bf16 %v2190_v2  ;;  %v2192_v7 = vunpack.c.h.bf16 %v2190_v2  ;;  %v2717_v8 = vld [vmem:[%s2707_s17 + $0x8] sm:$0xff]   ;;  %v2727_v14 = vld [vmem:[%s2707_s17 + $0x20] sm:$0xff]   ;;  %v2739_v23 = vld [vmem:[%s2707_s17 + $0x38] sm:$0xff]  }
  0x13   : > { %v2720_v9 = vld [vmem:[%s2707_s17 + $0x28] sm:$0xff]   ;;  %v2203_v10 = vunpack.c.l.bf16 %v2712_v3  ;;  %v2204_v11 = vunpack.c.h.bf16 %v2712_v3  ;;  %v2195_v12 = vunpack.c.l.bf16 %v2717_v8  ;;  %v2196_v13 = vunpack.c.h.bf16 %v2717_v8  ;;  %v2396_v24 = vld [vmem:[%s2707_s17 + $0x30] sm:$0xff]   ;;  %v2398_v32 = vld [vmem:[%s2707_s17 + $0x40] sm:$0xff]  }
  0x14   : > { %v2459_v15 = vpack.i.bf16 %v2200_v5, %v2714_v4  ;;  %v2448_v16 = vpack.i.bf16 %v2192_v7, %v2191_v6  ;;  %v2211_v17 = vunpack.c.l.bf16 %v2720_v9  ;;  %v2212_v18 = vunpack.c.h.bf16 %v2720_v9  ;;  %v2399_v31 = vld [vmem:[%s2707_s17 + $0x48] sm:$0xff]   ;;  %v2751_v36 = vld [vmem:[%s2707_s17 + $0x50] sm:$0xff]   ;;  %v773_v48 = vld [vmem:[%s2707_s17 + $0x4] sm:$0xe] }
  0x15   : > { %v2464_v19 = vpack.i.bf16 %v2204_v11, %v2203_v10  ;;  %v2453_v20 = vpack.i.bf16 %v2196_v13, %v2195_v12  ;;  %v2207_v21 = vunpack.c.l.bf16 %v2727_v14  ;;  %v2208_v22 = vunpack.c.h.bf16 %v2727_v14  ;;  %v377_v49 = vld [vmem:[%s2707_s17 + $0x50] sm:$0x1]  ;;  %v635_v50 = vld [vmem:[%s2707_s17] sm:$0xe]  ;;  %v793_v59 = vld [vmem:[%s2707_s17 + $0x54] sm:$0x1] }
  0x16   : > { %2460 = vperm.xlu1 %2458, %v2459_v15   ;;  %2449 = vperm.xlu0 %2447, %v2448_v16   ;;  %v2219_v25 = vunpack.c.l.bf16 %v2739_v23  ;;  %v2220_v26 = vunpack.c.h.bf16 %v2739_v23  ;;  %v2474_v27 = vpack.i.bf16 %v2212_v18, %v2211_v17  ;;  %v2215_v29 = vunpack.c.l.bf16 %v2396_v24  ;;  %v1050_v60 = vld [vmem:[%s2707_s17 + $0x54] sm:$0x3]  ;;  %v792_v61 = vld [vmem:[%s2707_s17 + $0xc] ss:$68 sps:$4 sm:$0xff]   ;;  %v1188_v2 = vld [vmem:[%s2707_s17 + $0x4] sm:$0xc] }
  0x17   : > { %v2469_v28 = vpack.i.bf16 %v2208_v22, %v2207_v21  ;;  %v2216_v30 = vunpack.c.h.bf16 %v2396_v24  ;;  %v2227_v34 = vunpack.c.l.bf16 %v2399_v31  ;;  %v2228_v35 = vunpack.c.h.bf16 %v2399_v31  ;;  %v1326_v3 = vld [vmem:[%s2707_s17 + $0x8] sm:$0xc] }
  0x18   : > { %v2484_v33 = vpack.i.bf16 %v2220_v26, %v2219_v25  ;;  %v2223_v38 = vunpack.c.l.bf16 %v2398_v32  ;;  %v2224_v39 = vunpack.c.h.bf16 %v2398_v32  ;;  %v2753_v40 = vpack.i.bf16 %v2203_v10, %v2200_v5 }
  0x19   : > { %v2479_v37 = vpack.i.bf16 %v2216_v30, %v2215_v29  ;;  %v2755_v41 = vpack.i.bf16 %v2211_v17, %v2208_v22  ;;  %v2757_v42 = vpack.i.bf16 %v2219_v25, %v2216_v30  ;;  %v2339_v43 = vunpack.c.l.bf16 %v2751_v36  ;;  %v1741_v17 = vld [vmem:[%s2707_s17 + $0x8] sm:$0x8] }
  0x1a   : > { %2465 = vperm.xlu1 %2458, %v2464_v19   ;;  %2454 = vperm.xlu0 %2447, %v2453_v20   ;;  %v2760_v44 = vpack.i.bf16 %v2227_v34, %v2224_v39  ;;  %v2494_v45 = vpack.i.bf16 %v2228_v35, %v2227_v34  ;;  %v2489_v46 = vpack.i.bf16 %v2224_v39, %v2223_v38  ;;  %v796_v51 = vunpack.c.l.bf16 %v773_v48  ;;  %v2137_v34 = vld [vmem:[%s3765_s1 + $0x2] sm:$0x1] }
  0x1b   : > { %v2762_v47 = vpack.i.bf16 %v2339_v43, %v2228_v35  ;;  %v400_v52 = vunpack.c.l.bf16 %v377_v49  ;;  %v638_v53 = vunpack.c.l.bf16 %v635_v50  ;;  %v2559_v56 = vpack.i.bf16 %v2714_v4, %v2196_v13  ;;  %v2142_v43 = vld [vmem:[%s3765_s1 + $0x7] sm:$0x1] }
  0x1c   : > { %v2554_v54 = vpack.i.bf16 %v2195_v12, %v796_v51  ;;  %v2569_v57 = vpack.i.bf16 %v2207_v21, %v2204_v11  ;;  %v2579_v58 = vpack.i.bf16 %v2215_v29, %v2212_v18  ;;  %v816_v62 = vunpack.c.l.bf16 %v793_v59  ;;  %v1346_v12 = vld [vmem:[%s2707_s17 + $0x58] sm:$0x3]  ;;  %v191_v21 = vld [vmem:[%s3765_s1] sm:$0x1] }
  0x1d   : > { %v2549_v55 = vpack.i.bf16 %v638_v53, %v400_v52  ;;  %v2589_v63 = vpack.i.bf16 %v2223_v38, %v2220_v26  ;;  %v1053_v0 = vunpack.c.l.bf16 %v1050_v60  ;;  %v815_v1 = vunpack.c.h.bf16 %v792_v61  ;;  %v2141_v38 = vld [vmem:[%s3765_s1 + $0x6] sm:$0x1] }
  0x1e   : > { %2475 = vperm.xlu1 %2458, %v2474_v27   ;;  %2470 = vperm.xlu0 %2447, %v2469_v28   ;;  %v1350_v5 = vunpack.c.l.bf16 %v792_v61  ;;  %v1191_v8 = vunpack.c.l.bf16 %v1188_v2  ;;  %v1349_v9 = vunpack.c.l.bf16 %v1326_v3  ;;  %v2340_v13 = vunpack.c.h.bf16 %v2751_v36  ;;  %v2139_v36 = vld [vmem:[%s3765_s1 + $0x4] sm:$0x1] }
  0x1f   : > { %v2604_v6 = vpack.i.bf16 %v1053_v0, %v816_v62  ;;  %v2599_v7 = vpack.i.bf16 %v815_v1, %v2228_v35  ;;  %v1369_v14 = vunpack.c.l.bf16 %v1346_v12  ;;  %v1744_v18 = vunpack.c.l.bf16 %v1741_v17  ;;  %v2138_v35 = vld [vmem:[%s3765_s1 + $0x3] sm:$0x1] }
  0x20   : > { %v2614_v10 = vpack.i.bf16 %v2714_v4, %v1350_v5  ;;  %v2609_v11 = vpack.i.bf16 %v1349_v9, %v1191_v8  ;;  %v212_v22 = vunpack.c.l.bf16 %v191_v21  ;;  %v1370_v50 = vunpack.c.l.bf16 %v2141_v38 }
  0x21   : > { %v1607_v51 = vunpack.c.l.bf16 %v2142_v43 }
  0x22   : > { %2485 = vperm.xlu1 %2458, %v2484_v33   ;;  %2480 = vperm.xlu0 %2447, %v2479_v37  }
  0x26   : > { %2495 = vperm.xlu1 %2458, %v2494_v45   ;;  %2490 = vperm.xlu0 %2447, %v2489_v46  }
  0x2a   : > { %2505 = vperm.xlu1 %2458, %v2453_v20   ;;  %2500 = vperm.xlu0 %2447, %v2448_v16   ;;  %v2659_v16 = vpack.i.bf16 %v1369_v14, %v2340_v13 }
  0x2e   : > { %2515 = vperm.xlu1 %2458, %v2464_v19   ;;  %2510 = vperm.xlu0 %2447, %v2459_v15   ;;  %v1603_v15 = vld [vmem:[%s2707_s17 + $0x58] sm:$0x7]  ;;  %v313_v19 = vlaneseq  ;;  %s2437_s17 = smul.u32 80, %s3775_s13 }
  0x2f   : > { %v1606_v4 = vunpack.c.l.bf16 %v1603_v15 }
  0x30   : > { %v314_v20 = vshrl.u32 %v313_v19, 7  ;;  %s3549_s19 = scalar_lea.vmem %s3767_s3, %s2437_s17 }
  0x32   : > { %2525 = vperm.xlu1 %2458, %v2474_v27   ;;  %2520 = vperm.xlu0 %2447, %v2469_v28   ;;  %v315_v23 = vsub.s32 0, %v314_v20 }
  0x34   : > { %v2798_v24 = vrot.slane %v212_v22, %v315_v23  ;;  %v2846_v1 = vrot.slane %v1370_v50, %v315_v23  ;;  %v2848_v5 = vrot.slane %v1607_v51, %v315_v23 }
  0x36   : > { %2535 = vperm.xlu1 %2458, %v2484_v33   ;;  %2530 = vperm.xlu0 %2447, %v2479_v37   ;;  %v2136_v33 = vld [vmem:[%s3765_s1 + $0x1] sm:$0x1]  ;;  %v2140_v37 = vld [vmem:[%s3765_s1 + $0x5] sm:$0x1] }
  0x37   : > { %v1192_v49 = vunpack.c.l.bf16 %v2140_v37 }
  0x39   : > { %v2844_v0 = vrot.slane %v1192_v49, %v315_v23 }
  0x3a   : > { %2545 = vperm.xlu1 %2458, %v2494_v45   ;;  %2540 = vperm.xlu0 %2447, %v2489_v46   ;;  %v817_v45 = vunpack.c.l.bf16 %v2138_v35  ;;  %v1054_v46 = vunpack.c.l.bf16 %v2139_v36 }
  0x3c   : > { %v2834_v60 = vrot.slane %v817_v45, %v315_v23  ;;  %v2836_v61 = vrot.slane %v1054_v46, %v315_v23 }
  0x3e   : > { %2555 = vperm.xlu1 %2458, %v2554_v54   ;;  %2550 = vperm.xlu0 %2447, %v2549_v55  }
  0x42   : > { %2565 = vperm.xlu1 %2458, %v2753_v40   ;;  %2560 = vperm.xlu0 %2447, %v2559_v56  }
  0x46   : > { %2575 = vperm.xlu1 %2458, %v2755_v41   ;;  %2570 = vperm.xlu0 %2447, %v2569_v57  }
  0x4a   : > { %2585 = vperm.xlu1 %2458, %v2757_v42   ;;  %2580 = vperm.xlu0 %2447, %v2579_v58  }
  0x4e   : > { %2595 = vperm.xlu1 %2458, %v2760_v44   ;;  %2590 = vperm.xlu0 %2447, %v2589_v63  }
  0x52   : > { %2605 = vperm.xlu1 %2458, %v2604_v6   ;;  %2600 = vperm.xlu0 %2447, %v2599_v7  }
  0x56   : > { %2615 = vperm.xlu1 %2458, %v2614_v10   ;;  %2610 = vperm.xlu0 %2447, %v2609_v11  }
  0x5a   : > { %2625 = vperm.xlu1 %2458, %v2569_v57   ;;  %2620 = vperm.xlu0 %2447, %v2753_v40  }
  0x5e   : > { %2635 = vperm.xlu1 %2458, %v2579_v58   ;;  %2630 = vperm.xlu0 %2447, %v2755_v41   ;;  %v401_v41 = vunpack.c.l.bf16 %v2136_v33 }
  0x60   : > { %v2830_v56 = vrot.slane %v401_v41, %v315_v23 }
  0x62   : > { %2645 = vperm.xlu1 %2458, %v2589_v63   ;;  %2640 = vperm.xlu0 %2447, %v2757_v42   ;;  %v639_v42 = vunpack.c.l.bf16 %v2137_v34 }
  0x64   : > { %v2832_v57 = vrot.slane %v639_v42, %v315_v23 }
  0x66   : > { %2655 = vperm.xlu1 %2458, %v2762_v47   ;;  %2650 = vperm.xlu0 %2447, %v2760_v44   ;;  %v2143_v44 = vld [vmem:[%s3765_s1 + $0x8] sm:$0x1] }
  0x67   : > { %v1745_v52 = vunpack.c.l.bf16 %v2143_v44 }
  0x69   : > { %v2850_v6 = vrot.slane %v1745_v52, %v315_v23 }
  0x6a   : > { %1610 = vperm.xlu1 %2458, %v1606_v4   ;;  %2660 = vperm.xlu0 %2447, %v2659_v16  }
  0x6e   : > { %1748 = vperm.xlu0 %2447, %v1744_v18  }
  0x95   : > { %v2461_v25 = vpop.permute.xlu1 %2460  ;;  %v2450_v26 = vpop.permute.xlu0 %2449 }
  0x96   : > { %v2452_v27 = vunpack.i.h.bf16 %v2450_v26  ;;  %v2451_v28 = vunpack.i.l.bf16 %v2450_v26  ;;  %v2463_v47 = vunpack.i.h.bf16 %v2461_v25  ;;  %v2462_v48 = vunpack.i.l.bf16 %v2461_v25 }
  0x98   : > { %v2801_v29 = vmul.f32 %v2452_v27, %v2798_v24  ;;  %v2804_v30 = vmul.f32 %v2451_v28, %v2798_v24  ;;  %v2839_v62 = vmul.f32 %v2463_v47, %v2798_v24  ;;  %v2842_v63 = vmul.f32 %v2462_v48, %v2798_v24 }
  0x99   : > { %v2466_v31 = vpop.permute.xlu1 %2465  ;;  %v2455_v32 = vpop.permute.xlu0 %2454 }
  0x9a   : > { %v2468_v53 = vunpack.i.h.bf16 %v2466_v31  ;;  %v2467_v58 = vunpack.i.l.bf16 %v2466_v31  ;;  %v2457_v59 = vunpack.i.h.bf16 %v2455_v32  ;;  %v2456_v2 = vunpack.i.l.bf16 %v2455_v32 }
  0x9c   : > { %v2853_v7 = vmul.f32 %v2468_v53, %v2798_v24  ;;  %v2856_v13 = vmul.f32 %v2467_v58, %v2798_v24  ;;  %v2859_v14 = vmul.f32 %v2457_v59, %v2798_v24  ;;  %v319_v20 = vmul.f32 %v2456_v2, %v2798_v24 }
  0x9d   : > { %v2476_v39 = vpop.permute.xlu1 %2475  ;;  %v2471_v40 = vpop.permute.xlu0 %2470 }
  0x9e   : > { %v2478_v3 = vunpack.i.h.bf16 %v2476_v39  ;;  %v2477_v8 = vunpack.i.l.bf16 %v2476_v39  ;;  %v2473_v9 = vunpack.i.h.bf16 %v2471_v40  ;;  %v2472_v10 = vunpack.i.l.bf16 %v2471_v40 }
  0xa0   : > { %v2863_v21 = vmul.f32 %v2478_v3, %v2798_v24  ;;  %v2872_v25 = vmul.f32 %v2477_v8, %v2798_v24  ;;  %v2875_v26 = vmul.f32 %v2473_v9, %v2798_v24  ;;  %v2878_v27 = vmul.f32 %v2472_v10, %v2798_v24 }
  0xa1   : > { %v2486_v54 = vpop.permute.xlu1 %2485  ;;  %v2481_v55 = vpop.permute.xlu0 %2480 }
  0xa2   : > { %v2488_v16 = vunpack.i.h.bf16 %v2486_v54  ;;  %v2487_v17 = vunpack.i.l.bf16 %v2486_v54  ;;  %v2483_v18 = vunpack.i.h.bf16 %v2481_v55  ;;  %v2482_v19 = vunpack.i.l.bf16 %v2481_v55 }
  0xa4   : > { %v2881_v37 = vmul.f32 %v2488_v16, %v2798_v24  ;;  %v2884_v38 = vmul.f32 %v2487_v17, %v2798_v24  ;;  %v2887_v39 = vmul.f32 %v2483_v18, %v2798_v24  ;;  %v2890_v40 = vmul.f32 %v2482_v19, %v2798_v24 }
  0xa5   : > { %v2496_v11 = vpop.permute.xlu1 %2495  ;;  %v2491_v12 = vpop.permute.xlu0 %2490 }
  0xa6   : > { %v2498_v15 = vunpack.i.h.bf16 %v2496_v11  ;;  %v2497_v4 = vunpack.i.l.bf16 %v2496_v11  ;;  %v2493_v28 = vunpack.i.h.bf16 %v2491_v12  ;;  %v2492_v45 = vunpack.i.l.bf16 %v2491_v12 }
  0xa8   : > { %v2866_v22 = vmul.f32 %v2498_v15, %v2798_v24  ;;  %v2869_v23 = vmul.f32 %v2497_v4, %v2798_v24  ;;  %v2906_v51 = vmul.f32 %v2493_v28, %v2798_v24  ;;  %v2913_v11 = vmul.f32 %v2492_v45, %v2798_v24 }
  0xa9   : > { %v2506_v31 = vpop.permute.xlu1 %2505  ;;  %v2501_v32 = vpop.permute.xlu0 %2500 }
  0xaa   : > { %v2508_v33 = vunpack.i.h.bf16 %v2506_v31  ;;  %v2507_v34 = vunpack.i.l.bf16 %v2506_v31  ;;  %v2503_v35 = vunpack.i.h.bf16 %v2501_v32  ;;  %v2502_v36 = vunpack.i.l.bf16 %v2501_v32 }
  0xac   : > { %v2893_v41 = vmul.f32 %v2508_v33, %v2830_v56  ;;  %v2896_v42 = vmul.f32 %v2508_v33, %v2832_v57  ;;  %v513_v43 = vmul.f32 %v2507_v34, %v2830_v56  ;;  %v651_v44 = vmul.f32 %v2507_v34, %v2832_v57 }
  0xad   : > { %v512_v46 = vmul.f32 %v2503_v35, %v2830_v56  ;;  %v2902_v47 = vmul.f32 %v2503_v35, %v2832_v57  ;;  %v511_v48 = vmul.f32 %v2502_v36, %v2830_v56  ;;  %v2516_v49 = vpop.permute.xlu1 %2515  ;;  %v2511_v50 = vpop.permute.xlu0 %2510 }
  0xae   : > { %v559_v52 = vrot.slane %v2893_v41, 1  ;;  %v557_v53 = vrot.slane %v513_v43, 1  ;;  %v695_v54 = vrot.slane %v651_v44, 2  ;;  %v2518_v2 = vunpack.i.h.bf16 %v2516_v49 }
  0xaf   : > { %v555_v55 = vrot.slane %v512_v46, 1  ;;  %v693_v58 = vrot.slane %v2902_v47, 2  ;;  %v554_v59 = vrot.slane %v511_v48, 1  ;;  %v697_v3 = vrot.slane %v2896_v42, 2 }
  0xb0   : > { %v560_v8 = vsel %vm553_vm0, %v557_v53, %v559_v52  ;;  %v2517_v9 = vunpack.i.l.bf16 %v2516_v49  ;;  %v2513_v10 = vunpack.i.h.bf16 %v2511_v50  ;;  %v2922_v18 = vmul.f32 %v2518_v2, %v2830_v56 }
  0xb1   : > { %v617_v12 = vadd.f32 %v560_v8, %v319_v20  ;;  %v558_v15 = vsel %vm553_vm0, %v555_v55, %v557_v53  ;;  %v556_v4 = vsel %vm553_vm0, %v554_v59, %v555_v55  ;;  %v2925_v19 = vmul.f32 %v2518_v2, %v2832_v57  ;;  %v2521_v43 = vpop.permute.xlu0 %2520 }
  0xb2   : > { %v2918_v16 = vadd.f32 %v556_v4, %v2804_v30  ;;  %v616_v17 = vadd.f32 %v558_v15, %v2801_v29  ;;  %v696_v24 = vsel %vm691_vm1, %v693_v58, %v695_v54  ;;  %v517_v20 = vmul.f32 %v2517_v9, %v2830_v56  ;;  %v2526_v30 = vpop.permute.xlu1 %2525 }
  0xb3   : > { %v655_v28 = vmul.f32 %v2517_v9, %v2832_v57  ;;  %v516_v31 = vmul.f32 %v2513_v10, %v2830_v56  ;;  %v698_v32 = vsel %vm691_vm1, %v695_v54, %v697_v3  ;;  %v567_v33 = vrot.slane %v2922_v18, 1 }
  0xb4   : > { %v2934_v29 = vadd.f32 %v696_v24, %v616_v17  ;;  %v654_v34 = vmul.f32 %v2513_v10, %v2832_v57  ;;  %v705_v35 = vrot.slane %v2925_v19, 2  ;;  %v565_v36 = vrot.slane %v517_v20, 1 }
  0xb5   : > { %v563_v41 = vrot.slane %v516_v31, 1  ;;  %v2512_v42 = vunpack.i.l.bf16 %v2511_v50  ;;  %v703_v44 = vrot.slane %v655_v28, 2  ;;  %v2528_v46 = vunpack.i.h.bf16 %v2526_v30 }
  0xb6   : > { %v701_v45 = vrot.slane %v654_v34, 2  ;;  %v2527_v48 = vunpack.i.l.bf16 %v2526_v30  ;;  %v2939_v49 = vadd.f32 %v698_v32, %v617_v12  ;;  %v568_v53 = vsel %vm553_vm0, %v565_v36, %v567_v33  ;;  %v2536_v30 = vpop.permute.xlu1 %2535 }
  0xb7   : > { %v566_v54 = vsel %vm553_vm0, %v563_v41, %v565_v36  ;;  %v515_v55 = vmul.f32 %v2512_v42, %v2830_v56  ;;  %v621_v59 = vadd.f32 %v568_v53, %v2856_v13  ;;  %v653_v50 = vmul.f32 %v2512_v42, %v2832_v57 }
  0xb8   : > { %v620_v2 = vadd.f32 %v566_v54, %v2839_v62  ;;  %v2523_v8 = vunpack.i.h.bf16 %v2521_v43  ;;  %v2950_v10 = vmul.f32 %v2528_v46, %v2830_v56  ;;  %v2953_v12 = vmul.f32 %v2528_v46, %v2832_v57 }
  0xb9   : > { %v561_v9 = vrot.slane %v515_v55, 1  ;;  %v521_v15 = vmul.f32 %v2527_v48, %v2830_v56  ;;  %v706_v4 = vsel %vm691_vm1, %v703_v44, %v705_v35  ;;  %v704_v13 = vsel %vm691_vm1, %v701_v45, %v703_v44 }
  0xba   : > { %v699_v17 = vrot.slane %v653_v50, 2  ;;  %v659_v62 = vmul.f32 %v2527_v48, %v2832_v57  ;;  %v2961_v24 = vadd.f32 %v706_v4, %v621_v59  ;;  %v575_v31 = vrot.slane %v2950_v10, 1 }
  0xbb   : > { %v562_v20 = vsel %vm553_vm0, %v559_v52, %v561_v9  ;;  %v564_v28 = vsel %vm553_vm0, %v561_v9, %v563_v41  ;;  %v2966_v32 = vadd.f32 %v704_v13, %v620_v2  ;;  %v713_v42 = vrot.slane %v2953_v12, 2 }
  0xbc   : > { %v618_v34 = vadd.f32 %v562_v20, %v2859_v14  ;;  %v619_v36 = vadd.f32 %v564_v28, %v2842_v63  ;;  %v573_v44 = vrot.slane %v521_v15, 1  ;;  %v711_v46 = vrot.slane %v659_v62, 2 }
  0xbd   : > { %v520_v48 = vmul.f32 %v2523_v8, %v2830_v56  ;;  %v658_v53 = vmul.f32 %v2523_v8, %v2832_v57  ;;  %v700_v52 = vsel %vm691_vm1, %v697_v3, %v699_v17  ;;  %v702_v41 = vsel %vm691_vm1, %v699_v17, %v701_v45 }
  0xbe   : > { %v2522_v54 = vunpack.i.l.bf16 %v2521_v43  ;;  %v2538_v55 = vunpack.i.h.bf16 %v2536_v30  ;;  %v2975_v59 = vadd.f32 %v700_v52, %v618_v34  ;;  %v576_v63 = vsel %vm553_vm0, %v573_v44, %v575_v31 }
  0xbf   : > { %v571_v14 = vrot.slane %v520_v48, 1  ;;  %v709_v2 = vrot.slane %v658_v53, 2  ;;  %v625_v50 = vadd.f32 %v576_v63, %v2872_v25  ;;  %v714_v43 = vsel %vm691_vm1, %v711_v46, %v713_v42  ;;  %v2531_v53 = vpop.permute.xlu0 %2530 }
  0xc0   : > { %v519_v9 = vmul.f32 %v2522_v54, %v2830_v56  ;;  %v657_v8 = vmul.f32 %v2522_v54, %v2832_v57  ;;  %v2984_v3 = vmul.f32 %v2538_v55, %v2830_v56  ;;  %v2991_v15 = vmul.f32 %v2538_v55, %v2832_v57 }
  0xc1   : > { %v574_v45 = vsel %vm553_vm0, %v571_v14, %v573_v44  ;;  %v2537_v4 = vunpack.i.l.bf16 %v2536_v30  ;;  %v2993_v13 = vadd.f32 %v702_v41, %v619_v36  ;;  %v2995_v25 = vadd.f32 %v714_v43, %v625_v50  ;;  %v2546_v44 = vpop.permute.xlu1 %2545 }
  0xc2   : > { %v569_v17 = vrot.slane %v519_v9, 1  ;;  %v707_v62 = vrot.slane %v657_v8, 2  ;;  %v624_v20 = vadd.f32 %v574_v45, %v2875_v26  ;;  %v583_v28 = vrot.slane %v2984_v3, 1 }
  0xc3   : > { %v525_v34 = vmul.f32 %v2537_v4, %v2830_v56  ;;  %v663_v48 = vmul.f32 %v2537_v4, %v2832_v57  ;;  %v712_v52 = vsel %vm691_vm1, %v709_v2, %v711_v46  ;;  %v721_v41 = vrot.slane %v2991_v15, 2 }
  0xc4   : > { %v570_v30 = vsel %vm553_vm0, %v567_v33, %v569_v17  ;;  %v572_v36 = vsel %vm553_vm0, %v569_v17, %v571_v14  ;;  %v708_v54 = vsel %vm691_vm1, %v705_v35, %v707_v62  ;;  %v710_v55 = vsel %vm691_vm1, %v707_v62, %v709_v2 }
  0xc5   : > { %v622_v26 = vadd.f32 %v570_v30, %v2853_v7  ;;  %v581_v63 = vrot.slane %v525_v34, 1  ;;  %v719_v50 = vrot.slane %v663_v48, 2  ;;  %v2533_v9 = vunpack.i.h.bf16 %v2531_v53 }
  0xc6   : > { %v2532_v46 = vunpack.i.l.bf16 %v2531_v53  ;;  %v2548_v8 = vunpack.i.h.bf16 %v2546_v44  ;;  %v623_v18 = vadd.f32 %v572_v36, %v2878_v27  ;;  %v3013_v33 = vadd.f32 %v712_v52, %v624_v20 }
  0xc7   : > { %v584_v14 = vsel %vm553_vm0, %v581_v63, %v583_v28  ;;  %v2547_v7 = vunpack.i.l.bf16 %v2546_v44  ;;  %v722_v35 = vsel %vm691_vm1, %v719_v50, %v721_v41  ;;  %v524_v2 = vmul.f32 %v2533_v9, %v2830_v56 }
  0xc8   : > { %v629_v19 = vadd.f32 %v584_v14, %v2884_v38  ;;  %v662_v43 = vmul.f32 %v2533_v9, %v2832_v57  ;;  %v523_v45 = vmul.f32 %v2532_v46, %v2830_v56  ;;  %v661_v27 = vmul.f32 %v2532_v46, %v2832_v57 }
  0xc9   : > { %v3027_v4 = vmul.f32 %v2548_v8, %v2830_v56  ;;  %v3030_v17 = vmul.f32 %v2548_v8, %v2832_v57  ;;  %v579_v38 = vrot.slane %v524_v2, 1  ;;  %v529_v34 = vmul.f32 %v2547_v7, %v2830_v56  ;;  %v2541_v8 = vpop.permute.xlu0 %2540 }
  0xca   : > { %v3032_v62 = vadd.f32 %v722_v35, %v629_v19  ;;  %v717_v20 = vrot.slane %v662_v43, 2  ;;  %v3035_v48 = vadd.f32 %v708_v54, %v622_v26  ;;  %v577_v53 = vrot.slane %v523_v45, 1  ;;  %v2556_v35 = vpop.permute.xlu1 %2555 }
  0xcb   : > { %v715_v44 = vrot.slane %v661_v27, 2  ;;  %v591_v52 = vrot.slane %v3027_v4, 1  ;;  %v3038_v30 = vadd.f32 %v710_v55, %v623_v18  ;;  %v582_v36 = vsel %vm553_vm0, %v579_v38, %v581_v63 }
  0xcc   : > { %v589_v9 = vrot.slane %v529_v34, 1  ;;  %v667_v46 = vmul.f32 %v2547_v7, %v2832_v57  ;;  %v720_v14 = vsel %vm691_vm1, %v717_v20, %v719_v50  ;;  %v578_v19 = vsel %vm553_vm0, %v575_v31, %v577_v53 }
  0xcd   : > { %v580_v26 = vsel %vm553_vm0, %v577_v53, %v579_v38  ;;  %v729_v54 = vrot.slane %v3030_v17, 2  ;;  %v626_v55 = vadd.f32 %v578_v19, %v2863_v21  ;;  %v628_v18 = vadd.f32 %v582_v36, %v2887_v39 }
  0xce   : > { %v716_v63 = vsel %vm691_vm1, %v713_v42, %v715_v44  ;;  %v592_v50 = vsel %vm553_vm0, %v589_v9, %v591_v52  ;;  %v627_v10 = vadd.f32 %v580_v26, %v2890_v40  ;;  %v727_v7 = vrot.slane %v667_v46, 2 }
  0xcf   : > { %v633_v31 = vadd.f32 %v592_v50, %v2869_v23  ;;  %v2543_v2 = vunpack.i.h.bf16 %v2541_v8  ;;  %v718_v43 = vsel %vm691_vm1, %v715_v44, %v717_v20  ;;  %v3059_v45 = vadd.f32 %v716_v63, %v626_v55 }
  0xd0   : > { %v2542_v21 = vunpack.i.l.bf16 %v2541_v8  ;;  %v2558_v39 = vunpack.i.h.bf16 %v2556_v35  ;;  %v730_v12 = vsel %vm691_vm1, %v727_v7, %v729_v54  ;;  %v2557_v40 = vunpack.i.l.bf16 %v2556_v35 }
  0xd1   : > { %v528_v42 = vmul.f32 %v2543_v2, %v2830_v56  ;;  %v666_v27 = vmul.f32 %v2543_v2, %v2832_v57  ;;  %v3066_v38 = vadd.f32 %v730_v12, %v633_v31  ;;  %v3079_v8 = vadd.f32 %v720_v14, %v628_v18  ;;  %v2551_v2 = vpop.permute.xlu0 %2550 }
  0xd2   : > { %v527_v23 = vmul.f32 %v2542_v21, %v2830_v56  ;;  %v665_v20 = vmul.f32 %v2542_v21, %v2832_v57  ;;  %v3071_v34 = vmul.f32 %v2558_v39, %v2834_v60  ;;  %v3074_v36 = vmul.f32 %v2558_v39, %v2836_v61 }
  0xd3   : > { %v587_v53 = vrot.slane %v528_v42, 1  ;;  %v725_v44 = vrot.slane %v666_v27, 2  ;;  %v3077_v46 = vmul.f32 %v2558_v39, %v2844_v0  ;;  %v927_v35 = vmul.f32 %v2557_v40, %v2834_v60 }
  0xd4   : > { %v585_v19 = vrot.slane %v527_v23, 1  ;;  %v723_v26 = vrot.slane %v665_v20, 2  ;;  %v970_v50 = vrot.slane %v3071_v34, 2  ;;  %v1108_v31 = vrot.slane %v3074_v36, 3 }
  0xd5   : > { %v590_v55 = vsel %vm553_vm0, %v587_v53, %v589_v9  ;;  %v728_v63 = vsel %vm691_vm1, %v725_v44, %v727_v7  ;;  %v2566_v9 = vpop.permute.xlu1 %2565  ;;  %v969_v27 = vrot.slane %v927_v35, 2  ;;  %v1064_v3 = vmul.f32 %v2557_v40, %v2836_v61 }
  0xd6   : > { %v586_v21 = vsel %vm553_vm0, %v583_v28, %v585_v19  ;;  %v588_v14 = vsel %vm553_vm0, %v585_v19, %v587_v53  ;;  %v632_v18 = vadd.f32 %v590_v55, %v2906_v51  ;;  %v724_v39 = vsel %vm691_vm1, %v721_v41, %v723_v26 }
  0xd7   : > { %v630_v7 = vadd.f32 %v586_v21, %v2881_v37  ;;  %v631_v12 = vadd.f32 %v588_v14, %v2913_v11  ;;  %v726_v42 = vsel %vm691_vm1, %v723_v26, %v725_v44  ;;  %v2553_v28 = vunpack.i.h.bf16 %v2551_v2 }
  0xd8   : > { %v3097_v23 = vadd.f32 %v728_v63, %v632_v18  ;;  %v2552_v20 = vunpack.i.l.bf16 %v2551_v2  ;;  %v971_v15 = vsel %vm691_vm1, %v969_v27, %v970_v50  ;;  %v2568_v37 = vunpack.i.h.bf16 %v2566_v9 }
  0xd9   : > { %v3100_v53 = vadd.f32 %v724_v39, %v630_v7  ;;  %v3102_v51 = vadd.f32 %v726_v42, %v631_v12  ;;  %v1107_v41 = vrot.slane %v1064_v3, 3  ;;  %v649_v11 = vmul.f32 %v2553_v28, %v2832_v57  ;;  %v2561_v7 = vpop.permute.xlu0 %2560  ;;  %v2576_v42 = vpop.permute.xlu1 %2575 }
  0xda   : > { %v531_v44 = vmul.f32 %v2552_v20, %v2830_v56  ;;  %v669_v19 = vmul.f32 %v2552_v20, %v2832_v57  ;;  %v3111_v40 = vmul.f32 %v2568_v37, %v2834_v60  ;;  %v3114_v26 = vmul.f32 %v2568_v37, %v2836_v61 }
  0xdb   : > { %v3117_v35 = vmul.f32 %v2568_v37, %v2844_v0  ;;  %v2567_v55 = vunpack.i.l.bf16 %v2566_v9  ;;  %v3122_v63 = vsel %vm1106_vm2, %v1107_v41, %v1108_v31  ;;  %v692_v2 = vrot.slane %v649_v11, 2 }
  0xdc   : > { %v593_v56 = vrot.slane %v531_v44, 1  ;;  %v731_v21 = vrot.slane %v669_v19, 2  ;;  %v3124_v57 = vadd.f32 %v718_v43, %v627_v10  ;;  %v978_v14 = vrot.slane %v3111_v40, 2 }
  0xdd   : > { %v1116_v18 = vrot.slane %v3114_v26, 3  ;;  %v931_v39 = vmul.f32 %v2567_v55, %v2834_v60  ;;  %v694_v12 = vsel %vm691_vm1, %v692_v2, %v693_v58  ;;  %v1068_v43 = vmul.f32 %v2567_v55, %v2836_v61 }
  0xde   : > { %v594_v9 = vsel %vm553_vm0, %v591_v52, %v593_v56  ;;  %v732_v10 = vsel %vm691_vm1, %v729_v54, %v731_v21  ;;  %v753_v3 = vadd.f32 %v694_v12, %v2918_v16  ;;  %v1206_v4 = vmul.f32 %v2567_v55, %v2844_v0 }
  0xdf   : > { %v634_v27 = vadd.f32 %v594_v9, %v2866_v22  ;;  %v976_v28 = vrot.slane %v931_v39, 2  ;;  %v1254_v52 = vrot.slane %v3117_v35, 4  ;;  %v1114_v20 = vrot.slane %v1068_v43, 3 }
  0xe0   : > { %v2563_v47 = vunpack.i.h.bf16 %v2561_v7  ;;  %v2562_v37 = vunpack.i.l.bf16 %v2561_v7  ;;  %v3145_v17 = vadd.f32 %v971_v15, %v753_v3  ;;  %v2578_v41 = vunpack.i.h.bf16 %v2576_v42 }
  0xe1   : > { %v3143_v58 = vadd.f32 %v732_v10, %v634_v27  ;;  %v979_v54 = vsel %vm691_vm1, %v976_v28, %v978_v14  ;;  %v1252_v16 = vrot.slane %v1206_v4, 4  ;;  %v1117_v19 = vsel %vm1106_vm2, %v1114_v20, %v1116_v18 }
  0xe2   : > { %v1034_v22 = vadd.f32 %v979_v54, %v2993_v13  ;;  %v930_v11 = vmul.f32 %v2563_v47, %v2834_v60  ;;  %v1067_v44 = vmul.f32 %v2563_v47, %v2836_v61  ;;  %v1205_v55 = vmul.f32 %v2563_v47, %v2844_v0 }
  0xe3   : > { %v929_v15 = vmul.f32 %v2562_v37, %v2834_v60  ;;  %v1066_v2 = vmul.f32 %v2562_v37, %v2836_v61  ;;  %v1204_v13 = vmul.f32 %v2562_v37, %v2844_v0  ;;  %v3768_v7 = vrot.slane %v3077_v46, 4 }
  0xe4   : > { %v1172_v56 = vadd.f32 %v1117_v19, %v1034_v22  ;;  %v974_v21 = vrot.slane %v930_v11, 2  ;;  %v1112_v39 = vrot.slane %v1067_v44, 3  ;;  %v1250_v9 = vrot.slane %v1205_v55, 4  ;;  %v2571_v55 = vpop.permute.xlu0 %2570 }
  0xe5   : > { %v972_v12 = vrot.slane %v929_v15, 2  ;;  %v1110_v10 = vrot.slane %v1066_v2, 3  ;;  %v1255_v43 = vsel %vm1244_vm3, %v1252_v16, %v1254_v52  ;;  %v1248_v3 = vrot.slane %v1204_v13, 4 }
  0xe6   : > { %v977_v27 = vsel %vm691_vm1, %v974_v21, %v976_v28  ;;  %v3166_v4 = vmul.f32 %v2578_v41, %v2834_v60  ;;  %v3168_v47 = vadd.f32 %v1255_v43, %v1172_v56  ;;  %v1115_v11 = vsel %vm1106_vm2, %v1112_v39, %v1114_v20 }
  0xe7   : > { %v973_v37 = vsel %vm691_vm1, %v970_v50, %v972_v12  ;;  %v975_v54 = vsel %vm691_vm1, %v972_v12, %v974_v21  ;;  %v1033_v22 = vadd.f32 %v977_v27, %v2975_v59  ;;  %v1253_v44 = vsel %vm1244_vm3, %v1250_v9, %v1252_v16 }
  0xe8   : > { %v1031_v28 = vadd.f32 %v973_v37, %v2934_v29  ;;  %v1032_v19 = vadd.f32 %v975_v54, %v2939_v49  ;;  %v1111_v15 = vsel %vm1106_vm2, %v1108_v31, %v1110_v10  ;;  %v1113_v34 = vsel %vm1106_vm2, %v1110_v10, %v1112_v39 }
  0xe9   : > { %v1171_v50 = vadd.f32 %v1115_v11, %v1033_v22  ;;  %v1249_v59 = vsel %vm1244_vm3, %v3768_v7, %v1248_v3  ;;  %v1251_v20 = vsel %vm1244_vm3, %v1248_v3, %v1250_v9  ;;  %v3188_v16 = vmul.f32 %v2578_v41, %v2836_v61 }
  0xea   : > { %v1169_v2 = vadd.f32 %v1111_v15, %v1031_v28  ;;  %v3191_v29 = vmul.f32 %v2578_v41, %v2844_v0  ;;  %v986_v49 = vrot.slane %v3166_v4, 2  ;;  %v2577_v36 = vunpack.i.l.bf16 %v2576_v42 }
  0xeb   : > { %v2573_v31 = vunpack.i.h.bf16 %v2571_v55  ;;  %v2572_v56 = vunpack.i.l.bf16 %v2571_v55  ;;  %v1170_v21 = vadd.f32 %v1113_v34, %v1032_v19  ;;  %v1124_v13 = vrot.slane %v3188_v16, 3 }
  0xec   : > { %v3194_v39 = vadd.f32 %v1249_v59, %v1169_v2  ;;  %v1262_v12 = vrot.slane %v3191_v29, 4  ;;  %v935_v9 = vmul.f32 %v2577_v36, %v2834_v60  ;;  %v1072_v10 = vmul.f32 %v2577_v36, %v2836_v61 }
  0xed   : > { %v1210_v43 = vmul.f32 %v2577_v36, %v2844_v0  ;;  %v934_v41 = vmul.f32 %v2573_v31, %v2834_v60  ;;  %v1071_v27 = vmul.f32 %v2573_v31, %v2836_v61  ;;  %v1209_v42 = vmul.f32 %v2573_v31, %v2844_v0 }
  0xee   : > { %v933_v3 = vmul.f32 %v2572_v56, %v2834_v60  ;;  %v1070_v37 = vmul.f32 %v2572_v56, %v2836_v61  ;;  %v984_v54 = vrot.slane %v935_v9, 2  ;;  %v1122_v22 = vrot.slane %v1072_v10, 3 }
  0xef   : > { %v1260_v11 = vrot.slane %v1210_v43, 4  ;;  %v982_v28 = vrot.slane %v934_v41, 2  ;;  %v3206_v19 = vadd.f32 %v1253_v44, %v1171_v50  ;;  %v1120_v55 = vrot.slane %v1071_v27, 3 }
  0xf0   : > { %v1258_v15 = vrot.slane %v1209_v42, 4  ;;  %v980_v34 = vrot.slane %v933_v3, 2  ;;  %v3208_v59 = vadd.f32 %v1251_v20, %v1170_v21  ;;  %v987_v2 = vsel %vm691_vm1, %v984_v54, %v986_v49  ;;  %v2586_v20 = vpop.permute.xlu1 %2585 }
  0xf1   : > { %v985_v36 = vsel %vm691_vm1, %v982_v28, %v984_v54  ;;  %v1118_v31 = vrot.slane %v1070_v37, 3  ;;  %v1038_v7 = vadd.f32 %v987_v2, %v3038_v30  ;;  %v1125_v9 = vsel %vm1106_vm2, %v1122_v22, %v1124_v13  ;;  %v2581_v37 = vpop.permute.xlu0 %2580 }
  0xf2   : > { %v1263_v44 = vsel %vm1244_vm3, %v1260_v11, %v1262_v12  ;;  %v981_v50 = vsel %vm691_vm1, %v978_v14, %v980_v34  ;;  %v1123_v21 = vsel %vm1106_vm2, %v1120_v55, %v1122_v22  ;;  %v983_v10 = vsel %vm691_vm1, %v980_v34, %v982_v28 }
  0xf3   : > { %v1035_v43 = vadd.f32 %v981_v50, %v2966_v32  ;;  %v1037_v30 = vadd.f32 %v985_v36, %v3035_v48  ;;  %v1176_v41 = vadd.f32 %v1125_v9, %v1038_v7  ;;  %v1261_v27 = vsel %vm1244_vm3, %v1258_v15, %v1260_v11 }
  0xf4   : > { %v1036_v42 = vadd.f32 %v983_v10, %v2961_v24  ;;  %v1208_v3 = vmul.f32 %v2572_v56, %v2844_v0  ;;  %v1119_v40 = vsel %vm1106_vm2, %v1116_v18, %v1118_v31  ;;  %v2588_v54 = vunpack.i.h.bf16 %v2586_v20 }
  0xf5   : > { %v1175_v14 = vadd.f32 %v1123_v21, %v1037_v30  ;;  %v2587_v22 = vunpack.i.l.bf16 %v2586_v20  ;;  %v3234_v28 = vadd.f32 %v1263_v44, %v1176_v41  ;;  %v1121_v32 = vsel %vm1106_vm2, %v1118_v31, %v1120_v55 }
  0xf6   : > { %v1173_v48 = vadd.f32 %v1119_v40, %v1035_v43  ;;  %v1256_v7 = vrot.slane %v1208_v3, 4  ;;  %v3238_v11 = vmul.f32 %v2588_v54, %v2834_v60  ;;  %v3241_v24 = vmul.f32 %v2588_v54, %v2836_v61  ;;  %v2596_v43 = vpop.permute.xlu1 %2595 }
  0xf7   : > { %v3244_v56 = vmul.f32 %v2588_v54, %v2844_v0  ;;  %v2583_v26 = vunpack.i.h.bf16 %v2581_v37  ;;  %v1174_v18 = vadd.f32 %v1121_v32, %v1036_v42  ;;  %v3246_v34 = vadd.f32 %v1261_v27, %v1175_v14 }
  0xf8   : > { %v939_v2 = vmul.f32 %v2587_v22, %v2834_v60  ;;  %v1076_v36 = vmul.f32 %v2587_v22, %v2836_v61  ;;  %v1257_v55 = vsel %vm1244_vm3, %v1254_v52, %v1256_v7  ;;  %v1259_v31 = vsel %vm1244_vm3, %v1256_v7, %v1258_v15 }
  0xf9   : > { %v994_v9 = vrot.slane %v3238_v11, 2  ;;  %v1132_v44 = vrot.slane %v3241_v24, 3  ;;  %v1270_v50 = vrot.slane %v3244_v56, 4  ;;  %v1214_v10 = vmul.f32 %v2587_v22, %v2844_v0 }
  0xfa   : > { %v992_v20 = vrot.slane %v939_v2, 2  ;;  %v1130_v21 = vrot.slane %v1076_v36, 3  ;;  %v938_v30 = vmul.f32 %v2583_v26, %v2834_v60  ;;  %v1075_v41 = vmul.f32 %v2583_v26, %v2836_v61 }
  0xfb   : > { %v1213_v35 = vmul.f32 %v2583_v26, %v2844_v0  ;;  %v2582_v52 = vunpack.i.l.bf16 %v2581_v37  ;;  %v3261_v27 = vadd.f32 %v1257_v55, %v1173_v48  ;;  %v1268_v3 = vrot.slane %v1214_v10, 4 }
  0xfc   : > { %v995_v15 = vsel %vm691_vm1, %v992_v20, %v994_v9  ;;  %v1133_v42 = vsel %vm1106_vm2, %v1130_v21, %v1132_v44  ;;  %v990_v14 = vrot.slane %v938_v30, 2  ;;  %v1128_v54 = vrot.slane %v1075_v41, 3 }
  0xfd   : > { %v1042_v40 = vadd.f32 %v995_v15, %v3124_v57  ;;  %v2598_v22 = vunpack.i.h.bf16 %v2596_v43  ;;  %v1266_v32 = vrot.slane %v1213_v35, 4  ;;  %v937_v7 = vmul.f32 %v2582_v52, %v2834_v60 }
  0xfe   : > { %v1074_v37 = vmul.f32 %v2582_v52, %v2836_v61  ;;  %v1212_v48 = vmul.f32 %v2582_v52, %v2844_v0  ;;  %v3273_v26 = vadd.f32 %v1259_v31, %v1174_v18  ;;  %v1271_v36 = vsel %vm1244_vm3, %v1268_v3, %v1270_v50 }
  0xff   : > { %v1180_v2 = vadd.f32 %v1133_v42, %v1042_v40  ;;  %v993_v55 = vsel %vm691_vm1, %v990_v14, %v992_v20  ;;  %v988_v57 = vrot.slane %v937_v7, 2  ;;  %v1131_v35 = vsel %vm1106_vm2, %v1128_v54, %v1130_v21 }
 0x100   : > { %v1041_v10 = vadd.f32 %v993_v55, %v3059_v45  ;;  %v1126_v30 = vrot.slane %v1074_v37, 3  ;;  %v1264_v41 = vrot.slane %v1212_v48, 4  ;;  %v3282_v15 = vmul.f32 %v2598_v22, %v2834_v60  ;;  %v2591_v37 = vpop.permute.xlu0 %2590 }
 0x101   : > { %v3285_v18 = vmul.f32 %v2598_v22, %v2836_v61  ;;  %v3288_v31 = vmul.f32 %v2598_v22, %v2844_v0  ;;  %v3290_v52 = vadd.f32 %v1271_v36, %v1180_v2  ;;  %v1269_v20 = vsel %vm1244_vm3, %v1266_v32, %v1268_v3 }
 0x102   : > { %v989_v45 = vsel %vm691_vm1, %v986_v49, %v988_v57  ;;  %v991_v42 = vsel %vm691_vm1, %v988_v57, %v990_v14  ;;  %v1127_v7 = vsel %vm1106_vm2, %v1124_v13, %v1126_v30  ;;  %v1179_v22 = vadd.f32 %v1131_v35, %v1041_v10  ;;  %v2606_v14 = vpop.permute.xlu1 %2605 }
 0x103   : > { %v1039_v21 = vadd.f32 %v989_v45, %v3013_v33  ;;  %v1040_v40 = vadd.f32 %v991_v42, %v2995_v25  ;;  %v1129_v48 = vsel %vm1106_vm2, %v1126_v30, %v1128_v54  ;;  %v1265_v4 = vsel %vm1244_vm3, %v1262_v12, %v1264_v41 }
 0x104   : > { %v1267_v49 = vsel %vm1244_vm3, %v1264_v41, %v1266_v32  ;;  %v1002_v3 = vrot.slane %v3282_v15, 2  ;;  %v1140_v25 = vrot.slane %v3285_v18, 3  ;;  %v3769_v16 = vrot.slane %v3288_v31, 4 }
 0x105   : > { %v1177_v33 = vadd.f32 %v1127_v7, %v1039_v21  ;;  %v2597_v2 = vunpack.i.l.bf16 %v2596_v43  ;;  %v1178_v13 = vadd.f32 %v1129_v48, %v1040_v40  ;;  %v3310_v36 = vadd.f32 %v1269_v20, %v1179_v22 }
 0x106   : > { %v2593_v55 = vunpack.i.h.bf16 %v2591_v37  ;;  %v2592_v54 = vunpack.i.l.bf16 %v2591_v37  ;;  %v2608_v57 = vunpack.i.h.bf16 %v2606_v14  ;;  %v2607_v32 = vunpack.i.l.bf16 %v2606_v14 }
 0x107   : > { %v943_v29 = vmul.f32 %v2597_v2, %v2834_v60  ;;  %v1080_v12 = vmul.f32 %v2597_v2, %v2836_v61  ;;  %v1218_v10 = vmul.f32 %v2597_v2, %v2844_v0  ;;  %v3320_v21 = vadd.f32 %v1265_v4, %v1177_v33 }
 0x108   : > { %v942_v30 = vmul.f32 %v2593_v55, %v2834_v60  ;;  %v1079_v41 = vmul.f32 %v2593_v55, %v2836_v61  ;;  %v1217_v35 = vmul.f32 %v2593_v55, %v2844_v0  ;;  %v941_v20 = vmul.f32 %v2592_v54, %v2834_v60 }
 0x109   : > { %v1000_v43 = vrot.slane %v943_v29, 2  ;;  %v1138_v45 = vrot.slane %v1080_v12, 3  ;;  %v1078_v42 = vmul.f32 %v2592_v54, %v2836_v61  ;;  %v1276_v40 = vrot.slane %v1218_v10, 4 }
 0x10a   : > { %v998_v7 = vrot.slane %v942_v30, 2  ;;  %v1136_v22 = vrot.slane %v1079_v41, 3  ;;  %v3322_v37 = vadd.f32 %v1267_v49, %v1178_v13  ;;  %v1274_v14 = vrot.slane %v1217_v35, 4 }
 0x10b   : > { %v1003_v48 = vsel %vm691_vm1, %v1000_v43, %v1002_v3  ;;  %v996_v2 = vrot.slane %v941_v20, 2  ;;  %v1141_v29 = vsel %vm1106_vm2, %v1138_v45, %v1140_v25  ;;  %v1134_v33 = vrot.slane %v1078_v42, 3 }
 0x10c   : > { %v1046_v55 = vadd.f32 %v1003_v48, %v3102_v51  ;;  %v1001_v4 = vsel %vm691_vm1, %v998_v7, %v1000_v43  ;;  %v1279_v49 = vsel %vm1244_vm3, %v1276_v40, %v3769_v16  ;;  %v1139_v30 = vsel %vm1106_vm2, %v1136_v22, %v1138_v45  ;;  %v2601_v48 = vpop.permute.xlu0 %2600 }
 0x10d   : > { %v997_v13 = vsel %vm691_vm1, %v994_v9, %v996_v2  ;;  %v999_v12 = vsel %vm691_vm1, %v996_v2, %v998_v7  ;;  %v1045_v10 = vadd.f32 %v1001_v4, %v3100_v53  ;;  %v1277_v43 = vsel %vm1244_vm3, %v1274_v14, %v1276_v40  ;;  %v2616_v9 = vpop.permute.xlu1 %2615 }
 0x10e   : > { %v1184_v51 = vadd.f32 %v1141_v29, %v1046_v55  ;;  %v1043_v41 = vadd.f32 %v997_v13, %v3079_v8  ;;  %v1044_v35 = vadd.f32 %v999_v12, %v3032_v62  ;;  %v1216_v42 = vmul.f32 %v2592_v54, %v2844_v0 }
 0x10f   : > { %v1183_v20 = vadd.f32 %v1139_v30, %v1045_v10  ;;  %v1084_v11 = vmul.f32 %v2608_v57, %v2836_v61  ;;  %v1135_v53 = vsel %vm1106_vm2, %v1132_v44, %v1134_v33  ;;  %v1137_v45 = vsel %vm1106_vm2, %v1134_v33, %v1136_v22 }
 0x110   : > { %v3346_v16 = vadd.f32 %v1279_v49, %v1184_v51  ;;  %v1222_v8 = vmul.f32 %v2608_v57, %v2844_v0  ;;  %v1181_v62 = vadd.f32 %v1135_v53, %v1043_v41  ;;  %v1182_v7 = vadd.f32 %v1137_v45, %v1044_v35 }
 0x111   : > { %v1272_v40 = vrot.slane %v1216_v42, 4  ;;  %v947_v2 = vmul.f32 %v2607_v32, %v2834_v60  ;;  %v3354_v54 = vadd.f32 %v1277_v43, %v1183_v20  ;;  %v2603_v55 = vunpack.i.h.bf16 %v2601_v48 }
 0x112   : > { %v2602_v29 = vunpack.i.l.bf16 %v2601_v48  ;;  %v2618_v4 = vunpack.i.h.bf16 %v2616_v9  ;;  %v1146_v49 = vrot.slane %v1084_v11, 3  ;;  %v1284_v22 = vrot.slane %v1222_v8, 4 }
 0x113   : > { %v1273_v24 = vsel %vm1244_vm3, %v1270_v50, %v1272_v40  ;;  %v1275_v44 = vsel %vm1244_vm3, %v1272_v40, %v1274_v14  ;;  %v1008_v33 = vrot.slane %v947_v2, 2  ;;  %v946_v57 = vmul.f32 %v2603_v55, %v2834_v60 }
 0x114   : > { %v1083_v13 = vmul.f32 %v2603_v55, %v2836_v61  ;;  %v2617_v12 = vunpack.i.l.bf16 %v2616_v9  ;;  %v1221_v32 = vmul.f32 %v2603_v55, %v2844_v0  ;;  %v945_v10 = vmul.f32 %v2602_v29, %v2834_v60  ;;  %v2611_v55 = vpop.permute.xlu0 %2610 }
 0x115   : > { %v1082_v51 = vmul.f32 %v2602_v29, %v2836_v61  ;;  %v1220_v56 = vmul.f32 %v2602_v29, %v2844_v0  ;;  %v3366_v30 = vadd.f32 %v1273_v24, %v1181_v62  ;;  %v1006_v50 = vrot.slane %v946_v57, 2  ;;  %v2626_v57 = vpop.permute.xlu1 %2625 }
 0x116   : > { %v1144_v14 = vrot.slane %v1083_v13, 3  ;;  %v3369_v41 = vmul.f32 %v2618_v4, %v2846_v1  ;;  %v1282_v35 = vrot.slane %v1221_v32, 4  ;;  %v1004_v43 = vrot.slane %v945_v10, 2 }
 0x117   : > { %v1142_v20 = vrot.slane %v1082_v51, 3  ;;  %v3372_v42 = vmul.f32 %v2618_v4, %v2848_v5  ;;  %v3374_v11 = vadd.f32 %v1275_v44, %v1182_v7  ;;  %v1009_v60 = vsel %vm691_vm1, %v1006_v50, %v1008_v33 }
 0x118   : > { %v1147_v61 = vsel %vm1106_vm2, %v1144_v14, %v1146_v49  ;;  %v1280_v48 = vrot.slane %v1220_v56, 4  ;;  %v3379_v9 = vsel %vm1244_vm3, %v1282_v35, %v1284_v22  ;;  %v1005_v53 = vsel %vm691_vm1, %v1002_v3, %v1004_v43 }
 0x119   : > { %v1007_v45 = vsel %vm691_vm1, %v1004_v43, %v1006_v50  ;;  %v1049_v8 = vadd.f32 %v1009_v60, %v3143_v58  ;;  %v1047_v62 = vadd.f32 %v1005_v53, %v3097_v23  ;;  %v1145_v40 = vsel %vm1106_vm2, %v1142_v20, %v1144_v14 }
 0x11a   : > { %v1048_v7 = vadd.f32 %v1007_v45, %v3066_v38  ;;  %v1525_v2 = vrot.slane %v3369_v41, 4  ;;  %v1143_v15 = vsel %vm1106_vm2, %v1140_v25, %v1142_v20  ;;  %v1663_v3 = vrot.slane %v3372_v42, 5 }
 0x11b   : > { %v3393_v29 = vadd.f32 %v1147_v61, %v1049_v8  ;;  %v3397_v58 = vmul.f32 %v2618_v4, %v2850_v6  ;;  %v3771_v23 = vrot.slane %v3288_v31, 4  ;;  %v1481_v44 = vmul.f32 %v2617_v12, %v2846_v1 }
 0x11c   : > { %v1186_v24 = vadd.f32 %v1145_v40, %v1048_v7  ;;  %v1618_v49 = vmul.f32 %v2617_v12, %v2848_v5  ;;  %v1283_v18 = vsel %vm1244_vm3, %v1280_v48, %v1282_v35  ;;  %v3406_v25 = vmul.f32 %v2617_v12, %v2850_v6  ;;  %v2621_v7 = vpop.permute.xlu0 %2620 }
 0x11d   : > { %v1281_v38 = vsel %vm1244_vm3, %v3771_v23, %v1280_v48  ;;  %v2613_v22 = vunpack.i.h.bf16 %v2611_v55  ;;  %v2612_v33 = vunpack.i.l.bf16 %v2611_v55  ;;  %v1185_v13 = vadd.f32 %v1143_v15, %v1047_v62 }
 0x11e   : > { %v3408_v4 = vadd.f32 %v1283_v18, %v1186_v24  ;;  %v1523_v32 = vrot.slane %v1481_v44, 4  ;;  %v1661_v10 = vrot.slane %v1618_v49, 5  ;;  %v1801_v31 = vrot.slane %v3397_v58, 6 }
 0x11f   : > { %v1480_v51 = vmul.f32 %v2613_v22, %v2846_v1  ;;  %v1617_v56 = vmul.f32 %v2613_v22, %v2848_v5  ;;  %v1168_v50 = vadd.f32 %v3122_v63, %v3145_v17  ;;  %v3770_v14 = vrot.slane %v3406_v25, 6 }
 0x120   : > { %v1526_v12 = vsel %vm1244_vm3, %v1523_v32, %v1525_v2  ;;  %v1202_v35 = vmul.f32 %v2612_v33, %v2844_v0  ;;  %v2628_v43 = vunpack.i.h.bf16 %v2626_v57  ;;  %v1664_v60 = vsel %vm1659_vm4, %v1661_v10, %v1663_v3 }
 0x121   : > { %v1584_v20 = vadd.f32 %v1526_v12, %v3194_v39  ;;  %v1522_v61 = vrot.slane %v1480_v51, 4  ;;  %v1660_v48 = vrot.slane %v1617_v56, 5  ;;  %v2627_v62 = vunpack.i.l.bf16 %v2626_v57 }
 0x122   : > { %v1245_v53 = vrot.slane %v1202_v35, 4  ;;  %v3425_v63 = vmul.f32 %v2628_v43, %v2846_v1  ;;  %v3428_v17 = vmul.f32 %v2628_v43, %v2848_v5  ;;  %v3431_v45 = vmul.f32 %v2628_v43, %v2850_v6 }
 0x123   : > { %v1722_v0 = vadd.f32 %v1664_v60, %v1584_v20  ;;  %v1524_v8 = vsel %vm1244_vm3, %v1522_v61, %v1523_v32  ;;  %v3435_v39 = vsel %vm1659_vm4, %v1660_v48, %v1661_v10  ;;  %v3437_v40 = vadd.f32 %v1281_v38, %v1185_v13  ;;  %v3453_v38 = vld [vmem:[%s3766_s2] ss:$0 sm:$0xff]  ;;  %v2636_v32 = vpop.permute.xlu1 %2635 }
 0x124   : > { %v1802_v55 = vsel %vm1797_vm5, %v3770_v14, %v1801_v31  ;;  %v3772_v15 = vrot.slane %v3077_v46, 4  ;;  %v1533_v23 = vrot.slane %v3425_v63, 4  ;;  %v1485_v18 = vmul.f32 %v2627_v62, %v2846_v1 }
 0x125   : > { %v1860_v44 = vadd.f32 %v1802_v55, %v1722_v0  ;;  %v1622_v22 = vmul.f32 %v2627_v62, %v2848_v5  ;;  %v1671_v33 = vrot.slane %v3428_v17, 5  ;;  %v1760_v57 = vmul.f32 %v2627_v62, %v2850_v6 }
 0x126   : > { %v1247_v24 = vsel %vm1244_vm3, %v1245_v53, %v3772_v15  ;;  %v2623_v46 = vunpack.i.h.bf16 %v2621_v7  ;;  %v2622_v13 = vunpack.i.l.bf16 %v2621_v7  ;;  %v1809_v51 = vrot.slane %v3431_v45, 6 }
 0x127   : > { %v1306_v49 = vadd.f32 %v1247_v24, %v1168_v50  ;;  %v1531_v56 = vrot.slane %v1485_v18, 4  ;;  %v1669_v50 = vrot.slane %v1622_v22, 5  ;;  %v1807_v12 = vrot.slane %v1760_v57, 6 }
 0x128   : > { %v1484_v35 = vmul.f32 %v2623_v46, %v2846_v1  ;;  %v1621_v43 = vmul.f32 %v2623_v46, %v2848_v5  ;;  %v1759_v20 = vmul.f32 %v2623_v46, %v2850_v6  ;;  %v3464_v60 = vadd.f32 %v3453_v38, %v1860_v44 }
 0x129   : > { %v3457_v10 = vadd.f32 %v1524_v8, %v1306_v49  ;;  %v1534_v61 = vsel %vm1244_vm3, %v1531_v56, %v1533_v23  ;;  %v1483_v48 = vmul.f32 %v2622_v13, %v2846_v1  ;;  %v2638_v53 = vunpack.i.h.bf16 %v2636_v32 }
 0x12a   : > { %v1588_v0 = vadd.f32 %v1534_v61, %v3261_v27  ;;  %v1672_v8 = vsel %vm1659_vm4, %v1669_v50, %v1671_v33  ;;  %v1529_v62 = vrot.slane %v1484_v35, 4  ;;  %v1667_v7 = vrot.slane %v1621_v43, 5 }
 0x12b   : > { %v1810_v55 = vsel %vm1797_vm5, %v1807_v12, %v1809_v51  ;;  %v1805_v15 = vrot.slane %v1759_v20, 6  ;;  %v1527_v24 = vrot.slane %v1483_v48, 4  ;;  %v1620_v44 = vmul.f32 %v2622_v13, %v2848_v5 }
 0x12c   : > { %v1726_v49 = vadd.f32 %v1672_v8, %v1588_v0  ;;  %v1532_v18 = vsel %vm1244_vm3, %v1529_v62, %v1531_v56  ;;  %v1670_v22 = vsel %vm1659_vm4, %v1667_v7, %v1669_v50  ;;  %v1758_v27 = vmul.f32 %v2622_v13, %v2850_v6 }
 0x12d   : > { %v1808_v57 = vsel %vm1797_vm5, %v1805_v15, %v1807_v12  ;;  %v1528_v46 = vsel %vm1244_vm3, %v1525_v2, %v1527_v24  ;;  %v1530_v35 = vsel %vm1244_vm3, %v1527_v24, %v1529_v62  ;;  %v1587_v43 = vadd.f32 %v1532_v18, %v3168_v47  ;;  %v2631_v24 = vpop.permute.xlu0 %2630 }
 0x12e   : > { %v1864_v20 = vadd.f32 %v1810_v55, %v1726_v49  ;;  %v1585_v61 = vadd.f32 %v1528_v46, %v3208_v59  ;;  %v1586_v48 = vadd.f32 %v1530_v35, %v3206_v19  ;;  %v1665_v56 = vrot.slane %v1620_v44, 5  ;;  %v3520_v46 = vld [vmem:[%s3766_s2 + $0x2] ss:$0 sm:$0xff] }
 0x12f   : > { %v1725_v0 = vadd.f32 %v1670_v22, %v1587_v43  ;;  %v1803_v50 = vrot.slane %v1758_v27, 6  ;;  %v3490_v13 = vmul.f32 %v2638_v53, %v2846_v1  ;;  %v3493_v12 = vmul.f32 %v2638_v53, %v2848_v5 }
 0x130   : > { %v1891_v41 = vadd.f32 %v3453_v38, %v1864_v20  ;;  %v1666_v47 = vsel %vm1659_vm4, %v1663_v3, %v1665_v56  ;;  %v1668_v2 = vsel %vm1659_vm4, %v1665_v56, %v1667_v7  ;;  %v3501_v59 = vmul.f32 %v2638_v53, %v2850_v6  ;;  %v3512_v53 = vld [vmem:[%s3766_s2 + $0x1] ss:$0 sm:$0xff] }
 0x131   : > { %v1723_v19 = vadd.f32 %v1666_v47, %v1585_v61  ;;  %v1724_v8 = vadd.f32 %v1668_v2, %v1586_v48  ;;  %v1804_v62 = vsel %vm1797_vm5, %v1801_v31, %v1803_v50  ;;  %v1806_v55 = vsel %vm1797_vm5, %v1803_v50, %v1805_v15 }
 0x132   : > { %v1911_v44 = vmax.f32 %v1891_v41, 0.0  ;;  %v1863_v49 = vadd.f32 %v1808_v57, %v1725_v0  ;;  %v1541_v42 = vrot.slane %v3490_v13, 4  ;;  %v1679_v3 = vrot.slane %v3493_v12, 5 }
 0x133   : > { %v1861_v7 = vadd.f32 %v1804_v62, %v1723_v19  ;;  %v1862_v18 = vadd.f32 %v1806_v55, %v1724_v8  ;;  %v1817_v58 = vrot.slane %v3501_v59, 6  ;;  %v2637_v31 = vunpack.i.l.bf16 %v2636_v32 }
 0x134   : > { %v1935_v15 = vmul.f32 %v3512_v53, %v1911_v44  ;;  %v1890_v22 = vadd.f32 %v3453_v38, %v1863_v49  ;;  %v2633_v27 = vunpack.i.h.bf16 %v2631_v24  ;;  %v2632_v57 = vunpack.i.l.bf16 %v2631_v24 }
 0x135   : > { %v1888_v35 = vadd.f32 %v3453_v38, %v1861_v7  ;;  %v1889_v43 = vadd.f32 %v3453_v38, %v1862_v18  ;;  %v1489_v20 = vmul.f32 %v2637_v31, %v2846_v1  ;;  %v1626_v61 = vmul.f32 %v2637_v31, %v2848_v5 }
 0x136   : > { %v1959_v32 = vadd.f32 %v3520_v46, %v1935_v15  ;;  %v1910_v48 = vmax.f32 %v1890_v22, 0.0  ;;  %v1764_v56 = vmul.f32 %v2637_v31, %v2850_v6  ;;  %v1488_v0 = vmul.f32 %v2633_v27, %v2846_v1 }
 0x137   : > { %v1908_v50 = vmax.f32 %v1888_v35, 0.0  ;;  %v1909_v41 = vmax.f32 %v1889_v43, 0.0  ;;  %v1539_v47 = vrot.slane %v1489_v20, 4  ;;  %v1677_v2 = vrot.slane %v1626_v61, 5 }
 0x138   : > { %v1934_v19 = vmul.f32 %v3512_v53, %v1910_v48  ;;  %v1815_v8 = vrot.slane %v1764_v56, 6  ;;  %v1537_v62 = vrot.slane %v1488_v0, 4  ;;  %v1625_v55 = vmul.f32 %v2633_v27, %v2848_v5 }
 0x139   : > { %v1932_v24 = vmul.f32 %v3512_v53, %v1908_v50  ;;  %v1933_v44 = vmul.f32 %v3512_v53, %v1909_v41  ;;  %v1542_v49 = vsel %vm1244_vm3, %v1539_v47, %v1541_v42  ;;  %v1680_v7 = vsel %vm1659_vm4, %v1677_v2, %v1679_v3  ;;  %v2646_v50 = vpop.permute.xlu1 %2645 }
 0x13a   : > { %v1958_v18 = vadd.f32 %v3520_v46, %v1934_v19  ;;  %v1592_v31 = vadd.f32 %v1542_v49, %v3320_v21  ;;  %v1818_v15 = vsel %vm1797_vm5, %v1815_v8, %v1817_v58  ;;  %v1540_v22 = vsel %vm1244_vm3, %v1537_v62, %v1539_v47 }
 0x13b   : > { %v1956_v35 = vadd.f32 %v3520_v46, %v1932_v24  ;;  %v1957_v43 = vadd.f32 %v3520_v46, %v1933_v44  ;;  %v1675_v20 = vrot.slane %v1625_v55, 5  ;;  %v1763_v21 = vmul.f32 %v2633_v27, %v2850_v6 }
 0x13c   : > { %v2354_v61 = vpack.c.bf16 %v1959_v32, %v1958_v18  ;;  %v1730_v48 = vadd.f32 %v1680_v7, %v1592_v31  ;;  %v1487_v56 = vmul.f32 %v2632_v57, %v2846_v1  ;;  %v1591_v0 = vadd.f32 %v1540_v22, %v3234_v28 }
 0x13d   : > { %v2349_v41 = vpack.c.bf16 %v1957_v43, %v1956_v35  ;;  %v1678_v47 = vsel %vm1659_vm4, %v1675_v20, %v1677_v2  ;;  %v1813_v19 = vrot.slane %v1763_v21, 6  ;;  %v1624_v49 = vmul.f32 %v2632_v57, %v2848_v5 }
 0x13e   : > { %2428 = vst [vmem:[%s3549_s19 + $0x10] sm:$0xff] %v2354_v61   ;;  %v1868_v24 = vadd.f32 %v1818_v15, %v1730_v48  ;;  %v1535_v44 = vrot.slane %v1487_v56, 4  ;;  %v1729_v55 = vadd.f32 %v1678_v47, %v1591_v0  ;;  %v1762_v14 = vmul.f32 %v2632_v57, %v2850_v6  ;;  %v2641_v0 = vpop.permute.xlu0 %2640 }
 0x13f   : > { %2427 = vst [vmem:[%s3549_s19 + $0x8] sm:$0xff] %v2349_v41   ;;  %v1816_v27 = vsel %vm1797_vm5, %v1813_v19, %v1815_v8  ;;  %v1673_v32 = vrot.slane %v1624_v49, 5  ;;  %v2648_v7 = vunpack.i.h.bf16 %v2646_v50  ;;  %v2647_v18 = vunpack.i.l.bf16 %v2646_v50 }
 0x140   : > { %v1895_v28 = vadd.f32 %v3453_v38, %v1868_v24  ;;  %v1536_v2 = vsel %vm1244_vm3, %v1533_v23, %v1535_v44  ;;  %v1538_v31 = vsel %vm1244_vm3, %v1535_v44, %v1537_v62  ;;  %v1811_v22 = vrot.slane %v1762_v14, 6 }
 0x141   : > { %v1589_v15 = vadd.f32 %v1536_v2, %v3273_v26  ;;  %v1590_v35 = vadd.f32 %v1538_v31, %v3246_v34  ;;  %v1674_v57 = vsel %vm1659_vm4, %v1671_v33, %v1673_v32  ;;  %v1676_v8 = vsel %vm1659_vm4, %v1673_v32, %v1675_v20 }
 0x142   : > { %v1915_v43 = vmax.f32 %v1895_v28, 0.0  ;;  %v1812_v63 = vsel %vm1797_vm5, %v1809_v51, %v1811_v22  ;;  %v1814_v23 = vsel %vm1797_vm5, %v1811_v22, %v1813_v19  ;;  %v1867_v21 = vadd.f32 %v1816_v27, %v1729_v55 }
 0x143   : > { %v1727_v62 = vadd.f32 %v1674_v57, %v1589_v15  ;;  %v1728_v14 = vadd.f32 %v1676_v8, %v1590_v35  ;;  %v3578_v26 = vmul.f32 %v2648_v7, %v2846_v1  ;;  %v3581_v34 = vmul.f32 %v2648_v7, %v2848_v5 }
 0x144   : > { %v1939_v17 = vmul.f32 %v3512_v53, %v1915_v43  ;;  %v1894_v33 = vadd.f32 %v3453_v38, %v1867_v21  ;;  %v3586_v20 = vmul.f32 %v2648_v7, %v2850_v6  ;;  %v1493_v45 = vmul.f32 %v2647_v18, %v2846_v1 }
 0x145   : > { %v1865_v51 = vadd.f32 %v1812_v63, %v1727_v62  ;;  %v1866_v61 = vadd.f32 %v1814_v23, %v1728_v14  ;;  %v1549_v48 = vrot.slane %v3578_v26, 4  ;;  %v1687_v56 = vrot.slane %v3581_v34, 5 }
 0x146   : > { %v1963_v50 = vadd.f32 %v3520_v46, %v1939_v17  ;;  %v1914_v41 = vmax.f32 %v1894_v33, 0.0  ;;  %v1825_v47 = vrot.slane %v3586_v20, 6  ;;  %v1547_v19 = vrot.slane %v1493_v45, 4 }
 0x147   : > { %v1892_v49 = vadd.f32 %v3453_v38, %v1865_v51  ;;  %v1893_v24 = vadd.f32 %v3453_v38, %v1866_v61  ;;  %v1630_v44 = vmul.f32 %v2647_v18, %v2848_v5  ;;  %v1768_v55 = vmul.f32 %v2647_v18, %v2850_v6 }
 0x148   : > { %v1938_v27 = vmul.f32 %v3512_v53, %v1914_v41  ;;  %v1550_v32 = vsel %vm1244_vm3, %v1547_v19, %v1549_v48  ;;  %v2643_v7 = vunpack.i.h.bf16 %v2641_v0  ;;  %v2642_v28 = vunpack.i.l.bf16 %v2641_v0 }
 0x149   : > { %v1912_v2 = vmax.f32 %v1892_v49, 0.0  ;;  %v1913_v31 = vmax.f32 %v1893_v24, 0.0  ;;  %v1596_v22 = vadd.f32 %v1550_v32, %v3366_v30  ;;  %v1685_v15 = vrot.slane %v1630_v44, 5  ;;  %v2656_v24 = vpop.permute.xlu1 %2655  ;;  %v3620_v44 = vpop.permute.xlu0 %2650 }
 0x14a   : > { %v1962_v35 = vadd.f32 %v3520_v46, %v1938_v27  ;;  %v1823_v57 = vrot.slane %v1768_v55, 6  ;;  %v1492_v8 = vmul.f32 %v2643_v7, %v2846_v1  ;;  %v1629_v18 = vmul.f32 %v2643_v7, %v2848_v5 }
 0x14b   : > { %v1936_v43 = vmul.f32 %v3512_v53, %v1912_v2  ;;  %v1937_v63 = vmul.f32 %v3512_v53, %v1913_v31  ;;  %v1688_v23 = vsel %vm1659_vm4, %v1685_v15, %v1687_v56  ;;  %v1767_v21 = vmul.f32 %v2643_v7, %v2850_v6 }
 0x14c   : > { %v2364_v30 = vpack.c.bf16 %v1963_v50, %v1962_v35  ;;  %v1734_v62 = vadd.f32 %v1688_v23, %v1596_v22  ;;  %v1826_v14 = vsel %vm1797_vm5, %v1823_v57, %v1825_v47  ;;  %v1545_v17 = vrot.slane %v1492_v8, 4 }
 0x14d   : > { %v1960_v33 = vadd.f32 %v3520_v46, %v1936_v43  ;;  %v1961_v45 = vadd.f32 %v3520_v46, %v1937_v63  ;;  %v1683_v51 = vrot.slane %v1629_v18, 5  ;;  %v1821_v61 = vrot.slane %v1767_v21, 6 }
 0x14e   : > { %2430 = vst [vmem:[%s3549_s19 + $0x20] sm:$0xff] %v2364_v30   ;;  %v1872_v0 = vadd.f32 %v1826_v14, %v1734_v62  ;;  %v1548_v41 = vsel %vm1244_vm3, %v1545_v17, %v1547_v19  ;;  %v1491_v49 = vmul.f32 %v2642_v28, %v2846_v1  ;;  %v1628_v50 = vmul.f32 %v2642_v28, %v2848_v5 }
 0x14f   : > { %v2359_v55 = vpack.c.bf16 %v1961_v45, %v1960_v33  ;;  %v1686_v27 = vsel %vm1659_vm4, %v1683_v51, %v1685_v15  ;;  %v1824_v32 = vsel %vm1797_vm5, %v1821_v61, %v1823_v57  ;;  %v1595_v7 = vadd.f32 %v1548_v41, %v3290_v52 }
 0x150   : > { %v1899_v2 = vadd.f32 %v3453_v38, %v1872_v0  ;;  %v1543_v31 = vrot.slane %v1491_v49, 4  ;;  %v1681_v22 = vrot.slane %v1628_v50, 5  ;;  %v1766_v19 = vmul.f32 %v2642_v28, %v2850_v6 }
 0x151   : > { %2429 = vst [vmem:[%s3549_s19 + $0x18] sm:$0xff] %v2359_v55   ;;  %v1733_v35 = vadd.f32 %v1686_v27, %v1595_v7  ;;  %v2658_v8 = vunpack.i.h.bf16 %v2656_v24  ;;  %v2657_v18 = vunpack.i.l.bf16 %v2656_v24  ;;  %v2653_v43 = vunpack.i.h.bf16 %v3620_v44 }
 0x152   : > { %v1919_v63 = vmax.f32 %v1899_v2, 0.0  ;;  %v1544_v15 = vsel %vm1244_vm3, %v1541_v42, %v1543_v31  ;;  %v1546_v57 = vsel %vm1244_vm3, %v1543_v31, %v1545_v17  ;;  %v1682_v52 = vsel %vm1659_vm4, %v1679_v3, %v1681_v22 }
 0x153   : > { %v1593_v23 = vadd.f32 %v1544_v15, %v3322_v37  ;;  %v1594_v28 = vadd.f32 %v1546_v57, %v3310_v36  ;;  %v1684_v21 = vsel %vm1659_vm4, %v1681_v22, %v1683_v51  ;;  %v1819_v30 = vrot.slane %v1766_v19, 6 }
 0x154   : > { %v1943_v62 = vmul.f32 %v3512_v53, %v1919_v63  ;;  %v1871_v14 = vadd.f32 %v1824_v32, %v1733_v35  ;;  %v3641_v13 = vmul.f32 %v2658_v8, %v2846_v1  ;;  %v3644_v42 = vmul.f32 %v2658_v8, %v2848_v5 }
 0x155   : > { %v1731_v17 = vadd.f32 %v1682_v52, %v1593_v23  ;;  %v1732_v12 = vadd.f32 %v1684_v21, %v1594_v28  ;;  %v1820_v37 = vsel %vm1797_vm5, %v1817_v58, %v1819_v30  ;;  %v1822_v36 = vsel %vm1797_vm5, %v1819_v30, %v1821_v61 }
 0x156   : > { %v1967_v3 = vadd.f32 %v3520_v46, %v1943_v62  ;;  %v1898_v33 = vadd.f32 %v3453_v38, %v1871_v14  ;;  %v1557_v45 = vrot.slane %v3641_v13, 4  ;;  %v1695_v51 = vrot.slane %v3644_v42, 5 }
 0x157   : > { %v1869_v0 = vadd.f32 %v1820_v37, %v1731_v17  ;;  %v1870_v41 = vadd.f32 %v1822_v36, %v1732_v12  ;;  %v3655_v49 = vmul.f32 %v2658_v8, %v2850_v6  ;;  %v1497_v50 = vmul.f32 %v2657_v18, %v2846_v1  ;;  %v1611_v37 = vpop.permute.xlu1 %1610 }
 0x158   : > { %v1918_v59 = vmax.f32 %v1898_v33, 0.0  ;;  %v1634_v58 = vmul.f32 %v2657_v18, %v2848_v5  ;;  %v1772_v61 = vmul.f32 %v2657_v18, %v2850_v6  ;;  %v1496_v24 = vmul.f32 %v2653_v43, %v2846_v1 }
 0x159   : > { %v1896_v55 = vadd.f32 %v3453_v38, %v1869_v0  ;;  %v1897_v27 = vadd.f32 %v3453_v38, %v1870_v41  ;;  %v1833_v32 = vrot.slane %v3655_v49, 6  ;;  %v1555_v7 = vrot.slane %v1497_v50, 4 }
 0x15a   : > { %v1942_v2 = vmul.f32 %v3512_v53, %v1918_v59  ;;  %v1693_v31 = vrot.slane %v1634_v58, 5  ;;  %v1831_v22 = vrot.slane %v1772_v61, 6  ;;  %v1553_v19 = vrot.slane %v1496_v24, 4 }
 0x15b   : > { %v1916_v35 = vmax.f32 %v1896_v55, 0.0  ;;  %v1917_v8 = vmax.f32 %v1897_v27, 0.0  ;;  %v1558_v18 = vsel %vm1244_vm3, %v1555_v7, %v1557_v45  ;;  %v1633_v63 = vmul.f32 %v2653_v43, %v2848_v5  ;;  %v2661_v55 = vpop.permute.xlu0 %2660 }
 0x15c   : > { %v1966_v15 = vadd.f32 %v3520_v46, %v1942_v2  ;;  %v1600_v57 = vadd.f32 %v1558_v18, %v3437_v40  ;;  %v1696_v52 = vsel %vm1659_vm4, %v1693_v31, %v1695_v51  ;;  %v1834_v23 = vsel %vm1797_vm5, %v1831_v22, %v1833_v32 }
 0x15d   : > { %v1940_v28 = vmul.f32 %v3512_v53, %v1916_v35  ;;  %v1941_v21 = vmul.f32 %v3512_v53, %v1917_v8  ;;  %v1556_v30 = vsel %vm1244_vm3, %v1553_v19, %v1555_v7  ;;  %v1691_v62 = vrot.slane %v1633_v63, 5 }
 0x15e   : > { %v2374_v14 = vpack.c.bf16 %v1967_v3, %v1966_v15  ;;  %v1738_v17 = vadd.f32 %v1696_v52, %v1600_v57  ;;  %v1771_v40 = vmul.f32 %v2653_v43, %v2850_v6  ;;  %v2652_v12 = vunpack.i.l.bf16 %v3620_v44 }
 0x15f   : > { %v1964_v36 = vadd.f32 %v3520_v46, %v1940_v28  ;;  %v1965_v33 = vadd.f32 %v3520_v46, %v1941_v21  ;;  %v1694_v0 = vsel %vm1659_vm4, %v1691_v62, %v1693_v31  ;;  %v1599_v41 = vadd.f32 %v1556_v30, %v3346_v16 }
 0x160   : > { %2432 = vst [vmem:[%s3549_s19 + $0x30] sm:$0xff] %v2374_v14   ;;  %v1876_v50 = vadd.f32 %v1834_v23, %v1738_v17  ;;  %v1829_v59 = vrot.slane %v1771_v40, 6  ;;  %v1495_v3 = vmul.f32 %v2652_v12, %v2846_v1  ;;  %v1632_v58 = vmul.f32 %v2652_v12, %v2848_v5 }
 0x161   : > { %v2369_v43 = vpack.c.bf16 %v1965_v33, %v1964_v36  ;;  %v1737_v61 = vadd.f32 %v1694_v0, %v1599_v41  ;;  %v1770_v44 = vmul.f32 %v2652_v12, %v2850_v6  ;;  %v1637_v24 = vmul.f32 %v2848_v5, %v1611_v37 }
 0x162   : > { %v1903_v27 = vadd.f32 %v3453_v38, %v1876_v50  ;;  %v1832_v7 = vsel %vm1797_vm5, %v1829_v59, %v1831_v22  ;;  %v1551_v2 = vrot.slane %v1495_v3, 4  ;;  %v1689_v16 = vrot.slane %v1632_v58, 5 }
 0x163   : > { %2431 = vst [vmem:[%s3549_s19 + $0x28] sm:$0xff] %v2369_v43   ;;  %v1827_v31 = vrot.slane %v1770_v44, 6  ;;  %v1875_v35 = vadd.f32 %v1832_v7, %v1737_v61  ;;  %v1699_v8 = vrot.slane %v1637_v24, 5  ;;  %v1775_v18 = vmul.f32 %v2850_v6, %v1611_v37 }
 0x164   : > { %v1923_v63 = vmax.f32 %v1903_v27, 0.0  ;;  %v1552_v15 = vsel %vm1244_vm3, %v1549_v48, %v1551_v2  ;;  %v1554_v57 = vsel %vm1244_vm3, %v1551_v2, %v1553_v19  ;;  %v1690_v52 = vsel %vm1659_vm4, %v1687_v56, %v1689_v16 }
 0x165   : > { %v1597_v22 = vadd.f32 %v1552_v15, %v3374_v11  ;;  %v1598_v23 = vadd.f32 %v1554_v57, %v3354_v54  ;;  %v1692_v28 = vsel %vm1659_vm4, %v1689_v16, %v1691_v62  ;;  %v1828_v21 = vsel %vm1797_vm5, %v1825_v47, %v1827_v31  ;;  %v1749_v11 = vpop.permute.xlu0 %1748 }
 0x166   : > { %v1947_v26 = vmul.f32 %v3512_v53, %v1923_v63  ;;  %v1830_v48 = vsel %vm1797_vm5, %v1827_v31, %v1829_v59  ;;  %v1902_v19 = vadd.f32 %v3453_v38, %v1875_v35  ;;  %v1837_v30 = vrot.slane %v1775_v18, 6 }
 0x167   : > { %v1735_v34 = vadd.f32 %v1690_v52, %v1597_v22  ;;  %v1736_v14 = vadd.f32 %v1692_v28, %v1598_v23  ;;  %v2663_v56 = vunpack.i.h.bf16 %v2661_v55  ;;  %v2662_v17 = vunpack.i.l.bf16 %v2661_v55 }
 0x168   : > { %v1971_v54 = vadd.f32 %v3520_v46, %v1947_v26  ;;  %v1922_v40 = vmax.f32 %v1902_v19, 0.0  ;;  %v1325_v20 = vadd.f32 %v3379_v9, %v3393_v29  ;;  %v1721_v47 = vadd.f32 %v3435_v39, %v3457_v10 }
 0x169   : > { %v1873_v62 = vadd.f32 %v1828_v21, %v1735_v34  ;;  %v1874_v12 = vadd.f32 %v1830_v48, %v1736_v14  ;;  %v1500_v37 = vmul.f32 %v2663_v56, %v2846_v1  ;;  %v1499_v36 = vmul.f32 %v2662_v17, %v2846_v1 }
 0x16a   : > { %v1946_v33 = vmul.f32 %v3512_v53, %v1922_v40  ;;  %v1636_v0 = vmul.f32 %v2662_v17, %v2848_v5  ;;  %v1774_v41 = vmul.f32 %v2662_v17, %v2850_v6  ;;  %v1755_v50 = vmul.f32 %v2850_v6, %v1749_v11 }
 0x16b   : > { %v1900_v59 = vadd.f32 %v3453_v38, %v1873_v62  ;;  %v1901_v9 = vadd.f32 %v3453_v38, %v1874_v12  ;;  %v1561_v29 = vrot.slane %v1500_v37, 4  ;;  %v1559_v39 = vrot.slane %v1499_v36, 4 }
 0x16c   : > { %v1970_v10 = vadd.f32 %v3520_v46, %v1946_v33  ;;  %v1697_v3 = vrot.slane %v1636_v0, 5  ;;  %v1835_v58 = vrot.slane %v1774_v41, 6  ;;  %v1798_v1 = vrot.slane %v1755_v50, 6 }
 0x16d   : > { %v1920_v43 = vmax.f32 %v1900_v59, 0.0  ;;  %v1921_v61 = vmax.f32 %v1901_v9, 0.0  ;;  %v1560_v5 = vsel %vm1244_vm3, %v1557_v45, %v1559_v39  ;;  %v1562_v6 = vsel %vm1244_vm3, %v1559_v39, %v1561_v29 }
 0x16e   : > { %v2384_v44 = vpack.c.bf16 %v1971_v54, %v1970_v10  ;;  %v1601_v24 = vadd.f32 %v1560_v5, %v3408_v4  ;;  %v1602_v55 = vadd.f32 %v1562_v6, %v1325_v20  ;;  %v1698_v27 = vsel %vm1659_vm4, %v1695_v51, %v1697_v3 }
 0x16f   : > { %v1944_v7 = vmul.f32 %v3512_v53, %v1920_v43  ;;  %v1945_v2 = vmul.f32 %v3512_v53, %v1921_v61  ;;  %v1700_v16 = vsel %vm1659_vm4, %v1697_v3, %v1699_v8  ;;  %v1836_v13 = vsel %vm1797_vm5, %v1833_v32, %v1835_v58 }
 0x170   : > { %2434 = vst [vmem:[%s3549_s19 + $0x40] sm:$0xff] %v2384_v44   ;;  %v1739_v45 = vadd.f32 %v1698_v27, %v1601_v24  ;;  %v1740_v31 = vadd.f32 %v1700_v16, %v1602_v55  ;;  %v1838_v4 = vsel %vm1797_vm5, %v1835_v58, %v1837_v30  ;;  %v3773_v42 = vrot.slane %v3406_v25, 6 }
 0x171   : > { %v1907_v35 = vmax.f32 %v3464_v60, 0.0  ;;  %v1968_v18 = vadd.f32 %v3520_v46, %v1944_v7  ;;  %v1969_v8 = vadd.f32 %v3520_v46, %v1945_v2 }
 0x172   : > { %v1800_v51 = vsel %vm1797_vm5, %v1798_v1, %v3773_v42  ;;  %v1877_v49 = vadd.f32 %v1836_v13, %v1739_v45  ;;  %v1878_v15 = vadd.f32 %v1838_v4, %v1740_v31 }
 0x173   : > { %v1859_v63 = vadd.f32 %v1800_v51, %v1721_v47  ;;  %v2379_v32 = vpack.c.bf16 %v1969_v8, %v1968_v18  ;;  %v1931_v25 = vmul.f32 %v3512_v53, %v1907_v35 }
 0x174   : > { %v1904_v52 = vadd.f32 %v3453_v38, %v1877_v49  ;;  %v1905_v22 = vadd.f32 %v3453_v38, %v1878_v15 }
 0x175   : > { %v1886_v57 = vadd.f32 %v3453_v38, %v1859_v63  ;;  %2433 = vst [vmem:[%s3549_s19 + $0x38] sm:$0xff] %v2379_v32   ;;  %v1955_v30 = vadd.f32 %v3520_v46, %v1931_v25 }
 0x176   : > { %v1924_v23 = vmax.f32 %v1904_v52, 0.0  ;;  %v1925_v28 = vmax.f32 %v1905_v22, 0.0 }
 0x177   : > { %v1906_v60 = vmax.f32 %v1886_v57, 0.0 }
 0x178   : > { %v1948_v26 = vmul.f32 %v3512_v53, %v1924_v23  ;;  %v1949_v48 = vmul.f32 %v3512_v53, %v1925_v28 }
 0x179   : > { %v1930_v21 = vmul.f32 %v3512_v53, %v1906_v60 }
 0x17a   : > { %v1972_v34 = vadd.f32 %v3520_v46, %v1948_v26  ;;  %v1973_v38 = vadd.f32 %v3520_v46, %v1949_v48 }
 0x17b   : > { %v1954_v19 = vadd.f32 %v3520_v46, %v1930_v21 }
 0x17c   : > { %v2389_v56 = vpack.c.bf16 %v1973_v38, %v1972_v34 }
 0x17d   : > { %v2344_v14 = vpack.c.bf16 %v1955_v30, %v1954_v19 }
 0x17e   : > { %2435 = vst [vmem:[%s3549_s19 + $0x48] sm:$0xff] %v2389_v56  }
 0x17f   : > { %2345 = vst [vmem:[%s3549_s19] sm:$0xff] %v2344_v14  }
 0x180 PF: > { %s13_s12 = sadd.s32 1, %s2670_s12  }
 0x181   : > { %p10_p4 = scmp.ge.s32.totalorder %s13_s12, 4  }
 0x183   :  { %12 = sbr.rel (!%p10_p4) target bundleno = 1 (0x1), region = 70 }

// kernel: _lambda_.13
= control target key start
LH: loop header
LB: loop body
LE: loop exit
PB: predicated region body
PF: predicated region fallthrough
CT: control target
= control target key end

     0   :  { %s4052_s12 = smov 0   ;;  %s4792_s0 = inlined_call_operand.vmem [shape: bf16[2,182,128], index: 0, kind: input, shape index: {}]   ;;  %s4793_s1 = inlined_call_operand.vmem [shape: bf16[9,128,128], index: 1, kind: input, shape index: {}]   ;;  %s4794_s2 = inlined_call_operand.vmem [shape: f32[3,128], index: 2, kind: input, shape index: {}]   ;;  %s4795_s3 = inlined_call_operand.vmem [shape: bf16[2,160,128], index: 3, kind: output, shape index: {}]  }
   0x1 LB: > { %s2886_s13 = sadd.s32 4294967295, %s4030_s12   ;;  %p2890_p0 = scmp.ge.s32.totalorder %s4030_s12, 1  ;;  %s4030_s12 = sphi %s4052_s12, %s13_s12  }
   0x2   : > { %p137_p1 = scmp.lt.s32.totalorder %s4030_s12, 3 }
   0x4   : > { %p138_p2 = pnand %p2890_p0, %p137_p1 }
   0x5   : > { %v3907_v0 = vld [vmem:[%s4793_s1 + $0x40] sm:$0xff] (!%p138_p2)   ;;  %p161_p3 = scmp.lt.s32.totalorder (!%p138_p2), %s2886_s13, 1  ;;  %v3909_v2 = vld [vmem:[%s4793_s1 + $0x48] sm:$0xff] (!%p138_p2)   ;;  %v3911_v4 = vld [vmem:[%s4793_s1 + $0x50] sm:$0xff] (!%p138_p2)   ;;  %vm279_vm0 = vsmask.f32 (!%p138_p2), 7424 }
   0x6   : > { %141 = sbr.rel (%p138_p2) target bundleno = 445 (0x1bd), region = 32  ;;  %v3908_v1 = vld [vmem:[%s4793_s1 + $0x100] sm:$0xff] (!%p138_p2)   ;;  %3397 = vmatprep.subr.bf16.mxu1 (!%p138_p2), %v3907_v0  ;;  %v3910_v3 = vld [vmem:[%s4793_s1 + $0x108] sm:$0xff] (!%p138_p2)   ;;  %v3912_v5 = vld [vmem:[%s4793_s1 + $0x110] sm:$0xff] (!%p138_p2)   ;;  %vm1264_vm1 = vsmask.f32 (!%p138_p2), 6400 }
   0x7   : > { %3541 = vmatprep.subr.bf16.mxu0 (!%p138_p2), %v3908_v1  ;;  %3398 = vmatpush3.bf16.msra.mxu1 (!%p138_p2), %v3907_v0  ;;  %v3913_v6 = vld [vmem:[%s4793_s1 + $0x58] sm:$0xff] (!%p138_p2)   ;;  %v3915_v8 = vld [vmem:[%s4793_s1 + $0x60] sm:$0xff] (!%p138_p2)   ;;  %v3917_v10 = vld [vmem:[%s4793_s1 + $0x68] sm:$0xff] (!%p138_p2)   ;;  %vm1575_vm2 = vcmask (!%p138_p2), 1045504   ;;  %vm727_vm3 = vcmask (!%p138_p2), 1046528   ;;  %vm2423_vm4 = vcmask (!%p138_p2), 1044480  }
   0x8   : > { %3542 = vmatpush3.bf16.msra.mxu0 (!%p138_p2), %v3908_v1  ;;  %3399 = vmatprep.subr.bf16.mxu1 (!%p138_p2), %v3909_v2  ;;  %v3914_v7 = vld [vmem:[%s4793_s1 + $0x118] sm:$0xff] (!%p138_p2)   ;;  %v3916_v9 = vld [vmem:[%s4793_s1 + $0x120] sm:$0xff] (!%p138_p2)   ;;  %v3918_v11 = vld [vmem:[%s4793_s1 + $0x128] sm:$0xff] (!%p138_p2)   ;;  %vm2112_vm5 = vsmask.f32 (!%p138_p2), 5376 }
   0x9   : > { %3543 = vmatprep.subr.bf16.mxu0 (!%p138_p2), %v3910_v3  ;;  %v3919_v17 = vld [vmem:[%s4793_s1 + $0x70] sm:$0xff] (!%p138_p2)   ;;  %v3921_v32 = vld [vmem:[%s4793_s1 + $0x78] sm:$0xff] (!%p138_p2)   ;;  %v3929_v54 = vld [vmem:[%s4793_s1 + $0x140] sm:$0xff] (!%p138_p2)  }
   0xa   : > { %v3920_v20 = vld [vmem:[%s4793_s1 + $0x130] sm:$0xff] (!%p138_p2)   ;;  %v3922_v41 = vld [vmem:[%s4793_s1 + $0x138] sm:$0xff] (!%p138_p2)   ;;  %v3934_v0 = vld [vmem:[%s4793_s1] sm:$0xff] (!%p138_p2)  }
   0xb   : > { %3400 = vmatpush3.bf16.msra.mxu1 (!%p138_p2), %v3909_v2 }
   0xc   : > { %3544 = vmatpush3.bf16.msra.mxu0 (!%p138_p2), %v3910_v3  ;;  %3401 = vmatprep.subr.bf16.mxu1 (!%p138_p2), %v3911_v4 }
   0xd   : > { %s4797_s13 = smov (!%p161_p3, %s2886_s13), 1  ;;  %3545 = vmatprep.subr.bf16.mxu0 %v3912_v5 }
   0xe   : > { %s3897_s30 = smul.u32 92, %s4797_s13 }
   0xf   : > { %3402 = vmatpush3.bf16.msra.mxu1 %v3911_v4  ;;  %s3898_s22 = smul.u32 80, %s4797_s13 }
  0x10   : > { %3546 = vmatpush3.bf16.msra.mxu0 %v3912_v5  ;;  %3403 = vmatprep.subr.bf16.mxu1 %v3913_v6  ;;  %s4096_s10 = scalar_lea.vmem %s4792_s0, %s3897_s30  ;;  %v3930_v5 = vld [vmem:[%s4793_s1 + $0x148] sm:$0xff]  }
  0x11   : > { %3547 = vmatprep.subr.bf16.mxu0 %v3914_v7  ;;  %v172_v12 = vld [vmem:[%s4096_s10] sm:$0xf]  ;;  %v4106_v13 = vld [vmem:[%s4096_s10 + $0x4] sm:$0xf]  ;;  %v4112_v15 = vld [vmem:[%s4096_s10 + $0x8] sm:$0xff]   ;;  %s4727_s24 = scalar_lea.vmem %s4795_s3, %s3898_s22 }
  0x12   : > { %v4109_v14 = vcombine.low %v172_v12, %v4106_v13  ;;  %v4115_v16 = vld [vmem:[%s4096_s10 + $0xc] sm:$0xff]   ;;  %v940_v18 = vld [vmem:[%s4096_s10 + $0x4] sm:$0xe]  ;;  %v4122_v19 = vld [vmem:[%s4096_s10 + $0x8] sm:$0xf]  ;;  %v288_v23 = vshll.u32 %v4112_v15, 16 }
  0x13   : > { %3404 = vmatpush3.bf16.msra.mxu1 %v3913_v6  ;;  %v4131_v24 = vcombine.low %v940_v18, %v4122_v19  ;;  %v4134_v25 = vld [vmem:[%s4096_s10 + $0x10] sm:$0xff]   ;;  %v1274_v26 = vshrl.u32 %v4115_v16, 16  ;;  %v1277_v27 = vshll.u32 %v4115_v16, 16  ;;  %v292_v39 = vshrl.u32 %v4112_v15, 16  ;;  %v4155_v48 = vld [vmem:[%s4096_s10 + $0x18] sm:$0xff]   ;;  %v4167_v59 = vld [vmem:[%s4096_s10 + $0x20] sm:$0xff]  }
  0x14   : > { %3548 = vmatpush3.bf16.msra.mxu0 %v3914_v7  ;;  %3405 = vmatprep.subr.bf16.mxu1 %v3915_v8  ;;  %v281_v21 = vshrl.u32 %v4109_v14, 16  ;;  %v283_v22 = vshll.u32 %v4109_v14, 16  ;;  %v290_v29 = vrot.slane %v288_v23, 1  ;;  %v296_v35 = vshll.u32 %v4134_v25, 16  ;;  %v4146_v40 = vld [vmem:[%s4096_s10 + $0x14] sm:$0xff]   ;;  %v4164_v57 = vld [vmem:[%s4096_s10 + $0x1c] sm:$0xff]  }
  0x15   : > { %3549 = vmatprep.subr.bf16.mxu0 %v3916_v9  ;;  %v1266_v30 = vshrl.u32 %v4131_v24, 16  ;;  %v1269_v31 = vshll.u32 %v4131_v24, 16  ;;  %v1276_v33 = vrot.slane %v1274_v26, 1  ;;  %v1279_v34 = vrot.slane %v1277_v27, 2  ;;  %v4178_v3 = vld [vmem:[%s4096_s10 + $0x24] sm:$0xff]   ;;  %v4195_v26 = vld [vmem:[%s4096_s10 + $0x2c] sm:$0xff]  }
  0x16   : > { %v285_v28 = vrot.slane %v283_v22, 1  ;;  %v298_v43 = vrot.slane %v296_v35, 1  ;;  %v1283_v46 = vshrl.u32 %v4146_v40, 16  ;;  %v1286_v47 = vshll.u32 %v4146_v40, 16  ;;  %v4205_v35 = vld [vmem:[%s4096_s10 + $0x30] sm:$0xff]  }
  0x17   : > { %3406 = vmatpush3.bf16.msra.mxu1 %v3915_v8  ;;  %v1268_v37 = vrot.slane %v1266_v30, 1  ;;  %v1271_v38 = vrot.slane %v1269_v31, 2  ;;  %v1280_v42 = vor.u32 %v1279_v34, %v1276_v33  ;;  %v300_v49 = vshrl.u32 %v4134_v25, 16 }
  0x18   : > { %3550 = vmatpush3.bf16.msra.mxu0 %v3916_v9  ;;  %3407 = vmatprep.subr.bf16.mxu1 %v3917_v10  ;;  %v286_v36 = vor.u32 %v285_v28, %v281_v21  ;;  %v294_v51 = vor.u32 %v292_v39, %v290_v29  ;;  %v1285_v52 = vrot.slane %v1283_v46, 1  ;;  %v1288_v53 = vrot.slane %v1286_v47, 2  ;;  %v3937_v9 = vld [vmem:[%s4793_s1 + $0x8] sm:$0xff]   ;;  %v3936_v28 = vld [vmem:[%s4793_s1 + $0x150] sm:$0xff]   ;;  %v3940_v47 = vld [vmem:[%s4793_s1 + $0x158] sm:$0xff]  }
  0x19   : > { %3551 = vmatprep.subr.bf16.mxu0 %v3918_v11  ;;  %v1272_v45 = vor.u32 %v1271_v38, %v1268_v37  ;;  %v302_v55 = vor.u32 %v300_v49, %v298_v43  ;;  %v304_v56 = vshll.u32 %v4155_v48, 16  ;;  %v308_v60 = vshrl.u32 %v4155_v48, 16  ;;  %v3942_v37 = vld [vmem:[%s4793_s1 + $0x10] sm:$0xff]  }
  0x1a   : > { %v291_v44 = vsel %vm279_vm0, %v286_v36, %v290_v29  ;;  %v1289_v58 = vor.u32 %v1288_v53, %v1285_v52  ;;  %v1292_v62 = vshrl.u32 %v4164_v57, 16  ;;  %v1295_v63 = vshll.u32 %v4164_v57, 16  ;;  %v3944_v53 = vld [vmem:[%s4793_s1 + $0x18] sm:$0xff]  }
  0x1b   : > { %3408 = vmatpush3.bf16.msra.mxu1 %v3917_v10  ;;  %3413 = vmatprep.mubr.bf16.mxu1 %v291_v44  ;;  %v1281_v50 = vsel %vm1264_vm1, %v1272_v45, %v1280_v42  ;;  %v306_v61 = vrot.slane %v304_v56, 1  ;;  %v299_v1 = vsel %vm279_vm0, %v294_v51, %v298_v43  ;;  %v312_v2 = vshll.u32 %v4167_v59, 16  ;;  %v4216_v45 = vld [vmem:[%s4096_s10 + $0x34] sm:$0xff]   ;;  %v3945_v56 = vld [vmem:[%s4793_s1 + $0x160] sm:$0xff]  }
  0x1c   : > { %3552 = vmatpush3.bf16.msra.mxu0 %v3918_v11  ;;  %3409 = vmatprep.subr.bf16.mxu1 %v3919_v17  ;;  %v1290_v4 = vsel %vm1264_vm1, %v1280_v42, %v1289_v58  ;;  %v1294_v7 = vrot.slane %v1292_v62, 1  ;;  %v1297_v8 = vrot.slane %v1295_v63, 2  ;;  %v1301_v11 = vshrl.u32 %v4178_v3, 16  ;;  %v4235_v62 = vld [vmem:[%s4096_s10 + $0x3c] sm:$0xff]  }
  0x1d   : > { %3553 = vmatprep.subr.bf16.mxu0 %v3920_v20  ;;  %3557 = vmatprep.mubr.bf16.mxu0 %v1281_v50  ;;  %v307_v6 = vsel %vm279_vm0, %v302_v55, %v306_v61  ;;  %v314_v10 = vrot.slane %v312_v2, 1  ;;  %v1304_v12 = vshll.u32 %v4178_v3, 16  ;;  %v316_v23 = vshrl.u32 %v4167_v59, 16 }
  0x1e   : > { %v1298_v18 = vor.u32 %v1297_v8, %v1294_v7  ;;  %v1303_v21 = vrot.slane %v1301_v11, 1  ;;  %v1313_v33 = vshll.u32 %v4195_v26, 16  ;;  %v328_v44 = vshll.u32 %v4205_v35, 16  ;;  %v3949_v8 = vld [vmem:[%s4793_s1 + $0x20] sm:$0xff]  }
  0x1f   : > { %3410 = vmatpush3.bf16.msra.mxu1 %v3919_v17  ;;  %v4191_v17 = vld [vmem:[%s4096_s10 + $0x28] sm:$0xff]   ;;  %v1306_v22 = vrot.slane %v1304_v12, 2  ;;  %v318_v31 = vor.u32 %v316_v23, %v314_v10  ;;  %v332_v49 = vshrl.u32 %v4205_v35, 16  ;;  %v1319_v51 = vshrl.u32 %v4216_v45, 16 }
  0x20   : > { %3554 = vmatpush3.bf16.msra.mxu0 %v3920_v20  ;;  %3411 = vmatprep.subr.bf16.mxu1 %v3921_v32  ;;  %v310_v20 = vor.u32 %v308_v60, %v306_v61  ;;  %v1299_v27 = vsel %vm1264_vm1, %v1289_v58, %v1298_v18  ;;  %v320_v29 = vshll.u32 %v4191_v17, 16  ;;  %v324_v36 = vshrl.u32 %v4191_v17, 16  ;;  %v4232_v61 = vld [vmem:[%s4096_s10 + $0x38] sm:$0xff]  }
  0x21   : > { %3555 = vmatprep.subr.bf16.mxu0 %v3922_v41  ;;  %v1307_v30 = vor.u32 %v1306_v22, %v1303_v21  ;;  %v330_v50 = vrot.slane %v328_v44, 1  ;;  %v1322_v52 = vshll.u32 %v4216_v45, 16  ;;  %v1321_v58 = vrot.slane %v1319_v51, 1  ;;  %v3951_v21 = vld [vmem:[%s4793_s1 + $0x168] sm:$0xff]  }
  0x22   : > { %v322_v34 = vrot.slane %v320_v29, 1  ;;  %v315_v38 = vsel %vm279_vm0, %v310_v20, %v314_v10  ;;  %v1328_v2 = vshrl.u32 %v4235_v62, 16  ;;  %v340_v7 = vshrl.u32 %v4232_v61, 16  ;;  %v3952_v29 = vld [vmem:[%s4793_s1 + $0x28] sm:$0xff]  }
  0x23   : > { %3412 = vmatpush3.bf16.msra.mxu1 %v3921_v32  ;;  %v1310_v32 = vshrl.u32 %v4195_v26, 16  ;;  %v1308_v42 = vsel %vm1264_vm1, %v1298_v18, %v1307_v30  ;;  %v1324_v60 = vrot.slane %v1322_v52, 2  ;;  %v334_v63 = vor.u32 %v332_v49, %v330_v50  ;;  %v4250_v18 = vld [vmem:[%s4096_s10 + $0x44] sm:$0xff]   ;;  %v3957_v49 = vld [vmem:[%s4793_s1 + $0x30] sm:$0xff]  }
  0x24   : > { %3556 = vmatpush3.bf16.msra.mxu0 %v3922_v41  ;;  %3433 = vmatprep.subr.bf16.mxu1 %v3934_v0  ;;  %v1315_v41 = vrot.slane %v1313_v33, 2  ;;  %v323_v43 = vsel %vm279_vm0, %v318_v31, %v322_v34  ;;  %v326_v55 = vor.u32 %v324_v36, %v322_v34  ;;  %v1330_v11 = vrot.slane %v1328_v2, 1  ;;  %v3953_v34 = vld [vmem:[%s4793_s1 + $0x170] sm:$0xff]  }
  0x25   : > { %3577 = vmatprep.subr.bf16.mxu0 %v3929_v54  ;;  %v1312_v39 = vrot.slane %v1310_v32, 1  ;;  %v1340_v31 = vshll.u32 %v4250_v18, 16 }
  0x26   : > { %3414 = vmatmul.mubr.bf16.vlgmr.msra.gmra.mrb[0].mxu1 %v299_v1  ;;  %v336_v1 = vshll.u32 %v4232_v61, 16 }
  0x27   : > { %3558 = vmatmul.mubr.bf16.vlgmr.msra.gmra.mrb[0].mxu0 %v1290_v4  ;;  %3417 = vmatprep.mubr.bf16.mxu1 %v307_v6  ;;  %v1316_v46 = vor.u32 %v1315_v41, %v1312_v39  ;;  %v1331_v4 = vshll.u32 %v4235_v62, 16  ;;  %v331_v6 = vsel %vm279_vm0, %v326_v55, %v330_v50  ;;  %v1342_v36 = vrot.slane %v1340_v31, 2  ;;  %v4271_v39 = vld [vmem:[%s4096_s10 + $0x4c] sm:$0xff]  }
  0x28   : > { %3578 = vmatpush3.bf16.msra.mxu0 %v3929_v54  ;;  %3434 = vmatpush3.bf16.msra.mxu1 %v3934_v0  ;;  %v1325_v0 = vor.u32 %v1324_v60, %v1321_v58  ;;  %v338_v10 = vrot.slane %v336_v1, 1  ;;  %v1349_v50 = vshll.u32 %v4271_v39, 16  ;;  %v3959_v60 = vld [vmem:[%s4793_s1 + $0x178] sm:$0xff]   ;;  %v729_v31 = vrot.slane %v4112_v15, 1 }
  0x29   : > { %3579 = vmatprep.subr.bf16.mxu0 %v3930_v5  ;;  %3561 = vmatprep.mubr.bf16.mxu0 %v1299_v27  ;;  %v1317_v54 = vsel %vm1264_vm1, %v1307_v30, %v1316_v46  ;;  %v1333_v12 = vrot.slane %v1331_v4, 2 }
  0x2a   : > { %3435 = vmatprep.subr.bf16.mxu1 %v3937_v9  ;;  %v339_v22 = vsel %vm279_vm0, %v334_v63, %v338_v10  ;;  %v342_v27 = vor.u32 %v340_v7, %v338_v10  ;;  %v1351_v58 = vrot.slane %v1349_v50, 2  ;;  %v3960_v7 = vld [vmem:[%s4793_s1 + $0x38] sm:$0xff]  }
  0x2b   : > { %v1334_v23 = vor.u32 %v1333_v12, %v1330_v11  ;;  %v3962_v12 = vld [vmem:[%s4793_s1 + $0x180] sm:$0xff]  }
  0x2c   : > { %3580 = vmatpush3.bf16.msra.mxu0 %v3930_v5  ;;  %3436 = vmatpush3.bf16.msra.mxu1 %v3937_v9  ;;  %v4241_v5 = vld [vmem:[%s4096_s10 + $0x40] sm:$0xff]   ;;  %v1326_v9 = vsel %vm1264_vm1, %v1316_v46, %v1325_v0  ;;  %v1346_v46 = vshrl.u32 %v4271_v39, 16 }
  0x2d   : > { %3581 = vmatprep.subr.bf16.mxu0 %v3936_v28  ;;  %3437 = vmatprep.subr.bf16.mxu1 %v3942_v37  ;;  %v344_v20 = vshll.u32 %v4241_v5, 16  ;;  %v1335_v32 = vsel %vm1264_vm1, %v1325_v0, %v1334_v23 }
  0x2e   : > { %3418 = vmatmul.mubr.bf16.gmra.mrb[4].mxu1 %v315_v38  ;;  %v348_v38 = vshrl.u32 %v4241_v5, 16 }
  0x2f   : > { %3562 = vmatmul.mubr.bf16.gmra.mrb[4].mxu0 %v1308_v42  ;;  %3421 = vmatprep.mubr.bf16.mxu1 %v323_v43  ;;  %v346_v30 = vrot.slane %v344_v20, 1 }
  0x30   : > { %3582 = vmatpush3.bf16.msra.mxu0 %v3936_v28  ;;  %3565 = vmatprep.mubr.bf16.mxu0 %v1317_v54  ;;  %v1337_v28 = vshrl.u32 %v4250_v18, 16  ;;  %v1348_v54 = vrot.slane %v1346_v46, 1  ;;  %v1585_v46 = vrot.slane %v4195_v26, 2  ;;  %v743_v26 = vrot.slane %v4241_v5, 1 }
  0x31   : > { %3583 = vmatprep.subr.bf16.mxu0 %v3940_v47  ;;  %3438 = vmatpush3.bf16.msra.mxu1 %v3942_v37  ;;  %v4267_v37 = vld [vmem:[%s4096_s10 + $0x48] sm:$0xff]   ;;  %v347_v41 = vsel %vm279_vm0, %v342_v27, %v346_v30  ;;  %v350_v43 = vor.u32 %v348_v38, %v346_v30  ;;  %v1581_v30 = vrot.slane %v4164_v57, 2  ;;  %v735_v38 = vrot.slane %v4167_v59, 1 }
  0x32   : > { %3439 = vmatprep.subr.bf16.mxu1 %v3944_v53  ;;  %v1339_v33 = vrot.slane %v1337_v28, 1  ;;  %v352_v44 = vshll.u32 %v4267_v37, 16  ;;  %v356_v51 = vshrl.u32 %v4267_v37, 16  ;;  %v1352_v4 = vor.u32 %v1351_v58, %v1348_v54 }
  0x34   : > { %3584 = vmatpush3.bf16.msra.mxu0 %v3940_v47  ;;  %v1343_v42 = vor.u32 %v1342_v36, %v1339_v33  ;;  %v4277_v47 = vld [vmem:[%s4096_s10 + $0x50] ss:$0 sps:$4 sm:$0x11]   ;;  %v731_v33 = vrot.slane %v4134_v25, 1 }
  0x35   : > { %3585 = vmatprep.subr.bf16.mxu0 %v3945_v56  ;;  %3440 = vmatpush3.bf16.msra.mxu1 %v3944_v53  ;;  %v354_v53 = vrot.slane %v352_v44, 1  ;;  %v360_v55 = vshll.u32 %v4277_v47, 16  ;;  %v739_v44 = vrot.slane %v4205_v35, 1 }
  0x36   : > { %3422 = vmatmul.mubr.bf16.gmra.mrb[8].mxu1 %v331_v6  ;;  %3441 = vmatprep.subr.bf16.mxu1 %v3949_v8  ;;  %v1344_v52 = vsel %vm1264_vm1, %v1334_v23, %v1343_v42  ;;  %v1353_v20 = vsel %vm1264_vm1, %v1343_v42, %v1352_v4  ;;  %v4327_v57 = vsel %vm727_vm3, %v729_v31, %v731_v33  ;;  %v737_v42 = vrot.slane %v4191_v17, 1 }
  0x37   : > { %3566 = vmatmul.mubr.bf16.gmra.mrb[8].mxu0 %v1326_v9  ;;  %3425 = vmatprep.mubr.bf16.mxu1 %v339_v22  ;;  %v355_v63 = vsel %vm279_vm0, %v350_v43, %v354_v53  ;;  %v358_v0 = vor.u32 %v356_v51, %v354_v53  ;;  %v362_v1 = vrot.slane %v360_v55, 1  ;;  %v1577_v9 = vrot.slane %v4115_v16, 2  ;;  %v3964_v16 = vld [vmem:[%s4793_s1 + $0x80] sm:$0xff]  }
  0x38   : > { %3586 = vmatpush3.bf16.msra.mxu0 %v3945_v56  ;;  %3569 = vmatprep.mubr.bf16.mxu0 %v1335_v32  ;;  %v4287_v56 = vld [vmem:[%s4096_s10 + $0x54] ss:$0 sps:$4 sm:$0x33]   ;;  %v4346_v50 = vsel %vm727_vm3, %v735_v38, %v737_v42  ;;  %v741_v51 = vrot.slane %v4232_v61, 1  ;;  %v4354_v53 = vsel %vm727_vm3, %v737_v42, %v739_v44  ;;  %v4456_v42 = vld [vmem:[%s4096_s10 + $0x28] sm:$0xff]  }
  0x39   : > { %3442 = vmatpush3.bf16.msra.mxu1 %v3949_v8  ;;  %3587 = vmatprep.subr.bf16.mxu0 %v3951_v21  ;;  %v1355_v2 = vshrl.u32 %v4287_v56, 16  ;;  %v1358_v6 = vshll.u32 %v4287_v56, 16  ;;  %v1554_v8 = vld [vmem:[%s4096_s10 + $0x4] sm:$0xc]  ;;  %v363_v22 = vsel %vm279_vm0, %v358_v0, %v362_v1  ;;  %v3969_v0 = vld [vmem:[%s4793_s1 + $0x98] sm:$0xff]  }
  0x3a   : > { %3443 = vmatprep.subr.bf16.mxu1 %v3952_v29  ;;  %v3037_v11 = vcombine.low %v1554_v8, %v4122_v19  ;;  %v4357_v54 = vsel %vm727_vm3, %v739_v44, %v741_v51  ;;  %v3988_v44 = vld [vmem:[%s4793_s1 + $0xc8] sm:$0xff]  }
  0x3b   : > { %v1357_v10 = vrot.slane %v1355_v2, 1  ;;  %v1587_v2 = vrot.slane %v4216_v45, 2 }
  0x3c   : > { %3588 = vmatpush3.bf16.msra.mxu0 %v3951_v21  ;;  %v1360_v21 = vrot.slane %v1358_v6, 2  ;;  %v1576_v23 = vrot.slane %v3037_v11, 2  ;;  %v745_v6 = vrot.slane %v4267_v37, 1  ;;  %v1591_v11 = vrot.slane %v4250_v18, 2 }
  0x3d   : > { %3444 = vmatpush3.bf16.msra.mxu1 %v3952_v29  ;;  %3589 = vmatprep.subr.bf16.mxu0 %v3953_v34  ;;  %v1579_v29 = vrot.slane %v4146_v40, 2  ;;  %v3966_v40 = vld [vmem:[%s4793_s1 + $0x88] sm:$0xff]   ;;  %v1588_v45 = vsel %vm1575_vm2, %v1585_v46, %v1587_v2 }
  0x3e   : > { %3426 = vmatmul.mubr.bf16.gmra.mrb[12].mxu1 %v347_v41  ;;  %3445 = vmatprep.subr.bf16.mxu1 %v3957_v49  ;;  %v1361_v27 = vor.u32 %v1360_v21, %v1357_v10  ;;  %v1578_v19 = vsel %vm1575_vm2, %v1576_v23, %v1577_v9  ;;  %v4387_v8 = vsel %vm727_vm3, %v743_v26, %v745_v6  ;;  %v3972_v10 = vld [vmem:[%s4793_s1 + $0x1a8] sm:$0xff]   ;;  %v3976_v23 = vld [vmem:[%s4793_s1 + $0x1b8] sm:$0xff]  }
  0x3f   : > { %3570 = vmatmul.mubr.bf16.gmra.mrb[12].mxu0 %v1344_v52  ;;  %3429 = vmatprep.mubr.bf16.mxu1 %v355_v63  ;;  %v1580_v32 = vsel %vm1575_vm2, %v1577_v9, %v1579_v29  ;;  %v1582_v36 = vsel %vm1575_vm2, %v1579_v29, %v1581_v30  ;;  %v4366_v63 = vsel %vm727_vm3, %v741_v51, %v743_v26  ;;  %v1788_v21 = vld [vmem:[%s4096_s10 + $0x8] sm:$0xc]  ;;  %v1595_v29 = vrot.slane %v4287_v56, 2  ;;  %v4441_v56 = vld [vmem:[%s4096_s10 + $0x18] sm:$0xff]  }
  0x40   : > { %3590 = vmatpush3.bf16.msra.mxu0 %v3953_v34  ;;  %3573 = vmatprep.mubr.bf16.mxu0 %v1353_v20  ;;  %v1362_v28 = vsel %vm1264_vm1, %v1352_v4, %v1361_v27  ;;  %v3963_v34 = vld [vmem:[%s4793_s1 + $0x188] sm:$0xff]   ;;  %v1589_v4 = vrot.slane %v4235_v62, 2  ;;  %v1593_v20 = vrot.slane %v4271_v39, 2  ;;  %v1046_v51 = vrot.slane %v4250_v18, 1 }
  0x41   : > { %3446 = vmatpush3.bf16.msra.mxu1 %v3957_v49  ;;  %3591 = vmatprep.subr.bf16.mxu0 %v3959_v60  ;;  %v706_v49 = vld [vmem:[%s4096_s10] sm:$0xe] }
  0x42   : > { %3447 = vmatprep.subr.bf16.mxu1 %v3960_v7  ;;  %v2952_v52 = vcombine.low %v706_v49, %v4106_v13  ;;  %v3967_v13 = vld [vmem:[%s4793_s1 + $0x198] sm:$0xff]   ;;  %v1590_v9 = vsel %vm1575_vm2, %v1587_v2, %v1589_v4  ;;  %v1594_v27 = vsel %vm1575_vm2, %v1591_v11, %v1593_v20 }
  0x43   : > { %v3993_v2 = vld [vmem:[%s4793_s1 + $0xd8] sm:$0xff]  }
  0x44   : > { %3592 = vmatpush3.bf16.msra.mxu0 %v3959_v60  ;;  %v728_v58 = vrot.slane %v2952_v52, 1 }
  0x45   : > { %3448 = vmatpush3.bf16.msra.mxu1 %v3960_v7  ;;  %3613 = vmatprep.subr.bf16.mxu0 %v3962_v12  ;;  %v3971_v7 = vld [vmem:[%s4793_s1 + $0xa0] sm:$0xff]  }
  0x46   : > { %3430 = vmatmul.mubr.bf16.gmra.mrb[16].mxu1 %v363_v22  ;;  %3469 = vmatprep.subr.bf16.mxu1 %v3964_v16  ;;  %v4373_v1 = vsel %vm727_vm3, %v728_v58, %v729_v31  ;;  %v1592_v22 = vsel %vm1575_vm2, %v1589_v4, %v1591_v11  ;;  %v3982_v31 = vld [vmem:[%s4793_s1 + $0x1c0] sm:$0xff]   ;;  %v2431_v11 = vrot.slane %v4456_v42, 3 }
  0x47   : > { %3574 = vmatmul.mubr.bf16.gmra.mrb[16].mxu0 %v1362_v28  ;;  %3449 = vmatprep.mubr.bf16.mxu1 %v4109_v14  ;;  %v733_v14 = vrot.slane %v4155_v48, 1  ;;  %v3977_v28 = vld [vmem:[%s4793_s1 + $0xb8] sm:$0xff]  }
  0x48   : > { %3593 = vmatprep.mubr.bf16.mxu0 %v1578_v19  ;;  %v4423_v19 = vld [vmem:[%s4096_s10 + $0x10] sm:$0xff]  }
  0x49   : > { %v4332_v41 = vsel %vm727_vm3, %v731_v33, %v733_v14  ;;  %v4337_v43 = vsel %vm727_vm3, %v733_v14, %v735_v38  ;;  %v3983_v38 = vld [vmem:[%s4793_s1 + $0x1c8] sm:$0xff]  }
  0x4e   : > { %3450 = vmatmul.mubr.bf16.vlgmr.msra.gmra.mrb[0].mxu1 %v4112_v15  ;;  %v1583_v15 = vrot.slane %v4178_v3, 2  ;;  %v3968_v3 = vld [vmem:[%s4793_s1 + $0x90] sm:$0xff]  }
  0x4f   : > { %3594 = vmatmul.mubr.bf16.vlgmr.msra.gmra.mrb[0].mxu0 %v1580_v32  ;;  %3453 = vmatprep.mubr.bf16.mxu1 %v4134_v25  ;;  %v3965_v25 = vld [vmem:[%s4793_s1 + $0x190] sm:$0xff]   ;;  %v1596_v32 = vsel %vm1575_vm2, %v1593_v20, %v1595_v29 }
  0x50   : > { %3614 = vmatpush3.bf16.msra.mxu0 %v3962_v12  ;;  %3597 = vmatprep.mubr.bf16.mxu0 %v1582_v36  ;;  %v1584_v55 = vsel %vm1575_vm2, %v1581_v30, %v1583_v15  ;;  %v1586_v60 = vsel %vm1575_vm2, %v1583_v15, %v1585_v46  ;;  %v3974_v12 = vld [vmem:[%s4793_s1 + $0x1b0] sm:$0xff]   ;;  %v1882_v36 = vrot.slane %v4441_v56, 2 }
  0x51   : > { %3615 = vmatprep.subr.bf16.mxu0 %v3963_v34  ;;  %3470 = vmatpush3.bf16.msra.mxu1 %v3964_v16  ;;  %v4460_v15 = vld [vmem:[%s4096_s10 + $0x30] sm:$0xff]  }
  0x52   : > { %3471 = vmatprep.subr.bf16.mxu1 %v3966_v40  ;;  %v4013_v46 = vld [vmem:[%s4096_s10 + $0x54] ss:$0 sps:$4 sm:$0x11]   ;;  %v1888_v49 = vrot.slane %v4460_v15, 2 }
  0x53   : > { %v1050_v52 = vrot.slane %v4013_v46, 1  ;;  %v1031_v46 = vrot.slane %v4131_v24, 1 }
  0x54   : > { %3616 = vmatpush3.bf16.msra.mxu0 %v3963_v34  ;;  %v4445_v34 = vld [vmem:[%s4096_s10 + $0x20] sm:$0xff]  }
  0x55   : > { %3617 = vmatprep.subr.bf16.mxu0 %v3965_v25  ;;  %3472 = vmatpush3.bf16.msra.mxu1 %v3966_v40  ;;  %v1884_v14 = vrot.slane %v4445_v34, 2  ;;  %v2143_v24 = vshll.u32 %v4445_v34, 16 }
  0x56   : > { %3454 = vmatmul.mubr.bf16.gmra.mrb[4].mxu1 %v4155_v48  ;;  %3473 = vmatprep.subr.bf16.mxu1 %v3968_v3  ;;  %v3970_v48 = vld [vmem:[%s4793_s1 + $0x1a0] sm:$0xff]  }
  0x57   : > { %3598 = vmatmul.mubr.bf16.gmra.mrb[4].mxu0 %v1584_v55  ;;  %3457 = vmatprep.mubr.bf16.mxu1 %v4167_v59  ;;  %v747_v59 = vrot.slane %v4277_v47, 1  ;;  %v3973_v47 = vld [vmem:[%s4793_s1 + $0xa8] sm:$0xff]   ;;  %v4480_v55 = vld [vmem:[%s4096_s10 + $0x38] sm:$0xff]  }
  0x58   : > { %3618 = vmatpush3.bf16.msra.mxu0 %v3965_v25  ;;  %3601 = vmatprep.mubr.bf16.mxu0 %v1586_v60  ;;  %v1886_v25 = vrot.slane %v4456_v42, 2  ;;  %v2402_v60 = vld [vmem:[%s4096_s10 + $0x8] sm:$0x8] }
  0x59   : > { %3619 = vmatprep.subr.bf16.mxu0 %v3967_v13  ;;  %3474 = vmatpush3.bf16.msra.mxu1 %v3968_v3  ;;  %v4391_v62 = vsel %vm727_vm3, %v745_v6, %v747_v59  ;;  %v1048_v3 = vrot.slane %v4271_v39, 1  ;;  %v3990_v39 = vld [vmem:[%s4793_s1 + $0x1d8] sm:$0xff]   ;;  %v1890_v6 = vrot.slane %v4480_v55, 2  ;;  %v3994_v59 = vld [vmem:[%s4793_s1 + $0x1e0] sm:$0xff]  }
  0x5a   : > { %3475 = vmatprep.subr.bf16.mxu1 %v3969_v0  ;;  %v1887_v26 = vsel %vm1575_vm2, %v1884_v14, %v1886_v25 }
  0x5b   : > { %v4485_v58 = vsel %vm727_vm3, %v1046_v51, %v1048_v3  ;;  %v1891_v20 = vsel %vm1575_vm2, %v1888_v49, %v1890_v6 }
  0x5c   : > { %3620 = vmatpush3.bf16.msra.mxu0 %v3967_v13  ;;  %v1889_v13 = vsel %vm1575_vm2, %v1886_v25, %v1888_v49  ;;  %v4005_v25 = vld [vmem:[%s4793_s1 + $0xf8] sm:$0xff]   ;;  %v4017_v49 = vld [vmem:[%s4096_s10 + $0xc] sm:$0xff]  }
  0x5d   : > { %3621 = vmatprep.subr.bf16.mxu0 %v3970_v48  ;;  %3476 = vmatpush3.bf16.msra.mxu1 %v3969_v0  ;;  %v4493_v0 = vld [vmem:[%s4096_s10 + $0x40] sm:$0xff]  }
  0x5e   : > { %3458 = vmatmul.mubr.bf16.gmra.mrb[8].mxu1 %v4191_v17  ;;  %3477 = vmatprep.subr.bf16.mxu1 %v3971_v7  ;;  %v3975_v17 = vld [vmem:[%s4793_s1 + $0xb0] sm:$0xff]  }
  0x5f   : > { %3602 = vmatmul.mubr.bf16.gmra.mrb[8].mxu0 %v1588_v45  ;;  %3461 = vmatprep.mubr.bf16.mxu1 %v4205_v35  ;;  %v4412_v35 = vld [vmem:[%s4096_s10 + $0xc] sm:$0xf]  ;;  %v1892_v45 = vrot.slane %v4493_v0, 2 }
  0x60   : > { %3622 = vmatpush3.bf16.msra.mxu0 %v3970_v48  ;;  %3605 = vmatprep.mubr.bf16.mxu0 %v1590_v9  ;;  %v4420_v16 = vcombine.low %v1788_v21, %v4412_v35  ;;  %v3122_v4 = vcombine.low %v2402_v60, %v4412_v35  ;;  %v2425_v48 = vrot.slane %v4423_v19, 3  ;;  %v2429_v9 = vrot.slane %v4445_v34, 3  ;;  %v4006_v60 = vld [vmem:[%s4793_s1 + $0x200] sm:$0xff]  }
  0x61   : > { %3478 = vmatpush3.bf16.msra.mxu1 %v3971_v7  ;;  %3623 = vmatprep.subr.bf16.mxu0 %v3972_v10  ;;  %v2433_v35 = vrot.slane %v4460_v15, 3 }
  0x62   : > { %3479 = vmatprep.subr.bf16.mxu1 %v3973_v47  ;;  %v1879_v30 = vrot.slane %v4420_v16, 2  ;;  %v2424_v7 = vrot.slane %v3122_v4, 3  ;;  %v4530_v21 = vsel %vm2423_vm4, %v2429_v9, %v2431_v11 }
  0x63   : > { %v4547_v29 = vsel %vm2423_vm4, %v2431_v11, %v2433_v35 }
  0x64   : > { %3624 = vmatpush3.bf16.msra.mxu0 %v3972_v10  ;;  %v4516_v10 = vsel %vm2423_vm4, %v2424_v7, %v2425_v48 }
  0x65   : > { %3480 = vmatpush3.bf16.msra.mxu1 %v3973_v47  ;;  %3625 = vmatprep.subr.bf16.mxu0 %v3974_v12 }
  0x66   : > { %3462 = vmatmul.mubr.bf16.gmra.mrb[12].mxu1 %v4232_v61  ;;  %3481 = vmatprep.subr.bf16.mxu1 %v3975_v17  ;;  %v1880_v61 = vrot.slane %v4423_v19, 2 }
  0x67   : > { %3606 = vmatmul.mubr.bf16.gmra.mrb[12].mxu0 %v1592_v22  ;;  %3465 = vmatprep.mubr.bf16.mxu1 %v4241_v5  ;;  %v3985_v5 = vld [vmem:[%s4793_s1 + $0xc0] sm:$0xff]   ;;  %v1893_v22 = vsel %vm1575_vm2, %v1890_v6, %v1892_v45  ;;  %v2145_v6 = vrot.slane %v2143_v24, 3 }
  0x68   : > { %3609 = vmatprep.mubr.bf16.mxu0 %v1594_v27  ;;  %3626 = vmatpush3.bf16.msra.mxu0 %v3974_v12  ;;  %v1881_v33 = vsel %vm1575_vm2, %v1879_v30, %v1880_v61  ;;  %v1883_v40 = vsel %vm1575_vm2, %v1880_v61, %v1882_v36  ;;  %v4538_v27 = vld [vmem:[%s4096_s10 + $0x50] sm:$0xff]  }
  0x69   : > { %3482 = vmatpush3.bf16.msra.mxu1 %v3975_v17  ;;  %3627 = vmatprep.subr.bf16.mxu0 %v3976_v23  ;;  %v4527_v17 = vld [vmem:[%s4096_s10 + $0x48] sm:$0xff]   ;;  %v4000_v61 = vld [vmem:[%s4793_s1 + $0x1f0] sm:$0xff]  }
  0x6a   : > { %3483 = vmatprep.subr.bf16.mxu1 %v3977_v28  ;;  %v1894_v30 = vrot.slane %v4527_v17, 2 }
  0x6c   : > { %3628 = vmatpush3.bf16.msra.mxu0 %v3976_v23  ;;  %v3998_v23 = vld [vmem:[%s4793_s1 + $0x1e8] sm:$0xff]  }
  0x6d   : > { %3484 = vmatpush3.bf16.msra.mxu1 %v3977_v28  ;;  %3649 = vmatprep.subr.bf16.mxu0 %v3982_v31  ;;  %v3999_v28 = vld [vmem:[%s4793_s1 + $0xe8] sm:$0xff]  }
  0x6e   : > { %3466 = vmatmul.mubr.bf16.gmra.mrb[16].mxu1 %v4267_v37  ;;  %3505 = vmatprep.subr.bf16.mxu1 %v3985_v5  ;;  %v1885_v37 = vsel %vm1575_vm2, %v1882_v36, %v1884_v14  ;;  %v1895_v36 = vsel %vm1575_vm2, %v1892_v45, %v1894_v30  ;;  %v4003_v14 = vld [vmem:[%s4096_s10 + $0x58] ss:$0 sps:$4 sm:$0x33]  }
  0x6f   : > { %3610 = vmatmul.mubr.bf16.gmra.mrb[16].mxu0 %v1596_v32  ;;  %3485 = vmatprep.mubr.bf16.mxu1 %v4373_v1  ;;  %v4496_v1 = vsel %vm727_vm3, %v1048_v3, %v1050_v52  ;;  %v2122_v32 = vshrl.u32 %v4423_v19, 16  ;;  %v2131_v3 = vshrl.u32 %v4441_v56, 16  ;;  %v2134_v52 = vshll.u32 %v4441_v56, 16 }
  0x70   : > { %3629 = vmatprep.mubr.bf16.mxu0 %v1881_v33  ;;  %v4002_v33 = vld [vmem:[%s4793_s1 + $0xf0] sm:$0xff]  }
  0x76   : > { %3486 = vmatmul.mubr.bf16.vlgmr.msra.gmra.mrb[0].mxu1 %v4327_v57  ;;  %v3987_v57 = vld [vmem:[%s4793_s1 + $0x1d0] sm:$0xff]  }
  0x77   : > { %3630 = vmatmul.mubr.bf16.vlgmr.msra.gmra.mrb[0].mxu0 %v1883_v40  ;;  %3489 = vmatprep.mubr.bf16.mxu1 %v4332_v41  ;;  %v3991_v41 = vld [vmem:[%s4793_s1 + $0xd0] sm:$0xff]  }
  0x78   : > { %3650 = vmatpush3.bf16.msra.mxu0 %v3982_v31  ;;  %3633 = vmatprep.mubr.bf16.mxu0 %v1885_v37  ;;  %v1896_v31 = vrot.slane %v4538_v27, 2  ;;  %v2124_v37 = vrot.slane %v2122_v32, 2  ;;  %v4020_v32 = vld [vmem:[%s4096_s10 + $0x24] sm:$0xff]  }
  0x79   : > { %3651 = vmatprep.subr.bf16.mxu0 %v3983_v38  ;;  %3506 = vmatpush3.bf16.msra.mxu1 %v3985_v5  ;;  %v2117_v5 = vshll.u32 %v4420_v16, 16 }
  0x7a   : > { %3507 = vmatprep.subr.bf16.mxu1 %v3988_v44 }
  0x7c   : > { %3652 = vmatpush3.bf16.msra.mxu0 %v3983_v38  ;;  %v1897_v38 = vsel %vm1575_vm2, %v1894_v30, %v1896_v31 }
  0x7d   : > { %3653 = vmatprep.subr.bf16.mxu0 %v3987_v57  ;;  %3508 = vmatpush3.bf16.msra.mxu1 %v3988_v44 }
  0x7e   : > { %3490 = vmatmul.mubr.bf16.gmra.mrb[4].mxu1 %v4337_v43  ;;  %3509 = vmatprep.subr.bf16.mxu1 %v3991_v41  ;;  %v2427_v43 = vrot.slane %v4441_v56, 3 }
  0x7f   : > { %3634 = vmatmul.mubr.bf16.gmra.mrb[4].mxu0 %v1887_v26  ;;  %3493 = vmatprep.mubr.bf16.mxu1 %v4346_v50  ;;  %v3996_v50 = vld [vmem:[%s4793_s1 + $0xe0] sm:$0xff]  }
  0x80   : > { %3654 = vmatpush3.bf16.msra.mxu0 %v3987_v57  ;;  %3637 = vmatprep.mubr.bf16.mxu0 %v1889_v13  ;;  %v4519_v47 = vsel %vm2423_vm4, %v2425_v48, %v2427_v43  ;;  %v4523_v12 = vsel %vm2423_vm4, %v2427_v43, %v2429_v9  ;;  %v1898_v57 = vrot.slane %v4003_v14, 2  ;;  %v2149_v9 = vshrl.u32 %v4456_v42, 16 }
  0x81   : > { %3655 = vmatprep.subr.bf16.mxu0 %v3990_v39  ;;  %3510 = vmatpush3.bf16.msra.mxu1 %v3991_v41  ;;  %v1032_v41 = vrot.slane %v4017_v49, 1 }
  0x82   : > { %3511 = vmatprep.subr.bf16.mxu1 %v3993_v2  ;;  %v1899_v13 = vsel %vm1575_vm2, %v1896_v31, %v1898_v57  ;;  %v2151_v30 = vrot.slane %v2149_v9, 2 }
  0x83   : > { %v1033_v56 = vsel %vm727_vm3, %v1031_v46, %v1032_v41 }
  0x84   : > { %3656 = vmatpush3.bf16.msra.mxu0 %v3990_v39  ;;  %v2133_v39 = vrot.slane %v2131_v3, 2 }
  0x85   : > { %3657 = vmatprep.subr.bf16.mxu0 %v3994_v59  ;;  %3512 = vmatpush3.bf16.msra.mxu1 %v3993_v2  ;;  %v2136_v2 = vrot.slane %v2134_v52, 3  ;;  %v4009_v52 = vld [vmem:[%s4793_s1 + $0x218] sm:$0xff]  }
  0x86   : > { %3494 = vmatmul.mubr.bf16.gmra.mrb[8].mxu1 %v4354_v53  ;;  %3513 = vmatprep.subr.bf16.mxu1 %v3996_v50  ;;  %v2114_v53 = vshrl.u32 %v4420_v16, 16  ;;  %v4004_v16 = vld [vmem:[%s4793_s1 + $0x1f8] sm:$0xff]  }
  0x87   : > { %3638 = vmatmul.mubr.bf16.gmra.mrb[8].mxu0 %v1891_v20  ;;  %3497 = vmatprep.mubr.bf16.mxu1 %v4357_v54  ;;  %v2125_v54 = vshll.u32 %v4423_v19, 16  ;;  %v2119_v19 = vrot.slane %v2117_v5, 3  ;;  %v2137_v43 = vor.u32 %v2136_v2, %v2133_v39  ;;  %v2158_v20 = vshrl.u32 %v4460_v15, 16 }
  0x88   : > { %3658 = vmatpush3.bf16.msra.mxu0 %v3994_v59  ;;  %3641 = vmatprep.mubr.bf16.mxu0 %v1893_v22  ;;  %v2116_v40 = vrot.slane %v2114_v53, 2  ;;  %v4019_v59 = vld [vmem:[%s4096_s10 + $0x1c] sm:$0xff]   ;;  %v2161_v22 = vshll.u32 %v4460_v15, 16  ;;  %v2185_v39 = vshrl.u32 %v4527_v17, 16  ;;  %v2188_v2 = vshll.u32 %v4527_v17, 16 }
  0x89   : > { %3514 = vmatpush3.bf16.msra.mxu1 %v3996_v50  ;;  %3659 = vmatprep.subr.bf16.mxu0 %v3998_v23  ;;  %v2127_v44 = vrot.slane %v2125_v54, 3  ;;  %v1036_v45 = vrot.slane %v4019_v59, 1  ;;  %v2152_v50 = vshll.u32 %v4456_v42, 16  ;;  %v2160_v31 = vrot.slane %v2158_v20, 2  ;;  %v4011_v20 = vld [vmem:[%s4793_s1 + $0x228] sm:$0xff]  }
  0x8a   : > { %3515 = vmatprep.subr.bf16.mxu1 %v3999_v28  ;;  %v2163_v5 = vrot.slane %v2161_v22, 3  ;;  %v1038_v54 = vrot.slane %v4020_v32, 1  ;;  %v2190_v9 = vrot.slane %v2188_v2, 3 }
  0x8b   : > { %v2128_v26 = vor.u32 %v2127_v44, %v2124_v37  ;;  %v2154_v53 = vrot.slane %v2152_v50, 3  ;;  %v2176_v37 = vshrl.u32 %v4493_v0, 16  ;;  %v2179_v44 = vshll.u32 %v4493_v0, 16  ;;  %v4014_v50 = vld [vmem:[%s4096_s10 + $0x58] ss:$0 sps:$4 sm:$0x77]  }
  0x8c   : > { %3660 = vmatpush3.bf16.msra.mxu0 %v3998_v23 }
  0x8d   : > { %3516 = vmatpush3.bf16.msra.mxu1 %v3999_v28  ;;  %3661 = vmatprep.subr.bf16.mxu0 %v4000_v61  ;;  %v2138_v23 = vsel %vm2112_vm5, %v2128_v26, %v2137_v43 }
  0x8e   : > { %3498 = vmatmul.mubr.bf16.gmra.mrb[12].mxu1 %v4366_v63  ;;  %3517 = vmatprep.subr.bf16.mxu1 %v4002_v33  ;;  %v2120_v63 = vor.u32 %v2119_v19, %v2116_v40  ;;  %v2167_v40 = vshrl.u32 %v4480_v55, 16  ;;  %v2164_v19 = vor.u32 %v2163_v5, %v2160_v31 }
  0x8f   : > { %3642 = vmatmul.mubr.bf16.gmra.mrb[12].mxu0 %v1895_v36  ;;  %3501 = vmatprep.mubr.bf16.mxu1 %v4387_v8  ;;  %v2140_v8 = vshrl.u32 %v4445_v34, 16  ;;  %v4018_v34 = vld [vmem:[%s4096_s10 + $0x14] sm:$0xff]   ;;  %v4021_v36 = vld [vmem:[%s4096_s10 + $0x2c] sm:$0xff]  }
  0x90   : > { %3645 = vmatprep.mubr.bf16.mxu0 %v1897_v38  ;;  %3662 = vmatpush3.bf16.msra.mxu0 %v4000_v61  ;;  %v2129_v4 = vsel %vm2112_vm5, %v2120_v63, %v2128_v26  ;;  %v1034_v7 = vrot.slane %v4018_v34, 1  ;;  %v4007_v61 = vld [vmem:[%s4793_s1 + $0x208] sm:$0xff]   ;;  %v1040_v14 = vrot.slane %v4021_v36, 1  ;;  %v2170_v38 = vshll.u32 %v4480_v55, 16 }
  0x91   : > { %3518 = vmatpush3.bf16.msra.mxu1 %v4002_v33  ;;  %3663 = vmatprep.subr.bf16.mxu0 %v4004_v16  ;;  %v2142_v48 = vrot.slane %v2140_v8, 2  ;;  %v2155_v33 = vor.u32 %v2154_v53, %v2151_v30  ;;  %v2169_v49 = vrot.slane %v2167_v40, 2  ;;  %v2178_v63 = vrot.slane %v2176_v37, 2  ;;  %v4012_v53 = vld [vmem:[%s4793_s1 + $0x230] sm:$0xff]  }
  0x92   : > { %3519 = vmatprep.subr.bf16.mxu1 %v4005_v25  ;;  %v1037_v28 = vsel %vm727_vm3, %v1034_v7, %v1036_v45  ;;  %v1041_v57 = vsel %vm727_vm3, %v1038_v54, %v1040_v14  ;;  %v2181_v26 = vrot.slane %v2179_v44, 3  ;;  %v2197_v34 = vshll.u32 %v4538_v27, 16 }
  0x93   : > { %v2146_v11 = vor.u32 %v2145_v6, %v2142_v48  ;;  %v2165_v3 = vsel %vm2112_vm5, %v2155_v33, %v2164_v19  ;;  %v2194_v6 = vshrl.u32 %v4538_v27, 16  ;;  %v2206_v30 = vshll.u32 %v4014_v50, 16 }
  0x94   : > { %3664 = vmatpush3.bf16.msra.mxu0 %v4004_v16  ;;  %v4008_v16 = vld [vmem:[%s4793_s1 + $0x210] sm:$0xff]   ;;  %v2182_v48 = vor.u32 %v2181_v26, %v2178_v63  ;;  %v2437_v36 = vrot.slane %v4493_v0, 3 }
  0x95   : > { %3520 = vmatpush3.bf16.msra.mxu1 %v4005_v25  ;;  %3685 = vmatprep.subr.bf16.mxu0 %v4006_v60  ;;  %v2147_v42 = vsel %vm2112_vm5, %v2137_v43, %v2146_v11  ;;  %v1039_v25 = vsel %vm727_vm3, %v1036_v45, %v1038_v54  ;;  %v2156_v46 = vsel %vm2112_vm5, %v2146_v11, %v2155_v33  ;;  %v2187_v45 = vrot.slane %v2185_v39, 2  ;;  %v4015_v33 = vld [vmem:[%s4793_s1 + $0x238] sm:$0xff]  }
  0x96   : > { %3502 = vmatmul.mubr.bf16.gmra.mrb[16].mxu1 %v4391_v62  ;;  %3721 = vmatprep.subr.bf16.mxu1 %v4006_v60  ;;  %v1035_v62 = vsel %vm727_vm3, %v1032_v41, %v1034_v7  ;;  %v2172_v41 = vrot.slane %v2170_v38, 3  ;;  %v2196_v22 = vrot.slane %v2194_v6, 2  ;;  %v2208_v32 = vrot.slane %v2206_v30, 3 }
  0x97   : > { %3646 = vmatmul.mubr.bf16.gmra.mrb[16].mxu0 %v1899_v13  ;;  %3521 = vmatprep.mubr.bf16.mxu1 %v1033_v56  ;;  %v4023_v13 = vld [vmem:[%s4096_s10 + $0x3c] sm:$0xff]  }
  0x98   : > { %3665 = vmatprep.mubr.bf16.mxu0 %v2129_v4  ;;  %v2173_v24 = vor.u32 %v2172_v41, %v2169_v49  ;;  %v1044_v56 = vrot.slane %v4023_v13, 1  ;;  %v4010_v4 = vld [vmem:[%s4793_s1 + $0x220] sm:$0xff]  }
  0x9a   : > { %v2174_v43 = vsel %vm2112_vm5, %v2164_v19, %v2173_v24  ;;  %v2183_v11 = vsel %vm2112_vm5, %v2173_v24, %v2182_v48 }
  0x9e   : > { %3522 = vmatmul.mubr.bf16.vlgmr.msra.gmra.mrb[0].mxu1 %v1035_v62  ;;  %v2199_v62 = vrot.slane %v2197_v34, 3 }
  0x9f   : > { %3666 = vmatmul.mubr.bf16.vlgmr.msra.gmra.mrb[0].mxu0 %v2138_v23  ;;  %3525 = vmatprep.mubr.bf16.mxu1 %v1037_v28  ;;  %v2191_v23 = vor.u32 %v2190_v9, %v2187_v45  ;;  %v2203_v28 = vshrl.u32 %v4014_v50, 16 }
  0xa0   : > { %3686 = vmatpush3.bf16.msra.mxu0 %v4006_v60  ;;  %3669 = vmatprep.mubr.bf16.mxu0 %v2147_v42  ;;  %v1047_v42 = vsel %vm727_vm3, %v1044_v56, %v1046_v51  ;;  %v2435_v51 = vrot.slane %v4480_v55, 3  ;;  %v2441_v55 = vrot.slane %v4538_v27, 3 }
  0xa1   : > { %3687 = vmatprep.subr.bf16.mxu0 %v4007_v61  ;;  %3729 = vmatpush3.bf16.msra.mxu1 %v4006_v60  ;;  %v4022_v60 = vld [vmem:[%s4096_s10 + $0x34] sm:$0xff]   ;;  %v2192_v31 = vsel %vm2112_vm5, %v2182_v48, %v2191_v23  ;;  %v2205_v5 = vrot.slane %v2203_v28, 2 }
  0xa2   : > { %3722 = vmatprep.subr.bf16.mxu1 %v4007_v61  ;;  %v1042_v8 = vrot.slane %v4022_v60, 1  ;;  %v2438_v40 = vsel %vm2423_vm4, %v2435_v51, %v2437_v36 }
  0xa3   : > { %v2209_v18 = vor.u32 %v2208_v32, %v2205_v5 }
  0xa4   : > { %3688 = vmatpush3.bf16.msra.mxu0 %v4007_v61  ;;  %v1043_v7 = vsel %vm727_vm3, %v1040_v14, %v1042_v8  ;;  %v1045_v59 = vsel %vm727_vm3, %v1042_v8, %v1044_v56 }
  0xa5   : > { %3689 = vmatprep.subr.bf16.mxu0 %v4008_v16  ;;  %3730 = vmatpush3.bf16.msra.mxu1 %v4007_v61  ;;  %v2200_v61 = vor.u32 %v2199_v62, %v2196_v22 }
  0xa6   : > { %3526 = vmatmul.mubr.bf16.gmra.mrb[4].mxu1 %v1039_v25  ;;  %3723 = vmatprep.subr.bf16.mxu1 %v4008_v16 }
  0xa7   : > { %3670 = vmatmul.mubr.bf16.gmra.mrb[4].mxu0 %v2156_v46  ;;  %3529 = vmatprep.mubr.bf16.mxu1 %v1041_v57  ;;  %v2201_v54 = vsel %vm2112_vm5, %v2191_v23, %v2200_v61  ;;  %v2210_v14 = vsel %vm2112_vm5, %v2200_v61, %v2209_v18 }
  0xa8   : > { %3690 = vmatpush3.bf16.msra.mxu0 %v4008_v16  ;;  %3673 = vmatprep.mubr.bf16.mxu0 %v2165_v3 }
  0xa9   : > { %3691 = vmatprep.subr.bf16.mxu0 %v4009_v52  ;;  %3731 = vmatpush3.bf16.msra.mxu1 %v4008_v16  ;;  %v2443_v16 = vrot.slane %v4014_v50, 3  ;;  %v4689_v50 = vld [vmem:[%s4794_s2] ss:$0 sm:$0xff] }
  0xaa   : > { %3724 = vmatprep.subr.bf16.mxu1 %v4009_v52 }
  0xac   : > { %3692 = vmatpush3.bf16.msra.mxu0 %v4009_v52 }
  0xad   : > { %3693 = vmatprep.subr.bf16.mxu0 %v4010_v4  ;;  %3732 = vmatpush3.bf16.msra.mxu1 %v4009_v52 }
  0xae   : > { %3530 = vmatmul.mubr.bf16.gmra.mrb[8].mxu1 %v1043_v7  ;;  %3725 = vmatprep.subr.bf16.mxu1 %v4010_v4 }
  0xaf   : > { %3674 = vmatmul.mubr.bf16.gmra.mrb[8].mxu0 %v2174_v43  ;;  %3533 = vmatprep.mubr.bf16.mxu1 %v1045_v59 }
  0xb0   : > { %3694 = vmatpush3.bf16.msra.mxu0 %v4010_v4  ;;  %3677 = vmatprep.mubr.bf16.mxu0 %v2183_v11 }
  0xb1   : > { %3733 = vmatpush3.bf16.msra.mxu1 %v4010_v4  ;;  %3695 = vmatprep.subr.bf16.mxu0 %v4011_v20 }
  0xb2   : > { %3726 = vmatprep.subr.bf16.mxu1 %v4011_v20 }
  0xb4   : > { %3696 = vmatpush3.bf16.msra.mxu0 %v4011_v20 }
  0xb5   : > { %3734 = vmatpush3.bf16.msra.mxu1 %v4011_v20  ;;  %3697 = vmatprep.subr.bf16.mxu0 %v4012_v53 }
  0xb6   : > { %3534 = vmatmul.mubr.bf16.gmra.mrb[12].mxu1 %v1047_v42  ;;  %3727 = vmatprep.subr.bf16.mxu1 %v4012_v53 }
  0xb7   : > { %3678 = vmatmul.mubr.bf16.gmra.mrb[12].mxu0 %v2192_v31  ;;  %3537 = vmatprep.mubr.bf16.mxu1 %v4485_v58  ;;  %v2439_v58 = vrot.slane %v4527_v17, 3 }
  0xb8   : > { %3681 = vmatprep.mubr.bf16.mxu0 %v2201_v54  ;;  %3698 = vmatpush3.bf16.msra.mxu0 %v4012_v53  ;;  %v4695_v54 = vld [vmem:[%s4794_s2 + $0x1] ss:$0 sm:$0xff] }
  0xb9   : > { %3735 = vmatpush3.bf16.msra.mxu1 %v4012_v53  ;;  %3699 = vmatprep.subr.bf16.mxu0 %v4015_v33  ;;  %v2440_v0 = vsel %vm2423_vm4, %v2437_v36, %v2439_v58  ;;  %v2442_v38 = vsel %vm2423_vm4, %v2439_v58, %v2441_v55 }
  0xba   : > { %3728 = vmatprep.subr.bf16.mxu1 %v4015_v33 }
  0xbc   : > { %3700 = vmatpush3.bf16.msra.mxu0 %v4015_v33 }
  0xbd   : > { %3736 = vmatpush3.bf16.msra.mxu1 %v4015_v33 }
  0xbe   : > { %3538 = vmatmul.mubr.bf16.gmra.mrb[16].mxu1 %v4496_v1  ;;  %v2444_v1 = vsel %vm2423_vm4, %v2441_v55, %v2443_v16 }
  0xbf   : > { %3682 = vmatmul.mubr.bf16.gmra.mrb[16].mxu0 %v2210_v14  ;;  %3713 = vmatprep.mubr.bf16.mxu1 %v2438_v40 }
  0xc0   : > { %3701 = vmatprep.mubr.bf16.mxu0 %v4516_v10  ;;  %v2436_v10 = vsel %vm2423_vm4, %v2433_v35, %v2435_v51 }
  0xc6   : > { %3714 = vmatmul.mubr.bf16.vlgmr.msra.gmra.mrb[20].mxu1 %v2440_v0 }
  0xc7   : > { %3702 = vmatmul.mubr.bf16.vlgmr.msra.gmra.mrb[0].mxu0 %v4519_v47  ;;  %3717 = vmatprep.mubr.bf16.mxu1 %v2442_v38  ;;  %v4704_v38 = vld [vmem:[%s4794_s2 + $0x2] ss:$0 sm:$0xff] }
  0xc8   : > { %3705 = vmatprep.mubr.bf16.mxu0 %v4523_v12 }
  0xce   : > { %3718 = vmatmul.mubr.bf16.gmra.mrb[24].mxu1 %v2444_v1 }
  0xcf   : > { %3706 = vmatmul.mubr.bf16.gmra.mrb[4].mxu0 %v4530_v21 }
  0xd0   : > { %3709 = vmatprep.mubr.bf16.mxu0 %v4547_v29 }
  0xd7   : > { %3710 = vmatmul.mubr.bf16.gmra.mrb[8].mxu0 %v2436_v10 }
 0x171   : > { %v3523_v17 = vpop.f32.mrb[0].mxu1 }
 0x172   : > { %v1144_v27 = vpop.f32.mrb[1].mxu1 }
 0x173   : > { %v3524_v19 = vpop.f32.mrb[2].mxu1 }
 0x174   : > { %v1147_v47 = vpop.f32.mrb[3].mxu1 }
 0x179   : > { %v4662_v37 = vpop.f32.mrb[4].mxu1 }
 0x17a   : > { %v4664_v44 = vpop.f32.mrb[5].mxu1 }
 0x17b   : > { %v4666_v12 = vpop.f32.mrb[6].mxu1 }
 0x17c   : > { %v4668_v25 = vpop.f32.mrb[7].mxu1 }
 0x181   : > { %v4670_v21 = vpop.f32.mrb[8].mxu1 }
 0x182   : > { %v4672_v29 = vpop.f32.mrb[9].mxu1 }
 0x183   : > { %v4674_v15 = vpop.f32.mrb[10].mxu1 }
 0x184   : > { %v4676_v35 = vpop.f32.mrb[11].mxu1 }
 0x189   : > { %v3535_v46 = vpop.f32.mrb[12].mxu1 }
 0x18a   : > { %v3679_v57 = vpop.f32.mrb[12].mxu0  ;;  %v1192_v49 = vpop.f32.mrb[13].mxu1 }
 0x18b   : > { %v3749_v41 = vadd.f32 %v3679_v57, %v3535_v46  ;;  %v2351_v3 = vpop.f32.mrb[13].mxu0  ;;  %v3536_v52 = vpop.f32.mrb[14].mxu1 }
 0x18c   : > { %v3751_v63 = vadd.f32 %v2351_v3, %v1192_v49  ;;  %v3680_v26 = vpop.f32.mrb[14].mxu0  ;;  %v1195_v60 = vpop.f32.mrb[15].mxu1 }
 0x18d   : > { %v3753_v8 = vadd.f32 %v3680_v26, %v3536_v52  ;;  %v2354_v24 = vpop.f32.mrb[15].mxu0 }
 0x18e   : > { %v3755_v13 = vadd.f32 %v2354_v24, %v1195_v60 }
 0x191   : > { %v3539_v56 = vpop.f32.mrb[16].mxu1 }
 0x192   : > { %v3683_v39 = vpop.f32.mrb[16].mxu0  ;;  %v1208_v2 = vpop.f32.mrb[17].mxu1 }
 0x193   : > { %v4678_v4 = vadd.f32 %v3683_v39, %v3539_v56  ;;  %v2367_v48 = vpop.f32.mrb[17].mxu0  ;;  %v3540_v6 = vpop.f32.mrb[18].mxu1 }
 0x194   : > { %v4680_v34 = vadd.f32 %v2367_v48, %v1208_v2  ;;  %v3684_v7 = vpop.f32.mrb[18].mxu0  ;;  %v1211_v43 = vpop.f32.mrb[19].mxu1 }
 0x195   : > { %v4682_v59 = vadd.f32 %v3684_v7, %v3540_v6  ;;  %v2370_v45 = vpop.f32.mrb[19].mxu0 }
 0x196   : > { %v4684_v9 = vadd.f32 %v2370_v45, %v1211_v43 }
 0x199   : > { %v3715_v11 = vpop.f32.mrb[20].mxu1 }
 0x19a   : > { %v3703_v20 = vpop.f32.mrb[0].mxu0  ;;  %v3750_v22 = vadd.f32 %v3749_v41, %v3715_v11  ;;  %v2585_v62 = vpop.f32.mrb[21].mxu1 }
 0x19b   : > { %v3737_v23 = vadd.f32 %v3703_v20, %v3523_v17  ;;  %v2537_v28 = vpop.f32.mrb[1].mxu0  ;;  %v3752_v30 = vadd.f32 %v3751_v63, %v2585_v62  ;;  %v3716_v53 = vpop.f32.mrb[22].mxu1 }
 0x19c   : > { %v2657_v61 = vadd.f32 %v3750_v22, %v4689_v50  ;;  %v3738_v42 = vadd.f32 %v2537_v28, %v1144_v27  ;;  %v3704_v31 = vpop.f32.mrb[2].mxu0  ;;  %v3754_v5 = vadd.f32 %v3753_v8, %v3716_v53  ;;  %v2588_v32 = vpop.f32.mrb[23].mxu1 }
 0x19d   : > { %v2645_v33 = vadd.f32 %v3737_v23, %v4689_v50  ;;  %v2655_v18 = vadd.f32 %v3752_v30, %v4689_v50  ;;  %v3739_v51 = vadd.f32 %v3704_v31, %v3524_v19  ;;  %v2540_v36 = vpop.f32.mrb[3].mxu0  ;;  %v3756_v14 = vadd.f32 %v3755_v13, %v2588_v32 }
 0x19e   : > { %v2677_v40 = vmax.f32 %v2657_v61, 0.0  ;;  %v2643_v58 = vadd.f32 %v3738_v42, %v4689_v50  ;;  %v2658_v55 = vadd.f32 %v3754_v5, %v4689_v50  ;;  %v3740_v0 = vadd.f32 %v2540_v36, %v1147_v47 }
 0x19f   : > { %v2665_v16 = vmax.f32 %v2645_v33, 0.0  ;;  %v2675_v1 = vmax.f32 %v2655_v18, 0.0  ;;  %v2646_v10 = vadd.f32 %v3739_v51, %v4689_v50  ;;  %v2656_v17 = vadd.f32 %v3756_v14, %v4689_v50 }
 0x1a0   : > { %v2701_v27 = vmul.f32 %v4695_v54, %v2677_v40  ;;  %v2663_v19 = vmax.f32 %v2643_v58, 0.0  ;;  %v2678_v46 = vmax.f32 %v2658_v55, 0.0  ;;  %v2644_v57 = vadd.f32 %v3740_v0, %v4689_v50 }
 0x1a1   : > { %v2689_v49 = vmul.f32 %v4695_v54, %v2665_v16  ;;  %v2699_v47 = vmul.f32 %v4695_v54, %v2675_v1  ;;  %v2666_v41 = vmax.f32 %v2646_v10, 0.0  ;;  %v2676_v3 = vmax.f32 %v2656_v17, 0.0  ;;  %v3719_v52 = vpop.f32.mrb[24].mxu1 }
 0x1a2   : > { %v2725_v63 = vadd.f32 %v4704_v38, %v2701_v27  ;;  %v2687_v26 = vmul.f32 %v4695_v54, %v2663_v19  ;;  %v2702_v60 = vmul.f32 %v4695_v54, %v2678_v46  ;;  %v2664_v8 = vmax.f32 %v2644_v57, 0.0  ;;  %v3707_v24 = vpop.f32.mrb[4].mxu0  ;;  %v2601_v13 = vpop.f32.mrb[25].mxu1 }
 0x1a3   : > { %v2713_v56 = vadd.f32 %v4704_v38, %v2689_v49  ;;  %v2723_v39 = vadd.f32 %v4704_v38, %v2699_v47  ;;  %v2690_v2 = vmul.f32 %v4695_v54, %v2666_v41  ;;  %v2700_v48 = vmul.f32 %v4695_v54, %v2676_v3  ;;  %v2553_v6 = vpop.f32.mrb[5].mxu0  ;;  %v3720_v7 = vpop.f32.mrb[26].mxu1 }
 0x1a4   : > { %v2711_v43 = vadd.f32 %v4704_v38, %v2687_v26  ;;  %v2726_v45 = vadd.f32 %v4704_v38, %v2702_v60  ;;  %v2688_v11 = vmul.f32 %v4695_v54, %v2664_v8  ;;  %v3741_v20 = vadd.f32 %v3707_v24, %v4662_v37  ;;  %v3708_v22 = vpop.f32.mrb[6].mxu0  ;;  %v2604_v62 = vpop.f32.mrb[27].mxu1 }
 0x1a5   : > { %v2714_v23 = vadd.f32 %v4704_v38, %v2690_v2  ;;  %v2724_v28 = vadd.f32 %v4704_v38, %v2700_v48  ;;  %v3758_v30 = vadd.f32 %v4678_v4, %v3719_v52  ;;  %v3742_v53 = vadd.f32 %v2553_v6, %v4664_v44  ;;  %v2556_v61 = vpop.f32.mrb[7].mxu0 }
 0x1a6   : > { %v3214_v37 = vpack.c.bf16 %v2726_v45, %v2725_v63  ;;  %v2712_v42 = vadd.f32 %v4704_v38, %v2688_v11  ;;  %v2649_v31 = vadd.f32 %v3741_v20, %v4689_v50  ;;  %v3760_v5 = vadd.f32 %v4680_v34, %v2601_v13 }
 0x1a7   : > { %v3184_v32 = vpack.c.bf16 %v2714_v23, %v2713_v56  ;;  %v3209_v33 = vpack.c.bf16 %v2724_v28, %v2723_v39  ;;  %v2661_v18 = vadd.f32 %v3758_v30, %v4689_v50  ;;  %v2647_v51 = vadd.f32 %v3742_v53, %v4689_v50 }
 0x1a8   : > { %3232 = vst [vmem:[%s4727_s24 + $0x38] sm:$0xff] %v3214_v37   ;;  %v3179_v4 = vpack.c.bf16 %v2712_v42, %v2711_v43  ;;  %v2669_v36 = vmax.f32 %v2649_v31, 0.0  ;;  %v2659_v44 = vadd.f32 %v3760_v5, %v4689_v50  ;;  %v3743_v14 = vadd.f32 %v3708_v22, %v4666_v12 }
 0x1a9   : > { %3226 = vst [vmem:[%s4727_s24 + $0x8] sm:$0xff] %v3184_v32   ;;  %3231 = vst [vmem:[%s4727_s24 + $0x30] sm:$0xff] %v3209_v33   ;;  %v2681_v40 = vmax.f32 %v2661_v18, 0.0  ;;  %v2667_v58 = vmax.f32 %v2647_v51, 0.0  ;;  %v3762_v34 = vadd.f32 %v4682_v59, %v3720_v7  ;;  %v3744_v55 = vadd.f32 %v2556_v61, %v4668_v25 }
 0x1aa   : > { %3180 = vst [vmem:[%s4727_s24] sm:$0xff] %v3179_v4   ;;  %v2693_v0 = vmul.f32 %v4695_v54, %v2669_v36  ;;  %v2679_v16 = vmax.f32 %v2659_v44, 0.0  ;;  %v2650_v1 = vadd.f32 %v3743_v14, %v4689_v50  ;;  %v3764_v10 = vadd.f32 %v4684_v9, %v2604_v62  ;;  %v3711_v17 = vpop.f32.mrb[8].mxu0 }
 0x1ab   : > { %v2705_v27 = vmul.f32 %v4695_v54, %v2681_v40  ;;  %v2691_v12 = vmul.f32 %v4695_v54, %v2667_v58  ;;  %v2662_v19 = vadd.f32 %v3762_v34, %v4689_v50  ;;  %v2648_v46 = vadd.f32 %v3744_v55, %v4689_v50  ;;  %v2569_v59 = vpop.f32.mrb[9].mxu0 }
 0x1ac   : > { %v2717_v25 = vadd.f32 %v4704_v38, %v2693_v0  ;;  %v2703_v57 = vmul.f32 %v4695_v54, %v2679_v16  ;;  %v2670_v49 = vmax.f32 %v2650_v1, 0.0  ;;  %v2660_v47 = vadd.f32 %v3764_v10, %v4689_v50  ;;  %v3712_v41 = vpop.f32.mrb[10].mxu0 }
 0x1ad   : > { %v2729_v9 = vadd.f32 %v4704_v38, %v2705_v27  ;;  %v2715_v3 = vadd.f32 %v4704_v38, %v2691_v12  ;;  %v2682_v52 = vmax.f32 %v2662_v19, 0.0  ;;  %v2668_v63 = vmax.f32 %v2648_v46, 0.0  ;;  %v2572_v26 = vpop.f32.mrb[11].mxu0 }
 0x1ae   : > { %v2727_v60 = vadd.f32 %v4704_v38, %v2703_v57  ;;  %v2694_v8 = vmul.f32 %v4695_v54, %v2670_v49  ;;  %v2680_v24 = vmax.f32 %v2660_v47, 0.0  ;;  %v3745_v13 = vadd.f32 %v3711_v17, %v4670_v21 }
 0x1af   : > { %v2706_v56 = vmul.f32 %v4695_v54, %v2682_v52  ;;  %v2692_v39 = vmul.f32 %v4695_v54, %v2668_v63  ;;  %v3746_v2 = vadd.f32 %v2569_v59, %v4672_v29  ;;  %v3747_v48 = vadd.f32 %v3712_v41, %v4674_v15 }
 0x1b0   : > { %v2718_v6 = vadd.f32 %v4704_v38, %v2694_v8  ;;  %v2704_v7 = vmul.f32 %v4695_v54, %v2680_v24  ;;  %v2653_v43 = vadd.f32 %v3745_v13, %v4689_v50  ;;  %v3748_v45 = vadd.f32 %v2572_v26, %v4676_v35 }
 0x1b1   : > { %v2730_v11 = vadd.f32 %v4704_v38, %v2706_v56  ;;  %v2716_v21 = vadd.f32 %v4704_v38, %v2692_v39  ;;  %v2651_v20 = vadd.f32 %v3746_v2, %v4689_v50  ;;  %v2654_v29 = vadd.f32 %v3747_v48, %v4689_v50 }
 0x1b2   : > { %v3194_v15 = vpack.c.bf16 %v2718_v6, %v2717_v25  ;;  %v2728_v22 = vadd.f32 %v4704_v38, %v2704_v7  ;;  %v2673_v62 = vmax.f32 %v2653_v43, 0.0  ;;  %v2652_v23 = vadd.f32 %v3748_v45, %v4689_v50 }
 0x1b3   : > { %v3224_v28 = vpack.c.bf16 %v2730_v11, %v2729_v9  ;;  %v3189_v30 = vpack.c.bf16 %v2716_v21, %v2715_v3  ;;  %v2671_v35 = vmax.f32 %v2651_v20, 0.0  ;;  %v2674_v53 = vmax.f32 %v2654_v29, 0.0 }
 0x1b4   : > { %3228 = vst [vmem:[%s4727_s24 + $0x18] sm:$0xff] %v3194_v15   ;;  %v3219_v61 = vpack.c.bf16 %v2728_v22, %v2727_v60  ;;  %v2697_v37 = vmul.f32 %v4695_v54, %v2673_v62  ;;  %v2672_v42 = vmax.f32 %v2652_v23, 0.0 }
 0x1b5   : > { %3234 = vst [vmem:[%s4727_s24 + $0x48] sm:$0xff] %v3224_v28   ;;  %3227 = vst [vmem:[%s4727_s24 + $0x10] sm:$0xff] %v3189_v30   ;;  %v2695_v31 = vmul.f32 %v4695_v54, %v2671_v35  ;;  %v2698_v5 = vmul.f32 %v4695_v54, %v2674_v53 }
 0x1b6   : > { %3233 = vst [vmem:[%s4727_s24 + $0x40] sm:$0xff] %v3219_v61   ;;  %v2696_v50 = vmul.f32 %v4695_v54, %v2672_v42  ;;  %v2721_v32 = vadd.f32 %v4704_v38, %v2697_v37 }
 0x1b7   : > { %v2722_v33 = vadd.f32 %v4704_v38, %v2698_v5  ;;  %v2719_v18 = vadd.f32 %v4704_v38, %v2695_v31 }
 0x1b8   : > { %v2720_v51 = vadd.f32 %v4704_v38, %v2696_v50 }
 0x1b9   : > { %v3204_v4 = vpack.c.bf16 %v2722_v33, %v2721_v32 }
 0x1ba   : > { %v3199_v36 = vpack.c.bf16 %v2720_v51, %v2719_v18 }
 0x1bb   : > { %3230 = vst [vmem:[%s4727_s24 + $0x28] sm:$0xff] %v3204_v4  }
 0x1bc   : > { %3229 = vst [vmem:[%s4727_s24 + $0x20] sm:$0xff] %v3199_v36  }
 0x1bd PF: > { %s13_s12 = sadd.s32 1, %s4030_s12  }
 0x1be   : > { %p10_p4 = scmp.ge.s32.totalorder %s13_s12, 4  }
 0x1c0   :  { %12 = sbr.rel (!%p10_p4) target bundleno = 1 (0x1), region = 70 }

// kernel: _lambda_.15
= control target key start
LH: loop header
LB: loop body
LE: loop exit
PB: predicated region body
PF: predicated region fallthrough
CT: control target
= control target key end

     0   :  { %s2914_s12 = smov 0   ;;  %s3539_s0 = inlined_call_operand.vmem [shape: bf16[2,102,128], index: 0, kind: input, shape index: {}]   ;;  %s3540_s1 = inlined_call_operand.vmem [shape: bf16[9,128,128], index: 1, kind: input, shape index: {}]   ;;  %s3541_s2 = inlined_call_operand.vmem [shape: f32[3,128], index: 2, kind: input, shape index: {}]   ;;  %s3542_s3 = inlined_call_operand.vmem [shape: bf16[2,80,128], index: 3, kind: output, shape index: {}]  }
   0x1 LB: > { %s2036_s13 = sadd.s32 4294967295, %s2890_s12   ;;  %p2040_p0 = scmp.ge.s32.totalorder %s2890_s12, 1  ;;  %s2890_s12 = sphi %s2914_s12, %s13_s12  }
   0x2   : > { %p137_p1 = scmp.lt.s32.totalorder %s2890_s12, 3 }
   0x4   : > { %p138_p2 = pnand %p2040_p0, %p137_p1 }
   0x5   : > { %v2789_v0 = vld [vmem:[%s3540_s1 + $0x40] sm:$0xff] (!%p138_p2)   ;;  %v2892_v1 = vmov (!%p138_p2), 0.0   ;;  %v2791_v3 = vld [vmem:[%s3540_s1 + $0x48] sm:$0xff] (!%p138_p2)   ;;  %vm2893_vm0 = vmmov (!%p138_p2), 0   ;;  %p161_p3 = scmp.lt.s32.totalorder (!%p138_p2), %s2036_s13, 1  ;;  %v2793_v5 = vld [vmem:[%s3540_s1 + $0x50] sm:$0xff] (!%p138_p2)  }
   0x6   : > { %141 = sbr.rel (%p138_p2) target bundleno = 441 (0x1b9), region = 32  ;;  %2437 = vmatprep.subr.bf16.mxu0 (!%p138_p2), %v2892_v1  ;;  %2473 = vmatprep.subr.bf16.mxu1 (!%p138_p2), %v2892_v1  ;;  %v2790_v2 = vld [vmem:[%s3540_s1] sm:$0xff] (!%p138_p2)   ;;  %v2792_v4 = vld [vmem:[%s3540_s1 + $0x8] sm:$0xff] (!%p138_p2)   ;;  %v2794_v6 = vld [vmem:[%s3540_s1 + $0x10] sm:$0xff] (!%p138_p2)   ;;  %vm244_vm1 = vsmask.f32 (!%p138_p2), 7424 }
   0x7   : > { %2438 = vmatpush3.bf16.msra.mxu0 (!%p138_p2), %v2789_v0  ;;  %2453 = vmatprep.mubr.msk.bf16.mxu0 (!%p138_p2), %vm2893_vm0, %v2892_v1  ;;  %v2795_v7 = vld [vmem:[%s3540_s1 + $0x58] sm:$0xff] (!%p138_p2)   ;;  %v2797_v9 = vld [vmem:[%s3540_s1 + $0x60] sm:$0xff] (!%p138_p2)   ;;  %v2799_v13 = vld [vmem:[%s3540_s1 + $0x68] sm:$0xff] (!%p138_p2)   ;;  %vm562_vm2 = vcmask (!%p138_p2), 1046528   ;;  %vm934_vm3 = vsmask.f32 (!%p138_p2), 6400 }
   0x8   : > { %2474 = vmatpush3.bf16.msra.mxu1 (!%p138_p2), %v2790_v2  ;;  %2439 = vmatprep.subr.bf16.mxu0 (!%p138_p2), %v2892_v1  ;;  %v2796_v8 = vld [vmem:[%s3540_s1 + $0x18] sm:$0xff] (!%p138_p2)   ;;  %v2798_v10 = vld [vmem:[%s3540_s1 + $0x20] sm:$0xff] (!%p138_p2)   ;;  %v2800_v16 = vld [vmem:[%s3540_s1 + $0x28] sm:$0xff] (!%p138_p2)   ;;  %vm1145_vm4 = vcmask (!%p138_p2), 1045504   ;;  %vm1517_vm5 = vsmask.f32 (!%p138_p2), 5376 }
   0x9   : > { %2475 = vmatprep.subr.bf16.mxu1 (!%p138_p2), %v2892_v1  ;;  %2489 = vmatprep.mubr.msk.bf16.mxu1 (!%p138_p2), %vm2893_vm0, %v2892_v1  ;;  %v2801_v18 = vld [vmem:[%s3540_s1 + $0x70] sm:$0xff] (!%p138_p2)   ;;  %v2803_v23 = vld [vmem:[%s3540_s1 + $0x78] sm:$0xff] (!%p138_p2)   ;;  %v2807_v28 = vld [vmem:[%s3540_s1 + $0x80] sm:$0xff] (!%p138_p2)   ;;  %vm1728_vm6 = vcmask (!%p138_p2), 1044480  }
   0xa   : > { %v2802_v22 = vld [vmem:[%s3540_s1 + $0x30] sm:$0xff] (!%p138_p2)   ;;  %v2804_v24 = vld [vmem:[%s3540_s1 + $0x38] sm:$0xff] (!%p138_p2)   ;;  %v2810_v32 = vld [vmem:[%s3540_s1 + $0xc0] sm:$0xff] (!%p138_p2)  }
   0xb   : > { %2440 = vmatpush3.bf16.msra.mxu0 (!%p138_p2), %v2791_v3  ;;  %v2808_v34 = vld [vmem:[%s3540_s1 + $0x88] sm:$0xff] (!%p138_p2)   ;;  %v2811_v40 = vld [vmem:[%s3540_s1 + $0x90] sm:$0xff] (!%p138_p2)   ;;  %v2814_v44 = vld [vmem:[%s3540_s1 + $0x98] sm:$0xff] (!%p138_p2)  }
   0xc   : > { %2476 = vmatpush3.bf16.msra.mxu1 (!%p138_p2), %v2792_v4  ;;  %2441 = vmatprep.subr.bf16.mxu0 (!%p138_p2), %v2892_v1  ;;  %v2812_v37 = vld [vmem:[%s3540_s1 + $0xc8] sm:$0xff] (!%p138_p2)   ;;  %v2815_v42 = vld [vmem:[%s3540_s1 + $0xd0] sm:$0xff] (!%p138_p2)   ;;  %v2817_v47 = vld [vmem:[%s3540_s1 + $0xd8] sm:$0xff] (!%p138_p2)  }
   0xd   : > { %s3544_s13 = smov (!%p161_p3, %s2036_s13), 1  ;;  %2477 = vmatprep.subr.bf16.mxu1 %v2892_v1  ;;  %v2816_v48 = vld [vmem:[%s3540_s1 + $0xa0] sm:$0xff]   ;;  %v2820_v56 = vld [vmem:[%s3540_s1 + $0xa8] sm:$0xff]   ;;  %v2822_v61 = vld [vmem:[%s3540_s1 + $0xb0] sm:$0xff]  }
   0xe   : > { %s2777_s26 = smul.u32 52, %s3544_s13  ;;  %v2819_v52 = vld [vmem:[%s3540_s1 + $0xe0] sm:$0xff]   ;;  %v2821_v57 = vld [vmem:[%s3540_s1 + $0xe8] sm:$0xff]   ;;  %v2824_v62 = vld [vmem:[%s3540_s1 + $0xf0] sm:$0xff]  }
   0xf   : > { %2442 = vmatpush3.bf16.msra.mxu0 %v2793_v5  ;;  %v2825_v63 = vld [vmem:[%s3540_s1 + $0xb8] sm:$0xff]   ;;  %s2778_s22 = smul.u32 40, %s3544_s13 }
  0x10   : > { %2478 = vmatpush3.bf16.msra.mxu1 %v2794_v6  ;;  %2443 = vmatprep.subr.bf16.mxu0 %v2892_v1  ;;  %s2964_s6 = scalar_lea.vmem %s3539_s0, %s2777_s26  ;;  %v2826_v3 = vld [vmem:[%s3540_s1 + $0xf8] sm:$0xff]  }
  0x11   : > { %2479 = vmatprep.subr.bf16.mxu1 %v2892_v1  ;;  %v172_v11 = vld [vmem:[%s2964_s6] sm:$0xf]  ;;  %v2976_v12 = vld [vmem:[%s2964_s6 + $0x4] sm:$0xf]  ;;  %v2983_v15 = vld [vmem:[%s2964_s6 + $0x8] sm:$0xff]   ;;  %s3516_s24 = scalar_lea.vmem %s3542_s3, %s2778_s22 }
  0x12   : > { %v2059_v14 = vcombine.low %v172_v11, %v2976_v12  ;;  %v253_v21 = vshll.u32 %v2983_v15, 16  ;;  %v3006_v27 = vld [vmem:[%s2964_s6 + $0x10] sm:$0xff]   ;;  %v257_v30 = vshrl.u32 %v2983_v15, 16  ;;  %v3022_v33 = vld [vmem:[%s2964_s6 + $0x18] sm:$0xff]   ;;  %v3051_v45 = vld [vmem:[%s2964_s6 + $0x20] sm:$0xff]  }
  0x13   : > { %2444 = vmatpush3.bf16.msra.mxu0 %v2795_v7  ;;  %v261_v31 = vshll.u32 %v3006_v27, 16  ;;  %v269_v38 = vshll.u32 %v3022_v33, 16  ;;  %v265_v41 = vshrl.u32 %v3006_v27, 16  ;;  %v273_v50 = vshrl.u32 %v3022_v33, 16  ;;  %v541_v4 = vld [vmem:[%s2964_s6] sm:$0xe] }
  0x14   : > { %2480 = vmatpush3.bf16.msra.mxu1 %v2796_v8  ;;  %2445 = vmatprep.subr.bf16.mxu0 %v2892_v1  ;;  %v248_v17 = vshll.u32 %v2059_v14, 16  ;;  %v246_v19 = vshrl.u32 %v2059_v14, 16  ;;  %v255_v26 = vrot.slane %v253_v21, 1  ;;  %v277_v51 = vshll.u32 %v3051_v45, 16  ;;  %v710_v5 = vld [vmem:[%s2964_s6 + $0x4] sm:$0xe] }
  0x15   : > { %2481 = vmatprep.subr.bf16.mxu1 %v2892_v1  ;;  %v263_v36 = vrot.slane %v261_v31, 1  ;;  %v271_v43 = vrot.slane %v269_v38, 1  ;;  %v3074_v53 = vld [vmem:[%s2964_s6 + $0x28] ss:$0 sps:$4 sm:$0x11]   ;;  %v281_v59 = vshrl.u32 %v3051_v45, 16  ;;  %v2097_v8 = vcombine.low %v541_v4, %v2976_v12 }
  0x16   : > { %v250_v20 = vrot.slane %v248_v17, 1  ;;  %v259_v35 = vor.u32 %v257_v30, %v255_v26  ;;  %v279_v55 = vrot.slane %v277_v51, 1  ;;  %v285_v60 = vshll.u32 %v3074_v53, 16  ;;  %v3116_v6 = vld [vmem:[%s2964_s6 + $0x8] sm:$0xf]  ;;  %v2830_v17 = vld [vmem:[%s3540_s1 + $0x100] sm:$0xff]  }
  0x17   : > { %2446 = vmatpush3.bf16.msra.mxu0 %v2797_v9  ;;  %v267_v46 = vor.u32 %v265_v41, %v263_v36  ;;  %v275_v54 = vor.u32 %v273_v50, %v271_v43  ;;  %v3122_v9 = vcombine.low %v710_v5, %v3116_v6  ;;  %v563_v11 = vrot.slane %v2097_v8, 1  ;;  %v2837_v30 = vld [vmem:[%s3540_s1 + $0x118] sm:$0xff]   ;;  %v2844_v41 = vld [vmem:[%s3540_s1 + $0x168] sm:$0xff]  }
  0x18   : > { %2482 = vmatpush3.bf16.msra.mxu1 %v2798_v10  ;;  %2447 = vmatprep.subr.bf16.mxu0 %v2892_v1  ;;  %v251_v25 = vor.u32 %v250_v20, %v246_v19  ;;  %v264_v39 = vsel %vm244_vm1, %v259_v35, %v263_v36  ;;  %v283_v0 = vor.u32 %v281_v59, %v279_v55  ;;  %v287_v2 = vrot.slane %v285_v60, 1  ;;  %v3125_v10 = vld [vmem:[%s2964_s6 + $0xc] sm:$0xff]   ;;  %v3143_v19 = vld [vmem:[%s2964_s6 + $0x14] sm:$0xff]   ;;  %v3196_v36 = vld [vmem:[%s2964_s6 + $0x24] sm:$0xff]  }
  0x19   : > { %2483 = vmatprep.subr.bf16.mxu1 %v2892_v1  ;;  %v272_v49 = vsel %vm244_vm1, %v267_v46, %v271_v43  ;;  %v280_v58 = vsel %vm244_vm1, %v275_v54, %v279_v55  ;;  %v564_v12 = vrot.slane %v2983_v15, 1  ;;  %v2831_v20 = vld [vmem:[%s3540_s1 + $0x108] sm:$0xff]   ;;  %v566_v21 = vrot.slane %v3006_v27, 1  ;;  %v2847_v46 = vld [vmem:[%s3540_s1 + $0x170] sm:$0xff]   ;;  %v2849_v54 = vld [vmem:[%s3540_s1 + $0x178] sm:$0xff]  }
  0x1a   : > { %v256_v29 = vsel %vm244_vm1, %v251_v25, %v255_v26  ;;  %v288_v7 = vsel %vm244_vm1, %v283_v0, %v287_v2  ;;  %v2834_v25 = vld [vmem:[%s3540_s1 + $0x110] sm:$0xff]   ;;  %v570_v38 = vrot.slane %v3051_v45, 1  ;;  %v2846_v43 = vld [vmem:[%s2964_s6 + $0x2c] ss:$0 sps:$4 sm:$0x11]   ;;  %v944_v50 = vshrl.u32 %v3125_v10, 16 }
  0x1b   : > { %2448 = vmatpush3.bf16.msra.mxu0 %v2799_v13  ;;  %v766_v13 = vrot.slane %v3122_v9, 1  ;;  %v947_v51 = vshll.u32 %v3125_v10, 16  ;;  %v1124_v55 = vld [vmem:[%s2964_s6 + $0x4] sm:$0xc]  ;;  %v953_v2 = vshrl.u32 %v3143_v19, 16  ;;  %v1147_v5 = vrot.slane %v3125_v10, 2 }
  0x1c   : > { %2484 = vmatpush3.bf16.msra.mxu1 %v2800_v16  ;;  %2449 = vmatprep.subr.bf16.mxu0 %v2892_v1  ;;  %v565_v16 = vsel %vm562_vm2, %v563_v11, %v564_v12  ;;  %v946_v59 = vrot.slane %v944_v50, 1 }
  0x1d   : > { %2485 = vmatprep.subr.bf16.mxu1 %v2892_v1  ;;  %v949_v60 = vrot.slane %v947_v51, 2  ;;  %v955_v8 = vrot.slane %v953_v2, 1  ;;  %v3341_v51 = vld [vmem:[%s2964_s6 + $0x10] sm:$0xff]  }
  0x1f   : > { %2450 = vmatpush3.bf16.msra.mxu0 %v2801_v18  ;;  %v950_v0 = vor.u32 %v949_v60, %v946_v59  ;;  %v1530_v59 = vshll.u32 %v3341_v51, 16  ;;  %v2867_v60 = vld [vmem:[%s3540_s1 + $0x1f8] sm:$0xff]  }
  0x20   : > { %2486 = vmatpush3.bf16.msra.mxu1 %v2802_v22  ;;  %2451 = vmatprep.subr.bf16.mxu0 %v2892_v1  ;;  %v769_v22 = vrot.slane %v3143_v19, 1 }
  0x21   : > { %2487 = vmatprep.subr.bf16.mxu1 %v2892_v1 }
  0x23   : > { %2452 = vmatpush3.bf16.msra.mxu0 %v2803_v23  ;;  %v2835_v23 = vld [vmem:[%s3540_s1 + $0x148] sm:$0xff]  }
  0x24   : > { %2488 = vmatpush3.bf16.msra.mxu1 %v2804_v24  ;;  %2509 = vmatprep.subr.bf16.mxu0 %v2892_v1  ;;  %v567_v24 = vsel %vm562_vm2, %v564_v12, %v566_v21  ;;  %v2853_v12 = vld [vmem:[%s3540_s1 + $0x1c0] sm:$0xff]  }
  0x25   : > { %2545 = vmatprep.subr.bf16.mxu1 %v2892_v1 }
  0x26   : > { %2454 = vmatmul.mubr.bf16.vlgmr.msra.gmra.mrb[0].mxu0 %v256_v29  ;;  %v568_v29 = vrot.slane %v3022_v33, 1 }
  0x27   : > { %2490 = vmatmul.mubr.bf16.vlgmr.msra.gmra.mrb[0].mxu1 %v2059_v14  ;;  %2510 = vmatpush3.bf16.msra.mxu0 %v2807_v28  ;;  %v767_v14 = vrot.slane %v3125_v10, 1  ;;  %v2838_v28 = vld [vmem:[%s3540_s1 + $0x150] sm:$0xff]   ;;  %v2852_v10 = vld [vmem:[%s3540_s1 + $0x188] sm:$0xff]  }
  0x28   : > { %2511 = vmatprep.subr.bf16.mxu0 %v2892_v1  ;;  %2457 = vmatprep.mubr.msk.bf16.mxu0 %vm2893_vm0, %v2892_v1 }
  0x29   : > { %2493 = vmatprep.mubr.msk.bf16.mxu1 %vm2893_vm0, %v2892_v1  ;;  %2546 = vmatpush3.bf16.msra.mxu1 %v2810_v32  ;;  %v768_v18 = vsel %vm562_vm2, %v766_v13, %v767_v14  ;;  %v770_v26 = vsel %vm562_vm2, %v767_v14, %v769_v22  ;;  %v2840_v32 = vld [vmem:[%s3540_s1 + $0x158] sm:$0xff]  }
  0x2a   : > { %2547 = vmatprep.subr.bf16.mxu1 %v2892_v1 }
  0x2b   : > { %2512 = vmatpush3.bf16.msra.mxu0 %v2808_v34  ;;  %v2839_v34 = vld [vmem:[%s3540_s1 + $0x120] sm:$0xff]  }
  0x2c   : > { %2513 = vmatprep.subr.bf16.mxu0 %v2892_v1 }
  0x2d   : > { %2548 = vmatpush3.bf16.msra.mxu1 %v2812_v37  ;;  %v2842_v37 = vld [vmem:[%s3540_s1 + $0x160] sm:$0xff]  }
  0x2e   : > { %2458 = vmatmul.mubr.bf16.gmra.mrb[4].mxu0 %v264_v39  ;;  %2549 = vmatprep.subr.bf16.mxu1 %v2892_v1  ;;  %v2843_v39 = vld [vmem:[%s3540_s1 + $0x128] sm:$0xff]  }
  0x2f   : > { %2494 = vmatmul.mubr.bf16.gmra.mrb[4].mxu1 %v2983_v15  ;;  %2514 = vmatpush3.bf16.msra.mxu0 %v2811_v40  ;;  %v2833_v15 = vld [vmem:[%s3540_s1 + $0x140] sm:$0xff]   ;;  %v773_v40 = vrot.slane %v3196_v36, 1 }
  0x30   : > { %2461 = vmatprep.mubr.msk.bf16.mxu0 %vm2893_vm0, %v2892_v1  ;;  %2497 = vmatprep.mubr.msk.bf16.mxu1 %vm2893_vm0, %v2892_v1 }
  0x31   : > { %2515 = vmatprep.subr.bf16.mxu0 %v2892_v1  ;;  %2550 = vmatpush3.bf16.msra.mxu1 %v2815_v42  ;;  %v571_v42 = vsel %vm562_vm2, %v568_v29, %v570_v38 }
  0x32   : > { %2551 = vmatprep.subr.bf16.mxu1 %v2892_v1 }
  0x33   : > { %2516 = vmatpush3.bf16.msra.mxu0 %v2814_v44 }
  0x34   : > { %2517 = vmatprep.subr.bf16.mxu0 %v2892_v1 }
  0x35   : > { %2552 = vmatpush3.bf16.msra.mxu1 %v2817_v47  ;;  %v572_v47 = vrot.slane %v3074_v53, 1  ;;  %v2848_v53 = vld [vmem:[%s3540_s1 + $0x138] sm:$0xff]  }
  0x36   : > { %2462 = vmatmul.mubr.bf16.gmra.mrb[8].mxu0 %v272_v49  ;;  %2553 = vmatprep.subr.bf16.mxu1 %v2892_v1  ;;  %v939_v49 = vshll.u32 %v3122_v9, 16 }
  0x37   : > { %2498 = vmatmul.mubr.bf16.gmra.mrb[8].mxu1 %v3006_v27  ;;  %2518 = vmatpush3.bf16.msra.mxu0 %v2816_v48  ;;  %v3169_v27 = vld [vmem:[%s2964_s6 + $0x1c] sm:$0xff]   ;;  %v936_v48 = vshrl.u32 %v3122_v9, 16 }
  0x38   : > { %2465 = vmatprep.mubr.msk.bf16.mxu0 %vm2893_vm0, %v2892_v1  ;;  %2501 = vmatprep.mubr.msk.bf16.mxu1 %vm2893_vm0, %v2892_v1  ;;  %v771_v31 = vrot.slane %v3169_v27, 1  ;;  %v962_v14 = vshrl.u32 %v3169_v27, 16 }
  0x39   : > { %2519 = vmatprep.subr.bf16.mxu0 %v2892_v1  ;;  %2554 = vmatpush3.bf16.msra.mxu1 %v2819_v52  ;;  %v775_v52 = vrot.slane %v2846_v43, 1  ;;  %v2862_v43 = vld [vmem:[%s3540_s1 + $0x1e8] sm:$0xff]  }
  0x3a   : > { %2555 = vmatprep.subr.bf16.mxu1 %v2892_v1  ;;  %v772_v35 = vsel %vm562_vm2, %v769_v22, %v771_v31  ;;  %v774_v44 = vsel %vm562_vm2, %v771_v31, %v773_v40 }
  0x3b   : > { %2520 = vmatpush3.bf16.msra.mxu0 %v2820_v56  ;;  %v573_v56 = vsel %vm562_vm2, %v570_v38, %v572_v47 }
  0x3c   : > { %2521 = vmatprep.subr.bf16.mxu0 %v2892_v1 }
  0x3d   : > { %2556 = vmatpush3.bf16.msra.mxu1 %v2821_v57  ;;  %v938_v57 = vrot.slane %v936_v48, 1 }
  0x3e   : > { %2466 = vmatmul.mubr.bf16.gmra.mrb[12].mxu0 %v280_v58  ;;  %2557 = vmatprep.subr.bf16.mxu1 %v2892_v1  ;;  %v941_v58 = vrot.slane %v939_v49, 2 }
  0x3f   : > { %2502 = vmatmul.mubr.bf16.gmra.mrb[12].mxu1 %v3022_v33  ;;  %2469 = vmatprep.mubr.msk.bf16.mxu0 %vm2893_vm0, %v2892_v1  ;;  %v569_v33 = vsel %vm562_vm2, %v566_v21, %v568_v29  ;;  %v964_v21 = vrot.slane %v962_v14, 1  ;;  %v1151_v29 = vrot.slane %v3169_v27, 2 }
  0x40   : > { %2505 = vmatprep.mubr.msk.bf16.mxu1 %vm2893_vm0, %v2892_v1  ;;  %2522 = vmatpush3.bf16.msra.mxu0 %v2822_v61  ;;  %v776_v61 = vsel %vm562_vm2, %v773_v40, %v775_v52  ;;  %v2865_v52 = vld [vmem:[%s3540_s1 + $0x1f0] sm:$0xff]  }
  0x41   : > { %2558 = vmatpush3.bf16.msra.mxu1 %v2824_v62  ;;  %2523 = vmatprep.subr.bf16.mxu0 %v2892_v1  ;;  %v2177_v62 = vcombine.low %v1124_v55, %v3116_v6  ;;  %v2866_v55 = vld [vmem:[%s3540_s1 + $0x1b8] sm:$0xff]  }
  0x42   : > { %2559 = vmatprep.subr.bf16.mxu1 %v2892_v1 }
  0x43   : > { %v1146_v4 = vrot.slane %v2177_v62, 2 }
  0x44   : > { %2524 = vmatpush3.bf16.msra.mxu0 %v2825_v63  ;;  %v942_v63 = vor.u32 %v941_v58, %v938_v57  ;;  %v1527_v58 = vshrl.u32 %v3341_v51, 16 }
  0x45   : > { %2560 = vmatpush3.bf16.msra.mxu1 %v2826_v3  ;;  %2581 = vmatprep.subr.bf16.mxu0 %v2892_v1  ;;  %v956_v3 = vshll.u32 %v3143_v19, 16  ;;  %v1148_v11 = vsel %vm1145_vm4, %v1146_v4, %v1147_v5  ;;  %v3364_v4 = vld [vmem:[%s2964_s6 + $0x18] sm:$0xff]  }
  0x46   : > { %2470 = vmatmul.mubr.bf16.gmra.mrb[16].mxu0 %v288_v7  ;;  %2617 = vmatprep.subr.bf16.mxu1 %v2892_v1  ;;  %v951_v6 = vsel %vm934_vm3, %v942_v63, %v950_v0  ;;  %v2851_v7 = vld [vmem:[%s3540_s1 + $0x180] sm:$0xff]   ;;  %v1529_v2 = vrot.slane %v1527_v58, 2 }
  0x47   : > { %2506 = vmatmul.mubr.bf16.gmra.mrb[16].mxu1 %v3051_v45  ;;  %2525 = vmatprep.mubr.msk.bf16.mxu0 %vm2893_vm0, %v2892_v1  ;;  %v2845_v45 = vld [vmem:[%s3540_s1 + $0x130] sm:$0xff]   ;;  %v958_v9 = vrot.slane %v956_v3, 2  ;;  %v1532_v3 = vrot.slane %v1530_v59, 3 }
  0x48   : > { %2561 = vmatprep.mubr.msk.bf16.mxu1 %vm2893_vm0, %v2892_v1 }
  0x49   : > { %v959_v13 = vor.u32 %v958_v9, %v955_v8  ;;  %v1533_v8 = vor.u32 %v1532_v3, %v1529_v2  ;;  %v1536_v9 = vshrl.u32 %v3364_v4, 16 }
  0x4b   : > { %v1538_v14 = vrot.slane %v1536_v9, 2 }
  0x4e   : > { %2526 = vmatmul.mubr.bf16.vlgmr.msra.gmra.mrb[20].mxu0 %v565_v16  ;;  %v965_v16 = vshll.u32 %v3169_v27, 16 }
  0x4f   : > { %2562 = vmatmul.mubr.bf16.vlgmr.msra.gmra.mrb[20].mxu1 %v768_v18  ;;  %2582 = vmatpush3.bf16.msra.mxu0 %v2830_v17  ;;  %v1149_v17 = vrot.slane %v3143_v19, 2  ;;  %v2855_v18 = vld [vmem:[%s3540_s1 + $0x1c8] sm:$0xff]  }
  0x50   : > { %2583 = vmatprep.subr.bf16.mxu0 %v2892_v1  ;;  %2529 = vmatprep.mubr.msk.bf16.mxu0 %vm2893_vm0, %v2892_v1  ;;  %v967_v22 = vrot.slane %v965_v16, 2 }
  0x51   : > { %2565 = vmatprep.mubr.msk.bf16.mxu1 %vm2893_vm0, %v2892_v1  ;;  %2618 = vmatpush3.bf16.msra.mxu1 %v2833_v15  ;;  %v960_v15 = vsel %vm934_vm3, %v950_v0, %v959_v13  ;;  %v1150_v19 = vsel %vm1145_vm4, %v1147_v5, %v1149_v17  ;;  %v1152_v27 = vsel %vm1145_vm4, %v1149_v17, %v1151_v29  ;;  %v3381_v17 = vld [vmem:[%s2964_s6 + $0x20] sm:$0xff]  }
  0x52   : > { %2619 = vmatprep.subr.bf16.mxu1 %v2892_v1 }
  0x53   : > { %2584 = vmatpush3.bf16.msra.mxu0 %v2831_v20  ;;  %v2854_v20 = vld [vmem:[%s3540_s1 + $0x190] sm:$0xff]  }
  0x54   : > { %2585 = vmatprep.subr.bf16.mxu0 %v2892_v1 }
  0x55   : > { %2620 = vmatpush3.bf16.msra.mxu1 %v2835_v23  ;;  %v2857_v23 = vld [vmem:[%s3540_s1 + $0x1d0] sm:$0xff]  }
  0x56   : > { %2530 = vmatmul.mubr.bf16.gmra.mrb[24].mxu0 %v567_v24  ;;  %2621 = vmatprep.subr.bf16.mxu1 %v2892_v1  ;;  %v968_v24 = vor.u32 %v967_v22, %v964_v21  ;;  %v1545_v21 = vshrl.u32 %v3381_v17, 16  ;;  %v1548_v22 = vshll.u32 %v3381_v17, 16 }
  0x57   : > { %2566 = vmatmul.mubr.bf16.gmra.mrb[24].mxu1 %v770_v26  ;;  %2586 = vmatpush3.bf16.msra.mxu0 %v2834_v25  ;;  %v2856_v25 = vld [vmem:[%s3540_s1 + $0x198] sm:$0xff]   ;;  %v971_v26 = vshrl.u32 %v3196_v36, 16 }
  0x58   : > { %2533 = vmatprep.mubr.msk.bf16.mxu0 %vm2893_vm0, %v2892_v1  ;;  %2569 = vmatprep.mubr.msk.bf16.mxu1 %vm2893_vm0, %v2892_v1  ;;  %v969_v31 = vsel %vm934_vm3, %v959_v13, %v968_v24 }
  0x59   : > { %2587 = vmatprep.subr.bf16.mxu0 %v2892_v1  ;;  %2622 = vmatpush3.bf16.msra.mxu1 %v2838_v28  ;;  %v974_v28 = vshll.u32 %v3196_v36, 16 }
  0x5a   : > { %2623 = vmatprep.subr.bf16.mxu1 %v2892_v1 }
  0x5b   : > { %2588 = vmatpush3.bf16.msra.mxu0 %v2837_v30  ;;  %v2859_v30 = vld [vmem:[%s3540_s1 + $0x1d8] sm:$0xff]  }
  0x5c   : > { %2589 = vmatprep.subr.bf16.mxu0 %v2892_v1 }
  0x5d   : > { %2624 = vmatpush3.bf16.msra.mxu1 %v2840_v32  ;;  %v2858_v32 = vld [vmem:[%s3540_s1 + $0x1a0] sm:$0xff]  }
  0x5e   : > { %2534 = vmatmul.mubr.bf16.gmra.mrb[28].mxu0 %v569_v33  ;;  %2625 = vmatprep.subr.bf16.mxu1 %v2892_v1  ;;  %v973_v33 = vrot.slane %v971_v26, 1  ;;  %v1550_v26 = vrot.slane %v1548_v22, 3 }
  0x5f   : > { %2570 = vmatmul.mubr.bf16.gmra.mrb[28].mxu1 %v772_v35  ;;  %2590 = vmatpush3.bf16.msra.mxu0 %v2839_v34  ;;  %v976_v34 = vrot.slane %v974_v28, 2  ;;  %v2864_v35 = vld [vmem:[%s2964_s6 + $0x2c] ss:$0 sps:$4 sm:$0x33]  }
  0x60   : > { %2537 = vmatprep.mubr.msk.bf16.mxu0 %vm2893_vm0, %v2892_v1  ;;  %2573 = vmatprep.mubr.msk.bf16.mxu1 %vm2893_vm0, %v2892_v1  ;;  %v980_v40 = vshrl.u32 %v2864_v35, 16  ;;  %v3402_v28 = vld [vmem:[%s2964_s6 + $0x28] sm:$0xff]  }
  0x61   : > { %2591 = vmatprep.subr.bf16.mxu0 %v2892_v1  ;;  %2626 = vmatpush3.bf16.msra.mxu1 %v2842_v37  ;;  %v2860_v37 = vld [vmem:[%s3540_s1 + $0x1e0] sm:$0xff]   ;;  %v977_v38 = vor.u32 %v976_v34, %v973_v33  ;;  %v1557_v33 = vshll.u32 %v3402_v28, 16 }
  0x62   : > { %2627 = vmatprep.subr.bf16.mxu1 %v2892_v1  ;;  %v982_v47 = vrot.slane %v980_v40, 1  ;;  %v1356_v40 = vrot.slane %v3402_v28, 2 }
  0x63   : > { %2592 = vmatpush3.bf16.msra.mxu0 %v2843_v39  ;;  %v2861_v39 = vld [vmem:[%s3540_s1 + $0x1a8] sm:$0xff]  }
  0x64   : > { %2593 = vmatprep.subr.bf16.mxu0 %v2892_v1 }
  0x65   : > { %2628 = vmatpush3.bf16.msra.mxu1 %v2844_v41  ;;  %v983_v41 = vshll.u32 %v2864_v35, 16 }
  0x66   : > { %2538 = vmatmul.mubr.bf16.gmra.mrb[32].mxu0 %v571_v42  ;;  %2629 = vmatprep.subr.bf16.mxu1 %v2892_v1  ;;  %v1153_v42 = vrot.slane %v3196_v36, 2  ;;  %v2863_v36 = vld [vmem:[%s3540_s1 + $0x1b0] sm:$0xff]  }
  0x67   : > { %2574 = vmatmul.mubr.bf16.gmra.mrb[32].mxu1 %v774_v44  ;;  %2541 = vmatprep.mubr.msk.bf16.mxu0 %vm2893_vm0, %v2892_v1  ;;  %v1293_v44 = vld [vmem:[%s2964_s6 + $0x8] sm:$0xc]  ;;  %v985_v48 = vrot.slane %v983_v41, 2 }
  0x68   : > { %2577 = vmatprep.mubr.msk.bf16.mxu1 %vm2893_vm0, %v2892_v1  ;;  %2594 = vmatpush3.bf16.msra.mxu0 %v2845_v45  ;;  %v3330_v45 = vld [vmem:[%s2964_s6 + $0xc] sm:$0xf]  ;;  %v1154_v49 = vsel %vm1145_vm4, %v1151_v29, %v1153_v42  ;;  %v1354_v29 = vrot.slane %v3381_v17, 2 }
  0x69   : > { %2630 = vmatpush3.bf16.msra.mxu1 %v2847_v46  ;;  %2595 = vmatprep.subr.bf16.mxu0 %v2892_v1  ;;  %v978_v46 = vsel %vm934_vm3, %v968_v24, %v977_v38  ;;  %v2202_v50 = vcombine.low %v1293_v44, %v3330_v45  ;;  %v2878_v41 = vld [vmem:[%s3540_s1 + $0x228] sm:$0xff]  }
  0x6a   : > { %2631 = vmatprep.subr.bf16.mxu1 %v2892_v1 }
  0x6b   : > { %v1522_v57 = vshll.u32 %v2202_v50, 16  ;;  %v1349_v5 = vrot.slane %v2202_v50, 2 }
  0x6c   : > { %2596 = vmatpush3.bf16.msra.mxu0 %v2848_v53  ;;  %v986_v53 = vor.u32 %v985_v48, %v982_v47  ;;  %v2880_v47 = vld [vmem:[%s2964_s6 + $0x30] ss:$0 sps:$4 sm:$0x33]  }
  0x6d   : > { %2632 = vmatpush3.bf16.msra.mxu1 %v2849_v54  ;;  %2653 = vmatprep.subr.bf16.mxu0 %v2892_v1  ;;  %v1155_v54 = vrot.slane %v2864_v35, 2  ;;  %v1524_v0 = vrot.slane %v1522_v57, 3  ;;  %v2876_v35 = vld [vmem:[%s3540_s1 + $0x220] sm:$0xff]  }
  0x6e   : > { %2542 = vmatmul.mubr.bf16.gmra.mrb[36].mxu0 %v573_v56  ;;  %2689 = vmatprep.subr.bf16.mxu1 %v2892_v1  ;;  %v1519_v56 = vshrl.u32 %v2202_v50, 16 }
  0x6f   : > { %2578 = vmatmul.mubr.bf16.gmra.mrb[36].mxu1 %v776_v61  ;;  %2597 = vmatprep.mubr.msk.bf16.mxu0 %vm2893_vm0, %v2892_v1  ;;  %v987_v61 = vsel %vm934_vm3, %v977_v38, %v986_v53  ;;  %v1156_v62 = vsel %vm1145_vm4, %v1153_v42, %v1155_v54  ;;  %v1559_v38 = vrot.slane %v1557_v33, 3  ;;  %v2882_v54 = vld [vmem:[%s3540_s1 + $0x238] sm:$0xff]  }
  0x70   : > { %2633 = vmatprep.mubr.msk.bf16.mxu1 %vm2893_vm0, %v2892_v1  ;;  %v1521_v63 = vrot.slane %v1519_v56, 2 }
  0x76   : > { %2598 = vmatmul.mubr.bf16.vlgmr.msra.gmra.mrb[40].mxu0 %v951_v6  ;;  %v1350_v6 = vrot.slane %v3341_v51, 2 }
  0x77   : > { %2634 = vmatmul.mubr.bf16.vlgmr.msra.gmra.mrb[40].mxu1 %v1148_v11  ;;  %2654 = vmatpush3.bf16.msra.mxu0 %v2851_v7  ;;  %v1525_v7 = vor.u32 %v1524_v0, %v1521_v63  ;;  %v1539_v11 = vshll.u32 %v3364_v4, 16  ;;  %v1732_v0 = vrot.slane %v3364_v4, 3 }
  0x78   : > { %2655 = vmatprep.subr.bf16.mxu0 %v2892_v1  ;;  %2601 = vmatprep.mubr.msk.bf16.mxu0 %vm2893_vm0, %v2892_v1 }
  0x79   : > { %2637 = vmatprep.mubr.msk.bf16.mxu1 %vm2893_vm0, %v2892_v1  ;;  %2690 = vmatpush3.bf16.msra.mxu1 %v2853_v12  ;;  %v1351_v12 = vsel %vm1145_vm4, %v1349_v5, %v1350_v6  ;;  %v1534_v13 = vsel %vm1517_vm5, %v1525_v7, %v1533_v8  ;;  %v1541_v16 = vrot.slane %v1539_v11, 3 }
  0x7a   : > { %2691 = vmatprep.subr.bf16.mxu1 %v2892_v1 }
  0x7b   : > { %2656 = vmatpush3.bf16.msra.mxu0 %v2852_v10  ;;  %v2870_v10 = vld [vmem:[%s3540_s1 + $0x200] sm:$0xff]  }
  0x7c   : > { %2657 = vmatprep.subr.bf16.mxu0 %v2892_v1 }
  0x7d   : > { %2692 = vmatpush3.bf16.msra.mxu1 %v2855_v18  ;;  %v2871_v18 = vld [vmem:[%s3540_s1 + $0x208] sm:$0xff]  }
  0x7e   : > { %2602 = vmatmul.mubr.bf16.gmra.mrb[44].mxu0 %v960_v15  ;;  %2693 = vmatprep.subr.bf16.mxu1 %v2892_v1  ;;  %v1352_v15 = vrot.slane %v3364_v4, 2 }
  0x7f   : > { %2638 = vmatmul.mubr.bf16.gmra.mrb[44].mxu1 %v1150_v19  ;;  %2658 = vmatpush3.bf16.msra.mxu0 %v2854_v20  ;;  %v1542_v20 = vor.u32 %v1541_v16, %v1538_v14 }
  0x80   : > { %2605 = vmatprep.mubr.msk.bf16.mxu0 %vm2893_vm0, %v2892_v1  ;;  %2641 = vmatprep.mubr.msk.bf16.mxu1 %vm2893_vm0, %v2892_v1  ;;  %v1353_v19 = vsel %vm1145_vm4, %v1350_v6, %v1352_v15  ;;  %v1355_v34 = vsel %vm1145_vm4, %v1352_v15, %v1354_v29 }
  0x81   : > { %2659 = vmatprep.subr.bf16.mxu0 %v2892_v1  ;;  %2694 = vmatpush3.bf16.msra.mxu1 %v2857_v23  ;;  %v2873_v23 = vld [vmem:[%s3540_s1 + $0x210] sm:$0xff]   ;;  %v1543_v24 = vsel %vm1517_vm5, %v1533_v8, %v1542_v20 }
  0x82   : > { %2695 = vmatprep.subr.bf16.mxu1 %v2892_v1 }
  0x83   : > { %2660 = vmatpush3.bf16.msra.mxu0 %v2856_v25  ;;  %v1547_v25 = vrot.slane %v1545_v21, 2 }
  0x84   : > { %2661 = vmatprep.subr.bf16.mxu0 %v2892_v1 }
  0x85   : > { %2696 = vmatpush3.bf16.msra.mxu1 %v2859_v30  ;;  %v2875_v30 = vld [vmem:[%s3540_s1 + $0x218] sm:$0xff]  }
  0x86   : > { %2606 = vmatmul.mubr.bf16.gmra.mrb[48].mxu0 %v969_v31  ;;  %2697 = vmatprep.subr.bf16.mxu1 %v2892_v1  ;;  %v1551_v31 = vor.u32 %v1550_v26, %v1547_v25 }
  0x87   : > { %2642 = vmatmul.mubr.bf16.gmra.mrb[48].mxu1 %v1152_v27  ;;  %2662 = vmatpush3.bf16.msra.mxu0 %v2858_v32  ;;  %v1554_v32 = vshrl.u32 %v3402_v28, 16 }
  0x88   : > { %2609 = vmatprep.mubr.msk.bf16.mxu0 %vm2893_vm0, %v2892_v1  ;;  %2645 = vmatprep.mubr.msk.bf16.mxu1 %vm2893_vm0, %v2892_v1  ;;  %v1552_v27 = vsel %vm1517_vm5, %v1542_v20, %v1551_v31 }
  0x89   : > { %2663 = vmatprep.subr.bf16.mxu0 %v2892_v1  ;;  %2698 = vmatpush3.bf16.msra.mxu1 %v2860_v37  ;;  %v1556_v37 = vrot.slane %v1554_v32, 2 }
  0x8a   : > { %2699 = vmatprep.subr.bf16.mxu1 %v2892_v1 }
  0x8b   : > { %2664 = vmatpush3.bf16.msra.mxu0 %v2861_v39  ;;  %v3424_v39 = vld [vmem:[%s2964_s6 + $0x30] ss:$0 sps:$4 sm:$0x77]   ;;  %v1560_v42 = vor.u32 %v1559_v38, %v1556_v37 }
  0x8c   : > { %2665 = vmatprep.subr.bf16.mxu0 %v2892_v1  ;;  %v1566_v44 = vshll.u32 %v3424_v39, 16 }
  0x8d   : > { %2700 = vmatpush3.bf16.msra.mxu1 %v2862_v43  ;;  %v1563_v43 = vshrl.u32 %v3424_v39, 16  ;;  %v1561_v48 = vsel %vm1517_vm5, %v1551_v31, %v1560_v42 }
  0x8e   : > { %2610 = vmatmul.mubr.bf16.gmra.mrb[52].mxu0 %v978_v46  ;;  %2701 = vmatprep.subr.bf16.mxu1 %v2892_v1  ;;  %v1357_v46 = vsel %vm1145_vm4, %v1354_v29, %v1356_v40  ;;  %v1568_v50 = vrot.slane %v1566_v44, 3 }
  0x8f   : > { %2646 = vmatmul.mubr.bf16.gmra.mrb[52].mxu1 %v1154_v49  ;;  %2613 = vmatprep.mubr.msk.bf16.mxu0 %vm2893_vm0, %v2892_v1  ;;  %v2879_v49 = vld [vmem:[%s3540_s1 + $0x230] sm:$0xff]  }
  0x90   : > { %2649 = vmatprep.mubr.msk.bf16.mxu1 %vm2893_vm0, %v2892_v1  ;;  %2666 = vmatpush3.bf16.msra.mxu0 %v2863_v36  ;;  %v1565_v36 = vrot.slane %v1563_v43, 2 }
  0x91   : > { %2702 = vmatpush3.bf16.msra.mxu1 %v2865_v52  ;;  %2667 = vmatprep.subr.bf16.mxu0 %v2892_v1  ;;  %v1358_v52 = vrot.slane %v2880_v47, 2 }
  0x92   : > { %2703 = vmatprep.subr.bf16.mxu1 %v2892_v1  ;;  %v1569_v53 = vor.u32 %v1568_v50, %v1565_v36 }
  0x93   : > { %v1359_v56 = vsel %vm1145_vm4, %v1356_v40, %v1358_v52 }
  0x94   : > { %2668 = vmatpush3.bf16.msra.mxu0 %v2866_v55  ;;  %v1707_v55 = vld [vmem:[%s2964_s6 + $0x8] sm:$0x8]  ;;  %v1570_v58 = vsel %vm1517_vm5, %v1560_v42, %v1569_v53 }
  0x95   : > { %2704 = vmatpush3.bf16.msra.mxu1 %v2867_v60  ;;  %2725 = vmatprep.subr.bf16.mxu0 %v2892_v1  ;;  %v2257_v57 = vcombine.low %v1707_v55, %v3330_v45  ;;  %v1730_v60 = vrot.slane %v3341_v51, 3  ;;  %v1736_v45 = vrot.slane %v3402_v28, 3  ;;  %v1738_v51 = vrot.slane %v3424_v39, 3 }
  0x96   : > { %2614 = vmatmul.mubr.bf16.gmra.mrb[56].mxu0 %v987_v61  ;;  %2761 = vmatprep.subr.bf16.mxu1 %v2892_v1  ;;  %v1734_v61 = vrot.slane %v3381_v17, 3 }
  0x97   : > { %2650 = vmatmul.mubr.bf16.gmra.mrb[56].mxu1 %v1156_v62  ;;  %2669 = vmatprep.mubr.msk.bf16.mxu0 %vm2893_vm0, %v2892_v1  ;;  %v1729_v59 = vrot.slane %v2257_v57, 3  ;;  %v1733_v2 = vsel %vm1728_vm6, %v1730_v60, %v1732_v0  ;;  %v1739_v3 = vsel %vm1728_vm6, %v1736_v45, %v1738_v51 }
  0x98   : > { %2705 = vmatprep.mubr.msk.bf16.mxu1 %vm2893_vm0, %v2892_v1  ;;  %v1737_v63 = vsel %vm1728_vm6, %v1734_v61, %v1736_v45  ;;  %v1735_v5 = vsel %vm1728_vm6, %v1732_v0, %v1734_v61 }
  0x99   : > { %v1731_v62 = vsel %vm1728_vm6, %v1729_v59, %v1730_v60 }
  0x9e   : > { %2670 = vmatmul.mubr.bf16.vlgmr.msra.gmra.mrb[60].mxu0 %v1351_v12 }
  0x9f   : > { %2706 = vmatmul.mubr.bf16.vlgmr.msra.gmra.mrb[60].mxu1 %v1534_v13  ;;  %2726 = vmatpush3.bf16.msra.mxu0 %v2870_v10 }
  0xa0   : > { %2727 = vmatprep.subr.bf16.mxu0 %v2892_v1  ;;  %2673 = vmatprep.mubr.msk.bf16.mxu0 %vm2893_vm0, %v2892_v1 }
  0xa1   : > { %2709 = vmatprep.mubr.msk.bf16.mxu1 %vm2893_vm0, %v2892_v1  ;;  %2769 = vmatpush3.bf16.msra.mxu1 %v2870_v10 }
  0xa2   : > { %2762 = vmatprep.subr.bf16.mxu1 %v2892_v1 }
  0xa3   : > { %2728 = vmatpush3.bf16.msra.mxu0 %v2871_v18 }
  0xa4   : > { %2729 = vmatprep.subr.bf16.mxu0 %v2892_v1 }
  0xa5   : > { %2770 = vmatpush3.bf16.msra.mxu1 %v2871_v18 }
  0xa6   : > { %2674 = vmatmul.mubr.bf16.gmra.mrb[64].mxu0 %v1353_v19  ;;  %2763 = vmatprep.subr.bf16.mxu1 %v2892_v1 }
  0xa7   : > { %2710 = vmatmul.mubr.bf16.gmra.mrb[64].mxu1 %v1543_v24  ;;  %2730 = vmatpush3.bf16.msra.mxu0 %v2873_v23 }
  0xa8   : > { %2677 = vmatprep.mubr.msk.bf16.mxu0 %vm2893_vm0, %v2892_v1  ;;  %2713 = vmatprep.mubr.msk.bf16.mxu1 %vm2893_vm0, %v2892_v1 }
  0xa9   : > { %2731 = vmatprep.subr.bf16.mxu0 %v2892_v1  ;;  %2771 = vmatpush3.bf16.msra.mxu1 %v2873_v23 }
  0xaa   : > { %2764 = vmatprep.subr.bf16.mxu1 %v2892_v1 }
  0xab   : > { %2732 = vmatpush3.bf16.msra.mxu0 %v2875_v30 }
  0xac   : > { %2733 = vmatprep.subr.bf16.mxu0 %v2892_v1 }
  0xad   : > { %2772 = vmatpush3.bf16.msra.mxu1 %v2875_v30 }
  0xae   : > { %2678 = vmatmul.mubr.bf16.gmra.mrb[68].mxu0 %v1355_v34  ;;  %2765 = vmatprep.subr.bf16.mxu1 %v2892_v1 }
  0xaf   : > { %2714 = vmatmul.mubr.bf16.gmra.mrb[68].mxu1 %v1552_v27  ;;  %2734 = vmatpush3.bf16.msra.mxu0 %v2876_v35 }
  0xb0   : > { %2681 = vmatprep.mubr.msk.bf16.mxu0 %vm2893_vm0, %v2892_v1  ;;  %2717 = vmatprep.mubr.msk.bf16.mxu1 %vm2893_vm0, %v2892_v1 }
  0xb1   : > { %2773 = vmatpush3.bf16.msra.mxu1 %v2876_v35  ;;  %2735 = vmatprep.subr.bf16.mxu0 %v2892_v1 }
  0xb2   : > { %2766 = vmatprep.subr.bf16.mxu1 %v2892_v1 }
  0xb3   : > { %2736 = vmatpush3.bf16.msra.mxu0 %v2878_v41 }
  0xb4   : > { %2737 = vmatprep.subr.bf16.mxu0 %v2892_v1 }
  0xb5   : > { %2774 = vmatpush3.bf16.msra.mxu1 %v2878_v41 }
  0xb6   : > { %2682 = vmatmul.mubr.bf16.gmra.mrb[72].mxu0 %v1357_v46  ;;  %2767 = vmatprep.subr.bf16.mxu1 %v2892_v1 }
  0xb7   : > { %2718 = vmatmul.mubr.bf16.gmra.mrb[72].mxu1 %v1561_v48  ;;  %2685 = vmatprep.mubr.msk.bf16.mxu0 %vm2893_vm0, %v2892_v1 }
  0xb8   : > { %2721 = vmatprep.mubr.msk.bf16.mxu1 %vm2893_vm0, %v2892_v1  ;;  %2738 = vmatpush3.bf16.msra.mxu0 %v2879_v49 }
  0xb9   : > { %2775 = vmatpush3.bf16.msra.mxu1 %v2879_v49  ;;  %2739 = vmatprep.subr.bf16.mxu0 %v2892_v1 }
  0xba   : > { %2768 = vmatprep.subr.bf16.mxu1 %v2892_v1 }
  0xbc   : > { %2740 = vmatpush3.bf16.msra.mxu0 %v2882_v54 }
  0xbd   : > { %2776 = vmatpush3.bf16.msra.mxu1 %v2882_v54 }
  0xbe   : > { %2686 = vmatmul.mubr.bf16.gmra.mrb[76].mxu0 %v1359_v56 }
  0xbf   : > { %2722 = vmatmul.mubr.bf16.gmra.mrb[76].mxu1 %v1570_v58  ;;  %2741 = vmatprep.mubr.msk.bf16.mxu0 %vm2893_vm0, %v2892_v1 }
  0xc0   : > { %2753 = vmatprep.mubr.msk.bf16.mxu1 %vm2893_vm0, %v2892_v1 }
  0xc6   : > { %2742 = vmatmul.mubr.bf16.vlgmr.msra.gmra.mrb[80].mxu0 %v1731_v62 }
  0xc7   : > { %2754 = vmatmul.mubr.bf16.vlgmr.msra.gmra.mrb[80].mxu1 %v1737_v63  ;;  %2745 = vmatprep.mubr.msk.bf16.mxu0 %vm2893_vm0, %v2892_v1 }
  0xc8   : > { %2757 = vmatprep.mubr.msk.bf16.mxu1 %vm2893_vm0, %v2892_v1 }
  0xce   : > { %2746 = vmatmul.mubr.bf16.gmra.mrb[84].mxu0 %v1733_v2 }
  0xcf   : > { %2758 = vmatmul.mubr.bf16.gmra.mrb[84].mxu1 %v1739_v3  ;;  %2749 = vmatprep.mubr.msk.bf16.mxu0 %vm2893_vm0, %v2892_v1 }
  0xd6   : > { %2750 = vmatmul.mubr.bf16.gmra.mrb[88].mxu0 %v1735_v5 }
  0xf9   : > { %v376_v6 = vpop.f32.mrb[0].mxu0 }
  0xfa   : > { %v502_v7 = vpop.f32.mrb[0].mxu1  ;;  %v2455_v4 = vpop.f32.mrb[1].mxu0 }
  0xfb   : > { %v503_v8 = vadd.f32 %v502_v7, %v376_v6  ;;  %v2491_v9 = vpop.f32.mrb[1].mxu1  ;;  %v379_v11 = vpop.f32.mrb[2].mxu0 }
  0xfc   : > { %v505_v12 = vpop.f32.mrb[2].mxu1  ;;  %v2456_v10 = vpop.f32.mrb[3].mxu0 }
  0xfd   : > { %v506_v13 = vadd.f32 %v505_v12, %v379_v11  ;;  %v2492_v14 = vpop.f32.mrb[3].mxu1 }
 0x101   : > { %v384_v16 = vpop.f32.mrb[4].mxu0 }
 0x102   : > { %v510_v17 = vpop.f32.mrb[4].mxu1  ;;  %v2459_v18 = vpop.f32.mrb[5].mxu0 }
 0x103   : > { %v511_v15 = vadd.f32 %v510_v17, %v384_v16  ;;  %v2495_v20 = vpop.f32.mrb[5].mxu1  ;;  %v387_v21 = vpop.f32.mrb[6].mxu0 }
 0x104   : > { %v513_v1 = vpop.f32.mrb[6].mxu1  ;;  %v2460_v22 = vpop.f32.mrb[7].mxu0 }
 0x105   : > { %v514_v19 = vadd.f32 %v513_v1, %v387_v21  ;;  %v2496_v23 = vpop.f32.mrb[7].mxu1 }
 0x109   : > { %v392_v24 = vpop.f32.mrb[8].mxu0 }
 0x10a   : > { %v518_v25 = vpop.f32.mrb[8].mxu1  ;;  %v2463_v26 = vpop.f32.mrb[9].mxu0 }
 0x10b   : > { %v519_v28 = vadd.f32 %v518_v25, %v392_v24  ;;  %v2499_v29 = vpop.f32.mrb[9].mxu1  ;;  %v395_v30 = vpop.f32.mrb[10].mxu0 }
 0x10c   : > { %v521_v31 = vpop.f32.mrb[10].mxu1  ;;  %v2464_v32 = vpop.f32.mrb[11].mxu0 }
 0x10d   : > { %v522_v33 = vadd.f32 %v521_v31, %v395_v30  ;;  %v2500_v34 = vpop.f32.mrb[11].mxu1 }
 0x111   : > { %v400_v35 = vpop.f32.mrb[12].mxu0 }
 0x112   : > { %v526_v27 = vpop.f32.mrb[12].mxu1  ;;  %v2467_v37 = vpop.f32.mrb[13].mxu0 }
 0x113   : > { %v527_v38 = vadd.f32 %v526_v27, %v400_v35  ;;  %v2503_v39 = vpop.f32.mrb[13].mxu1  ;;  %v403_v40 = vpop.f32.mrb[14].mxu0 }
 0x114   : > { %v529_v41 = vpop.f32.mrb[14].mxu1  ;;  %v2468_v42 = vpop.f32.mrb[15].mxu0 }
 0x115   : > { %v530_v43 = vadd.f32 %v529_v41, %v403_v40  ;;  %v2504_v44 = vpop.f32.mrb[15].mxu1 }
 0x119   : > { %v408_v46 = vpop.f32.mrb[16].mxu0 }
 0x11a   : > { %v534_v47 = vpop.f32.mrb[16].mxu1  ;;  %v2471_v48 = vpop.f32.mrb[17].mxu0 }
 0x11b   : > { %v535_v49 = vadd.f32 %v534_v47, %v408_v46  ;;  %v2507_v36 = vpop.f32.mrb[17].mxu1  ;;  %v411_v50 = vpop.f32.mrb[18].mxu0 }
 0x11c   : > { %v537_v52 = vpop.f32.mrb[18].mxu1  ;;  %v2472_v53 = vpop.f32.mrb[19].mxu0 }
 0x11d   : > { %v538_v54 = vadd.f32 %v537_v52, %v411_v50  ;;  %v2508_v55 = vpop.f32.mrb[19].mxu1 }
 0x121   : > { %v661_v56 = vpop.f32.mrb[20].mxu0 }
 0x122   : > { %v700_v57 = vadd.f32 %v661_v56, %v503_v8  ;;  %v2527_v58 = vpop.f32.mrb[21].mxu0  ;;  %v864_v59 = vpop.f32.mrb[20].mxu1 }
 0x123   : > { %v664_v60 = vpop.f32.mrb[22].mxu0  ;;  %v2563_v61 = vpop.f32.mrb[21].mxu1 }
 0x124   : > { %v701_v45 = vadd.f32 %v664_v60, %v506_v13  ;;  %v903_v62 = vadd.f32 %v864_v59, %v700_v57  ;;  %v2528_v63 = vpop.f32.mrb[23].mxu0  ;;  %v867_v0 = vpop.f32.mrb[22].mxu1 }
 0x125   : > { %v2564_v51 = vpop.f32.mrb[23].mxu1 }
 0x126   : > { %v904_v2 = vadd.f32 %v867_v0, %v701_v45 }
 0x129   : > { %v669_v3 = vpop.f32.mrb[24].mxu0 }
 0x12a   : > { %v702_v5 = vadd.f32 %v669_v3, %v511_v15  ;;  %v2531_v6 = vpop.f32.mrb[25].mxu0  ;;  %v872_v7 = vpop.f32.mrb[24].mxu1 }
 0x12b   : > { %v672_v4 = vpop.f32.mrb[26].mxu0  ;;  %v2567_v9 = vpop.f32.mrb[25].mxu1 }
 0x12c   : > { %v703_v11 = vadd.f32 %v672_v4, %v514_v19  ;;  %v905_v12 = vadd.f32 %v872_v7, %v702_v5  ;;  %v2532_v10 = vpop.f32.mrb[27].mxu0  ;;  %v875_v8 = vpop.f32.mrb[26].mxu1 }
 0x12d   : > { %v2568_v14 = vpop.f32.mrb[27].mxu1 }
 0x12e   : > { %v906_v16 = vadd.f32 %v875_v8, %v703_v11 }
 0x131   : > { %v677_v17 = vpop.f32.mrb[28].mxu0 }
 0x132   : > { %v704_v18 = vadd.f32 %v677_v17, %v519_v28  ;;  %v2535_v13 = vpop.f32.mrb[29].mxu0  ;;  %v880_v20 = vpop.f32.mrb[28].mxu1 }
 0x133   : > { %v680_v21 = vpop.f32.mrb[30].mxu0  ;;  %v2571_v1 = vpop.f32.mrb[29].mxu1 }
 0x134   : > { %v705_v22 = vadd.f32 %v680_v21, %v522_v33  ;;  %v907_v23 = vadd.f32 %v880_v20, %v704_v18  ;;  %v2536_v24 = vpop.f32.mrb[31].mxu0  ;;  %v883_v15 = vpop.f32.mrb[30].mxu1 }
 0x135   : > { %v2572_v25 = vpop.f32.mrb[31].mxu1 }
 0x136   : > { %v908_v26 = vadd.f32 %v883_v15, %v705_v22 }
 0x139   : > { %v685_v29 = vpop.f32.mrb[32].mxu0 }
 0x13a   : > { %v706_v30 = vadd.f32 %v685_v29, %v527_v38  ;;  %v2539_v19 = vpop.f32.mrb[33].mxu0  ;;  %v888_v31 = vpop.f32.mrb[32].mxu1 }
 0x13b   : > { %v688_v32 = vpop.f32.mrb[34].mxu0  ;;  %v2575_v34 = vpop.f32.mrb[33].mxu1 }
 0x13c   : > { %v707_v35 = vadd.f32 %v688_v32, %v530_v43  ;;  %v909_v27 = vadd.f32 %v888_v31, %v706_v30  ;;  %v2540_v37 = vpop.f32.mrb[35].mxu0  ;;  %v891_v28 = vpop.f32.mrb[34].mxu1 }
 0x13d   : > { %v2576_v39 = vpop.f32.mrb[35].mxu1 }
 0x13e   : > { %v910_v40 = vadd.f32 %v891_v28, %v707_v35 }
 0x141   : > { %v693_v41 = vpop.f32.mrb[36].mxu0 }
 0x142   : > { %v708_v42 = vadd.f32 %v693_v41, %v535_v49  ;;  %v2543_v33 = vpop.f32.mrb[37].mxu0  ;;  %v896_v44 = vpop.f32.mrb[36].mxu1 }
 0x143   : > { %v696_v46 = vpop.f32.mrb[38].mxu0  ;;  %v2579_v47 = vpop.f32.mrb[37].mxu1 }
 0x144   : > { %v709_v48 = vadd.f32 %v696_v46, %v538_v54  ;;  %v911_v36 = vadd.f32 %v896_v44, %v708_v42  ;;  %v2544_v50 = vpop.f32.mrb[39].mxu0  ;;  %v899_v38 = vpop.f32.mrb[38].mxu1 }
 0x145   : > { %v2580_v52 = vpop.f32.mrb[39].mxu1 }
 0x146   : > { %v912_v53 = vadd.f32 %v899_v38, %v709_v48 }
 0x149   : > { %v1075_v55 = vpop.f32.mrb[40].mxu0 }
 0x14a   : > { %v1114_v56 = vadd.f32 %v1075_v55, %v903_v62  ;;  %v2599_v43 = vpop.f32.mrb[41].mxu0  ;;  %v1244_v57 = vpop.f32.mrb[40].mxu1 }
 0x14b   : > { %v1078_v58 = vpop.f32.mrb[42].mxu0  ;;  %v2635_v59 = vpop.f32.mrb[41].mxu1 }
 0x14c   : > { %v1115_v60 = vadd.f32 %v1078_v58, %v904_v2  ;;  %v1283_v61 = vadd.f32 %v1244_v57, %v1114_v56  ;;  %v2600_v45 = vpop.f32.mrb[43].mxu0  ;;  %v1247_v49 = vpop.f32.mrb[42].mxu1 }
 0x14d   : > { %v2636_v63 = vpop.f32.mrb[43].mxu1 }
 0x14e   : > { %v1284_v0 = vadd.f32 %v1247_v49, %v1115_v60 }
 0x151   : > { %v1083_v51 = vpop.f32.mrb[44].mxu0 }
 0x152   : > { %v1116_v3 = vadd.f32 %v1083_v51, %v905_v12  ;;  %v2603_v54 = vpop.f32.mrb[45].mxu0  ;;  %v1252_v5 = vpop.f32.mrb[44].mxu1 }
 0x153   : > { %v1086_v6 = vpop.f32.mrb[46].mxu0  ;;  %v2639_v7 = vpop.f32.mrb[45].mxu1 }
 0x154   : > { %v1117_v4 = vadd.f32 %v1086_v6, %v906_v16  ;;  %v1285_v9 = vadd.f32 %v1252_v5, %v1116_v3  ;;  %v2604_v11 = vpop.f32.mrb[47].mxu0  ;;  %v1255_v62 = vpop.f32.mrb[46].mxu1 }
 0x155   : > { %v2640_v10 = vpop.f32.mrb[47].mxu1 }
 0x156   : > { %v1286_v8 = vadd.f32 %v1255_v62, %v1117_v4 }
 0x159   : > { %v1091_v14 = vpop.f32.mrb[48].mxu0 }
 0x15a   : > { %v1118_v17 = vadd.f32 %v1091_v14, %v907_v23  ;;  %v2607_v2 = vpop.f32.mrb[49].mxu0  ;;  %v1260_v18 = vpop.f32.mrb[48].mxu1 }
 0x15b   : > { %v1094_v13 = vpop.f32.mrb[50].mxu0  ;;  %v2643_v20 = vpop.f32.mrb[49].mxu1 }
 0x15c   : > { %v1119_v21 = vadd.f32 %v1094_v13, %v908_v26  ;;  %v1287_v1 = vadd.f32 %v1260_v18, %v1118_v17  ;;  %v2608_v22 = vpop.f32.mrb[51].mxu0  ;;  %v1263_v12 = vpop.f32.mrb[50].mxu1 }
 0x15d   : > { %v2644_v24 = vpop.f32.mrb[51].mxu1 }
 0x15e   : > { %v1288_v15 = vadd.f32 %v1263_v12, %v1119_v21 }
 0x161   : > { %v1099_v25 = vpop.f32.mrb[52].mxu0 }
 0x162   : > { %v1120_v29 = vadd.f32 %v1099_v25, %v909_v27  ;;  %v2611_v16 = vpop.f32.mrb[53].mxu0  ;;  %v1268_v30 = vpop.f32.mrb[52].mxu1 }
 0x163   : > { %v1102_v19 = vpop.f32.mrb[54].mxu0  ;;  %v2647_v31 = vpop.f32.mrb[53].mxu1 }
 0x164   : > { %v1121_v32 = vadd.f32 %v1102_v19, %v910_v40  ;;  %v1289_v34 = vadd.f32 %v1268_v30, %v1120_v29  ;;  %v2612_v35 = vpop.f32.mrb[55].mxu0  ;;  %v1271_v23 = vpop.f32.mrb[54].mxu1 }
 0x165   : > { %v2648_v37 = vpop.f32.mrb[55].mxu1 }
 0x166   : > { %v1290_v28 = vadd.f32 %v1271_v23, %v1121_v32 }
 0x169   : > { %v1107_v39 = vpop.f32.mrb[56].mxu0 }
 0x16a   : > { %v1122_v41 = vadd.f32 %v1107_v39, %v911_v36  ;;  %v2615_v26 = vpop.f32.mrb[57].mxu0  ;;  %v1276_v42 = vpop.f32.mrb[56].mxu1 }
 0x16b   : > { %v1110_v33 = vpop.f32.mrb[58].mxu0  ;;  %v2651_v44 = vpop.f32.mrb[57].mxu1 }
 0x16c   : > { %v1123_v46 = vadd.f32 %v1110_v33, %v912_v53  ;;  %v1291_v47 = vadd.f32 %v1276_v42, %v1122_v41  ;;  %v2616_v48 = vpop.f32.mrb[59].mxu0  ;;  %v1279_v27 = vpop.f32.mrb[58].mxu1 }
 0x16d   : > { %v2652_v50 = vpop.f32.mrb[59].mxu1 }
 0x16e   : > { %v1292_v38 = vadd.f32 %v1279_v27, %v1123_v46 }
 0x171   : > { %v1447_v52 = vpop.f32.mrb[60].mxu0 }
 0x172   : > { %v1486_v55 = vadd.f32 %v1447_v52, %v1283_v61  ;;  %v2671_v40 = vpop.f32.mrb[61].mxu0  ;;  %v1658_v56 = vpop.f32.mrb[60].mxu1 }
 0x173   : > { %v1450_v43 = vpop.f32.mrb[62].mxu0  ;;  %v2707_v57 = vpop.f32.mrb[61].mxu1 }
 0x174   : > { %v1487_v58 = vadd.f32 %v1450_v43, %v1284_v0  ;;  %v1697_v59 = vadd.f32 %v1658_v56, %v1486_v55  ;;  %v2672_v60 = vpop.f32.mrb[63].mxu0  ;;  %v1661_v36 = vpop.f32.mrb[62].mxu1 }
 0x175   : > { %v2708_v45 = vpop.f32.mrb[63].mxu1 }
 0x176   : > { %v1698_v49 = vadd.f32 %v1661_v36, %v1487_v58  ;;  %v3497_v36 = vld [vmem:[%s3541_s2 + $0x1] ss:$0 sm:$0xff] }
 0x179   : > { %v1455_v63 = vpop.f32.mrb[64].mxu0 }
 0x17a   : > { %v1488_v51 = vadd.f32 %v1455_v63, %v1285_v9  ;;  %v2675_v53 = vpop.f32.mrb[65].mxu0  ;;  %v1666_v3 = vpop.f32.mrb[64].mxu1 }
 0x17b   : > { %v1458_v54 = vpop.f32.mrb[66].mxu0  ;;  %v2711_v5 = vpop.f32.mrb[65].mxu1 }
 0x17c   : > { %v1489_v6 = vadd.f32 %v1458_v54, %v1286_v8  ;;  %v3480_v7 = vadd.f32 %v1666_v3, %v1488_v51  ;;  %v2676_v61 = vpop.f32.mrb[67].mxu0  ;;  %v1669_v4 = vpop.f32.mrb[66].mxu1 }
 0x17d   : > { %v2712_v11 = vpop.f32.mrb[67].mxu1 }
 0x17e   : > { %v3482_v62 = vadd.f32 %v1669_v4, %v1489_v6  ;;  %v2268_v6 = vld [vmem:[%s3541_s2 + $0x2] ss:$0 sm:$0xff] }
 0x181   : > { %v1463_v0 = vpop.f32.mrb[68].mxu0 }
 0x182   : > { %v1490_v10 = vadd.f32 %v1463_v0, %v1287_v1  ;;  %v2679_v14 = vpop.f32.mrb[69].mxu0  ;;  %v1674_v17 = vpop.f32.mrb[68].mxu1 }
 0x183   : > { %v1466_v2 = vpop.f32.mrb[70].mxu0  ;;  %v2715_v18 = vpop.f32.mrb[69].mxu1 }
 0x184   : > { %v1491_v13 = vadd.f32 %v1466_v2, %v1288_v15  ;;  %v3484_v9 = vadd.f32 %v1674_v17, %v1490_v10  ;;  %v2680_v20 = vpop.f32.mrb[71].mxu0  ;;  %v1677_v21 = vpop.f32.mrb[70].mxu1 }
 0x185   : > { %v2716_v22 = vpop.f32.mrb[71].mxu1 }
 0x186   : > { %v3486_v8 = vadd.f32 %v1677_v21, %v1491_v13 }
 0x189   : > { %v1471_v12 = vpop.f32.mrb[72].mxu0 }
 0x18a   : > { %v1492_v24 = vadd.f32 %v1471_v12, %v1289_v34  ;;  %v2683_v25 = vpop.f32.mrb[73].mxu0  ;;  %v1682_v29 = vpop.f32.mrb[72].mxu1 }
 0x18b   : > { %v1474_v16 = vpop.f32.mrb[74].mxu0  ;;  %v2719_v30 = vpop.f32.mrb[73].mxu1 }
 0x18c   : > { %v1493_v19 = vadd.f32 %v1474_v16, %v1290_v28  ;;  %v1703_v1 = vadd.f32 %v1682_v29, %v1492_v24  ;;  %v2684_v31 = vpop.f32.mrb[75].mxu0  ;;  %v1685_v32 = vpop.f32.mrb[74].mxu1  ;;  %v3491_v28 = vld [vmem:[%s3541_s2] ss:$0 sm:$0xff] }
 0x18d   : > { %v2720_v35 = vpop.f32.mrb[75].mxu1 }
 0x18e   : > { %v1704_v23 = vadd.f32 %v1685_v32, %v1493_v19 }
 0x191   : > { %v1479_v15 = vpop.f32.mrb[76].mxu0 }
 0x192   : > { %v1494_v37 = vadd.f32 %v1479_v15, %v1291_v47  ;;  %v2687_v39 = vpop.f32.mrb[77].mxu0  ;;  %v1690_v41 = vpop.f32.mrb[76].mxu1 }
 0x193   : > { %v1482_v26 = vpop.f32.mrb[78].mxu0  ;;  %v2723_v42 = vpop.f32.mrb[77].mxu1 }
 0x194   : > { %v1495_v33 = vadd.f32 %v1482_v26, %v1292_v38  ;;  %v1705_v44 = vadd.f32 %v1690_v41, %v1494_v37  ;;  %v2688_v46 = vpop.f32.mrb[79].mxu0  ;;  %v1693_v34 = vpop.f32.mrb[78].mxu1 }
 0x195   : > { %v2724_v48 = vpop.f32.mrb[79].mxu1 }
 0x196   : > { %v1706_v27 = vadd.f32 %v1693_v34, %v1495_v33 }
 0x199   : > { %v1827_v50 = vpop.f32.mrb[80].mxu0 }
 0x19a   : > { %v1866_v52 = vadd.f32 %v1827_v50, %v1697_v59  ;;  %v1851_v55 = vpop.f32.mrb[80].mxu1  ;;  %v2743_v40 = vpop.f32.mrb[81].mxu0 }
 0x19b   : > { %v1872_v47 = vadd.f32 %v1851_v55, %v1703_v1  ;;  %v2755_v56 = vpop.f32.mrb[81].mxu1  ;;  %v1830_v43 = vpop.f32.mrb[82].mxu0 }
 0x19c   : > { %v1883_v57 = vadd.f32 %v3491_v28, %v1866_v52  ;;  %v1867_v38 = vadd.f32 %v1830_v43, %v1698_v49  ;;  %v1854_v58 = vpop.f32.mrb[82].mxu1  ;;  %v2744_v60 = vpop.f32.mrb[83].mxu0 }
 0x19d   : > { %v1889_v45 = vadd.f32 %v3491_v28, %v1872_v47  ;;  %v1873_v63 = vadd.f32 %v1854_v58, %v1704_v23  ;;  %v2756_v59 = vpop.f32.mrb[83].mxu1 }
 0x19e   : > { %v1893_v51 = vmax.f32 %v1883_v57, 0.0  ;;  %v1884_v53 = vadd.f32 %v3491_v28, %v1867_v38 }
 0x19f   : > { %v1899_v3 = vmax.f32 %v1889_v45, 0.0  ;;  %v1890_v54 = vadd.f32 %v3491_v28, %v1873_v63 }
 0x1a0   : > { %v1907_v5 = vmul.f32 %v3497_v36, %v1893_v51  ;;  %v1894_v49 = vmax.f32 %v1884_v53, 0.0 }
 0x1a1   : > { %v1913_v61 = vmul.f32 %v3497_v36, %v1899_v3  ;;  %v1900_v4 = vmax.f32 %v1890_v54, 0.0  ;;  %v1835_v11 = vpop.f32.mrb[84].mxu0 }
 0x1a2   : > { %v1908_v0 = vmul.f32 %v3497_v36, %v1894_v49  ;;  %v1868_v10 = vadd.f32 %v1835_v11, %v3480_v7  ;;  %v1859_v14 = vpop.f32.mrb[84].mxu1  ;;  %v2747_v17 = vpop.f32.mrb[85].mxu0  ;;  %v1921_v21 = vadd.f32 %v2268_v6, %v1907_v5 }
 0x1a3   : > { %v1914_v2 = vmul.f32 %v3497_v36, %v1900_v4  ;;  %v1874_v18 = vadd.f32 %v1859_v14, %v1705_v44  ;;  %v2759_v13 = vpop.f32.mrb[85].mxu1  ;;  %v1838_v20 = vpop.f32.mrb[86].mxu0  ;;  %v1927_v16 = vadd.f32 %v2268_v6, %v1913_v61 }
 0x1a4   : > { %v1922_v22 = vadd.f32 %v2268_v6, %v1908_v0  ;;  %v1885_v12 = vadd.f32 %v3491_v28, %v1868_v10  ;;  %v1869_v24 = vadd.f32 %v1838_v20, %v3482_v62  ;;  %v1862_v25 = vpop.f32.mrb[86].mxu1  ;;  %v2748_v29 = vpop.f32.mrb[87].mxu0 }
 0x1a5   : > { %v1928_v7 = vadd.f32 %v2268_v6, %v1914_v2  ;;  %v1891_v30 = vadd.f32 %v3491_v28, %v1874_v18  ;;  %v1875_v19 = vadd.f32 %v1862_v25, %v1706_v27  ;;  %v2760_v1 = vpop.f32.mrb[87].mxu1 }
 0x1a6   : > { %v2294_v31 = vpack.c.bf16 %v1922_v22, %v1921_v21  ;;  %v1895_v32 = vmax.f32 %v1885_v12, 0.0  ;;  %v1886_v35 = vadd.f32 %v3491_v28, %v1869_v24 }
 0x1a7   : > { %v2309_v62 = vpack.c.bf16 %v1928_v7, %v1927_v16  ;;  %v1901_v23 = vmax.f32 %v1891_v30, 0.0  ;;  %v1892_v15 = vadd.f32 %v3491_v28, %v1875_v19 }
 0x1a8   : > { %2295 = vst [vmem:[%s3516_s24] sm:$0xff] %v2294_v31   ;;  %v1909_v37 = vmul.f32 %v3497_v36, %v1895_v32  ;;  %v1896_v39 = vmax.f32 %v1886_v35, 0.0 }
 0x1a9   : > { %2318 = vst [vmem:[%s3516_s24 + $0x18] sm:$0xff] %v2309_v62   ;;  %v1915_v41 = vmul.f32 %v3497_v36, %v1901_v23  ;;  %v1902_v26 = vmax.f32 %v1892_v15, 0.0  ;;  %v1843_v42 = vpop.f32.mrb[88].mxu0 }
 0x1aa   : > { %v1910_v33 = vmul.f32 %v3497_v36, %v1896_v39  ;;  %v1870_v44 = vadd.f32 %v1843_v42, %v3484_v9  ;;  %v2751_v46 = vpop.f32.mrb[89].mxu0  ;;  %v1923_v27 = vadd.f32 %v2268_v6, %v1909_v37 }
 0x1ab   : > { %v1916_v34 = vmul.f32 %v3497_v36, %v1902_v26  ;;  %v1846_v48 = vpop.f32.mrb[90].mxu0  ;;  %v1929_v47 = vadd.f32 %v2268_v6, %v1915_v41 }
 0x1ac   : > { %v1924_v50 = vadd.f32 %v2268_v6, %v1910_v33  ;;  %v1887_v52 = vadd.f32 %v3491_v28, %v1870_v44  ;;  %v1871_v55 = vadd.f32 %v1846_v48, %v3486_v8  ;;  %v2752_v40 = vpop.f32.mrb[91].mxu0 }
 0x1ad   : > { %v1930_v56 = vadd.f32 %v2268_v6, %v1916_v34 }
 0x1ae   : > { %v2299_v43 = vpack.c.bf16 %v1924_v50, %v1923_v27  ;;  %v1897_v57 = vmax.f32 %v1887_v52, 0.0  ;;  %v1888_v38 = vadd.f32 %v3491_v28, %v1871_v55 }
 0x1af   : > { %v2314_v9 = vpack.c.bf16 %v1930_v56, %v1929_v47 }
 0x1b0   : > { %2316 = vst [vmem:[%s3516_s24 + $0x8] sm:$0xff] %v2299_v43   ;;  %v1911_v58 = vmul.f32 %v3497_v36, %v1897_v57  ;;  %v1898_v60 = vmax.f32 %v1888_v38, 0.0 }
 0x1b1   : > { %2319 = vst [vmem:[%s3516_s24 + $0x20] sm:$0xff] %v2314_v9  }
 0x1b2   : > { %v1912_v45 = vmul.f32 %v3497_v36, %v1898_v60  ;;  %v1925_v63 = vadd.f32 %v2268_v6, %v1911_v58 }
 0x1b4   : > { %v1926_v59 = vadd.f32 %v2268_v6, %v1912_v45 }
 0x1b6   : > { %v2304_v51 = vpack.c.bf16 %v1926_v59, %v1925_v63 }
 0x1b8   : > { %2317 = vst [vmem:[%s3516_s24 + $0x10] sm:$0xff] %v2304_v51  }
 0x1b9 PF: > { %s13_s12 = sadd.s32 1, %s2890_s12  }
 0x1ba   : > { %p10_p4 = scmp.ge.s32.totalorder %s13_s12, 4  }
 0x1bc   :  { %12 = sbr.rel (!%p10_p4) target bundleno = 1 (0x1), region = 70 }

// kernel: _lambda_.17
= control target key start
LH: loop header
LB: loop body
LE: loop exit
PB: predicated region body
PF: predicated region fallthrough
CT: control target
= control target key end

     0   :  { %s294_s9 = smov 0   ;;  %s314_s0 = inlined_call_operand.vmem [shape: bf16[2,4,8,256], index: 0, kind: input, shape index: {}]   ;;  %s315_s1 = inlined_call_operand.vmem [shape: bf16[2,4,8,256], index: 1, kind: input, shape index: {}]   ;;  %s316_s2 = inlined_call_operand.vmem [shape: bf16[2,4,8,256], index: 2, kind: output, shape index: {}]  }
   0x1 LB: > { %s247_s10 = sadd.s32 4294967295, %s277_s9   ;;  %p251_p0 = scmp.ge.s32.totalorder %s277_s9, 1  ;;  %s277_s9 = sphi %s294_s9, %s12_s9  }
   0x2   : > { %p122_p1 = scmp.lt.s32.totalorder %s277_s9, 3 }
   0x4   : > { %p123_p2 = pnand %p251_p0, %p122_p1 }
   0x5   : > { %p149_p3 = scmp.lt.s32.totalorder (!%p123_p2), %s247_s10, 1 }
   0x6   : > { %126 = sbr.rel (%p123_p2) target bundleno = 23 (0x17), region = 28 }
   0xd   : > { %s318_s10 = smov (!%p149_p3, %s247_s10), 1 }
   0xe   : > { %s260_s11 = sshll.u32 %s318_s10, 5 }
   0xf   : > { %s153_s14 = scalar_lea.vmem %s314_s0, %s260_s11  ;;  %s158_s17 = scalar_lea.vmem %s315_s1, %s260_s11 }
  0x10   : > { %s163_s20 = scalar_lea.vmem %s316_s2, %s260_s11  ;;  %v164_v0 = vld [vmem:[%s153_s14] sm:$0xff]  ;;  %v165_v2 = vld [vmem:[%s153_s14 + $0x8] sm:$0xff]  ;;  %v166_v5 = vld [vmem:[%s153_s14 + $0x10] sm:$0xff] }
  0x11   : > { %v168_v1 = vld [vmem:[%s158_s17] sm:$0xff]  ;;  %v169_v4 = vld [vmem:[%s158_s17 + $0x8] sm:$0xff]  ;;  %v170_v6 = vld [vmem:[%s158_s17 + $0x10] sm:$0xff] }
  0x12   : > { %v172_v3 = vmax.bf16 %v168_v1, %v164_v0  ;;  %v173_v7 = vmax.bf16 %v169_v4, %v165_v2  ;;  %v174_v8 = vmax.bf16 %v170_v6, %v166_v5  ;;  %v167_v9 = vld [vmem:[%s153_s14 + $0x18] sm:$0xff] }
  0x13   : > { %v171_v10 = vld [vmem:[%s158_s17 + $0x18] sm:$0xff] }
  0x14   : > { %176 = vst [vmem:[%s163_s20] sm:$0xff] %v172_v3  ;;  %v175_v11 = vmax.bf16 %v171_v10, %v167_v9  ;;  %177 = vst [vmem:[%s163_s20 + $0x8] sm:$0xff] %v173_v7 }
  0x15   : > { %178 = vst [vmem:[%s163_s20 + $0x10] sm:$0xff] %v174_v8 }
  0x16   : > { %179 = vst [vmem:[%s163_s20 + $0x18] sm:$0xff] %v175_v11 }
  0x17 PF: > { %s12_s9 = sadd.s32 1, %s277_s9  }
  0x18   : > { %p9_p4 = scmp.ge.s32.totalorder %s12_s9, 4  }
  0x1a   :  { %11 = sbr.rel (!%p9_p4) target bundleno = 1 (0x1), region = 61 }

// kernel: _lambda_.16
= control target key start
LH: loop header
LB: loop body
LE: loop exit
PB: predicated region body
PF: predicated region fallthrough
CT: control target
= control target key end

     0   :  { %s3348_s12 = smov 0   ;;  %s4206_s0 = inlined_call_operand.vmem [shape: bf16[2,102,128], index: 0, kind: input, shape index: {}]   ;;  %s4207_s1 = inlined_call_operand.vmem [shape: bf16[9,128,256], index: 1, kind: input, shape index: {}]   ;;  %s4208_s2 = inlined_call_operand.vmem [shape: f32[3,256], index: 2, kind: input, shape index: {}]   ;;  %s4209_s3 = inlined_call_operand.vmem [shape: bf16[2,80,256], index: 3, kind: output, shape index: {}]  }
   0x1 LB: > { %s2567_s13 = sadd.s32 4294967295, %s3325_s12   ;;  %p2571_p0 = scmp.ge.s32.totalorder %s3325_s12, 1  ;;  %s3325_s12 = sphi %s3348_s12, %s13_s12  }
   0x2   : > { %p137_p1 = scmp.lt.s32.totalorder %s3325_s12, 3 }
   0x4   : > { %p138_p2 = pnand %p2571_p0, %p137_p1 }
   0x5   : > { %v3080_v0 = vld [vmem:[%s4207_s1 + $0x84] ss:$8 sps:$4 sm:$0xff] (!%p138_p2)   ;;  %v3327_v2 = vmov (!%p138_p2), 0   ;;  %v3084_v3 = vld [vmem:[%s4207_s1 + $0x80] ss:$8 sps:$4 sm:$0xff] (!%p138_p2)   ;;  %p161_p3 = scmp.lt.s32.totalorder (!%p138_p2), %s2567_s13, 1 }
   0x6   : > { %141 = sbr.rel (%p138_p2) target bundleno = 448 (0x1c0), region = 32  ;;  %v3082_v1 = vld [vmem:[%s4207_s1 + $0x204] ss:$8 sps:$4 sm:$0xff] (!%p138_p2)   ;;  %406 = vmatprep.mubr.bf16.mxu1 (!%p138_p2), %v3327_v2  ;;  %1293 = vmatprep.mubr.bf16.mxu0 (!%p138_p2), %v3327_v2  ;;  %v3085_v4 = vld [vmem:[%s4207_s1 + $0x200] ss:$8 sps:$4 sm:$0xff] (!%p138_p2)   ;;  %vm646_vm2 = vcmask (!%p138_p2), 1046528  }
   0x7   : > { %374 = vmatprep.subr.bf16.mxu1 (!%p138_p2), %v3080_v0  ;;  %1261 = vmatprep.subr.bf16.mxu0 (!%p138_p2), %v3082_v1  ;;  %v3086_v5 = vld [vmem:[%s4207_s1 + $0x94] ss:$8 sps:$4 sm:$0xff] (!%p138_p2)   ;;  %v3090_v7 = vld [vmem:[%s4207_s1 + $0x90] ss:$8 sps:$4 sm:$0xff] (!%p138_p2)   ;;  %v3092_v9 = vld [vmem:[%s4207_s1 + $0xa4] ss:$8 sps:$4 sm:$0xff] (!%p138_p2)  }
   0x8   : > { %375 = vmatpush1.bf16.msra.mxu1 (!%p138_p2), %v3084_v3  ;;  %1262 = vmatpush1.bf16.msra.mxu0 (!%p138_p2), %v3085_v4  ;;  %v3088_v6 = vld [vmem:[%s4207_s1 + $0x214] ss:$8 sps:$4 sm:$0xff] (!%p138_p2)   ;;  %v3091_v8 = vld [vmem:[%s4207_s1 + $0x210] ss:$8 sps:$4 sm:$0xff] (!%p138_p2)   ;;  %v3094_v10 = vld [vmem:[%s4207_s1 + $0x224] ss:$8 sps:$4 sm:$0xff] (!%p138_p2)  }
   0x9   : > { %376 = vmatprep.subr.bf16.mxu1 (!%p138_p2), %v3086_v5  ;;  %1263 = vmatprep.subr.bf16.mxu0 (!%p138_p2), %v3088_v6  ;;  %v3096_v11 = vld [vmem:[%s4207_s1 + $0xa0] ss:$8 sps:$4 sm:$0xff] (!%p138_p2)   ;;  %v3098_v13 = vld [vmem:[%s4207_s1 + $0xb4] ss:$8 sps:$4 sm:$0xff] (!%p138_p2)   ;;  %v3102_v15 = vld [vmem:[%s4207_s1 + $0xb0] ss:$8 sps:$4 sm:$0xff] (!%p138_p2)  }
   0xa   : > { %v3097_v12 = vld [vmem:[%s4207_s1 + $0x220] ss:$8 sps:$4 sm:$0xff] (!%p138_p2)   ;;  %v3100_v14 = vld [vmem:[%s4207_s1 + $0x234] ss:$8 sps:$4 sm:$0xff] (!%p138_p2)   ;;  %v3103_v16 = vld [vmem:[%s4207_s1 + $0x230] ss:$8 sps:$4 sm:$0xff] (!%p138_p2)  }
   0xb   : > { %v3104_v17 = vld [vmem:[%s4207_s1 + $0xc4] ss:$8 sps:$4 sm:$0xff] (!%p138_p2)   ;;  %v3108_v19 = vld [vmem:[%s4207_s1 + $0xc0] ss:$8 sps:$4 sm:$0xff] (!%p138_p2)   ;;  %v3110_v21 = vld [vmem:[%s4207_s1 + $0xd4] ss:$8 sps:$4 sm:$0xff] (!%p138_p2)  }
   0xc   : > { %377 = vmatpush1.bf16.msra.mxu1 (!%p138_p2), %v3090_v7  ;;  %1264 = vmatpush1.bf16.msra.mxu0 (!%p138_p2), %v3091_v8  ;;  %v3106_v18 = vld [vmem:[%s4207_s1 + $0x244] ss:$8 sps:$4 sm:$0xff] (!%p138_p2)   ;;  %v3109_v20 = vld [vmem:[%s4207_s1 + $0x240] ss:$8 sps:$4 sm:$0xff] (!%p138_p2)   ;;  %v3112_v22 = vld [vmem:[%s4207_s1 + $0x254] ss:$8 sps:$4 sm:$0xff] (!%p138_p2)  }
   0xd   : > { %378 = vmatprep.subr.bf16.mxu1 %v3092_v9  ;;  %1265 = vmatprep.subr.bf16.mxu0 %v3094_v10  ;;  %s4211_s13 = smov (!%p161_p3, %s2567_s13), 1  ;;  %v3114_v23 = vld [vmem:[%s4207_s1 + $0xd0] ss:$8 sps:$4 sm:$0xff]   ;;  %v3116_v25 = vld [vmem:[%s4207_s1 + $0xe4] ss:$8 sps:$4 sm:$0xff]   ;;  %vm1385_vm3 = vcmask 1045504  }
   0xe   : > { %s3069_s25 = smul.u32 52, %s4211_s13  ;;  %v3115_v24 = vld [vmem:[%s4207_s1 + $0x250] ss:$8 sps:$4 sm:$0xff]   ;;  %v3118_v26 = vld [vmem:[%s4207_s1 + $0x264] ss:$8 sps:$4 sm:$0xff]   ;;  %vm2124_vm4 = vcmask 1044480  }
   0xf   : > { %v3120_v29 = vld [vmem:[%s4207_s1 + $0xe0] ss:$8 sps:$4 sm:$0xff]   ;;  %v3122_v33 = vld [vmem:[%s4207_s1 + $0xf4] ss:$8 sps:$4 sm:$0xff]   ;;  %vm244_vm0 = vsmask.f32 7424 }
  0x10   : > { %379 = vmatpush1.bf16.msra.mxu1 %v3096_v11  ;;  %1266 = vmatpush1.bf16.msra.mxu0 %v3097_v12  ;;  %s3434_s9 = scalar_lea.vmem %s4206_s0, %s3069_s25  ;;  %v3121_v30 = vld [vmem:[%s4207_s1 + $0x260] ss:$8 sps:$4 sm:$0xff]   ;;  %v3124_v41 = vld [vmem:[%s4207_s1 + $0x274] ss:$8 sps:$4 sm:$0xff]   ;;  %v3126_v42 = vld [vmem:[%s4207_s1 + $0xf0] ss:$8 sps:$4 sm:$0xff]  }
  0x11   : > { %380 = vmatprep.subr.bf16.mxu1 %v3098_v13  ;;  %1267 = vmatprep.subr.bf16.mxu0 %v3100_v14  ;;  %v172_v27 = vld [vmem:[%s3434_s9] sm:$0xf]  ;;  %v3450_v28 = vld [vmem:[%s3434_s9 + $0x4] sm:$0xf]  ;;  %v3462_v32 = vld [vmem:[%s3434_s9 + $0x8] sm:$0xff]   ;;  %s3070_s21 = smul.u32 80, %s4211_s13 }
  0x12   : > { %v3459_v31 = vcombine.low %v172_v27, %v3450_v28  ;;  %v846_v34 = vld [vmem:[%s3434_s9 + $0x4] sm:$0xe]  ;;  %v3469_v35 = vld [vmem:[%s3434_s9 + $0x8] sm:$0xf]  ;;  %v253_v38 = vshll.u32 %v3462_v32, 16  ;;  %v3478_v40 = vld [vmem:[%s3434_s9 + $0xc] sm:$0xff]  }
  0x13   : > { %v3475_v39 = vcombine.low %v846_v34, %v3469_v35  ;;  %v3127_v43 = vld [vmem:[%s4207_s1 + $0x270] ss:$8 sps:$4 sm:$0xff]   ;;  %v1132_v48 = vshrl.u32 %v3478_v40, 16  ;;  %v1135_v49 = vshll.u32 %v3478_v40, 16  ;;  %v3134_v53 = vld [vmem:[%s4207_s1 + $0x284] ss:$8 sps:$4 sm:$0xff]   ;;  %s4139_s23 = scalar_lea.vmem %s4209_s3, %s3070_s21 }
  0x14   : > { %381 = vmatpush1.bf16.msra.mxu1 %v3102_v15  ;;  %1268 = vmatpush1.bf16.msra.mxu0 %v3103_v16  ;;  %v246_v36 = vshrl.u32 %v3459_v31, 16  ;;  %v248_v37 = vshll.u32 %v3459_v31, 16  ;;  %v255_v47 = vrot.slane %v253_v38, 1  ;;  %v3497_v56 = vld [vmem:[%s3434_s9 + $0x10] sm:$0xff]   ;;  %vm1122_vm1 = vsmask.f32 6400 }
  0x15   : > { %382 = vmatprep.subr.bf16.mxu1 %v3104_v17  ;;  %1269 = vmatprep.subr.bf16.mxu0 %v3106_v18  ;;  %v1124_v45 = vshrl.u32 %v3475_v39, 16  ;;  %v1127_v46 = vshll.u32 %v3475_v39, 16  ;;  %v1134_v54 = vrot.slane %v1132_v48, 1  ;;  %v1137_v55 = vrot.slane %v1135_v49, 2  ;;  %v3141_v59 = vld [vmem:[%s4207_s1 + $0x4] ss:$8 sps:$4 sm:$0xff]  }
  0x16   : > { %v250_v44 = vrot.slane %v248_v37, 1  ;;  %v257_v58 = vshrl.u32 %v3462_v32, 16  ;;  %v261_v61 = vshll.u32 %v3497_v56, 16  ;;  %v3505_v62 = vld [vmem:[%s3434_s9 + $0x14] sm:$0xff]   ;;  %v3132_v0 = vld [vmem:[%s4207_s1 + $0x280] ss:$8 sps:$4 sm:$0xff]  }
  0x17   : > { %v1126_v51 = vrot.slane %v1124_v45, 1  ;;  %v1129_v52 = vrot.slane %v1127_v46, 2  ;;  %v1138_v60 = vor.u32 %v1137_v55, %v1134_v54  ;;  %v648_v1 = vrot.slane %v3462_v32, 1  ;;  %v3137_v5 = vld [vmem:[%s4207_s1 + $0x294] ss:$8 sps:$4 sm:$0xff]  }
  0x18   : > { %383 = vmatpush1.bf16.msra.mxu1 %v3108_v19  ;;  %1270 = vmatpush1.bf16.msra.mxu0 %v3109_v20  ;;  %v251_v50 = vor.u32 %v250_v44, %v246_v36  ;;  %v650_v3 = vrot.slane %v3497_v56, 1  ;;  %v1141_v6 = vshrl.u32 %v3505_v62, 16  ;;  %v1144_v7 = vshll.u32 %v3505_v62, 16  ;;  %v3135_v8 = vld [vmem:[%s4207_s1 + $0x290] ss:$8 sps:$4 sm:$0xff]  }
  0x19   : > { %384 = vmatprep.subr.bf16.mxu1 %v3110_v21  ;;  %1271 = vmatprep.subr.bf16.mxu0 %v3112_v22  ;;  %v1130_v57 = vor.u32 %v1129_v52, %v1126_v51  ;;  %v263_v9 = vrot.slane %v261_v61, 1  ;;  %v3139_v10 = vld [vmem:[%s4207_s1] ss:$8 sps:$4 sm:$0xff]   ;;  %v259_v12 = vor.u32 %v257_v58, %v255_v47  ;;  %v3148_v15 = vld [vmem:[%s4207_s1 + $0x14] ss:$8 sps:$4 sm:$0xff]   ;;  %v902_v19 = vrot.slane %v3475_v39, 1 }
  0x1a   : > { %v256_v63 = vsel %vm244_vm0, %v251_v50, %v255_v47  ;;  %v3528_v11 = vsel %vm646_vm2, %v648_v1, %v650_v3  ;;  %v1143_v13 = vrot.slane %v1141_v6, 1  ;;  %v1146_v14 = vrot.slane %v1144_v7, 2  ;;  %v3145_v16 = vld [vmem:[%s4207_s1 + $0x2a4] ss:$8 sps:$4 sm:$0xff]   ;;  %v3539_v18 = vld [vmem:[%s3434_s9 + $0x18] sm:$0xff]  }
  0x1b   : > { %v1139_v4 = vsel %vm1122_vm1, %v1130_v57, %v1138_v60  ;;  %v903_v20 = vrot.slane %v3478_v40, 1  ;;  %v905_v21 = vrot.slane %v3505_v62, 1  ;;  %v3143_v22 = vld [vmem:[%s4207_s1 + $0x2a0] ss:$8 sps:$4 sm:$0xff]   ;;  %v652_v34 = vrot.slane %v3539_v18, 1 }
  0x1c   : > { %385 = vmatpush1.bf16.msra.mxu1 %v3114_v23  ;;  %1272 = vmatpush1.bf16.msra.mxu0 %v3115_v24  ;;  %v1147_v17 = vor.u32 %v1146_v14, %v1143_v13  ;;  %v3146_v23 = vld [vmem:[%s4207_s1 + $0x10] ss:$8 sps:$4 sm:$0xff]   ;;  %v264_v24 = vsel %vm244_vm0, %v259_v12, %v263_v9  ;;  %v3153_v37 = vld [vmem:[%s4207_s1 + $0x20] ss:$8 sps:$4 sm:$0xff]   ;;  %v3159_v49 = vld [vmem:[%s4207_s1 + $0x34] ss:$8 sps:$4 sm:$0xff]  }
  0x1d   : > { %386 = vmatprep.subr.bf16.mxu1 %v3116_v25  ;;  %1273 = vmatprep.subr.bf16.mxu0 %v3118_v26  ;;  %v265_v25 = vshrl.u32 %v3497_v56, 16  ;;  %v3553_v26 = vld [vmem:[%s3434_s9 + $0x1c] sm:$0xff]   ;;  %v3556_v27 = vsel %vm646_vm2, %v902_v19, %v903_v20  ;;  %v3567_v36 = vsel %vm646_vm2, %v903_v20, %v905_v21  ;;  %v3584_v44 = vsel %vm646_vm2, %v650_v3, %v652_v34  ;;  %v3162_v50 = vld [vmem:[%s4207_s1 + $0x2c4] ss:$8 sps:$4 sm:$0xff]   ;;  %v3168_v7 = vld [vmem:[%s4207_s1 + $0x2d0] ss:$8 sps:$4 sm:$0xff]  }
  0x1e   : > { %v1150_v38 = vshrl.u32 %v3553_v26, 16  ;;  %v1153_v39 = vshll.u32 %v3553_v26, 16  ;;  %v3594_v51 = vld [vmem:[%s3434_s9 + $0x24] sm:$0xff]   ;;  %v273_v55 = vshrl.u32 %v3539_v18, 16  ;;  %v3173_v12 = vld [vmem:[%s4207_s1 + $0x54] ss:$8 sps:$4 sm:$0xff]  }
  0x1f   : > { %v267_v47 = vor.u32 %v265_v25, %v263_v9  ;;  %v1162_v54 = vshll.u32 %v3594_v51, 16  ;;  %v3160_v61 = vld [vmem:[%s4207_s1 + $0x2c0] ss:$8 sps:$4 sm:$0xff]   ;;  %v3166_v3 = vld [vmem:[%s4207_s1 + $0x44] ss:$8 sps:$4 sm:$0xff]   ;;  %v909_v9 = vrot.slane %v3594_v51, 1 }
  0x20   : > { %387 = vmatpush1.bf16.msra.mxu1 %v3120_v29  ;;  %1274 = vmatpush1.bf16.msra.mxu0 %v3121_v30  ;;  %v1148_v29 = vsel %vm1122_vm1, %v1138_v60, %v1147_v17  ;;  %v3151_v30 = vld [vmem:[%s4207_s1 + $0x2b4] ss:$8 sps:$4 sm:$0xff]   ;;  %v1152_v45 = vrot.slane %v1150_v38, 1  ;;  %v1155_v46 = vrot.slane %v1153_v39, 2  ;;  %v3157_v60 = vld [vmem:[%s4207_s1 + $0x30] ss:$8 sps:$4 sm:$0xff]  }
  0x21   : > { %388 = vmatprep.subr.bf16.mxu1 %v3122_v33  ;;  %1275 = vmatprep.subr.bf16.mxu0 %v3124_v41  ;;  %v269_v33 = vshll.u32 %v3539_v18, 16  ;;  %v3149_v41 = vld [vmem:[%s4207_s1 + $0x2b0] ss:$8 sps:$4 sm:$0xff]   ;;  %v3164_v6 = vld [vmem:[%s4207_s1 + $0x40] ss:$8 sps:$4 sm:$0xff]  }
  0x22   : > { %v1156_v52 = vor.u32 %v1155_v46, %v1152_v45  ;;  %v3176_v13 = vld [vmem:[%s4207_s1 + $0x2e4] ss:$8 sps:$4 sm:$0xff]   ;;  %v3177_v19 = vld [vmem:[%s3434_s9 + $0x28] ss:$0 sps:$4 sm:$0x11]  }
  0x23   : > { %v271_v48 = vrot.slane %v269_v33, 1  ;;  %v3171_v33 = vld [vmem:[%s4207_s1 + $0x50] ss:$8 sps:$4 sm:$0xff]   ;;  %v3174_v38 = vld [vmem:[%s4207_s1 + $0x2e0] ss:$8 sps:$4 sm:$0xff]  }
  0x24   : > { %389 = vmatpush1.bf16.msra.mxu1 %v3126_v42  ;;  %1276 = vmatpush1.bf16.msra.mxu0 %v3127_v43  ;;  %v3155_v42 = vld [vmem:[%s4207_s1 + $0x24] ss:$8 sps:$4 sm:$0xff]   ;;  %v3184_v45 = vld [vmem:[%s4207_s1 + $0x2f4] ss:$8 sps:$4 sm:$0xff]   ;;  %vm1861_vm5 = vsmask.f32 5376 }
  0x25   : > { %1482 = vmatprep.subr.bf16.mxu0 %v3134_v53  ;;  %542 = vmatprep.subr.bf16.mxu1 %v3141_v59  ;;  %v3581_v43 = vld [vmem:[%s3434_s9 + $0x20] sm:$0xff]   ;;  %v1159_v53 = vshrl.u32 %v3594_v51, 16  ;;  %v272_v58 = vsel %vm244_vm0, %v267_v47, %v271_v48  ;;  %v1157_v59 = vsel %vm1122_vm1, %v1147_v17, %v1156_v52 }
  0x26   : > { %v277_v57 = vshll.u32 %v3581_v43, 16  ;;  %v3180_v39 = vld [vmem:[%s4207_s1 + $0x64] ss:$8 sps:$4 sm:$0xff]  }
  0x27   : > { %407 = vmatmul.mubr.bf16.vlgmr.msra.gmra.mrb[0].mxu1 %v256_v63  ;;  %1294 = vmatmul.mubr.bf16.vlgmr.msra.gmra.mrb[0].mxu0 %v1139_v4  ;;  %v1161_v63 = vrot.slane %v1159_v53, 1  ;;  %v654_v4 = vrot.slane %v3581_v43, 1  ;;  %v1364_v53 = vld [vmem:[%s3434_s9 + $0x4] sm:$0xc] }
  0x28   : > { %1483 = vmatpush1.bf16.msra.mxu0 %v3132_v0  ;;  %416 = vmatprep.mubr.bf16.mxu1 %v3327_v2  ;;  %v1164_v0 = vrot.slane %v1162_v54, 2  ;;  %v3191_v54 = vld [vmem:[%s4207_s1 + $0x304] ss:$8 sps:$4 sm:$0xff]  }
  0x29   : > { %1484 = vmatprep.subr.bf16.mxu0 %v3137_v5  ;;  %1303 = vmatprep.mubr.bf16.mxu0 %v3327_v2  ;;  %v907_v5 = vrot.slane %v3553_v26, 1  ;;  %v3631_v14 = vsel %vm646_vm2, %v652_v34, %v654_v4  ;;  %v285_v34 = vshll.u32 %v3177_v19, 16 }
  0x2a   : > { %543 = vmatpush1.bf16.msra.mxu1 %v3139_v10  ;;  %v279_v10 = vrot.slane %v277_v57, 1  ;;  %v1165_v17 = vor.u32 %v1164_v0, %v1161_v63  ;;  %v1387_v63 = vrot.slane %v3478_v40, 2  ;;  %v3189_v0 = vld [vmem:[%s4207_s1 + $0x300] ss:$8 sps:$4 sm:$0xff]   ;;  %v3203_v40 = vld [vmem:[%s4207_s1 + $0x114] ss:$8 sps:$4 sm:$0xff]  }
  0x2b   : > { %544 = vmatprep.subr.bf16.mxu1 %v3148_v15  ;;  %v3636_v15 = vsel %vm646_vm2, %v905_v21, %v907_v5  ;;  %v3642_v20 = vsel %vm646_vm2, %v907_v5, %v909_v9  ;;  %v656_v21 = vrot.slane %v3177_v19, 1  ;;  %v287_v47 = vrot.slane %v285_v34, 1  ;;  %v3192_v5 = vld [vmem:[%s4207_s1 + $0x310] ss:$8 sps:$4 sm:$0xff]   ;;  %v3207_v19 = vld [vmem:[%s4207_s1 + $0x120] ss:$8 sps:$4 sm:$0xff]  }
  0x2c   : > { %1485 = vmatpush1.bf16.msra.mxu0 %v3135_v8  ;;  %v3170_v8 = vld [vmem:[%s4207_s1 + $0x2d4] ss:$8 sps:$4 sm:$0xff]  }
  0x2d   : > { %1486 = vmatprep.subr.bf16.mxu0 %v3145_v16  ;;  %v275_v16 = vor.u32 %v273_v55, %v271_v48  ;;  %v3178_v48 = vld [vmem:[%s4207_s1 + $0x60] ss:$8 sps:$4 sm:$0xff]   ;;  %v3772_v34 = vld [vmem:[%s3434_s9 + $0x10] sm:$0xff]  }
  0x2e   : > { %545 = vmatpush1.bf16.msra.mxu1 %v3146_v23  ;;  %v281_v23 = vshrl.u32 %v3581_v43, 16 }
  0x2f   : > { %417 = vmatmul.mubr.bf16.gmra.mrb[4].mxu1 %v264_v24  ;;  %1304 = vmatmul.mubr.bf16.gmra.mrb[4].mxu0 %v1148_v29  ;;  %v280_v29 = vsel %vm244_vm0, %v275_v16, %v279_v10 }
  0x30   : > { %1487 = vmatpush1.bf16.msra.mxu0 %v3143_v22  ;;  %426 = vmatprep.mubr.bf16.mxu1 %v3327_v2  ;;  %v3647_v22 = vld [vmem:[%s3434_s9 + $0x2c] ss:$0 sps:$4 sm:$0x33]   ;;  %v283_v46 = vor.u32 %v281_v23, %v279_v10 }
  0x31   : > { %1313 = vmatprep.mubr.bf16.mxu0 %v3327_v2  ;;  %1488 = vmatprep.subr.bf16.mxu0 %v3151_v30  ;;  %v1168_v24 = vshrl.u32 %v3647_v22, 16  ;;  %v1171_v25 = vshll.u32 %v3647_v22, 16  ;;  %v1166_v30 = vsel %vm1122_vm1, %v1156_v52, %v1165_v17  ;;  %v3187_v52 = vld [vmem:[%s4207_s1 + $0x74] ss:$8 sps:$4 sm:$0xff]  }
  0x32   : > { %546 = vmatprep.subr.bf16.mxu1 %v3155_v42  ;;  %v288_v55 = vsel %vm244_vm0, %v283_v46, %v287_v47  ;;  %v2126_v46 = vrot.slane %v3772_v34, 3 }
  0x33   : > { %547 = vmatpush1.bf16.msra.mxu1 %v3153_v37  ;;  %v3658_v37 = vsel %vm646_vm2, %v654_v4, %v656_v21  ;;  %v1173_v42 = vrot.slane %v1171_v25, 2  ;;  %v3195_v4 = vld [vmem:[%s4207_s1 + $0x100] ss:$8 sps:$4 sm:$0xff]   ;;  %v1391_v21 = vrot.slane %v3553_v26, 2  ;;  %v3215_v26 = vld [vmem:[%s4207_s1 + $0x344] ss:$8 sps:$4 sm:$0xff]  }
  0x34   : > { %1489 = vmatpush1.bf16.msra.mxu0 %v3149_v41  ;;  %548 = vmatprep.subr.bf16.mxu1 %v3159_v49  ;;  %v1170_v41 = vrot.slane %v1168_v24, 1  ;;  %v3212_v24 = vld [vmem:[%s4207_s1 + $0x134] ss:$8 sps:$4 sm:$0xff]  }
  0x35   : > { %1490 = vmatprep.subr.bf16.mxu0 %v3162_v50  ;;  %v3182_v50 = vld [vmem:[%s4207_s1 + $0x2f0] ss:$8 sps:$4 sm:$0xff]  }
  0x36   : > { %v1174_v49 = vor.u32 %v1173_v42, %v1170_v41  ;;  %v3219_v41 = vld [vmem:[%s4207_s1 + $0x350] ss:$8 sps:$4 sm:$0xff]   ;;  %v3224_v42 = vld [vmem:[%s4207_s1 + $0x154] ss:$8 sps:$4 sm:$0xff]  }
  0x37   : > { %427 = vmatmul.mubr.bf16.gmra.mrb[8].mxu1 %v272_v58  ;;  %1314 = vmatmul.mubr.bf16.gmra.mrb[8].mxu0 %v1157_v59  ;;  %v3185_v58 = vld [vmem:[%s4207_s1 + $0x70] ss:$8 sps:$4 sm:$0xff]   ;;  %v2748_v59 = vcombine.low %v1364_v53, %v3469_v35 }
  0x38   : > { %549 = vmatpush1.bf16.msra.mxu1 %v3157_v60  ;;  %1491 = vmatpush1.bf16.msra.mxu0 %v3160_v61  ;;  %v1175_v57 = vsel %vm1122_vm1, %v1165_v17, %v1174_v49  ;;  %v3197_v60 = vld [vmem:[%s4207_s1 + $0x104] ss:$8 sps:$4 sm:$0xff]   ;;  %v3204_v17 = vld [vmem:[%s4207_s1 + $0x330] ss:$8 sps:$4 sm:$0xff]  }
  0x39   : > { %436 = vmatprep.mubr.bf16.mxu1 %v3327_v2  ;;  %1323 = vmatprep.mubr.bf16.mxu0 %v3327_v2  ;;  %v1386_v61 = vrot.slane %v2748_v59, 2  ;;  %v1395_v59 = vrot.slane %v3647_v22, 2 }
  0x3a   : > { %550 = vmatprep.subr.bf16.mxu1 %v3166_v3  ;;  %1492 = vmatprep.subr.bf16.mxu0 %v3170_v8  ;;  %v3194_v3 = vld [vmem:[%s4207_s1 + $0x314] ss:$8 sps:$4 sm:$0xff]   ;;  %v625_v8 = vld [vmem:[%s3434_s9] sm:$0xe] }
  0x3b   : > { %v1388_v35 = vsel %vm1385_vm3, %v1386_v61, %v1387_v63  ;;  %v2644_v10 = vcombine.low %v625_v8, %v3450_v28  ;;  %v3209_v28 = vld [vmem:[%s4207_s1 + $0x124] ss:$8 sps:$4 sm:$0xff]   ;;  %v3236_v61 = vld [vmem:[%s4207_s1 + $0x174] ss:$8 sps:$4 sm:$0xff]  }
  0x3c   : > { %551 = vmatpush1.bf16.msra.mxu1 %v3164_v6  ;;  %1493 = vmatpush1.bf16.msra.mxu0 %v3168_v7  ;;  %v1389_v6 = vrot.slane %v3505_v62, 2  ;;  %v3201_v7 = vld [vmem:[%s4207_s1 + $0x110] ss:$8 sps:$4 sm:$0xff]   ;;  %v3198_v62 = vld [vmem:[%s4207_s1 + $0x320] ss:$8 sps:$4 sm:$0xff]  }
  0x3d   : > { %552 = vmatprep.subr.bf16.mxu1 %v3173_v12  ;;  %1494 = vmatprep.subr.bf16.mxu0 %v3176_v13  ;;  %v3206_v13 = vld [vmem:[%s4207_s1 + $0x334] ss:$8 sps:$4 sm:$0xff]   ;;  %v647_v16 = vrot.slane %v2644_v10, 1  ;;  %v3243_v10 = vld [vmem:[%s4207_s1 + $0x390] ss:$8 sps:$4 sm:$0xff]  }
  0x3e   : > { %v1390_v12 = vsel %vm1385_vm3, %v1387_v63, %v1389_v6  ;;  %v1392_v25 = vsel %vm1385_vm3, %v1389_v6, %v1391_v21  ;;  %v1586_v63 = vld [vmem:[%s3434_s9 + $0xc] sm:$0xf]  ;;  %v3255_v8 = vld [vmem:[%s4207_s1 + $0x194] ss:$8 sps:$4 sm:$0xff]  }
  0x3f   : > { %437 = vmatmul.mubr.bf16.gmra.mrb[12].mxu1 %v280_v29  ;;  %1324 = vmatmul.mubr.bf16.gmra.mrb[12].mxu0 %v1166_v30  ;;  %v3745_v23 = vsel %vm646_vm2, %v647_v16, %v648_v1  ;;  %v3213_v1 = vld [vmem:[%s4207_s1 + $0x340] ss:$8 sps:$4 sm:$0xff]   ;;  %v3218_v29 = vld [vmem:[%s4207_s1 + $0x144] ss:$8 sps:$4 sm:$0xff]   ;;  %v3221_v30 = vld [vmem:[%s4207_s1 + $0x354] ss:$8 sps:$4 sm:$0xff]  }
  0x40   : > { %553 = vmatpush1.bf16.msra.mxu1 %v3171_v33  ;;  %446 = vmatprep.mubr.bf16.mxu1 %v3327_v2  ;;  %v3216_v33 = vld [vmem:[%s4207_s1 + $0x140] ss:$8 sps:$4 sm:$0xff]   ;;  %v3253_v16 = vld [vmem:[%s4207_s1 + $0x190] ss:$8 sps:$4 sm:$0xff]  }
  0x41   : > { %1333 = vmatprep.mubr.bf16.mxu0 %v3327_v2  ;;  %1495 = vmatpush1.bf16.msra.mxu0 %v3174_v38  ;;  %v3775_v38 = vld [vmem:[%s3434_s9 + $0x18] sm:$0xff]  }
  0x42   : > { %554 = vmatprep.subr.bf16.mxu1 %v3180_v39  ;;  %1496 = vmatprep.subr.bf16.mxu0 %v3184_v45  ;;  %v1393_v39 = vrot.slane %v3594_v51, 2  ;;  %v3786_v45 = vld [vmem:[%s3434_s9 + $0x20] sm:$0xff]   ;;  %v2128_v47 = vrot.slane %v3775_v38, 3 }
  0x44   : > { %555 = vmatpush1.bf16.msra.mxu1 %v3178_v48  ;;  %v2130_v48 = vrot.slane %v3786_v45, 3  ;;  %v3799_v49 = vsel %vm2124_vm4, %v2126_v46, %v2128_v47  ;;  %v1396_v22 = vsel %vm1385_vm3, %v1393_v39, %v1395_v59  ;;  %v3284_v59 = vld [vmem:[%s4207_s1 + $0x1e4] ss:$8 sps:$4 sm:$0xff]  }
  0x45   : > { %556 = vmatprep.subr.bf16.mxu1 %v3187_v52  ;;  %1497 = vmatpush1.bf16.msra.mxu0 %v3182_v50  ;;  %v1394_v50 = vsel %vm1385_vm3, %v1391_v21, %v1393_v39  ;;  %v3222_v52 = vld [vmem:[%s4207_s1 + $0x150] ss:$8 sps:$4 sm:$0xff]   ;;  %v3266_v39 = vld [vmem:[%s4207_s1 + $0x3c0] ss:$8 sps:$4 sm:$0xff]  }
  0x46   : > { %1737 = vmatprep.subr.bf16.mxu0 %v3191_v54  ;;  %v3808_v53 = vsel %vm2124_vm4, %v2128_v47, %v2130_v48  ;;  %v3225_v54 = vld [vmem:[%s4207_s1 + $0x360] ss:$8 sps:$4 sm:$0xff]  }
  0x47   : > { %447 = vmatmul.mubr.bf16.gmra.mrb[16].mxu1 %v288_v55  ;;  %1334 = vmatmul.mubr.bf16.gmra.mrb[16].mxu0 %v1175_v57  ;;  %v3230_v55 = vld [vmem:[%s4207_s1 + $0x164] ss:$8 sps:$4 sm:$0xff]   ;;  %v3233_v57 = vld [vmem:[%s4207_s1 + $0x374] ss:$8 sps:$4 sm:$0xff]   ;;  %v3269_v47 = vld [vmem:[%s4207_s1 + $0x1c0] ss:$8 sps:$4 sm:$0xff]  }
  0x48   : > { %557 = vmatpush1.bf16.msra.mxu1 %v3185_v58  ;;  %574 = vmatprep.mubr.bf16.mxu1 %v3327_v2  ;;  %v3228_v58 = vld [vmem:[%s4207_s1 + $0x160] ss:$8 sps:$4 sm:$0xff]  }
  0x49   : > { %1514 = vmatprep.mubr.bf16.mxu0 %v3327_v2  ;;  %743 = vmatprep.subr.bf16.mxu1 %v3197_v60  ;;  %v3231_v60 = vld [vmem:[%s4207_s1 + $0x370] ss:$8 sps:$4 sm:$0xff]  }
  0x4f   : > { %575 = vmatmul.mubr.bf16.vlgmr.msra.gmra.mrb[0].mxu1 %v3459_v31  ;;  %1515 = vmatmul.mubr.bf16.vlgmr.msra.gmra.mrb[0].mxu0 %v1388_v35  ;;  %v3200_v31 = vld [vmem:[%s4207_s1 + $0x324] ss:$8 sps:$4 sm:$0xff]  }
  0x50   : > { %1738 = vmatpush1.bf16.msra.mxu0 %v3189_v0  ;;  %584 = vmatprep.mubr.bf16.mxu1 %v3327_v2  ;;  %v3242_v35 = vld [vmem:[%s4207_s1 + $0x384] ss:$8 sps:$4 sm:$0xff]   ;;  %v3234_v0 = vld [vmem:[%s4207_s1 + $0x170] ss:$8 sps:$4 sm:$0xff]  }
  0x51   : > { %1739 = vmatprep.subr.bf16.mxu0 %v3194_v3  ;;  %1524 = vmatprep.mubr.bf16.mxu0 %v3327_v2 }
  0x52   : > { %744 = vmatpush1.bf16.msra.mxu1 %v3195_v4  ;;  %v3248_v4 = vld [vmem:[%s4207_s1 + $0x184] ss:$8 sps:$4 sm:$0xff]  }
  0x53   : > { %745 = vmatprep.subr.bf16.mxu1 %v3203_v40 }
  0x54   : > { %1740 = vmatpush1.bf16.msra.mxu0 %v3192_v5  ;;  %v1642_v5 = vrot.slane %v3772_v34, 2 }
  0x55   : > { %1741 = vmatprep.subr.bf16.mxu0 %v3200_v31  ;;  %v3240_v31 = vld [vmem:[%s4207_s1 + $0x380] ss:$8 sps:$4 sm:$0xff]  }
  0x56   : > { %746 = vmatpush1.bf16.msra.mxu1 %v3201_v7  ;;  %v3246_v7 = vld [vmem:[%s4207_s1 + $0x180] ss:$8 sps:$4 sm:$0xff]  }
  0x57   : > { %585 = vmatmul.mubr.bf16.gmra.mrb[4].mxu1 %v3462_v32  ;;  %1525 = vmatmul.mubr.bf16.gmra.mrb[4].mxu0 %v1390_v12  ;;  %v3210_v32 = vld [vmem:[%s4207_s1 + $0x130] ss:$8 sps:$4 sm:$0xff]   ;;  %v1644_v12 = vrot.slane %v3775_v38, 2 }
  0x58   : > { %1742 = vmatpush1.bf16.msra.mxu0 %v3198_v62  ;;  %594 = vmatprep.mubr.bf16.mxu1 %v3327_v2  ;;  %v3252_v62 = vld [vmem:[%s4207_s1 + $0x3a4] ss:$8 sps:$4 sm:$0xff]  }
  0x59   : > { %1534 = vmatprep.mubr.bf16.mxu0 %v3327_v2  ;;  %1743 = vmatprep.subr.bf16.mxu0 %v3206_v13  ;;  %v2103_v13 = vld [vmem:[%s3434_s9 + $0x8] sm:$0x8] }
  0x5a   : > { %747 = vmatprep.subr.bf16.mxu1 %v3209_v28  ;;  %v1645_v28 = vsel %vm1385_vm3, %v1642_v5, %v1644_v12 }
  0x5b   : > { %748 = vmatpush1.bf16.msra.mxu1 %v3207_v19  ;;  %v3250_v19 = vld [vmem:[%s4207_s1 + $0x3a0] ss:$8 sps:$4 sm:$0xff]  }
  0x5c   : > { %1744 = vmatpush1.bf16.msra.mxu0 %v3204_v17  ;;  %749 = vmatprep.subr.bf16.mxu1 %v3212_v24  ;;  %v2852_v17 = vcombine.low %v2103_v13, %v1586_v63  ;;  %v3261_v24 = vld [vmem:[%s4207_s1 + $0x1a4] ss:$8 sps:$4 sm:$0xff]  }
  0x5d   : > { %1745 = vmatprep.subr.bf16.mxu0 %v3215_v26 }
  0x5e   : > { %v2125_v21 = vrot.slane %v2852_v17, 3  ;;  %v3297_v17 = vld [vmem:[%s4207_s1 + $0x414] ss:$8 sps:$4 sm:$0xff]  }
  0x5f   : > { %595 = vmatmul.mubr.bf16.gmra.mrb[8].mxu1 %v3497_v56  ;;  %1535 = vmatmul.mubr.bf16.gmra.mrb[8].mxu0 %v1392_v25  ;;  %v3227_v56 = vld [vmem:[%s4207_s1 + $0x364] ss:$8 sps:$4 sm:$0xff]   ;;  %v1646_v25 = vrot.slane %v3786_v45, 2 }
  0x60   : > { %750 = vmatpush1.bf16.msra.mxu1 %v3210_v32  ;;  %1746 = vmatpush1.bf16.msra.mxu0 %v3213_v1  ;;  %v3891_v26 = vsel %vm2124_vm4, %v2125_v21, %v2126_v46  ;;  %v3259_v32 = vld [vmem:[%s4207_s1 + $0x1a0] ss:$8 sps:$4 sm:$0xff]   ;;  %v3256_v1 = vld [vmem:[%s4207_s1 + $0x3b0] ss:$8 sps:$4 sm:$0xff]   ;;  %v3275_v46 = vld [vmem:[%s4207_s1 + $0x3d4] ss:$8 sps:$4 sm:$0xff]  }
  0x61   : > { %604 = vmatprep.mubr.bf16.mxu1 %v3327_v2  ;;  %1544 = vmatprep.mubr.bf16.mxu0 %v3327_v2  ;;  %v1892_v21 = vshll.u32 %v3786_v45, 16 }
  0x62   : > { %751 = vmatprep.subr.bf16.mxu1 %v3218_v29  ;;  %1747 = vmatprep.subr.bf16.mxu0 %v3221_v30  ;;  %v3265_v29 = vld [vmem:[%s4207_s1 + $0x1b4] ss:$8 sps:$4 sm:$0xff]   ;;  %v1647_v30 = vsel %vm1385_vm3, %v1644_v12, %v1646_v25  ;;  %v1883_v12 = vshll.u32 %v3775_v38, 16 }
  0x64   : > { %752 = vmatpush1.bf16.msra.mxu1 %v3216_v33  ;;  %1748 = vmatpush1.bf16.msra.mxu0 %v3219_v41  ;;  %v3263_v33 = vld [vmem:[%s4207_s1 + $0x1b0] ss:$8 sps:$4 sm:$0xff]   ;;  %v3917_v41 = vld [vmem:[%s3434_s9 + $0x28] sm:$0xff]  }
  0x65   : > { %753 = vmatprep.subr.bf16.mxu1 %v3224_v42  ;;  %1749 = vmatprep.subr.bf16.mxu0 %v3227_v56  ;;  %v3271_v42 = vld [vmem:[%s4207_s1 + $0x1c4] ss:$8 sps:$4 sm:$0xff]   ;;  %v1648_v56 = vrot.slane %v3917_v41, 2 }
  0x67   : > { %605 = vmatmul.mubr.bf16.gmra.mrb[12].mxu1 %v3539_v18  ;;  %1545 = vmatmul.mubr.bf16.gmra.mrb[12].mxu0 %v1394_v50  ;;  %v1585_v18 = vld [vmem:[%s3434_s9 + $0x8] sm:$0xc]  ;;  %v3273_v50 = vld [vmem:[%s4207_s1 + $0x3d0] ss:$8 sps:$4 sm:$0xff]  }
  0x68   : > { %754 = vmatpush1.bf16.msra.mxu1 %v3222_v52  ;;  %614 = vmatprep.mubr.bf16.mxu1 %v3327_v2  ;;  %v3841_v3 = vcombine.low %v1585_v18, %v1586_v63  ;;  %v3281_v52 = vld [vmem:[%s4207_s1 + $0x3e4] ss:$8 sps:$4 sm:$0xff]   ;;  %v3282_v18 = vld [vmem:[%s4207_s1 + $0x1e0] ss:$8 sps:$4 sm:$0xff]  }
  0x69   : > { %1554 = vmatprep.mubr.bf16.mxu0 %v3327_v2  ;;  %1750 = vmatpush1.bf16.msra.mxu0 %v3225_v54  ;;  %v1649_v54 = vsel %vm1385_vm3, %v1646_v25, %v1648_v56  ;;  %v3303_v25 = vld [vmem:[%s4207_s1 + $0x434] ss:$8 sps:$4 sm:$0xff]  }
  0x6a   : > { %755 = vmatprep.subr.bf16.mxu1 %v3230_v55  ;;  %1751 = vmatprep.subr.bf16.mxu0 %v3233_v57  ;;  %v1641_v40 = vrot.slane %v3841_v3, 2  ;;  %v3276_v55 = vld [vmem:[%s4207_s1 + $0x1d0] ss:$8 sps:$4 sm:$0xff]  }
  0x6b   : > { %v3285_v57 = vld [vmem:[%s3434_s9 + $0x30] ss:$0 sps:$4 sm:$0x33]  }
  0x6c   : > { %756 = vmatpush1.bf16.msra.mxu1 %v3228_v58  ;;  %v1643_v6 = vsel %vm1385_vm3, %v1641_v40, %v1642_v5  ;;  %v3279_v58 = vld [vmem:[%s4207_s1 + $0x3e0] ss:$8 sps:$4 sm:$0xff]   ;;  %v1650_v63 = vrot.slane %v3285_v57, 2  ;;  %v3289_v5 = vld [vmem:[%s4207_s1 + $0x1f0] ss:$8 sps:$4 sm:$0xff]  }
  0x6d   : > { %757 = vmatprep.subr.bf16.mxu1 %v3236_v61  ;;  %1752 = vmatpush1.bf16.msra.mxu0 %v3231_v60  ;;  %v3288_v60 = vld [vmem:[%s4207_s1 + $0x3f4] ss:$8 sps:$4 sm:$0xff]   ;;  %v1863_v61 = vshrl.u32 %v3841_v3, 16  ;;  %v3312_v57 = vld [vmem:[%s4207_s1 + $0x464] ss:$8 sps:$4 sm:$0xff]  }
  0x6e   : > { %2000 = vmatprep.subr.bf16.mxu0 %v3242_v35  ;;  %v1866_v35 = vshll.u32 %v3841_v3, 16  ;;  %v3294_v3 = vld [vmem:[%s4207_s1 + $0x404] ss:$8 sps:$4 sm:$0xff]  }
  0x6f   : > { %615 = vmatmul.mubr.bf16.gmra.mrb[16].mxu1 %v3581_v43  ;;  %1555 = vmatmul.mubr.bf16.gmra.mrb[16].mxu0 %v1396_v22  ;;  %v3245_v43 = vld [vmem:[%s4207_s1 + $0x394] ss:$8 sps:$4 sm:$0xff]   ;;  %v1871_v22 = vshrl.u32 %v3772_v34, 16  ;;  %v1865_v40 = vrot.slane %v1863_v61, 2  ;;  %v3310_v61 = vld [vmem:[%s4207_s1 + $0x460] ss:$8 sps:$4 sm:$0xff]  }
  0x70   : > { %758 = vmatpush1.bf16.msra.mxu1 %v3234_v0  ;;  %775 = vmatprep.mubr.bf16.mxu1 %v3327_v2  ;;  %v1874_v0 = vshll.u32 %v3772_v34, 16  ;;  %v1651_v34 = vsel %vm1385_vm3, %v1648_v56, %v1650_v63  ;;  %v3314_v56 = vld [vmem:[%s3434_s9 + $0x30] ss:$0 sps:$4 sm:$0x77]  }
  0x71   : > { %1769 = vmatprep.mubr.bf16.mxu0 %v3327_v2  ;;  %998 = vmatprep.subr.bf16.mxu1 %v3248_v4  ;;  %v3291_v4 = vld [vmem:[%s4207_s1 + $0x1f4] ss:$8 sps:$4 sm:$0xff]  }
  0x77   : > { %776 = vmatmul.mubr.bf16.vlgmr.msra.gmra.mrb[0].mxu1 %v3745_v23  ;;  %1770 = vmatmul.mubr.bf16.vlgmr.msra.gmra.mrb[0].mxu0 %v1643_v6  ;;  %v3258_v23 = vld [vmem:[%s4207_s1 + $0x3b4] ss:$8 sps:$4 sm:$0xff]   ;;  %v1868_v6 = vrot.slane %v1866_v35, 3 }
  0x78   : > { %2001 = vmatpush1.bf16.msra.mxu0 %v3240_v31  ;;  %785 = vmatprep.mubr.bf16.mxu1 %v3327_v2  ;;  %v1873_v31 = vrot.slane %v1871_v22, 2  ;;  %v3315_v22 = vld [vmem:[%s4207_s1 + $0x470] ss:$8 sps:$4 sm:$0xff]  }
  0x79   : > { %2002 = vmatprep.subr.bf16.mxu0 %v3245_v43  ;;  %1779 = vmatprep.mubr.bf16.mxu0 %v3327_v2  ;;  %v1876_v43 = vrot.slane %v1874_v0, 3 }
  0x7a   : > { %999 = vmatpush1.bf16.msra.mxu1 %v3246_v7  ;;  %v1869_v7 = vor.u32 %v1868_v6, %v1865_v40 }
  0x7b   : > { %1000 = vmatprep.subr.bf16.mxu1 %v3255_v8  ;;  %v1877_v8 = vor.u32 %v1876_v43, %v1873_v31 }
  0x7c   : > { %2003 = vmatpush1.bf16.msra.mxu0 %v3243_v10  ;;  %v1880_v10 = vshrl.u32 %v3775_v38, 16  ;;  %v3295_v38 = vld [vmem:[%s4207_s1 + $0x410] ss:$8 sps:$4 sm:$0xff]  }
  0x7d   : > { %2004 = vmatprep.subr.bf16.mxu0 %v3252_v62  ;;  %v1878_v62 = vsel %vm1861_vm5, %v1869_v7, %v1877_v8 }
  0x7e   : > { %1001 = vmatpush1.bf16.msra.mxu1 %v3253_v16  ;;  %v1882_v13 = vrot.slane %v1880_v10, 2  ;;  %v1885_v16 = vrot.slane %v1883_v12, 3 }
  0x7f   : > { %786 = vmatmul.mubr.bf16.gmra.mrb[4].mxu1 %v3528_v11  ;;  %1780 = vmatmul.mubr.bf16.gmra.mrb[4].mxu0 %v1645_v28  ;;  %v3268_v11 = vld [vmem:[%s4207_s1 + $0x3c4] ss:$8 sps:$4 sm:$0xff]  }
  0x80   : > { %2005 = vmatpush1.bf16.msra.mxu0 %v3250_v19  ;;  %795 = vmatprep.mubr.bf16.mxu1 %v3327_v2  ;;  %v1886_v28 = vor.u32 %v1885_v16, %v1882_v13  ;;  %v1889_v19 = vshrl.u32 %v3786_v45, 16 }
  0x81   : > { %1789 = vmatprep.mubr.bf16.mxu0 %v3327_v2  ;;  %2006 = vmatprep.subr.bf16.mxu0 %v3258_v23 }
  0x82   : > { %1002 = vmatprep.subr.bf16.mxu1 %v3261_v24  ;;  %v1887_v23 = vsel %vm1861_vm5, %v1877_v8, %v1886_v28  ;;  %v3298_v24 = vld [vmem:[%s4207_s1 + $0x420] ss:$8 sps:$4 sm:$0xff]  }
  0x83   : > { %1003 = vmatpush1.bf16.msra.mxu1 %v3259_v32  ;;  %v1891_v32 = vrot.slane %v1889_v19, 2 }
  0x84   : > { %2007 = vmatpush1.bf16.msra.mxu0 %v3256_v1  ;;  %1004 = vmatprep.subr.bf16.mxu1 %v3265_v29  ;;  %v1894_v1 = vrot.slane %v1892_v21, 3  ;;  %v1898_v29 = vshrl.u32 %v3917_v41, 16 }
  0x85   : > { %2008 = vmatprep.subr.bf16.mxu0 %v3268_v11  ;;  %v3301_v11 = vld [vmem:[%s4207_s1 + $0x430] ss:$8 sps:$4 sm:$0xff]  }
  0x87   : > { %796 = vmatmul.mubr.bf16.gmra.mrb[8].mxu1 %v3584_v44  ;;  %1790 = vmatmul.mubr.bf16.gmra.mrb[8].mxu0 %v1647_v30  ;;  %v3278_v44 = vld [vmem:[%s4207_s1 + $0x1d4] ss:$8 sps:$4 sm:$0xff]   ;;  %v1895_v30 = vor.u32 %v1894_v1, %v1891_v32 }
  0x88   : > { %1005 = vmatpush1.bf16.msra.mxu1 %v3263_v33  ;;  %2009 = vmatpush1.bf16.msra.mxu0 %v3266_v39  ;;  %v1901_v33 = vshll.u32 %v3917_v41, 16  ;;  %v1900_v39 = vrot.slane %v1898_v29, 2 }
  0x89   : > { %805 = vmatprep.mubr.bf16.mxu1 %v3327_v2  ;;  %1799 = vmatprep.mubr.bf16.mxu0 %v3327_v2 }
  0x8a   : > { %1006 = vmatprep.subr.bf16.mxu1 %v3271_v42  ;;  %2010 = vmatprep.subr.bf16.mxu0 %v3275_v46  ;;  %v1896_v42 = vsel %vm1861_vm5, %v1886_v28, %v1895_v30  ;;  %v3304_v46 = vld [vmem:[%s4207_s1 + $0x440] ss:$8 sps:$4 sm:$0xff]  }
  0x8c   : > { %1007 = vmatpush1.bf16.msra.mxu1 %v3269_v47  ;;  %2011 = vmatpush1.bf16.msra.mxu0 %v3273_v50  ;;  %v1903_v47 = vrot.slane %v1901_v33, 3  ;;  %v3309_v50 = vld [vmem:[%s4207_s1 + $0x454] ss:$8 sps:$4 sm:$0xff]  }
  0x8d   : > { %1008 = vmatprep.subr.bf16.mxu1 %v3278_v44  ;;  %2012 = vmatprep.subr.bf16.mxu0 %v3281_v52  ;;  %v3307_v52 = vld [vmem:[%s4207_s1 + $0x450] ss:$8 sps:$4 sm:$0xff]  }
  0x8e   : > { %v1904_v44 = vor.u32 %v1903_v47, %v1900_v39  ;;  %v2869_v47 = vld [vmem:[%s4208_s2 + $0x1] ss:$4 sm:$0x3] }
  0x8f   : > { %806 = vmatmul.mubr.bf16.gmra.mrb[12].mxu1 %v3631_v14  ;;  %1800 = vmatmul.mubr.bf16.gmra.mrb[12].mxu0 %v1649_v54  ;;  %v3286_v14 = vld [vmem:[%s4207_s1 + $0x3f0] ss:$8 sps:$4 sm:$0xff]   ;;  %v1907_v54 = vshrl.u32 %v3314_v56, 16 }
  0x90   : > { %1009 = vmatpush1.bf16.msra.mxu1 %v3276_v55  ;;  %815 = vmatprep.mubr.bf16.mxu1 %v3327_v2  ;;  %v1910_v55 = vshll.u32 %v3314_v56, 16 }
  0x91   : > { %1809 = vmatprep.mubr.bf16.mxu0 %v3327_v2  ;;  %2013 = vmatpush1.bf16.msra.mxu0 %v3279_v58  ;;  %v3313_v58 = vld [vmem:[%s3434_s9 + $0x2c] ss:$0 sps:$4 sm:$0x11]  }
  0x92   : > { %1010 = vmatprep.subr.bf16.mxu1 %v3284_v59  ;;  %2014 = vmatprep.subr.bf16.mxu0 %v3288_v60  ;;  %v1909_v59 = vrot.slane %v1907_v54, 2  ;;  %v1912_v60 = vrot.slane %v1910_v55, 3  ;;  %v911_v63 = vrot.slane %v3313_v58, 1 }
  0x94   : > { %1011 = vmatpush1.bf16.msra.mxu1 %v3282_v18  ;;  %v3317_v18 = vld [vmem:[%s4207_s1 + $0x474] ss:$8 sps:$4 sm:$0xff]   ;;  %v1913_v35 = vor.u32 %v1912_v60, %v1909_v59  ;;  %v912_v0 = vsel %vm646_vm2, %v909_v9, %v911_v63  ;;  %v2134_v9 = vrot.slane %v3314_v56, 3  ;;  %v2870_v56 = vld [vmem:[%s4208_s2 + $0x2] ss:$4 sm:$0x3] }
  0x95   : > { %1012 = vmatprep.subr.bf16.mxu1 %v3291_v4  ;;  %2015 = vmatpush1.bf16.msra.mxu0 %v3286_v14  ;;  %v2132_v14 = vrot.slane %v3917_v41, 3 }
  0x96   : > { %2221 = vmatprep.subr.bf16.mxu0 %v3294_v3 }
  0x97   : > { %816 = vmatmul.mubr.bf16.gmra.mrb[16].mxu1 %v3658_v37  ;;  %1810 = vmatmul.mubr.bf16.gmra.mrb[16].mxu0 %v1651_v34  ;;  %v3292_v37 = vld [vmem:[%s4207_s1 + $0x400] ss:$8 sps:$4 sm:$0xff]   ;;  %v2133_v51 = vsel %vm2124_vm4, %v2130_v48, %v2132_v14  ;;  %v2135_v4 = vsel %vm2124_vm4, %v2132_v14, %v2134_v9 }
  0x98   : > { %1013 = vmatpush1.bf16.msra.mxu1 %v3289_v5  ;;  %1030 = vmatprep.mubr.bf16.mxu1 %v3327_v2 }
  0x99   : > { %2032 = vmatprep.mubr.bf16.mxu0 %v3327_v2  ;;  %2893 = vmatprep.subr.bf16.mxu1 %v3294_v3 }
  0x9f   : > { %1031 = vmatmul.mubr.bf16.vlgmr.msra.gmra.mrb[0].mxu1 %v3556_v27  ;;  %2033 = vmatmul.mubr.bf16.vlgmr.msra.gmra.mrb[0].mxu0 %v1878_v62  ;;  %v3300_v27 = vld [vmem:[%s4207_s1 + $0x424] ss:$8 sps:$4 sm:$0xff]  }
  0xa0   : > { %2222 = vmatpush1.bf16.msra.mxu0 %v3292_v37  ;;  %1040 = vmatprep.mubr.bf16.mxu1 %v3327_v2 }
  0xa1   : > { %2223 = vmatprep.subr.bf16.mxu0 %v3297_v17  ;;  %2042 = vmatprep.mubr.bf16.mxu0 %v3327_v2 }
  0xa2   : > { %2901 = vmatpush1.bf16.msra.mxu1 %v3292_v37 }
  0xa3   : > { %2894 = vmatprep.subr.bf16.mxu1 %v3297_v17 }
  0xa4   : > { %2224 = vmatpush1.bf16.msra.mxu0 %v3295_v38 }
  0xa5   : > { %2225 = vmatprep.subr.bf16.mxu0 %v3300_v27 }
  0xa6   : > { %2902 = vmatpush1.bf16.msra.mxu1 %v3295_v38  ;;  %v2330_v38 = vlaneseq }
  0xa7   : > { %1041 = vmatmul.mubr.bf16.gmra.mrb[4].mxu1 %v3567_v36  ;;  %2043 = vmatmul.mubr.bf16.gmra.mrb[4].mxu0 %v1887_v23  ;;  %v3306_v36 = vld [vmem:[%s4207_s1 + $0x444] ss:$8 sps:$4 sm:$0xff]  }
  0xa8   : > { %2226 = vmatpush1.bf16.msra.mxu0 %v3298_v24  ;;  %1050 = vmatprep.mubr.bf16.mxu1 %v3327_v2  ;;  %v2331_v19 = vshrl.u32 %v2330_v38, 7 }
  0xa9   : > { %2052 = vmatprep.mubr.bf16.mxu0 %v3327_v2  ;;  %2227 = vmatprep.subr.bf16.mxu0 %v3303_v25 }
  0xaa   : > { %2895 = vmatprep.subr.bf16.mxu1 %v3300_v27 }
  0xab   : > { %2903 = vmatpush1.bf16.msra.mxu1 %v3298_v24 }
  0xac   : > { %2228 = vmatpush1.bf16.msra.mxu0 %v3301_v11  ;;  %2896 = vmatprep.subr.bf16.mxu1 %v3303_v25 }
  0xad   : > { %2229 = vmatprep.subr.bf16.mxu0 %v3306_v36 }
  0xaf   : > { %1051 = vmatmul.mubr.bf16.gmra.mrb[8].mxu1 %v3636_v15  ;;  %2053 = vmatmul.mubr.bf16.gmra.mrb[8].mxu0 %v1896_v42  ;;  %v1905_v15 = vsel %vm1861_vm5, %v1895_v30, %v1904_v44  ;;  %v2324_v42 = vld [vmem:[%s4208_s2] ss:$4 sm:$0x3] }
  0xb0   : > { %2904 = vmatpush1.bf16.msra.mxu1 %v3301_v11  ;;  %2230 = vmatpush1.bf16.msra.mxu0 %v3304_v46 }
  0xb1   : > { %1060 = vmatprep.mubr.bf16.mxu1 %v3327_v2  ;;  %2062 = vmatprep.mubr.bf16.mxu0 %v3327_v2 }
  0xb2   : > { %2897 = vmatprep.subr.bf16.mxu1 %v3306_v36  ;;  %2231 = vmatprep.subr.bf16.mxu0 %v3309_v50  ;;  %v2332_v36 = vsub.s32 0, %v2331_v19 }
  0xb4   : > { %2905 = vmatpush1.bf16.msra.mxu1 %v3304_v46  ;;  %2232 = vmatpush1.bf16.msra.mxu0 %v3307_v52  ;;  %v2336_v46 = vsub.s32 1, %v2331_v19 }
  0xb5   : > { %2898 = vmatprep.subr.bf16.mxu1 %v3309_v50  ;;  %2233 = vmatprep.subr.bf16.mxu0 %v3312_v57  ;;  %v4102_v50 = vrot.slane %v2324_v42, %v2332_v36 }
  0xb6   : > { %v4104_v54 = vrot.slane %v2324_v42, %v2336_v46  ;;  %v4108_v59 = vrot.slane %v2869_v47, %v2336_v46  ;;  %v4112_v63 = vrot.slane %v2870_v56, %v2336_v46 }
  0xb7   : > { %1061 = vmatmul.mubr.bf16.gmra.mrb[12].mxu1 %v3642_v20  ;;  %2063 = vmatmul.mubr.bf16.gmra.mrb[12].mxu0 %v1905_v15  ;;  %v1914_v20 = vsel %vm1861_vm5, %v1904_v44, %v1913_v35 }
  0xb8   : > { %2906 = vmatpush1.bf16.msra.mxu1 %v3307_v52  ;;  %1070 = vmatprep.mubr.bf16.mxu1 %v3327_v2 }
  0xb9   : > { %2072 = vmatprep.mubr.bf16.mxu0 %v3327_v2  ;;  %2234 = vmatpush1.bf16.msra.mxu0 %v3310_v61 }
  0xba   : > { %2899 = vmatprep.subr.bf16.mxu1 %v3312_v57  ;;  %2235 = vmatprep.subr.bf16.mxu0 %v3317_v18  ;;  %v4106_v57 = vrot.slane %v2869_v47, %v2332_v36 }
  0xbc   : > { %2907 = vmatpush1.bf16.msra.mxu1 %v3310_v61  ;;  %v4110_v61 = vrot.slane %v2870_v56, %v2332_v36 }
  0xbd   : > { %2900 = vmatprep.subr.bf16.mxu1 %v3317_v18  ;;  %2236 = vmatpush1.bf16.msra.mxu0 %v3315_v22 }
  0xbf   : > { %1071 = vmatmul.mubr.bf16.gmra.mrb[16].mxu1 %v912_v0  ;;  %2073 = vmatmul.mubr.bf16.gmra.mrb[16].mxu0 %v1914_v20 }
  0xc0   : > { %2908 = vmatpush1.bf16.msra.mxu1 %v3315_v22  ;;  %2253 = vmatprep.mubr.bf16.mxu0 %v3327_v2 }
  0xc1   : > { %2283 = vmatprep.mubr.bf16.mxu1 %v3327_v2 }
  0xc7   : > { %2254 = vmatmul.mubr.bf16.vlgmr.msra.gmra.mrb[0].mxu0 %v3891_v26  ;;  %2284 = vmatmul.mubr.bf16.vlgmr.msra.gmra.mrb[20].mxu1 %v2133_v51 }
  0xc8   : > { %2263 = vmatprep.mubr.bf16.mxu0 %v3327_v2  ;;  %2293 = vmatprep.mubr.bf16.mxu1 %v3327_v2 }
  0xcf   : > { %2264 = vmatmul.mubr.bf16.gmra.mrb[4].mxu0 %v3799_v49  ;;  %2294 = vmatmul.mubr.bf16.gmra.mrb[24].mxu1 %v2135_v4 }
  0xd0   : > { %2273 = vmatprep.mubr.bf16.mxu0 %v3327_v2 }
  0xd7   : > { %2274 = vmatmul.mubr.bf16.gmra.mrb[8].mxu0 %v3808_v53 }
 0x172   : > { %v1032_v45 = vpop.f32.mrb[0].mxu1 }
 0x173   : > { %v1034_v41 = vpop.f32.mrb[1].mxu1 }
 0x174   : > { %v1036_v48 = vpop.f32.mrb[2].mxu1 }
 0x175   : > { %v4067_v3 = vpop.f32.mrb[3].mxu1 }
 0x17a   : > { %v4069_v26 = vpop.f32.mrb[4].mxu1 }
 0x17b   : > { %v4071_v40 = vpop.f32.mrb[5].mxu1 }
 0x17c   : > { %v4073_v34 = vpop.f32.mrb[6].mxu1 }
 0x17d   : > { %v4075_v5 = vpop.f32.mrb[7].mxu1 }
 0x182   : > { %v4077_v6 = vpop.f32.mrb[8].mxu1 }
 0x183   : > { %v4079_v49 = vpop.f32.mrb[9].mxu1 }
 0x184   : > { %v4081_v2 = vpop.f32.mrb[10].mxu1 }
 0x185   : > { %v4083_v53 = vpop.f32.mrb[11].mxu1 }
 0x18a   : > { %v1062_v31 = vpop.f32.mrb[12].mxu1  ;;  %v2064_v43 = vpop.f32.mrb[12].mxu0 }
 0x18b   : > { %v2921_v7 = vadd.f32 %v2064_v43, %v1062_v31  ;;  %v1064_v8 = vpop.f32.mrb[13].mxu1  ;;  %v2066_v10 = vpop.f32.mrb[13].mxu0 }
 0x18c   : > { %v2923_v12 = vadd.f32 %v2066_v10, %v1064_v8  ;;  %v1066_v62 = vpop.f32.mrb[14].mxu1  ;;  %v2068_v37 = vpop.f32.mrb[14].mxu0 }
 0x18d   : > { %v2925_v13 = vadd.f32 %v2068_v37, %v1066_v62  ;;  %v1068_v16 = vpop.f32.mrb[15].mxu1  ;;  %v2070_v17 = vpop.f32.mrb[15].mxu0 }
 0x18e   : > { %v2927_v28 = vadd.f32 %v2070_v17, %v1068_v16 }
 0x192   : > { %v1072_v21 = vpop.f32.mrb[16].mxu1  ;;  %v2074_v27 = vpop.f32.mrb[16].mxu0 }
 0x193   : > { %v4085_v23 = vadd.f32 %v2074_v27, %v1072_v21  ;;  %v1074_v24 = vpop.f32.mrb[17].mxu1  ;;  %v2076_v32 = vpop.f32.mrb[17].mxu0 }
 0x194   : > { %v4087_v1 = vadd.f32 %v2076_v32, %v1074_v24  ;;  %v1076_v25 = vpop.f32.mrb[18].mxu1  ;;  %v2078_v29 = vpop.f32.mrb[18].mxu0 }
 0x195   : > { %v4089_v11 = vadd.f32 %v2078_v29, %v1076_v25  ;;  %v1078_v30 = vpop.f32.mrb[19].mxu1  ;;  %v2080_v33 = vpop.f32.mrb[19].mxu0 }
 0x196   : > { %v4091_v39 = vadd.f32 %v2080_v33, %v1078_v30 }
 0x19a   : > { %v2255_v44 = vpop.f32.mrb[0].mxu0  ;;  %v2285_v52 = vpop.f32.mrb[20].mxu1 }
 0x19b   : > { %v2909_v55 = vadd.f32 %v2255_v44, %v1032_v45  ;;  %v2922_v15 = vadd.f32 %v2921_v7, %v2285_v52  ;;  %v2257_v58 = vpop.f32.mrb[1].mxu0  ;;  %v2287_v60 = vpop.f32.mrb[21].mxu1 }
 0x19c   : > { %v2910_v18 = vadd.f32 %v2257_v58, %v1034_v41  ;;  %v2924_v35 = vadd.f32 %v2923_v12, %v2287_v60  ;;  %v2259_v22 = vpop.f32.mrb[2].mxu0  ;;  %v2289_v0 = vpop.f32.mrb[22].mxu1 }
 0x19d   : > { %v2340_v20 = vadd.f32 %v2909_v55, %v4102_v50  ;;  %v2352_v14 = vadd.f32 %v2922_v15, %v4102_v50  ;;  %v2911_v51 = vadd.f32 %v2259_v22, %v1036_v48  ;;  %v2926_v9 = vadd.f32 %v2925_v13, %v2289_v0  ;;  %v2261_v4 = vpop.f32.mrb[3].mxu0  ;;  %v2291_v45 = vpop.f32.mrb[23].mxu1 }
 0x19e   : > { %v2341_v31 = vadd.f32 %v2910_v18, %v4104_v54  ;;  %v2353_v43 = vadd.f32 %v2924_v35, %v4104_v54  ;;  %v2912_v41 = vadd.f32 %v2261_v4, %v4067_v3  ;;  %v2928_v7 = vadd.f32 %v2927_v28, %v2291_v45 }
 0x19f   : > { %v2360_v8 = vmax.f32 %v2340_v20, 0.0  ;;  %v2372_v10 = vmax.f32 %v2352_v14, 0.0  ;;  %v2342_v12 = vadd.f32 %v2911_v51, %v4102_v50  ;;  %v2354_v62 = vadd.f32 %v2926_v9, %v4102_v50 }
 0x1a0   : > { %v2361_v37 = vmax.f32 %v2341_v31, 0.0  ;;  %v2373_v16 = vmax.f32 %v2353_v43, 0.0  ;;  %v2343_v48 = vadd.f32 %v2912_v41, %v4104_v54  ;;  %v2355_v13 = vadd.f32 %v2928_v7, %v4104_v54 }
 0x1a1   : > { %v2391_v17 = vmul.f32 %v4106_v57, %v2360_v8  ;;  %v2403_v38 = vmul.f32 %v4106_v57, %v2372_v10  ;;  %v2362_v19 = vmax.f32 %v2342_v12, 0.0  ;;  %v2374_v3 = vmax.f32 %v2354_v62, 0.0 }
 0x1a2   : > { %v2392_v28 = vmul.f32 %v4108_v59, %v2361_v37  ;;  %v2404_v21 = vmul.f32 %v4108_v59, %v2373_v16  ;;  %v2363_v27 = vmax.f32 %v2343_v48, 0.0  ;;  %v2375_v24 = vmax.f32 %v2355_v13, 0.0  ;;  %v2265_v32 = vpop.f32.mrb[4].mxu0  ;;  %v2295_v25 = vpop.f32.mrb[24].mxu1 }
 0x1a3   : > { %v2422_v29 = vadd.f32 %v4110_v61, %v2391_v17  ;;  %v2434_v30 = vadd.f32 %v4110_v61, %v2403_v38  ;;  %v2393_v33 = vmul.f32 %v4106_v57, %v2362_v19  ;;  %v2405_v36 = vmul.f32 %v4106_v57, %v2374_v3  ;;  %v2267_v42 = vpop.f32.mrb[5].mxu0  ;;  %v2297_v46 = vpop.f32.mrb[25].mxu1 }
 0x1a4   : > { %v2423_v47 = vadd.f32 %v4112_v63, %v2392_v28  ;;  %v2435_v56 = vadd.f32 %v4112_v63, %v2404_v21  ;;  %v2394_v44 = vmul.f32 %v4108_v59, %v2363_v27  ;;  %v2406_v52 = vmul.f32 %v4108_v59, %v2375_v24  ;;  %v2269_v55 = vpop.f32.mrb[6].mxu0  ;;  %v2299_v15 = vpop.f32.mrb[26].mxu1 }
 0x1a5   : > { %v2424_v58 = vadd.f32 %v4110_v61, %v2393_v33  ;;  %v2436_v60 = vadd.f32 %v4110_v61, %v2405_v36  ;;  %v2913_v18 = vadd.f32 %v2265_v32, %v4069_v26  ;;  %v2930_v35 = vadd.f32 %v4085_v23, %v2295_v25  ;;  %v2271_v22 = vpop.f32.mrb[7].mxu0  ;;  %v2301_v0 = vpop.f32.mrb[27].mxu1 }
 0x1a6   : > { %v2883_v20 = vpack.c.bf16 %v2423_v47, %v2422_v29  ;;  %v2889_v14 = vpack.c.bf16 %v2435_v56, %v2434_v30  ;;  %v2425_v51 = vadd.f32 %v4112_v63, %v2394_v44  ;;  %v2437_v9 = vadd.f32 %v4112_v63, %v2406_v52 }
 0x1a7   : > { %v2344_v4 = vadd.f32 %v2913_v18, %v4102_v50  ;;  %v2356_v45 = vadd.f32 %v2930_v35, %v4102_v50  ;;  %v2914_v31 = vadd.f32 %v2267_v42, %v4071_v40  ;;  %v2932_v26 = vadd.f32 %v4087_v1, %v2297_v46 }
 0x1a8   : > { %2502 = vst [vmem:[%s4139_s23] sm:$0xff] %v2883_v20  ;;  %2508 = vst [vmem:[%s4139_s23 + $0x30] sm:$0xff] %v2889_v14  ;;  %v2884_v23 = vpack.c.bf16 %v2425_v51, %v2424_v58  ;;  %v2890_v43 = vpack.c.bf16 %v2437_v9, %v2436_v60  ;;  %v2915_v41 = vadd.f32 %v2269_v55, %v4073_v34 }
 0x1a9   : > { %v2934_v7 = vadd.f32 %v4089_v11, %v2299_v15  ;;  %v2364_v8 = vmax.f32 %v2344_v4, 0.0  ;;  %v2376_v10 = vmax.f32 %v2356_v45, 0.0  ;;  %v2345_v12 = vadd.f32 %v2914_v31, %v4104_v54 }
 0x1aa   : > { %v2357_v62 = vadd.f32 %v2932_v26, %v4104_v54  ;;  %2503 = vst [vmem:[%s4139_s23 + $0x8] sm:$0xff] %v2884_v23  ;;  %2509 = vst [vmem:[%s4139_s23 + $0x38] sm:$0xff] %v2890_v43  ;;  %v2346_v40 = vadd.f32 %v2915_v41, %v4102_v50  ;;  %v2916_v37 = vadd.f32 %v2271_v22, %v4075_v5  ;;  %v2275_v48 = vpop.f32.mrb[8].mxu0 }
 0x1ab   : > { %v2358_v1 = vadd.f32 %v2934_v7, %v4102_v50  ;;  %v2936_v16 = vadd.f32 %v4091_v39, %v2301_v0  ;;  %v2395_v34 = vmul.f32 %v4106_v57, %v2364_v8  ;;  %v2407_v11 = vmul.f32 %v4106_v57, %v2376_v10  ;;  %v2277_v38 = vpop.f32.mrb[9].mxu0 }
 0x1ac   : > { %v2365_v13 = vmax.f32 %v2345_v12, 0.0  ;;  %v2377_v17 = vmax.f32 %v2357_v62, 0.0  ;;  %v2366_v19 = vmax.f32 %v2346_v40, 0.0  ;;  %v2347_v28 = vadd.f32 %v2916_v37, %v4104_v54  ;;  %v2279_v27 = vpop.f32.mrb[10].mxu0 }
 0x1ad   : > { %v2378_v3 = vmax.f32 %v2358_v1, 0.0  ;;  %v2359_v21 = vadd.f32 %v2936_v16, %v4104_v54  ;;  %v2426_v24 = vadd.f32 %v4110_v61, %v2395_v34  ;;  %v2438_v5 = vadd.f32 %v4110_v61, %v2407_v11  ;;  %v2281_v25 = vpop.f32.mrb[11].mxu0 }
 0x1ae   : > { %v2396_v39 = vmul.f32 %v4108_v59, %v2365_v13  ;;  %v2408_v32 = vmul.f32 %v4108_v59, %v2377_v17  ;;  %v2397_v29 = vmul.f32 %v4106_v57, %v2366_v19  ;;  %v2367_v33 = vmax.f32 %v2347_v28, 0.0 }
 0x1af   : > { %v2409_v30 = vmul.f32 %v4106_v57, %v2378_v3  ;;  %v2379_v36 = vmax.f32 %v2359_v21, 0.0  ;;  %v2917_v47 = vadd.f32 %v2275_v48, %v4077_v6  ;;  %v2918_v56 = vadd.f32 %v2277_v38, %v4079_v49 }
 0x1b0   : > { %v2427_v42 = vadd.f32 %v4112_v63, %v2396_v39  ;;  %v2439_v46 = vadd.f32 %v4112_v63, %v2408_v32  ;;  %v2428_v44 = vadd.f32 %v4110_v61, %v2397_v29  ;;  %v2398_v55 = vmul.f32 %v4108_v59, %v2367_v33 }
 0x1b1   : > { %v2440_v52 = vadd.f32 %v4110_v61, %v2409_v30  ;;  %v2410_v15 = vmul.f32 %v4108_v59, %v2379_v36  ;;  %v2348_v18 = vadd.f32 %v2917_v47, %v4102_v50  ;;  %v2349_v35 = vadd.f32 %v2918_v56, %v4104_v54 }
 0x1b2   : > { %v2885_v58 = vpack.c.bf16 %v2427_v42, %v2426_v24  ;;  %v2891_v60 = vpack.c.bf16 %v2439_v46, %v2438_v5  ;;  %v2429_v6 = vadd.f32 %v4112_v63, %v2398_v55  ;;  %v2919_v22 = vadd.f32 %v2279_v27, %v4081_v2 }
 0x1b3   : > { %v2441_v49 = vadd.f32 %v4112_v63, %v2410_v15  ;;  %v2920_v0 = vadd.f32 %v2281_v25, %v4083_v53  ;;  %v2368_v20 = vmax.f32 %v2348_v18, 0.0  ;;  %v2369_v14 = vmax.f32 %v2349_v35, 0.0 }
 0x1b4   : > { %2504 = vst [vmem:[%s4139_s23 + $0x10] sm:$0xff] %v2885_v58  ;;  %2510 = vst [vmem:[%s4139_s23 + $0x40] sm:$0xff] %v2891_v60  ;;  %v2886_v51 = vpack.c.bf16 %v2429_v6, %v2428_v44  ;;  %v2350_v4 = vadd.f32 %v2919_v22, %v4102_v50 }
 0x1b5   : > { %v2892_v9 = vpack.c.bf16 %v2441_v49, %v2440_v52  ;;  %v2351_v45 = vadd.f32 %v2920_v0, %v4104_v54  ;;  %v2399_v31 = vmul.f32 %v4106_v57, %v2368_v20  ;;  %v2400_v26 = vmul.f32 %v4108_v59, %v2369_v14 }
 0x1b6   : > { %2505 = vst [vmem:[%s4139_s23 + $0x18] sm:$0xff] %v2886_v51  ;;  %v2370_v2 = vmax.f32 %v2350_v4, 0.0 }
 0x1b7   : > { %2511 = vst [vmem:[%s4139_s23 + $0x48] sm:$0xff] %v2892_v9  ;;  %v2371_v53 = vmax.f32 %v2351_v45, 0.0  ;;  %v2430_v23 = vadd.f32 %v4110_v61, %v2399_v31  ;;  %v2431_v43 = vadd.f32 %v4112_v63, %v2400_v26 }
 0x1b8   : > { %v2401_v41 = vmul.f32 %v4106_v57, %v2370_v2 }
 0x1b9   : > { %v2402_v7 = vmul.f32 %v4108_v59, %v2371_v53  ;;  %v2887_v50 = vpack.c.bf16 %v2431_v43, %v2430_v23 }
 0x1ba   : > { %v2432_v54 = vadd.f32 %v4110_v61, %v2401_v41 }
 0x1bb   : > { %v2433_v8 = vadd.f32 %v4112_v63, %v2402_v7  ;;  %2506 = vst [vmem:[%s4139_s23 + $0x20] sm:$0xff] %v2887_v50 }
 0x1bd   : > { %v2888_v10 = vpack.c.bf16 %v2433_v8, %v2432_v54 }
 0x1bf   : > { %2507 = vst [vmem:[%s4139_s23 + $0x28] sm:$0xff] %v2888_v10 }
 0x1c0 PF: > { %s13_s12 = sadd.s32 1, %s3325_s12  }
 0x1c1   : > { %p10_p4 = scmp.ge.s32.totalorder %s13_s12, 4  }
 0x1c3   :  { %12 = sbr.rel (!%p10_p4) target bundleno = 1 (0x1), region = 72 }

// kernel: _lambda_.18
= control target key start
LH: loop header
LB: loop body
LE: loop exit
PB: predicated region body
PF: predicated region fallthrough
CT: control target
= control target key end

     0   :  { %s2909_s1 = inlined_call_operand.vmem [shape: bf16[1024,256], index: 1, kind: input, shape index: {}]   ;;  %s2910_s0 = inlined_call_operand.vmem [shape: bf16[128,1024], index: 0, kind: input, shape index: {}]   ;;  %s2911_s2 = inlined_call_operand.vmem [shape: f32[1,256], index: 2, kind: input, shape index: {}]   ;;  %s2912_s3 = inlined_call_operand.vmem [shape: f32[128,256], index: 3, kind: output, shape index: {}]  }
   0x1   :  { %v1986_v0 = vld [vmem:[%s2909_s1 + $0x4] ss:$8 sps:$4 sm:$0xff]   ;;  %v1990_v2 = vld [vmem:[%s2909_s1] ss:$8 sps:$4 sm:$0xff]   ;;  %v1992_v4 = vld [vmem:[%s2909_s1 + $0x14] ss:$8 sps:$4 sm:$0xff]  }
   0x2   :  { %v1988_v1 = vld [vmem:[%s2909_s1 + $0x204] ss:$8 sps:$4 sm:$0xff]   ;;  %1178 = vmatprep.subr.bf16.mxu1 %v1986_v0  ;;  %v1991_v3 = vld [vmem:[%s2909_s1 + $0x200] ss:$8 sps:$4 sm:$0xff]   ;;  %v1994_v5 = vld [vmem:[%s2909_s1 + $0x214] ss:$8 sps:$4 sm:$0xff]  }
   0x3   :  { %1404 = vmatprep.subr.bf16.mxu0 %v1988_v1  ;;  %1179 = vmatpush1.bf16.msra.mxu1 %v1990_v2  ;;  %v1996_v6 = vld [vmem:[%s2909_s1 + $0x10] ss:$8 sps:$4 sm:$0xff]   ;;  %v1998_v8 = vld [vmem:[%s2909_s1 + $0x24] ss:$8 sps:$4 sm:$0xff]   ;;  %v2002_v10 = vld [vmem:[%s2909_s1 + $0x20] ss:$8 sps:$4 sm:$0xff]  }
   0x4   :  { %1405 = vmatpush1.bf16.msra.mxu0 %v1991_v3  ;;  %1180 = vmatprep.subr.bf16.mxu1 %v1992_v4  ;;  %v1997_v7 = vld [vmem:[%s2909_s1 + $0x210] ss:$8 sps:$4 sm:$0xff]   ;;  %v2000_v9 = vld [vmem:[%s2909_s1 + $0x224] ss:$8 sps:$4 sm:$0xff]   ;;  %v2003_v11 = vld [vmem:[%s2909_s1 + $0x220] ss:$8 sps:$4 sm:$0xff]  }
   0x5   :  { %1406 = vmatprep.subr.bf16.mxu0 %v1994_v5  ;;  %v2004_v12 = vld [vmem:[%s2909_s1 + $0x34] ss:$8 sps:$4 sm:$0xff]   ;;  %v2008_v14 = vld [vmem:[%s2909_s1 + $0x30] ss:$8 sps:$4 sm:$0xff]   ;;  %v2010_v16 = vld [vmem:[%s2909_s1 + $0x44] ss:$8 sps:$4 sm:$0xff]  }
   0x6   :  { %v2006_v13 = vld [vmem:[%s2909_s1 + $0x234] ss:$8 sps:$4 sm:$0xff]   ;;  %v2009_v15 = vld [vmem:[%s2909_s1 + $0x230] ss:$8 sps:$4 sm:$0xff]   ;;  %v2012_v17 = vld [vmem:[%s2909_s1 + $0x244] ss:$8 sps:$4 sm:$0xff]  }
   0x7   :  { %1181 = vmatpush1.bf16.msra.mxu1 %v1996_v6  ;;  %v2014_v18 = vld [vmem:[%s2909_s1 + $0x40] ss:$8 sps:$4 sm:$0xff]   ;;  %v2016_v20 = vld [vmem:[%s2909_s1 + $0x54] ss:$8 sps:$4 sm:$0xff]   ;;  %v2020_v22 = vld [vmem:[%s2909_s1 + $0x50] ss:$8 sps:$4 sm:$0xff]  }
   0x8   :  { %1407 = vmatpush1.bf16.msra.mxu0 %v1997_v7  ;;  %1182 = vmatprep.subr.bf16.mxu1 %v1998_v8  ;;  %v2015_v19 = vld [vmem:[%s2909_s1 + $0x240] ss:$8 sps:$4 sm:$0xff]   ;;  %v2018_v21 = vld [vmem:[%s2909_s1 + $0x254] ss:$8 sps:$4 sm:$0xff]   ;;  %v2021_v23 = vld [vmem:[%s2909_s1 + $0x250] ss:$8 sps:$4 sm:$0xff]  }
   0x9   :  { %1408 = vmatprep.subr.bf16.mxu0 %v2000_v9  ;;  %v2022_v24 = vld [vmem:[%s2909_s1 + $0x64] ss:$8 sps:$4 sm:$0xff]   ;;  %v2026_v26 = vld [vmem:[%s2909_s1 + $0x60] ss:$8 sps:$4 sm:$0xff]   ;;  %v2028_v28 = vld [vmem:[%s2909_s1 + $0x74] ss:$8 sps:$4 sm:$0xff]  }
   0xa   :  { %v2024_v25 = vld [vmem:[%s2909_s1 + $0x264] ss:$8 sps:$4 sm:$0xff]   ;;  %v2027_v27 = vld [vmem:[%s2909_s1 + $0x260] ss:$8 sps:$4 sm:$0xff]   ;;  %v2030_v29 = vld [vmem:[%s2909_s1 + $0x274] ss:$8 sps:$4 sm:$0xff]  }
   0xb   :  { %1183 = vmatpush1.bf16.msra.mxu1 %v2002_v10  ;;  %v2032_v30 = vld [vmem:[%s2909_s1 + $0x70] ss:$8 sps:$4 sm:$0xff]   ;;  %v2034_v32 = vld [vmem:[%s2909_s1 + $0x84] ss:$8 sps:$4 sm:$0xff]   ;;  %v2038_v34 = vld [vmem:[%s2909_s1 + $0x80] ss:$8 sps:$4 sm:$0xff]  }
   0xc   :  { %1409 = vmatpush1.bf16.msra.mxu0 %v2003_v11  ;;  %1184 = vmatprep.subr.bf16.mxu1 %v2004_v12  ;;  %v2033_v31 = vld [vmem:[%s2909_s1 + $0x270] ss:$8 sps:$4 sm:$0xff]   ;;  %v2036_v33 = vld [vmem:[%s2909_s1 + $0x284] ss:$8 sps:$4 sm:$0xff]   ;;  %v2039_v35 = vld [vmem:[%s2909_s1 + $0x280] ss:$8 sps:$4 sm:$0xff]  }
   0xd   :  { %1410 = vmatprep.subr.bf16.mxu0 %v2006_v13  ;;  %v2040_v36 = vld [vmem:[%s2909_s1 + $0x94] ss:$8 sps:$4 sm:$0xff]   ;;  %v2044_v38 = vld [vmem:[%s2909_s1 + $0x90] ss:$8 sps:$4 sm:$0xff]   ;;  %v2046_v40 = vld [vmem:[%s2909_s1 + $0xa4] ss:$8 sps:$4 sm:$0xff]  }
   0xe   :  { %v2042_v37 = vld [vmem:[%s2909_s1 + $0x294] ss:$8 sps:$4 sm:$0xff]   ;;  %v2045_v39 = vld [vmem:[%s2909_s1 + $0x290] ss:$8 sps:$4 sm:$0xff]   ;;  %v2048_v41 = vld [vmem:[%s2909_s1 + $0x2a4] ss:$8 sps:$4 sm:$0xff]  }
   0xf   :  { %1185 = vmatpush1.bf16.msra.mxu1 %v2008_v14  ;;  %v2050_v42 = vld [vmem:[%s2909_s1 + $0xa0] ss:$8 sps:$4 sm:$0xff]   ;;  %v2052_v44 = vld [vmem:[%s2909_s1 + $0xb4] ss:$8 sps:$4 sm:$0xff]   ;;  %v2056_v46 = vld [vmem:[%s2909_s1 + $0xb0] ss:$8 sps:$4 sm:$0xff]  }
  0x10   :  { %1411 = vmatpush1.bf16.msra.mxu0 %v2009_v15  ;;  %1186 = vmatprep.subr.bf16.mxu1 %v2010_v16  ;;  %v2051_v43 = vld [vmem:[%s2909_s1 + $0x2a0] ss:$8 sps:$4 sm:$0xff]   ;;  %v2054_v45 = vld [vmem:[%s2909_s1 + $0x2b4] ss:$8 sps:$4 sm:$0xff]   ;;  %v2057_v47 = vld [vmem:[%s2909_s1 + $0x2b0] ss:$8 sps:$4 sm:$0xff]  }
  0x11   :  { %1412 = vmatprep.subr.bf16.mxu0 %v2012_v17  ;;  %v14_v48 = vld [vmem:[%s2910_s0] sm:$0xff]  ;;  %v16_v50 = vld [vmem:[%s2910_s0 + $0x10] sm:$0xff] }
  0x12   :  { %v18_v49 = vld [vmem:[%s2910_s0 + $0x20] sm:$0xff]  ;;  %v20_v51 = vld [vmem:[%s2910_s0 + $0x30] sm:$0xff] }
  0x13   :  { %1187 = vmatpush1.bf16.msra.mxu1 %v2014_v18  ;;  %v2058_v52 = vld [vmem:[%s2909_s1 + $0xc4] ss:$8 sps:$4 sm:$0xff]   ;;  %v1667_v53 = vcombine.high %v14_v48, %v18_v49  ;;  %v1671_v55 = vcombine.high %v16_v50, %v20_v51  ;;  %v2062_v56 = vld [vmem:[%s2909_s1 + $0xc0] ss:$8 sps:$4 sm:$0xff]   ;;  %v2064_v58 = vld [vmem:[%s2909_s1 + $0xd4] ss:$8 sps:$4 sm:$0xff]   ;;  %v1666_v11 = vcombine.low %v14_v48, %v18_v49  ;;  %v1670_v12 = vcombine.low %v16_v50, %v20_v51 }
  0x14   :  { %1413 = vmatpush1.bf16.msra.mxu0 %v2015_v19  ;;  %1188 = vmatprep.subr.bf16.mxu1 %v2016_v20  ;;  %v2060_v54 = vld [vmem:[%s2909_s1 + $0x2c4] ss:$8 sps:$4 sm:$0xff]   ;;  %v2063_v57 = vld [vmem:[%s2909_s1 + $0x2c0] ss:$8 sps:$4 sm:$0xff]   ;;  %v2066_v59 = vld [vmem:[%s2909_s1 + $0x2d4] ss:$8 sps:$4 sm:$0xff]  }
  0x15   :  { %1414 = vmatprep.subr.bf16.mxu0 %v2018_v21  ;;  %1210 = vmatprep.mubr.bf16.mxu1 %v1667_v53  ;;  %v2068_v60 = vld [vmem:[%s2909_s1 + $0xd0] ss:$8 sps:$4 sm:$0xff]   ;;  %v2070_v62 = vld [vmem:[%s2909_s1 + $0xe4] ss:$8 sps:$4 sm:$0xff]   ;;  %v2074_v0 = vld [vmem:[%s2909_s1 + $0xe0] ss:$8 sps:$4 sm:$0xff]  }
  0x16   :  { %1436 = vmatprep.mubr.bf16.mxu0 %v1671_v55  ;;  %v2069_v61 = vld [vmem:[%s2909_s1 + $0x2d0] ss:$8 sps:$4 sm:$0xff]   ;;  %v2072_v63 = vld [vmem:[%s2909_s1 + $0x2e4] ss:$8 sps:$4 sm:$0xff]   ;;  %v2075_v1 = vld [vmem:[%s2909_s1 + $0x2e0] ss:$8 sps:$4 sm:$0xff]  }
  0x17   :  { %1189 = vmatpush1.bf16.msra.mxu1 %v2020_v22  ;;  %v2076_v2 = vld [vmem:[%s2909_s1 + $0xf4] ss:$8 sps:$4 sm:$0xff]   ;;  %v2080_v4 = vld [vmem:[%s2909_s1 + $0xf0] ss:$8 sps:$4 sm:$0xff]   ;;  %v2084_v6 = vld [vmem:[%s2909_s1 + $0x104] ss:$8 sps:$4 sm:$0xff]  }
  0x18   :  { %1415 = vmatpush1.bf16.msra.mxu0 %v2021_v23  ;;  %1190 = vmatprep.subr.bf16.mxu1 %v2022_v24  ;;  %v2078_v3 = vld [vmem:[%s2909_s1 + $0x2f4] ss:$8 sps:$4 sm:$0xff]   ;;  %v2081_v5 = vld [vmem:[%s2909_s1 + $0x2f0] ss:$8 sps:$4 sm:$0xff]   ;;  %v2087_v7 = vld [vmem:[%s2909_s1 + $0x304] ss:$8 sps:$4 sm:$0xff]  }
  0x19   :  { %1416 = vmatprep.subr.bf16.mxu0 %v2024_v25  ;;  %v2082_v8 = vld [vmem:[%s2909_s1 + $0x100] ss:$8 sps:$4 sm:$0xff]   ;;  %v24_v14 = vld [vmem:[%s2910_s0 + $0x50] sm:$0xff]  ;;  %v2096_v22 = vld [vmem:[%s2909_s1 + $0x124] ss:$8 sps:$4 sm:$0xff]  }
  0x1a   :  { %v2085_v9 = vld [vmem:[%s2909_s1 + $0x300] ss:$8 sps:$4 sm:$0xff]   ;;  %v28_v15 = vld [vmem:[%s2910_s0 + $0x70] sm:$0xff]  ;;  %v2099_v23 = vld [vmem:[%s2909_s1 + $0x324] ss:$8 sps:$4 sm:$0xff]  }
  0x1b   :  { %1191 = vmatpush1.bf16.msra.mxu1 %v2026_v26  ;;  %v22_v10 = vld [vmem:[%s2910_s0 + $0x40] sm:$0xff]  ;;  %v2090_v16 = vld [vmem:[%s2909_s1 + $0x114] ss:$8 sps:$4 sm:$0xff]   ;;  %v1679_v19 = vcombine.high %v24_v14, %v28_v15  ;;  %v2088_v20 = vld [vmem:[%s2909_s1 + $0x110] ss:$8 sps:$4 sm:$0xff]  }
  0x1c   :  { %1417 = vmatpush1.bf16.msra.mxu0 %v2027_v27  ;;  %1192 = vmatprep.subr.bf16.mxu1 %v2028_v28  ;;  %v26_v13 = vld [vmem:[%s2910_s0 + $0x60] sm:$0xff]  ;;  %v2093_v17 = vld [vmem:[%s2909_s1 + $0x314] ss:$8 sps:$4 sm:$0xff]   ;;  %v2091_v21 = vld [vmem:[%s2909_s1 + $0x310] ss:$8 sps:$4 sm:$0xff]  }
  0x1d   :  { %1418 = vmatprep.subr.bf16.mxu0 %v2030_v29  ;;  %v1675_v18 = vcombine.high %v22_v10, %v26_v13  ;;  %v2094_v24 = vld [vmem:[%s2909_s1 + $0x120] ss:$8 sps:$4 sm:$0xff]   ;;  %v1674_v28 = vcombine.low %v22_v10, %v26_v13  ;;  %v1678_v29 = vcombine.low %v24_v14, %v28_v15  ;;  %v2114_v48 = vld [vmem:[%s2909_s1 + $0x154] ss:$8 sps:$4 sm:$0xff]   ;;  %v2115_v53 = vld [vmem:[%s2909_s1 + $0x350] ss:$8 sps:$4 sm:$0xff]  }
  0x1e   :  { %v2097_v25 = vld [vmem:[%s2909_s1 + $0x320] ss:$8 sps:$4 sm:$0xff]   ;;  %v2117_v49 = vld [vmem:[%s2909_s1 + $0x354] ss:$8 sps:$4 sm:$0xff]   ;;  %v2123_v55 = vld [vmem:[%s2909_s1 + $0x364] ss:$8 sps:$4 sm:$0xff]  }
  0x1f   :  { %1193 = vmatpush1.bf16.msra.mxu1 %v2032_v30  ;;  %v30_v26 = vld [vmem:[%s2910_s0 + $0x80] sm:$0xff]  ;;  %v32_v30 = vld [vmem:[%s2910_s0 + $0x90] sm:$0xff] }
  0x20   :  { %1419 = vmatpush1.bf16.msra.mxu0 %v2033_v31  ;;  %1194 = vmatprep.subr.bf16.mxu1 %v2034_v32  ;;  %v34_v27 = vld [vmem:[%s2910_s0 + $0xa0] sm:$0xff]  ;;  %v36_v31 = vld [vmem:[%s2910_s0 + $0xb0] sm:$0xff] }
  0x21   :  { %1420 = vmatprep.subr.bf16.mxu0 %v2036_v33  ;;  %v2102_v32 = vld [vmem:[%s2909_s1 + $0x134] ss:$8 sps:$4 sm:$0xff]   ;;  %v2130_v14 = vld [vmem:[%s2909_s1 + $0x180] ss:$8 sps:$4 sm:$0xff]  }
  0x22   :  { %v2105_v33 = vld [vmem:[%s2909_s1 + $0x334] ss:$8 sps:$4 sm:$0xff]   ;;  %v2133_v15 = vld [vmem:[%s2909_s1 + $0x380] ss:$8 sps:$4 sm:$0xff]  }
  0x23   :  { %1195 = vmatpush1.bf16.msra.mxu1 %v2038_v34  ;;  %v1683_v34 = vcombine.high %v30_v26, %v34_v27  ;;  %v60_v13 = vld [vmem:[%s2910_s0 + $0x170] sm:$0xff] }
  0x24   :  { %1421 = vmatpush1.bf16.msra.mxu0 %v2039_v35  ;;  %1196 = vmatprep.subr.bf16.mxu1 %v2040_v36  ;;  %v1687_v35 = vcombine.high %v32_v30, %v36_v31  ;;  %v2100_v36 = vld [vmem:[%s2909_s1 + $0x130] ss:$8 sps:$4 sm:$0xff]  }
  0x25   :  { %1422 = vmatprep.subr.bf16.mxu0 %v2042_v37  ;;  %v2103_v37 = vld [vmem:[%s2909_s1 + $0x330] ss:$8 sps:$4 sm:$0xff]  }
  0x27   :  { %1197 = vmatpush1.bf16.msra.mxu1 %v2044_v38  ;;  %v2108_v38 = vld [vmem:[%s2909_s1 + $0x144] ss:$8 sps:$4 sm:$0xff]  }
  0x28   :  { %1423 = vmatpush1.bf16.msra.mxu0 %v2045_v39  ;;  %1198 = vmatprep.subr.bf16.mxu1 %v2046_v40  ;;  %v2111_v39 = vld [vmem:[%s2909_s1 + $0x344] ss:$8 sps:$4 sm:$0xff]   ;;  %v2106_v40 = vld [vmem:[%s2909_s1 + $0x140] ss:$8 sps:$4 sm:$0xff]  }
  0x29   :  { %1424 = vmatprep.subr.bf16.mxu0 %v2048_v41  ;;  %v2109_v41 = vld [vmem:[%s2909_s1 + $0x340] ss:$8 sps:$4 sm:$0xff]  }
  0x2b   :  { %1199 = vmatpush1.bf16.msra.mxu1 %v2050_v42  ;;  %v38_v42 = vld [vmem:[%s2910_s0 + $0xc0] sm:$0xff] }
  0x2c   :  { %1425 = vmatpush1.bf16.msra.mxu0 %v2051_v43  ;;  %1200 = vmatprep.subr.bf16.mxu1 %v2052_v44  ;;  %v42_v43 = vld [vmem:[%s2910_s0 + $0xe0] sm:$0xff]  ;;  %v1682_v44 = vcombine.low %v30_v26, %v34_v27 }
  0x2d   :  { %1426 = vmatprep.subr.bf16.mxu0 %v2054_v45  ;;  %v1686_v45 = vcombine.low %v32_v30, %v36_v31  ;;  %v1691_v50 = vcombine.high %v38_v42, %v42_v43  ;;  %v66_v27 = vld [vmem:[%s2910_s0 + $0x1a0] sm:$0xff] }
  0x2e   :  { %v2142_v30 = vld [vmem:[%s2909_s1 + $0x1a0] ss:$8 sps:$4 sm:$0xff]  }
  0x2f   :  { %1201 = vmatpush1.bf16.msra.mxu1 %v2056_v46  ;;  %v40_v46 = vld [vmem:[%s2910_s0 + $0xd0] sm:$0xff]  ;;  %v2145_v31 = vld [vmem:[%s2909_s1 + $0x3a0] ss:$8 sps:$4 sm:$0xff]  }
  0x30   :  { %1427 = vmatpush1.bf16.msra.mxu0 %v2057_v47  ;;  %1202 = vmatprep.subr.bf16.mxu1 %v2058_v52  ;;  %v44_v47 = vld [vmem:[%s2910_s0 + $0xf0] sm:$0xff] }
  0x31   :  { %1428 = vmatprep.subr.bf16.mxu0 %v2060_v54  ;;  %v1695_v51 = vcombine.high %v40_v46, %v44_v47  ;;  %v2112_v52 = vld [vmem:[%s2909_s1 + $0x150] ss:$8 sps:$4 sm:$0xff]   ;;  %v2120_v54 = vld [vmem:[%s2909_s1 + $0x164] ss:$8 sps:$4 sm:$0xff]  }
  0x33   :  { %1203 = vmatpush1.bf16.msra.mxu1 %v2062_v56  ;;  %v2118_v56 = vld [vmem:[%s2909_s1 + $0x160] ss:$8 sps:$4 sm:$0xff]  }
  0x34   :  { %1429 = vmatpush1.bf16.msra.mxu0 %v2063_v57  ;;  %1204 = vmatprep.subr.bf16.mxu1 %v2064_v58  ;;  %v46_v57 = vld [vmem:[%s2910_s0 + $0x100] sm:$0xff] }
  0x35   :  { %1430 = vmatprep.subr.bf16.mxu0 %v2066_v59  ;;  %v50_v58 = vld [vmem:[%s2910_s0 + $0x120] sm:$0xff]  ;;  %v1690_v59 = vcombine.low %v38_v42, %v42_v43 }
  0x36   :  { %v1698_v10 = vcombine.low %v46_v57, %v50_v58  ;;  %v74_v43 = vld [vmem:[%s2910_s0 + $0x1e0] sm:$0xff] }
  0x37   :  { %1205 = vmatpush1.bf16.msra.mxu1 %v2068_v60  ;;  %v1694_v60 = vcombine.low %v40_v46, %v44_v47  ;;  %v2154_v46 = vld [vmem:[%s2909_s1 + $0x1c0] ss:$8 sps:$4 sm:$0xff]  }
  0x38   :  { %1431 = vmatpush1.bf16.msra.mxu0 %v2069_v61  ;;  %1206 = vmatprep.subr.bf16.mxu1 %v2070_v62  ;;  %v48_v61 = vld [vmem:[%s2910_s0 + $0x110] sm:$0xff]  ;;  %v2157_v47 = vld [vmem:[%s2909_s1 + $0x3c0] ss:$8 sps:$4 sm:$0xff]  }
  0x39   :  { %1432 = vmatprep.subr.bf16.mxu0 %v2072_v63  ;;  %v52_v62 = vld [vmem:[%s2910_s0 + $0x130] sm:$0xff]  ;;  %v2121_v63 = vld [vmem:[%s2909_s1 + $0x360] ss:$8 sps:$4 sm:$0xff]  }
  0x3b   :  { %1207 = vmatpush1.bf16.msra.mxu1 %v2074_v0  ;;  %v2126_v0 = vld [vmem:[%s2909_s1 + $0x174] ss:$8 sps:$4 sm:$0xff]  }
  0x3c   :  { %1433 = vmatpush1.bf16.msra.mxu0 %v2075_v1  ;;  %1208 = vmatprep.subr.bf16.mxu1 %v2076_v2  ;;  %v2129_v1 = vld [vmem:[%s2909_s1 + $0x374] ss:$8 sps:$4 sm:$0xff]   ;;  %v1699_v2 = vcombine.high %v46_v57, %v50_v58 }
  0x3d   :  { %1434 = vmatprep.subr.bf16.mxu0 %v2078_v3  ;;  %v1703_v3 = vcombine.high %v48_v61, %v52_v62 }
  0x3f   :  { %1209 = vmatpush1.bf16.msra.mxu1 %v2080_v4  ;;  %v2124_v4 = vld [vmem:[%s2909_s1 + $0x170] ss:$8 sps:$4 sm:$0xff]  }
  0x40   :  { %1435 = vmatpush1.bf16.msra.mxu0 %v2081_v5  ;;  %1291 = vmatprep.subr.bf16.mxu1 %v2084_v6  ;;  %v2127_v5 = vld [vmem:[%s2909_s1 + $0x370] ss:$8 sps:$4 sm:$0xff]   ;;  %v2132_v6 = vld [vmem:[%s2909_s1 + $0x184] ss:$8 sps:$4 sm:$0xff]  }
  0x41   :  { %1517 = vmatprep.subr.bf16.mxu0 %v2087_v7  ;;  %v2135_v7 = vld [vmem:[%s2909_s1 + $0x384] ss:$8 sps:$4 sm:$0xff]  }
  0x42   :  { %1211 = vmatmul.mubr.bf16.vlgmr.msra.gmra.mrb[0].mxu1 %v1666_v11  ;;  %v1702_v11 = vcombine.low %v48_v61, %v52_v62  ;;  %v21_v61 = vld [vmem:[%s2910_s0 + $0x38] sm:$0xff]  ;;  %v2166_v62 = vld [vmem:[%s2909_s1 + $0x1e0] ss:$8 sps:$4 sm:$0xff]  }
  0x43   :  { %1437 = vmatmul.mubr.bf16.vlgmr.msra.gmra.mrb[0].mxu0 %v1670_v12  ;;  %1292 = vmatpush1.bf16.msra.mxu1 %v2082_v8  ;;  %v54_v8 = vld [vmem:[%s2910_s0 + $0x140] sm:$0xff]  ;;  %v56_v12 = vld [vmem:[%s2910_s0 + $0x150] sm:$0xff] }
  0x44   :  { %1518 = vmatpush1.bf16.msra.mxu0 %v2085_v9  ;;  %1293 = vmatprep.subr.bf16.mxu1 %v2090_v16  ;;  %v58_v9 = vld [vmem:[%s2910_s0 + $0x160] sm:$0xff]  ;;  %v2138_v16 = vld [vmem:[%s2909_s1 + $0x194] ss:$8 sps:$4 sm:$0xff]   ;;  %v1710_v26 = vcombine.low %v56_v12, %v60_v13 }
  0x45   :  { %1519 = vmatprep.subr.bf16.mxu0 %v2093_v17  ;;  %1220 = vmatprep.mubr.bf16.mxu1 %v1675_v18  ;;  %v2141_v17 = vld [vmem:[%s2909_s1 + $0x394] ss:$8 sps:$4 sm:$0xff]   ;;  %v1707_v18 = vcombine.high %v54_v8, %v58_v9 }
  0x46   :  { %1446 = vmatprep.mubr.bf16.mxu0 %v1679_v19  ;;  %v1711_v19 = vcombine.high %v56_v12, %v60_v13 }
  0x47   :  { %1294 = vmatpush1.bf16.msra.mxu1 %v2088_v20  ;;  %v2136_v20 = vld [vmem:[%s2909_s1 + $0x190] ss:$8 sps:$4 sm:$0xff]  }
  0x48   :  { %1520 = vmatpush1.bf16.msra.mxu0 %v2091_v21  ;;  %1295 = vmatprep.subr.bf16.mxu1 %v2096_v22  ;;  %v2139_v21 = vld [vmem:[%s2909_s1 + $0x390] ss:$8 sps:$4 sm:$0xff]   ;;  %v2144_v22 = vld [vmem:[%s2909_s1 + $0x1a4] ss:$8 sps:$4 sm:$0xff]  }
  0x49   :  { %1521 = vmatprep.subr.bf16.mxu0 %v2099_v23  ;;  %v2147_v23 = vld [vmem:[%s2909_s1 + $0x3a4] ss:$8 sps:$4 sm:$0xff]  }
  0x4a   :  { %1221 = vmatmul.mubr.bf16.gmra.mrb[4].mxu1 %v1674_v28  ;;  %v64_v28 = vld [vmem:[%s2910_s0 + $0x190] sm:$0xff] }
  0x4b   :  { %1447 = vmatmul.mubr.bf16.gmra.mrb[4].mxu0 %v1678_v29  ;;  %1296 = vmatpush1.bf16.msra.mxu1 %v2094_v24  ;;  %v62_v24 = vld [vmem:[%s2910_s0 + $0x180] sm:$0xff]  ;;  %v68_v29 = vld [vmem:[%s2910_s0 + $0x1b0] sm:$0xff] }
  0x4c   :  { %1522 = vmatpush1.bf16.msra.mxu0 %v2097_v25  ;;  %1297 = vmatprep.subr.bf16.mxu1 %v2102_v32  ;;  %v1706_v25 = vcombine.low %v54_v8, %v58_v9  ;;  %v2150_v32 = vld [vmem:[%s2909_s1 + $0x1b4] ss:$8 sps:$4 sm:$0xff]   ;;  %v1718_v42 = vcombine.low %v64_v28, %v68_v29 }
  0x4d   :  { %1523 = vmatprep.subr.bf16.mxu0 %v2105_v33  ;;  %1230 = vmatprep.mubr.bf16.mxu1 %v1683_v34  ;;  %v2153_v33 = vld [vmem:[%s2909_s1 + $0x3b4] ss:$8 sps:$4 sm:$0xff]   ;;  %v1715_v34 = vcombine.high %v62_v24, %v66_v27 }
  0x4e   :  { %1456 = vmatprep.mubr.bf16.mxu0 %v1687_v35  ;;  %v1719_v35 = vcombine.high %v64_v28, %v68_v29  ;;  %v25_v8 = vld [vmem:[%s2910_s0 + $0x58] sm:$0xff] }
  0x4f   :  { %1298 = vmatpush1.bf16.msra.mxu1 %v2100_v36  ;;  %v2148_v36 = vld [vmem:[%s2909_s1 + $0x1b0] ss:$8 sps:$4 sm:$0xff]  }
  0x50   :  { %1524 = vmatpush1.bf16.msra.mxu0 %v2103_v37  ;;  %1299 = vmatprep.subr.bf16.mxu1 %v2108_v38  ;;  %v2151_v37 = vld [vmem:[%s2909_s1 + $0x3b0] ss:$8 sps:$4 sm:$0xff]   ;;  %v2156_v38 = vld [vmem:[%s2909_s1 + $0x1c4] ss:$8 sps:$4 sm:$0xff]  }
  0x51   :  { %1525 = vmatprep.subr.bf16.mxu0 %v2111_v39  ;;  %v2159_v39 = vld [vmem:[%s2909_s1 + $0x3c4] ss:$8 sps:$4 sm:$0xff]   ;;  %v29_v9 = vld [vmem:[%s2910_s0 + $0x78] sm:$0xff] }
  0x52   :  { %1231 = vmatmul.mubr.bf16.gmra.mrb[8].mxu1 %v1682_v44  ;;  %v72_v44 = vld [vmem:[%s2910_s0 + $0x1d0] sm:$0xff]  ;;  %v1681_v13 = vcombine.high %v25_v8, %v29_v9 }
  0x53   :  { %1457 = vmatmul.mubr.bf16.gmra.mrb[8].mxu0 %v1686_v45  ;;  %1300 = vmatpush1.bf16.msra.mxu1 %v2106_v40  ;;  %v70_v40 = vld [vmem:[%s2910_s0 + $0x1c0] sm:$0xff]  ;;  %v76_v45 = vld [vmem:[%s2910_s0 + $0x1f0] sm:$0xff] }
  0x54   :  { %1526 = vmatpush1.bf16.msra.mxu0 %v2109_v41  ;;  %1301 = vmatprep.subr.bf16.mxu1 %v2114_v48  ;;  %v1714_v41 = vcombine.low %v62_v24, %v66_v27  ;;  %v2162_v48 = vld [vmem:[%s2909_s1 + $0x1d4] ss:$8 sps:$4 sm:$0xff]   ;;  %v1722_v57 = vcombine.low %v70_v40, %v74_v43  ;;  %v1726_v58 = vcombine.low %v72_v44, %v76_v45 }
  0x55   :  { %1527 = vmatprep.subr.bf16.mxu0 %v2117_v49  ;;  %1240 = vmatprep.mubr.bf16.mxu1 %v1691_v50  ;;  %v2165_v49 = vld [vmem:[%s2909_s1 + $0x3d4] ss:$8 sps:$4 sm:$0xff]   ;;  %v1723_v50 = vcombine.high %v70_v40, %v74_v43 }
  0x56   :  { %1466 = vmatprep.mubr.bf16.mxu0 %v1695_v51  ;;  %v1727_v51 = vcombine.high %v72_v44, %v76_v45  ;;  %v41_v24 = vld [vmem:[%s2910_s0 + $0xd8] sm:$0xff] }
  0x57   :  { %1302 = vmatpush1.bf16.msra.mxu1 %v2112_v52  ;;  %v2160_v52 = vld [vmem:[%s2909_s1 + $0x1d0] ss:$8 sps:$4 sm:$0xff]  }
  0x58   :  { %1528 = vmatpush1.bf16.msra.mxu0 %v2115_v53  ;;  %1303 = vmatprep.subr.bf16.mxu1 %v2120_v54  ;;  %v2163_v53 = vld [vmem:[%s2909_s1 + $0x3d0] ss:$8 sps:$4 sm:$0xff]   ;;  %v2168_v54 = vld [vmem:[%s2909_s1 + $0x1e4] ss:$8 sps:$4 sm:$0xff]  }
  0x59   :  { %1529 = vmatprep.subr.bf16.mxu0 %v2123_v55  ;;  %v2171_v55 = vld [vmem:[%s2909_s1 + $0x3e4] ss:$8 sps:$4 sm:$0xff]   ;;  %v57_v40 = vld [vmem:[%s2910_s0 + $0x158] sm:$0xff] }
  0x5a   :  { %1241 = vmatmul.mubr.bf16.gmra.mrb[12].mxu1 %v1690_v59  ;;  %v19_v59 = vld [vmem:[%s2910_s0 + $0x28] sm:$0xff] }
  0x5b   :  { %1467 = vmatmul.mubr.bf16.gmra.mrb[12].mxu0 %v1694_v60  ;;  %1304 = vmatpush1.bf16.msra.mxu1 %v2118_v56  ;;  %v15_v56 = vld [vmem:[%s2910_s0 + $0x8] sm:$0xff]  ;;  %v17_v60 = vld [vmem:[%s2910_s0 + $0x18] sm:$0xff] }
  0x5c   :  { %1530 = vmatpush1.bf16.msra.mxu0 %v2121_v63  ;;  %1305 = vmatprep.subr.bf16.mxu1 %v2126_v0  ;;  %v2169_v63 = vld [vmem:[%s2909_s1 + $0x3e0] ss:$8 sps:$4 sm:$0xff]   ;;  %v2174_v0 = vld [vmem:[%s2909_s1 + $0x1f4] ss:$8 sps:$4 sm:$0xff]  }
  0x5d   :  { %1531 = vmatprep.subr.bf16.mxu0 %v2129_v1  ;;  %1250 = vmatprep.mubr.bf16.mxu1 %v1699_v2  ;;  %v2177_v1 = vld [vmem:[%s2909_s1 + $0x3f4] ss:$8 sps:$4 sm:$0xff]   ;;  %v1669_v2 = vcombine.high %v15_v56, %v19_v59 }
  0x5e   :  { %1476 = vmatprep.mubr.bf16.mxu0 %v1703_v3  ;;  %v1673_v3 = vcombine.high %v17_v60, %v21_v61 }
  0x5f   :  { %1306 = vmatpush1.bf16.msra.mxu1 %v2124_v4  ;;  %v2172_v4 = vld [vmem:[%s2909_s1 + $0x1f0] ss:$8 sps:$4 sm:$0xff]  }
  0x60   :  { %1532 = vmatpush1.bf16.msra.mxu0 %v2127_v5  ;;  %1307 = vmatprep.subr.bf16.mxu1 %v2132_v6  ;;  %v2175_v5 = vld [vmem:[%s2909_s1 + $0x3f0] ss:$8 sps:$4 sm:$0xff]   ;;  %v23_v6 = vld [vmem:[%s2910_s0 + $0x48] sm:$0xff] }
  0x61   :  { %1533 = vmatprep.subr.bf16.mxu0 %v2135_v7  ;;  %v27_v7 = vld [vmem:[%s2910_s0 + $0x68] sm:$0xff] }
  0x62   :  { %1251 = vmatmul.mubr.bf16.gmra.mrb[16].mxu1 %v1698_v10  ;;  %v1668_v10 = vcombine.low %v15_v56, %v19_v59  ;;  %v1677_v12 = vcombine.high %v23_v6, %v27_v7  ;;  %v73_v56 = vld [vmem:[%s2910_s0 + $0x1d8] sm:$0xff] }
  0x63   :  { %1477 = vmatmul.mubr.bf16.gmra.mrb[16].mxu0 %v1702_v11  ;;  %1308 = vmatpush1.bf16.msra.mxu1 %v2130_v14  ;;  %v1672_v11 = vcombine.low %v17_v60, %v21_v61  ;;  %v31_v14 = vld [vmem:[%s2910_s0 + $0x88] sm:$0xff] }
  0x64   :  { %1534 = vmatpush1.bf16.msra.mxu0 %v2133_v15  ;;  %1309 = vmatprep.subr.bf16.mxu1 %v2138_v16  ;;  %v35_v15 = vld [vmem:[%s2910_s0 + $0xa8] sm:$0xff]  ;;  %v33_v16 = vld [vmem:[%s2910_s0 + $0x98] sm:$0xff] }
  0x65   :  { %1535 = vmatprep.subr.bf16.mxu0 %v2141_v17  ;;  %1260 = vmatprep.mubr.bf16.mxu1 %v1707_v18  ;;  %v37_v17 = vld [vmem:[%s2910_s0 + $0xb8] sm:$0xff]  ;;  %v1676_v18 = vcombine.low %v23_v6, %v27_v7 }
  0x66   :  { %1486 = vmatprep.mubr.bf16.mxu0 %v1711_v19  ;;  %v1680_v19 = vcombine.low %v25_v8, %v29_v9  ;;  %v1688_v27 = vcombine.low %v33_v16, %v37_v17 }
  0x67   :  { %1310 = vmatpush1.bf16.msra.mxu1 %v2136_v20  ;;  %v1685_v20 = vcombine.high %v31_v14, %v35_v15 }
  0x68   :  { %1536 = vmatpush1.bf16.msra.mxu0 %v2139_v21  ;;  %1311 = vmatprep.subr.bf16.mxu1 %v2144_v22  ;;  %v1689_v21 = vcombine.high %v33_v16, %v37_v17  ;;  %v39_v22 = vld [vmem:[%s2910_s0 + $0xc8] sm:$0xff] }
  0x69   :  { %1537 = vmatprep.subr.bf16.mxu0 %v2147_v23  ;;  %v43_v23 = vld [vmem:[%s2910_s0 + $0xe8] sm:$0xff] }
  0x6a   :  { %1261 = vmatmul.mubr.bf16.gmra.mrb[20].mxu1 %v1706_v25  ;;  %v45_v25 = vld [vmem:[%s2910_s0 + $0xf8] sm:$0xff]  ;;  %v1693_v28 = vcombine.high %v39_v22, %v43_v23 }
  0x6b   :  { %1487 = vmatmul.mubr.bf16.gmra.mrb[20].mxu0 %v1710_v26  ;;  %1312 = vmatpush1.bf16.msra.mxu1 %v2142_v30  ;;  %v1684_v26 = vcombine.low %v31_v14, %v35_v15  ;;  %v1697_v29 = vcombine.high %v41_v24, %v45_v25  ;;  %v47_v30 = vld [vmem:[%s2910_s0 + $0x108] sm:$0xff] }
  0x6c   :  { %1538 = vmatpush1.bf16.msra.mxu0 %v2145_v31  ;;  %1313 = vmatprep.subr.bf16.mxu1 %v2150_v32  ;;  %v51_v31 = vld [vmem:[%s2910_s0 + $0x128] sm:$0xff]  ;;  %v49_v32 = vld [vmem:[%s2910_s0 + $0x118] sm:$0xff] }
  0x6d   :  { %1539 = vmatprep.subr.bf16.mxu0 %v2153_v33  ;;  %1270 = vmatprep.mubr.bf16.mxu1 %v1715_v34  ;;  %v53_v33 = vld [vmem:[%s2910_s0 + $0x138] sm:$0xff]  ;;  %v1692_v34 = vcombine.low %v39_v22, %v43_v23 }
  0x6e   :  { %1496 = vmatprep.mubr.bf16.mxu0 %v1719_v35  ;;  %v1696_v35 = vcombine.low %v41_v24, %v45_v25  ;;  %v1704_v43 = vcombine.low %v49_v32, %v53_v33 }
  0x6f   :  { %1314 = vmatpush1.bf16.msra.mxu1 %v2148_v36  ;;  %v1701_v36 = vcombine.high %v47_v30, %v51_v31 }
  0x70   :  { %1540 = vmatpush1.bf16.msra.mxu0 %v2151_v37  ;;  %1315 = vmatprep.subr.bf16.mxu1 %v2156_v38  ;;  %v1705_v37 = vcombine.high %v49_v32, %v53_v33  ;;  %v55_v38 = vld [vmem:[%s2910_s0 + $0x148] sm:$0xff] }
  0x71   :  { %1541 = vmatprep.subr.bf16.mxu0 %v2159_v39  ;;  %v59_v39 = vld [vmem:[%s2910_s0 + $0x168] sm:$0xff] }
  0x72   :  { %1271 = vmatmul.mubr.bf16.gmra.mrb[24].mxu1 %v1714_v41  ;;  %v61_v41 = vld [vmem:[%s2910_s0 + $0x178] sm:$0xff]  ;;  %v1709_v44 = vcombine.high %v55_v38, %v59_v39 }
  0x73   :  { %1497 = vmatmul.mubr.bf16.gmra.mrb[24].mxu0 %v1718_v42  ;;  %1316 = vmatpush1.bf16.msra.mxu1 %v2154_v46  ;;  %v1700_v42 = vcombine.low %v47_v30, %v51_v31  ;;  %v1713_v45 = vcombine.high %v57_v40, %v61_v41  ;;  %v63_v46 = vld [vmem:[%s2910_s0 + $0x188] sm:$0xff] }
  0x74   :  { %1542 = vmatpush1.bf16.msra.mxu0 %v2157_v47  ;;  %1317 = vmatprep.subr.bf16.mxu1 %v2162_v48  ;;  %v67_v47 = vld [vmem:[%s2910_s0 + $0x1a8] sm:$0xff]  ;;  %v65_v48 = vld [vmem:[%s2910_s0 + $0x198] sm:$0xff] }
  0x75   :  { %1543 = vmatprep.subr.bf16.mxu0 %v2165_v49  ;;  %1280 = vmatprep.mubr.bf16.mxu1 %v1723_v50  ;;  %v69_v49 = vld [vmem:[%s2910_s0 + $0x1b8] sm:$0xff]  ;;  %v1708_v50 = vcombine.low %v55_v38, %v59_v39 }
  0x76   :  { %1506 = vmatprep.mubr.bf16.mxu0 %v1727_v51  ;;  %v1712_v51 = vcombine.low %v57_v40, %v61_v41  ;;  %v1720_v59 = vcombine.low %v65_v48, %v69_v49 }
  0x77   :  { %1318 = vmatpush1.bf16.msra.mxu1 %v2160_v52  ;;  %v1717_v52 = vcombine.high %v63_v46, %v67_v47 }
  0x78   :  { %1544 = vmatpush1.bf16.msra.mxu0 %v2163_v53  ;;  %1319 = vmatprep.subr.bf16.mxu1 %v2168_v54  ;;  %v1721_v53 = vcombine.high %v65_v48, %v69_v49  ;;  %v71_v54 = vld [vmem:[%s2910_s0 + $0x1c8] sm:$0xff] }
  0x79   :  { %1545 = vmatprep.subr.bf16.mxu0 %v2171_v55  ;;  %v75_v55 = vld [vmem:[%s2910_s0 + $0x1e8] sm:$0xff] }
  0x7a   :  { %1281 = vmatmul.mubr.bf16.gmra.mrb[28].mxu1 %v1722_v57  ;;  %v77_v57 = vld [vmem:[%s2910_s0 + $0x1f8] sm:$0xff]  ;;  %v1725_v60 = vcombine.high %v71_v54, %v75_v55 }
  0x7b   :  { %1507 = vmatmul.mubr.bf16.gmra.mrb[28].mxu0 %v1726_v58  ;;  %1320 = vmatpush1.bf16.msra.mxu1 %v2166_v62  ;;  %v1716_v58 = vcombine.low %v63_v46, %v67_v47  ;;  %v1729_v61 = vcombine.high %v73_v56, %v77_v57  ;;  %v1724_v62 = vcombine.low %v71_v54, %v75_v55 }
  0x7c   :  { %1546 = vmatpush1.bf16.msra.mxu0 %v2169_v63  ;;  %1321 = vmatprep.subr.bf16.mxu1 %v2174_v0  ;;  %v1728_v63 = vcombine.low %v73_v56, %v77_v57  ;;  %v208_v0 = vlaneseq }
  0x7d   :  { %1547 = vmatprep.subr.bf16.mxu0 %v2177_v1  ;;  %1323 = vmatprep.mubr.bf16.mxu1 %v1669_v2 }
  0x7e   :  { %1549 = vmatprep.mubr.bf16.mxu0 %v1673_v3  ;;  %v209_v1 = vshrl.u32 %v208_v0, 7  ;;  %v206_v3 = vld [vmem:[%s2911_s2] sm:$0x3] }
  0x7f   :  { %1322 = vmatpush1.bf16.msra.mxu1 %v2172_v4 }
  0x80   :  { %1548 = vmatpush1.bf16.msra.mxu0 %v2175_v5  ;;  %v210_v2 = vsub.s32 0, %v209_v1  ;;  %v214_v4 = vsub.s32 1, %v209_v1 }
  0x82   :  { %1324 = vmatmul.mubr.bf16.vlgmr.msra.gmra.mrb[0].mxu1 %v1668_v10  ;;  %v2777_v5 = vrot.slane %v206_v3, %v210_v2  ;;  %v2779_v6 = vrot.slane %v206_v3, %v214_v4 }
  0x83   :  { %1550 = vmatmul.mubr.bf16.vlgmr.msra.gmra.mrb[0].mxu0 %v1672_v11  ;;  %1333 = vmatprep.mubr.bf16.mxu1 %v1677_v12 }
  0x84   :  { %1559 = vmatprep.mubr.bf16.mxu0 %v1681_v13 }
  0x8a   :  { %1334 = vmatmul.mubr.bf16.gmra.mrb[4].mxu1 %v1676_v18 }
  0x8b   :  { %1560 = vmatmul.mubr.bf16.gmra.mrb[4].mxu0 %v1680_v19  ;;  %1343 = vmatprep.mubr.bf16.mxu1 %v1685_v20 }
  0x8c   :  { %1569 = vmatprep.mubr.bf16.mxu0 %v1689_v21 }
  0x92   :  { %1344 = vmatmul.mubr.bf16.gmra.mrb[8].mxu1 %v1684_v26 }
  0x93   :  { %1570 = vmatmul.mubr.bf16.gmra.mrb[8].mxu0 %v1688_v27  ;;  %1353 = vmatprep.mubr.bf16.mxu1 %v1693_v28 }
  0x94   :  { %1579 = vmatprep.mubr.bf16.mxu0 %v1697_v29 }
  0x9a   :  { %1354 = vmatmul.mubr.bf16.gmra.mrb[12].mxu1 %v1692_v34 }
  0x9b   :  { %1580 = vmatmul.mubr.bf16.gmra.mrb[12].mxu0 %v1696_v35  ;;  %1363 = vmatprep.mubr.bf16.mxu1 %v1701_v36 }
  0x9c   :  { %1589 = vmatprep.mubr.bf16.mxu0 %v1705_v37 }
  0xa2   :  { %1364 = vmatmul.mubr.bf16.gmra.mrb[16].mxu1 %v1700_v42 }
  0xa3   :  { %1590 = vmatmul.mubr.bf16.gmra.mrb[16].mxu0 %v1704_v43  ;;  %1373 = vmatprep.mubr.bf16.mxu1 %v1709_v44 }
  0xa4   :  { %1599 = vmatprep.mubr.bf16.mxu0 %v1713_v45 }
  0xaa   :  { %1374 = vmatmul.mubr.bf16.gmra.mrb[20].mxu1 %v1708_v50 }
  0xab   :  { %1600 = vmatmul.mubr.bf16.gmra.mrb[20].mxu0 %v1712_v51  ;;  %1383 = vmatprep.mubr.bf16.mxu1 %v1717_v52 }
  0xac   :  { %1609 = vmatprep.mubr.bf16.mxu0 %v1721_v53 }
  0xb2   :  { %1384 = vmatmul.mubr.bf16.gmra.mrb[24].mxu1 %v1716_v58 }
  0xb3   :  { %1610 = vmatmul.mubr.bf16.gmra.mrb[24].mxu0 %v1720_v59  ;;  %1393 = vmatprep.mubr.bf16.mxu1 %v1725_v60 }
  0xb4   :  { %1619 = vmatprep.mubr.bf16.mxu0 %v1729_v61 }
  0xba   :  { %1394 = vmatmul.mubr.bf16.gmra.mrb[28].mxu1 %v1724_v62 }
  0xbb   :  { %1620 = vmatmul.mubr.bf16.gmra.mrb[28].mxu0 %v1728_v63 }
 0x155   :  { %v1325_v7 = vpop.f32.mrb[0].mxu1 }
 0x156   :  { %v1551_v8 = vpop.f32.mrb[0].mxu0  ;;  %v1858_v9 = vadd.f32 %v1325_v7, %v2777_v5  ;;  %v1327_v10 = vpop.f32.mrb[1].mxu1 }
 0x157   :  { %v1553_v11 = vpop.f32.mrb[1].mxu0  ;;  %v1860_v12 = vadd.f32 %v1327_v10, %v2779_v6  ;;  %v1329_v13 = vpop.f32.mrb[2].mxu1 }
 0x158   :  { %v1555_v14 = vpop.f32.mrb[2].mxu0  ;;  %v1859_v15 = vadd.f32 %v1858_v9, %v1551_v8  ;;  %v1862_v16 = vadd.f32 %v1329_v13, %v2777_v5  ;;  %v1331_v17 = vpop.f32.mrb[3].mxu1 }
 0x159   :  { %v1557_v18 = vpop.f32.mrb[3].mxu0  ;;  %v1861_v19 = vadd.f32 %v1860_v12, %v1553_v11  ;;  %v1864_v20 = vadd.f32 %v1331_v17, %v2779_v6 }
 0x15a   :  { %1630 = vst [vmem:[%s2912_s3] sm:$0xff] %v1859_v15  ;;  %v1863_v21 = vadd.f32 %v1862_v16, %v1555_v14 }
 0x15b   :  { %1631 = vst [vmem:[%s2912_s3 + $0x8] sm:$0xff] %v1861_v19  ;;  %v1865_v22 = vadd.f32 %v1864_v20, %v1557_v18 }
 0x15c   :  { %1632 = vst [vmem:[%s2912_s3 + $0x10] sm:$0xff] %v1863_v21 }
 0x15d   :  { %1633 = vst [vmem:[%s2912_s3 + $0x18] sm:$0xff] %v1865_v22  ;;  %v1335_v23 = vpop.f32.mrb[4].mxu1 }
 0x15e   :  { %v1561_v24 = vpop.f32.mrb[4].mxu0  ;;  %v1866_v25 = vadd.f32 %v1335_v23, %v2777_v5  ;;  %v1337_v26 = vpop.f32.mrb[5].mxu1 }
 0x15f   :  { %v1563_v27 = vpop.f32.mrb[5].mxu0  ;;  %v1868_v28 = vadd.f32 %v1337_v26, %v2779_v6  ;;  %v1339_v29 = vpop.f32.mrb[6].mxu1 }
 0x160   :  { %v1565_v30 = vpop.f32.mrb[6].mxu0  ;;  %v1867_v31 = vadd.f32 %v1866_v25, %v1561_v24  ;;  %v1870_v32 = vadd.f32 %v1339_v29, %v2777_v5  ;;  %v1341_v33 = vpop.f32.mrb[7].mxu1 }
 0x161   :  { %v1567_v34 = vpop.f32.mrb[7].mxu0  ;;  %v1869_v35 = vadd.f32 %v1868_v28, %v1563_v27  ;;  %v1872_v36 = vadd.f32 %v1341_v33, %v2779_v6 }
 0x162   :  { %1634 = vst [vmem:[%s2912_s3 + $0x20] sm:$0xff] %v1867_v31  ;;  %v1871_v37 = vadd.f32 %v1870_v32, %v1565_v30 }
 0x163   :  { %1635 = vst [vmem:[%s2912_s3 + $0x28] sm:$0xff] %v1869_v35  ;;  %v1873_v38 = vadd.f32 %v1872_v36, %v1567_v34 }
 0x164   :  { %1636 = vst [vmem:[%s2912_s3 + $0x30] sm:$0xff] %v1871_v37 }
 0x165   :  { %1637 = vst [vmem:[%s2912_s3 + $0x38] sm:$0xff] %v1873_v38  ;;  %v1345_v39 = vpop.f32.mrb[8].mxu1 }
 0x166   :  { %v1571_v40 = vpop.f32.mrb[8].mxu0  ;;  %v1874_v41 = vadd.f32 %v1345_v39, %v2777_v5  ;;  %v1347_v42 = vpop.f32.mrb[9].mxu1 }
 0x167   :  { %v1573_v43 = vpop.f32.mrb[9].mxu0  ;;  %v1876_v44 = vadd.f32 %v1347_v42, %v2779_v6  ;;  %v1349_v45 = vpop.f32.mrb[10].mxu1 }
 0x168   :  { %v1575_v46 = vpop.f32.mrb[10].mxu0  ;;  %v1875_v47 = vadd.f32 %v1874_v41, %v1571_v40  ;;  %v1878_v48 = vadd.f32 %v1349_v45, %v2777_v5  ;;  %v1351_v49 = vpop.f32.mrb[11].mxu1 }
 0x169   :  { %v1577_v50 = vpop.f32.mrb[11].mxu0  ;;  %v1877_v51 = vadd.f32 %v1876_v44, %v1573_v43  ;;  %v1880_v52 = vadd.f32 %v1351_v49, %v2779_v6 }
 0x16a   :  { %1638 = vst [vmem:[%s2912_s3 + $0x40] sm:$0xff] %v1875_v47  ;;  %v1879_v53 = vadd.f32 %v1878_v48, %v1575_v46 }
 0x16b   :  { %1639 = vst [vmem:[%s2912_s3 + $0x48] sm:$0xff] %v1877_v51  ;;  %v1881_v54 = vadd.f32 %v1880_v52, %v1577_v50 }
 0x16c   :  { %1640 = vst [vmem:[%s2912_s3 + $0x50] sm:$0xff] %v1879_v53 }
 0x16d   :  { %1641 = vst [vmem:[%s2912_s3 + $0x58] sm:$0xff] %v1881_v54  ;;  %v1355_v55 = vpop.f32.mrb[12].mxu1 }
 0x16e   :  { %v1581_v56 = vpop.f32.mrb[12].mxu0  ;;  %v1882_v57 = vadd.f32 %v1355_v55, %v2777_v5  ;;  %v1357_v58 = vpop.f32.mrb[13].mxu1 }
 0x16f   :  { %v1583_v59 = vpop.f32.mrb[13].mxu0  ;;  %v1884_v60 = vadd.f32 %v1357_v58, %v2779_v6  ;;  %v1359_v61 = vpop.f32.mrb[14].mxu1 }
 0x170   :  { %v1585_v62 = vpop.f32.mrb[14].mxu0  ;;  %v1883_v63 = vadd.f32 %v1882_v57, %v1581_v56  ;;  %v1886_v0 = vadd.f32 %v1359_v61, %v2777_v5  ;;  %v1361_v1 = vpop.f32.mrb[15].mxu1 }
 0x171   :  { %v1587_v2 = vpop.f32.mrb[15].mxu0  ;;  %v1885_v3 = vadd.f32 %v1884_v60, %v1583_v59  ;;  %v1888_v4 = vadd.f32 %v1361_v1, %v2779_v6 }
 0x172   :  { %1642 = vst [vmem:[%s2912_s3 + $0x60] sm:$0xff] %v1883_v63  ;;  %v1887_v7 = vadd.f32 %v1886_v0, %v1585_v62 }
 0x173   :  { %1643 = vst [vmem:[%s2912_s3 + $0x68] sm:$0xff] %v1885_v3  ;;  %v1889_v8 = vadd.f32 %v1888_v4, %v1587_v2 }
 0x174   :  { %1644 = vst [vmem:[%s2912_s3 + $0x70] sm:$0xff] %v1887_v7 }
 0x175   :  { %1645 = vst [vmem:[%s2912_s3 + $0x78] sm:$0xff] %v1889_v8  ;;  %v1365_v9 = vpop.f32.mrb[16].mxu1 }
 0x176   :  { %v1591_v10 = vpop.f32.mrb[16].mxu0  ;;  %v1890_v11 = vadd.f32 %v1365_v9, %v2777_v5  ;;  %v1367_v12 = vpop.f32.mrb[17].mxu1 }
 0x177   :  { %v1593_v13 = vpop.f32.mrb[17].mxu0  ;;  %v1892_v14 = vadd.f32 %v1367_v12, %v2779_v6  ;;  %v1369_v15 = vpop.f32.mrb[18].mxu1 }
 0x178   :  { %v1595_v16 = vpop.f32.mrb[18].mxu0  ;;  %v1891_v17 = vadd.f32 %v1890_v11, %v1591_v10  ;;  %v1894_v18 = vadd.f32 %v1369_v15, %v2777_v5  ;;  %v1371_v19 = vpop.f32.mrb[19].mxu1 }
 0x179   :  { %v1597_v20 = vpop.f32.mrb[19].mxu0  ;;  %v1893_v21 = vadd.f32 %v1892_v14, %v1593_v13  ;;  %v1896_v22 = vadd.f32 %v1371_v19, %v2779_v6 }
 0x17a   :  { %1646 = vst [vmem:[%s2912_s3 + $0x80] sm:$0xff] %v1891_v17  ;;  %v1895_v23 = vadd.f32 %v1894_v18, %v1595_v16 }
 0x17b   :  { %1647 = vst [vmem:[%s2912_s3 + $0x88] sm:$0xff] %v1893_v21  ;;  %v1897_v24 = vadd.f32 %v1896_v22, %v1597_v20 }
 0x17c   :  { %1648 = vst [vmem:[%s2912_s3 + $0x90] sm:$0xff] %v1895_v23 }
 0x17d   :  { %1649 = vst [vmem:[%s2912_s3 + $0x98] sm:$0xff] %v1897_v24  ;;  %v1375_v25 = vpop.f32.mrb[20].mxu1 }
 0x17e   :  { %v1601_v26 = vpop.f32.mrb[20].mxu0  ;;  %v1898_v27 = vadd.f32 %v1375_v25, %v2777_v5  ;;  %v1377_v28 = vpop.f32.mrb[21].mxu1 }
 0x17f   :  { %v1603_v29 = vpop.f32.mrb[21].mxu0  ;;  %v1900_v30 = vadd.f32 %v1377_v28, %v2779_v6  ;;  %v1379_v31 = vpop.f32.mrb[22].mxu1 }
 0x180   :  { %v1605_v32 = vpop.f32.mrb[22].mxu0  ;;  %v1899_v33 = vadd.f32 %v1898_v27, %v1601_v26  ;;  %v1902_v34 = vadd.f32 %v1379_v31, %v2777_v5  ;;  %v1381_v35 = vpop.f32.mrb[23].mxu1 }
 0x181   :  { %v1607_v36 = vpop.f32.mrb[23].mxu0  ;;  %v1901_v37 = vadd.f32 %v1900_v30, %v1603_v29  ;;  %v1904_v38 = vadd.f32 %v1381_v35, %v2779_v6 }
 0x182   :  { %1650 = vst [vmem:[%s2912_s3 + $0xa0] sm:$0xff] %v1899_v33  ;;  %v1903_v39 = vadd.f32 %v1902_v34, %v1605_v32 }
 0x183   :  { %1651 = vst [vmem:[%s2912_s3 + $0xa8] sm:$0xff] %v1901_v37  ;;  %v1905_v40 = vadd.f32 %v1904_v38, %v1607_v36 }
 0x184   :  { %1652 = vst [vmem:[%s2912_s3 + $0xb0] sm:$0xff] %v1903_v39 }
 0x185   :  { %1653 = vst [vmem:[%s2912_s3 + $0xb8] sm:$0xff] %v1905_v40  ;;  %v1385_v41 = vpop.f32.mrb[24].mxu1 }
 0x186   :  { %v1611_v42 = vpop.f32.mrb[24].mxu0  ;;  %v1906_v43 = vadd.f32 %v1385_v41, %v2777_v5  ;;  %v1387_v44 = vpop.f32.mrb[25].mxu1 }
 0x187   :  { %v1613_v45 = vpop.f32.mrb[25].mxu0  ;;  %v1908_v46 = vadd.f32 %v1387_v44, %v2779_v6  ;;  %v1389_v47 = vpop.f32.mrb[26].mxu1 }
 0x188   :  { %v1615_v48 = vpop.f32.mrb[26].mxu0  ;;  %v1907_v49 = vadd.f32 %v1906_v43, %v1611_v42  ;;  %v1910_v50 = vadd.f32 %v1389_v47, %v2777_v5  ;;  %v1391_v51 = vpop.f32.mrb[27].mxu1 }
 0x189   :  { %v1617_v52 = vpop.f32.mrb[27].mxu0  ;;  %v1909_v53 = vadd.f32 %v1908_v46, %v1613_v45  ;;  %v1912_v54 = vadd.f32 %v1391_v51, %v2779_v6 }
 0x18a   :  { %1654 = vst [vmem:[%s2912_s3 + $0xc0] sm:$0xff] %v1907_v49  ;;  %v1911_v55 = vadd.f32 %v1910_v50, %v1615_v48 }
 0x18b   :  { %1655 = vst [vmem:[%s2912_s3 + $0xc8] sm:$0xff] %v1909_v53  ;;  %v1913_v56 = vadd.f32 %v1912_v54, %v1617_v52 }
 0x18c   :  { %1656 = vst [vmem:[%s2912_s3 + $0xd0] sm:$0xff] %v1911_v55 }
 0x18d   :  { %1657 = vst [vmem:[%s2912_s3 + $0xd8] sm:$0xff] %v1913_v56  ;;  %v1395_v57 = vpop.f32.mrb[28].mxu1 }
 0x18e   :  { %v1621_v58 = vpop.f32.mrb[28].mxu0  ;;  %v1914_v59 = vadd.f32 %v1395_v57, %v2777_v5  ;;  %v1397_v60 = vpop.f32.mrb[29].mxu1 }
 0x18f   :  { %v1623_v61 = vpop.f32.mrb[29].mxu0  ;;  %v1916_v62 = vadd.f32 %v1397_v60, %v2779_v6  ;;  %v1399_v63 = vpop.f32.mrb[30].mxu1 }
 0x190   :  { %v1625_v0 = vpop.f32.mrb[30].mxu0  ;;  %v1915_v1 = vadd.f32 %v1914_v59, %v1621_v58  ;;  %v1918_v2 = vadd.f32 %v1399_v63, %v2777_v5  ;;  %v1401_v3 = vpop.f32.mrb[31].mxu1 }
 0x191   :  { %v1627_v4 = vpop.f32.mrb[31].mxu0  ;;  %v1917_v7 = vadd.f32 %v1916_v62, %v1623_v61  ;;  %v1920_v8 = vadd.f32 %v1401_v3, %v2779_v6 }
 0x192   :  { %1658 = vst [vmem:[%s2912_s3 + $0xe0] sm:$0xff] %v1915_v1  ;;  %v1919_v9 = vadd.f32 %v1918_v2, %v1625_v0 }
 0x193   :  { %1659 = vst [vmem:[%s2912_s3 + $0xe8] sm:$0xff] %v1917_v7  ;;  %v1921_v10 = vadd.f32 %v1920_v8, %v1627_v4 }
 0x194   :  { %1660 = vst [vmem:[%s2912_s3 + $0xf0] sm:$0xff] %v1919_v9 }
 0x195   :  { %1661 = vst [vmem:[%s2912_s3 + $0xf8] sm:$0xff] %v1921_v10 }

// kernel: _lambda_.19
= control target key start
LH: loop header
LB: loop body
LE: loop exit
PB: predicated region body
PF: predicated region fallthrough
CT: control target
= control target key end

     0   :  { %v545_v8 = vmov 0.0   ;;  %v547_v9 = vmov 0.0   ;;  %v549_v10 = vmov 0.0   ;;  %v551_v11 = vmov 0.0   ;;  %s553_s28 = smov 0   ;;  %s622_s0 = inlined_call_operand.vmem [shape: f32[8,2,256], index: 0, kind: input, shape index: {}]   ;;  %s623_s1 = inlined_call_operand.vmem [shape: f32[2,32,128], index: 1, kind: input, shape index: {}]   ;;  %s624_s2 = inlined_call_operand.vmem [shape: f32[8,2,32], index: 2, kind: output, shape index: {0}]   ;;  %s625_s3 = inlined_call_operand.vmem [shape: f32[8,2,32], index: 3, kind: output, shape index: {1}]  }
   0x1   :  { %v508_v0 = vld [vmem:[%s623_s1] sm:$0xff]  ;;  %v513_v1 = vld [vmem:[%s623_s1 + $0x8] sm:$0xff]  ;;  %v518_v2 = vld [vmem:[%s623_s1 + $0x10] sm:$0xff] }
   0x2   :  { %v523_v3 = vld [vmem:[%s623_s1 + $0x18] sm:$0xff]  ;;  %v528_v4 = vld [vmem:[%s623_s1 + $0x20] sm:$0xff]  ;;  %v533_v5 = vld [vmem:[%s623_s1 + $0x28] sm:$0xff] }
   0x3   :  { %v538_v6 = vld [vmem:[%s623_s1 + $0x30] sm:$0xff]  ;;  %v543_v7 = vld [vmem:[%s623_s1 + $0x38] sm:$0xff] }
   0x4 LB: > { %v45_v12 = vlaneseq  ;;  %v479_v13 = vmov 1983009808   ;;  %v480_v16 = vmov 0.0|0.0   ;;  %v366_v17 = vpack.c.bf16 %v513_v1, %v508_v0  ;;  %s483_s1 = smov 32   ;;  %s32_s29 = ssub.s32 7, %s477_s28  ;;  %s477_s28 = sphi %s553_s28, %s27_s28   ;;  %v473_v11 = vphi %v551_v11, %v234_v11   ;;  %v469_v10 = vphi %v549_v10, %v228_v10   ;;  %v465_v9 = vphi %v547_v9, %v258_v9   ;;  %v461_v8 = vphi %v545_v8, %v252_v8  }
   0x5   : > { %v43_v14 = vunpack.c.l.s4 %v479_v13  ;;  %365 = vmatprep.subr.bf16.mxu0 %v480_v16  ;;  %371 = vmatprep.subr.bf16.mxu1 %v480_v16  ;;  %v372_v18 = vpack.c.bf16 %v533_v5, %v528_v4  ;;  %v369_v20 = vpack.c.bf16 %v523_v3, %v518_v2  ;;  %v375_v21 = vpack.c.bf16 %v543_v7, %v538_v6  ;;  %s331_s30 = sshll.u32 %s477_s28, 2  ;;  %s332_s4 = sshll.u32 %s32_s29, 2 }
   0x6   : > { %v46_v15 = vshrl.u32 %v45_v12, 7  ;;  %367 = vmatpush3.bf16.msra.mxu0 %v366_v17  ;;  %vm481_vm0 = vmmov 0   ;;  %v482_v23 = vmov 0.0   ;;  %vm51_vm1 = vcmask 261120   ;;  %s35_s7 = scalar_lea.vmem %s622_s0, %s331_s30  ;;  %s39_s10 = scalar_lea.vmem %s622_s0, %s332_s4 }
   0x7   : > { %v44_v19 = vunpack.c.0.s8 %v43_v14  ;;  %373 = vmatpush3.bf16.msra.mxu1 %v372_v18  ;;  %368 = vmatprep.subr.bf16.mxu0 %v480_v16  ;;  %v36_v28 = vld [vmem:[%s35_s7] sm:$0xf]  ;;  %s484_s11 = smov 64   ;;  %s323_s12 = sshll.u32 %s477_s28, 1  ;;  %vm271_vm2 = vcmask 254976  }
   0x8   : > { %351 = vmatprep.mubr.msk.f32.mxu0 %vm481_vm0, %v482_v23  ;;  %374 = vmatprep.subr.bf16.mxu1 %v480_v16  ;;  %v40_v29 = vld [vmem:[%s39_s10] sm:$0xf]  ;;  %s270_s15 = scalar_lea.vmem %s624_s2, %s323_s12  ;;  %s325_s16 = sshll.u32 %s32_s29, 1 }
   0x9   : > { %v574_v22 = vsub.s32 %v44_v19, %v46_v15  ;;  %362 = vmatprep.mubr.msk.f32.mxu1 %vm481_vm0, %v482_v23  ;;  %v208_v33 = vrot.slane %v40_v29, 2  ;;  %s284_s19 = scalar_lea.vmem %s625_s3, %s325_s16  ;;  %s27_s28 = sadd.s32 1, %s477_s28  }
   0xa   : > { %370 = vmatpush3.bf16.msra.mxu0 %v369_v20  ;;  %p24_p0 = scmp.ge.s32.totalorder %s27_s28, 8  }
   0xb   : > { %v48_v24 = vrot.slane %v473_v11, %v574_v22  ;;  %376 = vmatpush3.bf16.msra.mxu1 %v375_v21  ;;  %v132_v25 = vrot.slane %v465_v9, %v574_v22 }
   0xd   : > { %49 = vrot.lane.b32.xlu0 %v48_v24, %s483_s1 }
  0x11   : > { %133 = vrot.lane.b32.xlu0 %v132_v25, %s483_s1 }
  0x7f   : > { %v50_v26 = vpop.permute.xlu0 %49 }
  0x80   : > { %352 = vmatmul.mubr.msk.f32.vlgmr.msra.gmra.mrb[0].mxu0 %vm51_vm1, %v50_v26 }
  0x83   : > { %v134_v27 = vpop.permute.xlu0 %133 }
  0x84   : > { %363 = vmatmul.mubr.msk.f32.vlgmr.msra.gmra.mrb[0].mxu1 %vm51_vm1, %v134_v27 }
 0x153   : > { %v120_v30 = vpop.f32.mrb[0].mxu0 }
 0x154   : > { %v124_v31 = vadd.f32 %v120_v30, %v36_v28  ;;  %v353_v32 = vpop.f32.mrb[1].mxu0 }
 0x156   : > { %423 = vtanh.f32 %v124_v31  ;;  %v329_v39 = vmul.f32 -1.442695, %v124_v31 }
 0x157   : > { %v203_v34 = vpop.f32.mrb[0].mxu1 }
 0x158   : > { %v210_v35 = vadd.f32 %v208_v33, %v203_v34  ;;  %v364_v36 = vpop.f32.mrb[1].mxu1 }
 0x15a   : > { %425 = vtanh.f32 %v210_v35  ;;  %v330_v40 = vmul.f32 -1.442695, %v210_v35 }
 0x15b   : > { %427 = vpow2.f32 %v329_v39 }
 0x15c   : > { %429 = vpow2.f32 %v330_v40 }
 0x160   : > { %v424_v37 = vpop.eup %423 }
 0x161   : > { %220 = vrot.lane.b32.xlu1 %v424_v37, %s484_s11 }
 0x164   : > { %v426_v38 = vpop.eup %425 }
 0x165   : > { %244 = vrot.lane.b32.xlu1 %v426_v38, %s484_s11  ;;  %v428_v41 = vpop.eup %427 }
 0x166   : > { %v214_v42 = vadd.f32 1.0, %v428_v41  ;;  %v430_v43 = vpop.eup %429 }
 0x167   : > { %v238_v44 = vadd.f32 1.0, %v430_v43 }
 0x168   : > { %431 = vrcp.f32 %v214_v42 }
 0x169   : > { %433 = vrcp.f32 %v238_v44 }
 0x172   : > { %v432_v45 = vpop.eup %431 }
 0x173   : > { %v434_v48 = vpop.eup %433  ;;  %v218_v51 = vmul.f32 %v469_v10, %v432_v45 }
 0x174   : > { %v242_v53 = vmul.f32 %v461_v8, %v434_v48 }
 0x1d3   : > { %v221_v46 = vpop.permute.xlu1 %220 }
 0x1d4   : > { %v223_v47 = vmul.f32 %v432_v45, %v221_v46 }
 0x1d6   : > { %225 = vrot.lane.b32.xlu0 %v223_v47, %s483_s1 }
 0x1d7   : > { %v245_v49 = vpop.permute.xlu1 %244 }
 0x1d8   : > { %v247_v50 = vmul.f32 %v434_v48, %v245_v49 }
 0x1da   : > { %249 = vrot.lane.b32.xlu1 %v247_v50, %s483_s1 }
 0x248   : > { %v226_v52 = vpop.permute.xlu0 %225 }
 0x249   : > { %v228_v10 = vadd.f32 %v226_v52, %v218_v51  }
 0x24b   : > { %435 = vtanh.f32 %v228_v10 }
 0x24c   : > { %v250_v54 = vpop.permute.xlu1 %249 }
 0x24d   : > { %v252_v8 = vadd.f32 %v250_v54, %v242_v53  }
 0x24f   : > { %437 = vtanh.f32 %v252_v8 }
 0x255   : > { %v436_v55 = vpop.eup %435 }
 0x256   : > { %231 = vrot.lane.b32.xlu0 %v436_v55, %s484_s11 }
 0x259   : > { %v438_v56 = vpop.eup %437 }
 0x25a   : > { %255 = vrot.lane.b32.xlu1 %v438_v56, %s484_s11 }
 0x2c8   : > { %v232_v57 = vpop.permute.xlu0 %231 }
 0x2c9   : > { %v234_v11 = vmul.f32 %v432_v45, %v232_v57  }
 0x2cb   : > { %v266_v58 = vrot.slane %v234_v11, %v574_v22 }
 0x2cc   : > { %v256_v59 = vpop.permute.xlu1 %255 }
 0x2cd   : > { %v258_v9 = vmul.f32 %v434_v48, %v256_v59   ;;  %267 = vrot.lane.b32.xlu0 %v266_v58, %s483_s1 }
 0x2cf   : > { %v280_v60 = vrot.slane %v258_v9, %v574_v22 }
 0x2d1   : > { %281 = vrot.lane.b32.xlu1 %v280_v60, %s483_s1 }
 0x33e   :  { %26 = sbr.rel (!%p24_p0) target bundleno = 4 (0x4), region = 48 }
 0x33f   : > { %v268_v61 = vpop.permute.xlu0 %267 }
 0x340   : > { %272 = vst.msk [vmem:[%s270_s15] sm:$0x3] %vm271_vm2, %v268_v61 }
 0x343   : > { %v282_v62 = vpop.permute.xlu1 %281 }
 0x344   : > { %285 = vst.msk [vmem:[%s284_s19] sm:$0x3] %vm271_vm2, %v282_v62 }

// kernel: _lambda_.20
= control target key start
LH: loop header
LB: loop body
LE: loop exit
PB: predicated region body
PF: predicated region fallthrough
CT: control target
= control target key end

     0   :  { %v358_v1 = vmov 0   ;;  %vm131_vm0 = vcmask 523264   ;;  %v41_v17 = vlaneseq  ;;  %s570_s1 = inlined_call_operand.vmem [shape: bf16[64,256], index: 1, kind: input, shape index: {}]   ;;  %s571_s0 = inlined_call_operand.vmem [shape: bf16[128,64], index: 0, kind: input, shape index: {}]   ;;  %s572_s2 = inlined_call_operand.vmem [shape: f32[1,256], index: 2, kind: input, shape index: {}]   ;;  %s573_s3 = inlined_call_operand.vmem [shape: f32[128,256], index: 3, kind: output, shape index: {}]  }
   0x1   :  { %v338_v0 = vld [vmem:[%s570_s1 + $0x4] ss:$8 sps:$4 sm:$0xff]   ;;  %188 = vmatprep.mubr.bf16.mxu0 %v358_v1  ;;  %228 = vmatprep.mubr.bf16.mxu1 %v358_v1  ;;  %v340_v2 = vld [vmem:[%s570_s1] ss:$8 sps:$4 sm:$0xff]   ;;  %v341_v3 = vld [vmem:[%s570_s1 + $0x14] ss:$8 sps:$4 sm:$0xff]  }
   0x2   :  { %156 = vmatprep.subr.bf16.mxu0 %v338_v0  ;;  %329 = vmatprep.subr.bf16.mxu1 %v338_v0  ;;  %v343_v4 = vld [vmem:[%s570_s1 + $0x10] ss:$8 sps:$4 sm:$0xff]   ;;  %v344_v5 = vld [vmem:[%s570_s1 + $0x24] ss:$8 sps:$4 sm:$0xff]   ;;  %v346_v6 = vld [vmem:[%s570_s1 + $0x20] ss:$8 sps:$4 sm:$0xff]  }
   0x3   :  { %157 = vmatpush1.bf16.msra.mxu0 %v340_v2  ;;  %333 = vmatpush1.bf16.msra.mxu1 %v340_v2  ;;  %v347_v7 = vld [vmem:[%s570_s1 + $0x34] ss:$8 sps:$4 sm:$0xff]   ;;  %v349_v8 = vld [vmem:[%s570_s1 + $0x30] ss:$8 sps:$4 sm:$0xff]   ;;  %v350_v9 = vld [vmem:[%s571_s0] sm:$0xff]   ;;  %v42_v18 = vshrl.u32 %v41_v17, 7 }
   0x4   :  { %158 = vmatprep.subr.bf16.mxu0 %v341_v3  ;;  %330 = vmatprep.subr.bf16.mxu1 %v341_v3  ;;  %v351_v10 = vld [vmem:[%s571_s0 + $0x20] sm:$0xff]   ;;  %v352_v11 = vld [vmem:[%s571_s0 + $0x8] sm:$0xff]   ;;  %v354_v13 = vld [vmem:[%s571_s0 + $0x10] sm:$0xff]  }
   0x5   :  { %v353_v12 = vld [vmem:[%s571_s0 + $0x28] sm:$0xff]   ;;  %v355_v14 = vld [vmem:[%s571_s0 + $0x30] sm:$0xff]   ;;  %v356_v15 = vld [vmem:[%s571_s0 + $0x18] sm:$0xff]   ;;  %v43_v19 = vsub.s32 0, %v42_v18  ;;  %v47_v21 = vsub.s32 1, %v42_v18 }
   0x6   :  { %v357_v16 = vld [vmem:[%s571_s0 + $0x38] sm:$0xff]   ;;  %v39_v20 = vld [vmem:[%s572_s2] sm:$0x3] }
   0x7   :  { %159 = vmatpush1.bf16.msra.mxu0 %v343_v4  ;;  %334 = vmatpush1.bf16.msra.mxu1 %v343_v4  ;;  %v438_v22 = vrot.slane %v39_v20, %v43_v19  ;;  %v440_v23 = vrot.slane %v39_v20, %v47_v21 }
   0x8   :  { %160 = vmatprep.subr.bf16.mxu0 %v344_v5  ;;  %331 = vmatprep.subr.bf16.mxu1 %v344_v5 }
   0xb   :  { %161 = vmatpush1.bf16.msra.mxu0 %v346_v6  ;;  %335 = vmatpush1.bf16.msra.mxu1 %v346_v6 }
   0xc   :  { %162 = vmatprep.subr.bf16.mxu0 %v347_v7  ;;  %332 = vmatprep.subr.bf16.mxu1 %v347_v7 }
   0xf   :  { %163 = vmatpush1.bf16.msra.mxu0 %v349_v8  ;;  %336 = vmatpush1.bf16.msra.mxu1 %v349_v8 }
  0x12   :  { %321 = vmatmul.mubr.msk.bf16.vlgmr.msra.gmra.mrb[0].mxu0 %vm131_vm0, %v350_v9  ;;  %325 = vmatmul.mubr.msk.bf16.vlgmr.msra.gmra.mrb[0].mxu1 %vm131_vm0, %v351_v10 }
  0x13   :  { %198 = vmatprep.mubr.bf16.mxu0 %v358_v1  ;;  %238 = vmatprep.mubr.bf16.mxu1 %v358_v1 }
  0x1a   :  { %322 = vmatmul.mubr.msk.bf16.gmra.mrb[4].mxu0 %vm131_vm0, %v352_v11  ;;  %326 = vmatmul.mubr.msk.bf16.gmra.mrb[4].mxu1 %vm131_vm0, %v353_v12 }
  0x1b   :  { %208 = vmatprep.mubr.bf16.mxu0 %v358_v1  ;;  %248 = vmatprep.mubr.bf16.mxu1 %v358_v1 }
  0x22   :  { %323 = vmatmul.mubr.msk.bf16.gmra.mrb[8].mxu0 %vm131_vm0, %v354_v13  ;;  %327 = vmatmul.mubr.msk.bf16.gmra.mrb[8].mxu1 %vm131_vm0, %v355_v14 }
  0x23   :  { %218 = vmatprep.mubr.bf16.mxu0 %v358_v1  ;;  %258 = vmatprep.mubr.bf16.mxu1 %v358_v1 }
  0x2a   :  { %324 = vmatmul.mubr.msk.bf16.gmra.mrb[12].mxu0 %vm131_vm0, %v356_v15  ;;  %328 = vmatmul.mubr.msk.bf16.gmra.mrb[12].mxu1 %vm131_vm0, %v357_v16 }
  0xe5   :  { %v190_v24 = vpop.f32.mrb[0].mxu0  ;;  %v230_v25 = vpop.f32.mrb[0].mxu1 }
  0xe6   :  { %v191_v26 = vadd.f32 %v190_v24, %v438_v22  ;;  %v231_v27 = vadd.f32 %v230_v25, %v438_v22  ;;  %v192_v28 = vpop.f32.mrb[1].mxu0  ;;  %v232_v29 = vpop.f32.mrb[1].mxu1 }
  0xe7   :  { %v193_v30 = vadd.f32 %v192_v28, %v440_v23  ;;  %v233_v31 = vadd.f32 %v232_v29, %v440_v23  ;;  %v194_v32 = vpop.f32.mrb[2].mxu0  ;;  %v234_v33 = vpop.f32.mrb[2].mxu1 }
  0xe8   :  { %269 = vst [vmem:[%s573_s3] sm:$0xff] %v191_v26  ;;  %285 = vst [vmem:[%s573_s3 + $0x80] sm:$0xff] %v231_v27  ;;  %v195_v34 = vadd.f32 %v194_v32, %v438_v22  ;;  %v235_v35 = vadd.f32 %v234_v33, %v438_v22  ;;  %v196_v36 = vpop.f32.mrb[3].mxu0  ;;  %v236_v37 = vpop.f32.mrb[3].mxu1 }
  0xe9   :  { %270 = vst [vmem:[%s573_s3 + $0x8] sm:$0xff] %v193_v30  ;;  %286 = vst [vmem:[%s573_s3 + $0x88] sm:$0xff] %v233_v31  ;;  %v197_v38 = vadd.f32 %v196_v36, %v440_v23  ;;  %v237_v39 = vadd.f32 %v236_v37, %v440_v23 }
  0xea   :  { %271 = vst [vmem:[%s573_s3 + $0x10] sm:$0xff] %v195_v34  ;;  %287 = vst [vmem:[%s573_s3 + $0x90] sm:$0xff] %v235_v35 }
  0xeb   :  { %272 = vst [vmem:[%s573_s3 + $0x18] sm:$0xff] %v197_v38  ;;  %288 = vst [vmem:[%s573_s3 + $0x98] sm:$0xff] %v237_v39 }
  0xed   :  { %v200_v40 = vpop.f32.mrb[4].mxu0  ;;  %v240_v41 = vpop.f32.mrb[4].mxu1 }
  0xee   :  { %v201_v42 = vadd.f32 %v200_v40, %v438_v22  ;;  %v241_v43 = vadd.f32 %v240_v41, %v438_v22  ;;  %v202_v44 = vpop.f32.mrb[5].mxu0  ;;  %v242_v45 = vpop.f32.mrb[5].mxu1 }
  0xef   :  { %v203_v46 = vadd.f32 %v202_v44, %v440_v23  ;;  %v243_v47 = vadd.f32 %v242_v45, %v440_v23  ;;  %v204_v48 = vpop.f32.mrb[6].mxu0  ;;  %v244_v49 = vpop.f32.mrb[6].mxu1 }
  0xf0   :  { %273 = vst [vmem:[%s573_s3 + $0x20] sm:$0xff] %v201_v42  ;;  %289 = vst [vmem:[%s573_s3 + $0xa0] sm:$0xff] %v241_v43  ;;  %v205_v50 = vadd.f32 %v204_v48, %v438_v22  ;;  %v245_v51 = vadd.f32 %v244_v49, %v438_v22  ;;  %v206_v52 = vpop.f32.mrb[7].mxu0  ;;  %v246_v53 = vpop.f32.mrb[7].mxu1 }
  0xf1   :  { %274 = vst [vmem:[%s573_s3 + $0x28] sm:$0xff] %v203_v46  ;;  %290 = vst [vmem:[%s573_s3 + $0xa8] sm:$0xff] %v243_v47  ;;  %v207_v54 = vadd.f32 %v206_v52, %v440_v23  ;;  %v247_v55 = vadd.f32 %v246_v53, %v440_v23 }
  0xf2   :  { %275 = vst [vmem:[%s573_s3 + $0x30] sm:$0xff] %v205_v50  ;;  %291 = vst [vmem:[%s573_s3 + $0xb0] sm:$0xff] %v245_v51 }
  0xf3   :  { %276 = vst [vmem:[%s573_s3 + $0x38] sm:$0xff] %v207_v54  ;;  %292 = vst [vmem:[%s573_s3 + $0xb8] sm:$0xff] %v247_v55 }
  0xf5   :  { %v210_v56 = vpop.f32.mrb[8].mxu0  ;;  %v250_v57 = vpop.f32.mrb[8].mxu1 }
  0xf6   :  { %v211_v58 = vadd.f32 %v210_v56, %v438_v22  ;;  %v251_v59 = vadd.f32 %v250_v57, %v438_v22  ;;  %v212_v60 = vpop.f32.mrb[9].mxu0  ;;  %v252_v61 = vpop.f32.mrb[9].mxu1 }
  0xf7   :  { %v213_v62 = vadd.f32 %v212_v60, %v440_v23  ;;  %v253_v63 = vadd.f32 %v252_v61, %v440_v23  ;;  %v214_v0 = vpop.f32.mrb[10].mxu0  ;;  %v254_v1 = vpop.f32.mrb[10].mxu1 }
  0xf8   :  { %277 = vst [vmem:[%s573_s3 + $0x40] sm:$0xff] %v211_v58  ;;  %293 = vst [vmem:[%s573_s3 + $0xc0] sm:$0xff] %v251_v59  ;;  %v215_v2 = vadd.f32 %v214_v0, %v438_v22  ;;  %v255_v3 = vadd.f32 %v254_v1, %v438_v22  ;;  %v216_v4 = vpop.f32.mrb[11].mxu0  ;;  %v256_v5 = vpop.f32.mrb[11].mxu1 }
  0xf9   :  { %278 = vst [vmem:[%s573_s3 + $0x48] sm:$0xff] %v213_v62  ;;  %294 = vst [vmem:[%s573_s3 + $0xc8] sm:$0xff] %v253_v63  ;;  %v217_v6 = vadd.f32 %v216_v4, %v440_v23  ;;  %v257_v7 = vadd.f32 %v256_v5, %v440_v23 }
  0xfa   :  { %279 = vst [vmem:[%s573_s3 + $0x50] sm:$0xff] %v215_v2  ;;  %295 = vst [vmem:[%s573_s3 + $0xd0] sm:$0xff] %v255_v3 }
  0xfb   :  { %280 = vst [vmem:[%s573_s3 + $0x58] sm:$0xff] %v217_v6  ;;  %296 = vst [vmem:[%s573_s3 + $0xd8] sm:$0xff] %v257_v7 }
  0xfd   :  { %v220_v8 = vpop.f32.mrb[12].mxu0  ;;  %v260_v9 = vpop.f32.mrb[12].mxu1 }
  0xfe   :  { %v221_v10 = vadd.f32 %v220_v8, %v438_v22  ;;  %v261_v11 = vadd.f32 %v260_v9, %v438_v22  ;;  %v222_v12 = vpop.f32.mrb[13].mxu0  ;;  %v262_v13 = vpop.f32.mrb[13].mxu1 }
  0xff   :  { %v223_v14 = vadd.f32 %v222_v12, %v440_v23  ;;  %v263_v15 = vadd.f32 %v262_v13, %v440_v23  ;;  %v224_v16 = vpop.f32.mrb[14].mxu0  ;;  %v264_v17 = vpop.f32.mrb[14].mxu1 }
 0x100   :  { %281 = vst [vmem:[%s573_s3 + $0x60] sm:$0xff] %v221_v10  ;;  %297 = vst [vmem:[%s573_s3 + $0xe0] sm:$0xff] %v261_v11  ;;  %v225_v18 = vadd.f32 %v224_v16, %v438_v22  ;;  %v265_v19 = vadd.f32 %v264_v17, %v438_v22  ;;  %v226_v20 = vpop.f32.mrb[15].mxu0  ;;  %v266_v21 = vpop.f32.mrb[15].mxu1 }
 0x101   :  { %282 = vst [vmem:[%s573_s3 + $0x68] sm:$0xff] %v223_v14  ;;  %298 = vst [vmem:[%s573_s3 + $0xe8] sm:$0xff] %v263_v15  ;;  %v227_v24 = vadd.f32 %v226_v20, %v440_v23  ;;  %v267_v25 = vadd.f32 %v266_v21, %v440_v23 }
 0x102   :  { %283 = vst [vmem:[%s573_s3 + $0x70] sm:$0xff] %v225_v18  ;;  %299 = vst [vmem:[%s573_s3 + $0xf0] sm:$0xff] %v265_v19 }
 0x103   :  { %284 = vst [vmem:[%s573_s3 + $0x78] sm:$0xff] %v227_v24  ;;  %300 = vst [vmem:[%s573_s3 + $0xf8] sm:$0xff] %v267_v25 }

// kernel: _lambda_.22
= control target key start
LH: loop header
LB: loop body
LE: loop exit
PB: predicated region body
PF: predicated region fallthrough
CT: control target
= control target key end

     0   :  { %vm110_vm0 = vcmask 523264   ;;  %s460_s1 = inlined_call_operand.vmem [shape: bf16[64,128], index: 1, kind: input, shape index: {}]   ;;  %s461_s0 = inlined_call_operand.vmem [shape: bf16[128,64], index: 0, kind: input, shape index: {}]   ;;  %s462_s2 = inlined_call_operand.vmem [shape: f32[1,128], index: 2, kind: input, shape index: {}]   ;;  %s463_s3 = inlined_call_operand.vmem [shape: f32[128,128], index: 3, kind: output, shape index: {}]  }
   0x1   :  { %v333_v0 = vld [vmem:[%s460_s1] sm:$0xff]   ;;  %v334_v1 = vld [vmem:[%s460_s1 + $0x8] sm:$0xff]   ;;  %v335_v2 = vld [vmem:[%s460_s1 + $0x10] sm:$0xff]  }
   0x2   :  { %301 = vmatprep.subr.bf16.mxu0 %v333_v0  ;;  %325 = vmatprep.subr.bf16.mxu1 %v333_v0  ;;  %v337_v3 = vld [vmem:[%s461_s0] sm:$0xff]   ;;  %v336_v5 = vld [vmem:[%s460_s1 + $0x18] sm:$0xff]   ;;  %v339_v6 = vld [vmem:[%s461_s0 + $0x8] sm:$0xff]  }
   0x3   :  { %302 = vmatpush3.bf16.msra.mxu0 %v333_v0  ;;  %329 = vmatpush3.bf16.msra.mxu1 %v333_v0  ;;  %v338_v4 = vld [vmem:[%s461_s0 + $0x20] sm:$0xff]   ;;  %v340_v7 = vld [vmem:[%s461_s0 + $0x28] sm:$0xff]   ;;  %v341_v8 = vld [vmem:[%s461_s0 + $0x10] sm:$0xff]  }
   0x4   :  { %303 = vmatprep.subr.bf16.mxu0 %v334_v1  ;;  %326 = vmatprep.subr.bf16.mxu1 %v334_v1  ;;  %v342_v9 = vld [vmem:[%s461_s0 + $0x30] sm:$0xff]   ;;  %v343_v10 = vld [vmem:[%s461_s0 + $0x18] sm:$0xff]   ;;  %v268_v12 = vld [vmem:[%s462_s2] ss:$0 sm:$0xff] }
   0x5   :  { %309 = vmatprep.mubr.msk.bf16.mxu0 %vm110_vm0, %v337_v3  ;;  %317 = vmatprep.mubr.msk.bf16.mxu1 %vm110_vm0, %v338_v4  ;;  %v344_v11 = vld [vmem:[%s461_s0 + $0x38] sm:$0xff]  }
   0x7   :  { %304 = vmatpush3.bf16.msra.mxu0 %v334_v1  ;;  %330 = vmatpush3.bf16.msra.mxu1 %v334_v1 }
   0x8   :  { %305 = vmatprep.subr.bf16.mxu0 %v335_v2  ;;  %327 = vmatprep.subr.bf16.mxu1 %v335_v2 }
   0xb   :  { %306 = vmatpush3.bf16.msra.mxu0 %v335_v2  ;;  %331 = vmatpush3.bf16.msra.mxu1 %v335_v2 }
   0xc   :  { %307 = vmatprep.subr.bf16.mxu0 %v336_v5  ;;  %328 = vmatprep.subr.bf16.mxu1 %v336_v5 }
   0xf   :  { %308 = vmatpush3.bf16.msra.mxu0 %v336_v5  ;;  %332 = vmatpush3.bf16.msra.mxu1 %v336_v5 }
  0x12   :  { %310 = vmatmul.mubr.msk.bf16.vlgmr.msra.gmra.mrb[0].mxu0 %vm110_vm0, %v339_v6  ;;  %318 = vmatmul.mubr.msk.bf16.vlgmr.msra.gmra.mrb[0].mxu1 %vm110_vm0, %v340_v7 }
  0x13   :  { %313 = vmatprep.mubr.msk.bf16.mxu0 %vm110_vm0, %v341_v8  ;;  %321 = vmatprep.mubr.msk.bf16.mxu1 %vm110_vm0, %v342_v9 }
  0x1a   :  { %314 = vmatmul.mubr.msk.bf16.gmra.mrb[4].mxu0 %vm110_vm0, %v343_v10  ;;  %322 = vmatmul.mubr.msk.bf16.gmra.mrb[4].mxu1 %vm110_vm0, %v344_v11 }
  0xe5   :  { %v311_v13 = vpop.f32.mrb[0].mxu0  ;;  %v319_v14 = vpop.f32.mrb[0].mxu1 }
  0xe6   :  { %v178_v15 = vadd.f32 %v311_v13, %v268_v12  ;;  %v210_v16 = vadd.f32 %v319_v14, %v268_v12  ;;  %v169_v17 = vpop.f32.mrb[1].mxu0  ;;  %v201_v18 = vpop.f32.mrb[1].mxu1 }
  0xe7   :  { %v170_v19 = vadd.f32 %v268_v12, %v169_v17  ;;  %v202_v20 = vadd.f32 %v268_v12, %v201_v18  ;;  %v312_v21 = vpop.f32.mrb[2].mxu0  ;;  %v320_v22 = vpop.f32.mrb[2].mxu1 }
  0xe8   :  { %v234_v23 = vmax.f32 %v178_v15, 0.0  ;;  %v242_v24 = vmax.f32 %v210_v16, 0.0  ;;  %v181_v25 = vadd.f32 %v312_v21, %v268_v12  ;;  %v213_v26 = vadd.f32 %v320_v22, %v268_v12  ;;  %v172_v27 = vpop.f32.mrb[3].mxu0  ;;  %v204_v28 = vpop.f32.mrb[3].mxu1 }
  0xe9   :  { %v232_v29 = vmax.f32 %v170_v19, 0.0  ;;  %v240_v30 = vmax.f32 %v202_v20, 0.0  ;;  %v173_v31 = vadd.f32 %v268_v12, %v172_v27  ;;  %v205_v32 = vadd.f32 %v268_v12, %v204_v28 }
  0xea   :  { %250 = vst [vmem:[%s463_s3 + $0x10] sm:$0xff] %v234_v23  ;;  %258 = vst [vmem:[%s463_s3 + $0x50] sm:$0xff] %v242_v24  ;;  %v235_v33 = vmax.f32 %v181_v25, 0.0  ;;  %v243_v34 = vmax.f32 %v213_v26, 0.0 }
  0xeb   :  { %248 = vst [vmem:[%s463_s3] sm:$0xff] %v232_v29  ;;  %256 = vst [vmem:[%s463_s3 + $0x40] sm:$0xff] %v240_v30  ;;  %v233_v35 = vmax.f32 %v173_v31, 0.0  ;;  %v241_v36 = vmax.f32 %v205_v32, 0.0 }
  0xec   :  { %251 = vst [vmem:[%s463_s3 + $0x18] sm:$0xff] %v235_v33  ;;  %259 = vst [vmem:[%s463_s3 + $0x58] sm:$0xff] %v243_v34 }
  0xed   :  { %249 = vst [vmem:[%s463_s3 + $0x8] sm:$0xff] %v233_v35  ;;  %257 = vst [vmem:[%s463_s3 + $0x48] sm:$0xff] %v241_v36  ;;  %v315_v37 = vpop.f32.mrb[4].mxu0  ;;  %v323_v38 = vpop.f32.mrb[4].mxu1 }
  0xee   :  { %v194_v39 = vadd.f32 %v315_v37, %v268_v12  ;;  %v226_v40 = vadd.f32 %v323_v38, %v268_v12  ;;  %v185_v41 = vpop.f32.mrb[5].mxu0  ;;  %v217_v42 = vpop.f32.mrb[5].mxu1 }
  0xef   :  { %v186_v43 = vadd.f32 %v268_v12, %v185_v41  ;;  %v218_v44 = vadd.f32 %v268_v12, %v217_v42  ;;  %v316_v45 = vpop.f32.mrb[6].mxu0  ;;  %v324_v46 = vpop.f32.mrb[6].mxu1 }
  0xf0   :  { %v238_v47 = vmax.f32 %v194_v39, 0.0  ;;  %v246_v48 = vmax.f32 %v226_v40, 0.0  ;;  %v197_v49 = vadd.f32 %v316_v45, %v268_v12  ;;  %v229_v50 = vadd.f32 %v324_v46, %v268_v12  ;;  %v188_v51 = vpop.f32.mrb[7].mxu0  ;;  %v220_v52 = vpop.f32.mrb[7].mxu1 }
  0xf1   :  { %v236_v53 = vmax.f32 %v186_v43, 0.0  ;;  %v244_v54 = vmax.f32 %v218_v44, 0.0  ;;  %v189_v55 = vadd.f32 %v268_v12, %v188_v51  ;;  %v221_v56 = vadd.f32 %v268_v12, %v220_v52 }
  0xf2   :  { %254 = vst [vmem:[%s463_s3 + $0x30] sm:$0xff] %v238_v47  ;;  %262 = vst [vmem:[%s463_s3 + $0x70] sm:$0xff] %v246_v48  ;;  %v239_v57 = vmax.f32 %v197_v49, 0.0  ;;  %v247_v58 = vmax.f32 %v229_v50, 0.0 }
  0xf3   :  { %252 = vst [vmem:[%s463_s3 + $0x20] sm:$0xff] %v236_v53  ;;  %260 = vst [vmem:[%s463_s3 + $0x60] sm:$0xff] %v244_v54  ;;  %v237_v59 = vmax.f32 %v189_v55, 0.0  ;;  %v245_v60 = vmax.f32 %v221_v56, 0.0 }
  0xf4   :  { %255 = vst [vmem:[%s463_s3 + $0x38] sm:$0xff] %v239_v57  ;;  %263 = vst [vmem:[%s463_s3 + $0x78] sm:$0xff] %v247_v58 }
  0xf5   :  { %253 = vst [vmem:[%s463_s3 + $0x28] sm:$0xff] %v237_v59  ;;  %261 = vst [vmem:[%s463_s3 + $0x68] sm:$0xff] %v245_v60 }

// kernel: _lambda_.23
= control target key start
LH: loop header
LB: loop body
LE: loop exit
PB: predicated region body
PF: predicated region fallthrough
CT: control target
= control target key end

     0   :  { %vm94_vm0 = vcmask 261120   ;;  %s602_s1 = inlined_call_operand.vmem [shape: bf16[32,128], index: 1, kind: input, shape index: {}]   ;;  %s603_s0 = inlined_call_operand.vmem [shape: bf16[128,32], index: 0, kind: input, shape index: {}]   ;;  %s604_s2 = inlined_call_operand.vmem [shape: f32[1,128], index: 2, kind: input, shape index: {}]   ;;  %s605_s3 = inlined_call_operand.vmem [shape: f32[128,128], index: 3, kind: output, shape index: {}]  }
   0x1   :  { %v401_v0 = vld [vmem:[%s602_s1] sm:$0xff]   ;;  %v402_v1 = vld [vmem:[%s602_s1 + $0x8] sm:$0xff]   ;;  %v407_v6 = vld [vmem:[%s603_s0 + $0x10] sm:$0xff]  }
   0x2   :  { %377 = vmatprep.subr.bf16.mxu0 %v401_v0  ;;  %397 = vmatprep.subr.bf16.mxu1 %v401_v0  ;;  %v403_v2 = vld [vmem:[%s603_s0] sm:$0xff]   ;;  %v405_v4 = vld [vmem:[%s603_s0 + $0x8] sm:$0xff]   ;;  %v408_v7 = vld [vmem:[%s603_s0 + $0x30] sm:$0xff]  }
   0x3   :  { %378 = vmatpush3.bf16.msra.mxu0 %v401_v0  ;;  %399 = vmatpush3.bf16.msra.mxu1 %v401_v0  ;;  %v404_v3 = vld [vmem:[%s603_s0 + $0x20] sm:$0xff]   ;;  %v406_v5 = vld [vmem:[%s603_s0 + $0x28] sm:$0xff]   ;;  %v409_v8 = vld [vmem:[%s603_s0 + $0x18] sm:$0xff]  }
   0x4   :  { %379 = vmatprep.subr.bf16.mxu0 %v402_v1  ;;  %398 = vmatprep.subr.bf16.mxu1 %v402_v1  ;;  %v410_v9 = vld [vmem:[%s603_s0 + $0x38] sm:$0xff]   ;;  %v536_v10 = vld [vmem:[%s604_s2] ss:$0 sm:$0xff] }
   0x5   :  { %381 = vmatprep.mubr.msk.bf16.mxu0 %vm94_vm0, %v403_v2  ;;  %389 = vmatprep.mubr.msk.bf16.mxu1 %vm94_vm0, %v404_v3 }
   0x7   :  { %380 = vmatpush3.bf16.msra.mxu0 %v402_v1  ;;  %400 = vmatpush3.bf16.msra.mxu1 %v402_v1 }
   0xa   :  { %382 = vmatmul.mubr.msk.bf16.vlgmr.msra.gmra.mrb[0].mxu0 %vm94_vm0, %v405_v4  ;;  %390 = vmatmul.mubr.msk.bf16.vlgmr.msra.gmra.mrb[0].mxu1 %vm94_vm0, %v406_v5 }
   0xb   :  { %385 = vmatprep.mubr.msk.bf16.mxu0 %vm94_vm0, %v407_v6  ;;  %393 = vmatprep.mubr.msk.bf16.mxu1 %vm94_vm0, %v408_v7 }
  0x12   :  { %386 = vmatmul.mubr.msk.bf16.gmra.mrb[4].mxu0 %vm94_vm0, %v409_v8  ;;  %394 = vmatmul.mubr.msk.bf16.gmra.mrb[4].mxu1 %vm94_vm0, %v410_v9 }
  0xdd   :  { %v383_v11 = vpop.f32.mrb[0].mxu0  ;;  %v391_v12 = vpop.f32.mrb[0].mxu1 }
  0xde   :  { %v162_v13 = vadd.f32 %v383_v11, %v536_v10  ;;  %v194_v14 = vadd.f32 %v391_v12, %v536_v10  ;;  %v153_v15 = vpop.f32.mrb[1].mxu0  ;;  %v185_v16 = vpop.f32.mrb[1].mxu1 }
  0xdf   :  { %v154_v17 = vadd.f32 %v536_v10, %v153_v15  ;;  %v186_v18 = vadd.f32 %v536_v10, %v185_v16  ;;  %v384_v19 = vpop.f32.mrb[2].mxu0  ;;  %v392_v20 = vpop.f32.mrb[2].mxu1 }
  0xe0   :  { %v353_v21 = vmul.f32 -1.442695, %v162_v13  ;;  %v361_v22 = vmul.f32 -1.442695, %v194_v14  ;;  %v165_v23 = vadd.f32 %v384_v19, %v536_v10  ;;  %v197_v24 = vadd.f32 %v392_v20, %v536_v10  ;;  %v156_v25 = vpop.f32.mrb[3].mxu0  ;;  %v188_v26 = vpop.f32.mrb[3].mxu1 }
  0xe1   :  { %v351_v27 = vmul.f32 -1.442695, %v154_v17  ;;  %v359_v28 = vmul.f32 -1.442695, %v186_v18  ;;  %v157_v29 = vadd.f32 %v536_v10, %v156_v25  ;;  %v189_v30 = vadd.f32 %v536_v10, %v188_v26 }
  0xe2   :  { %411 = vpow2.f32 %v353_v21  ;;  %v354_v31 = vmul.f32 -1.442695, %v165_v23  ;;  %v362_v32 = vmul.f32 -1.442695, %v197_v24 }
  0xe3   :  { %413 = vpow2.f32 %v361_v22  ;;  %v352_v33 = vmul.f32 -1.442695, %v157_v29  ;;  %v360_v34 = vmul.f32 -1.442695, %v189_v30 }
  0xe4   :  { %415 = vpow2.f32 %v351_v27 }
  0xe5   :  { %417 = vpow2.f32 %v359_v28  ;;  %v387_v35 = vpop.f32.mrb[4].mxu0  ;;  %v395_v36 = vpop.f32.mrb[4].mxu1 }
  0xe6   :  { %419 = vpow2.f32 %v354_v31  ;;  %v178_v37 = vadd.f32 %v387_v35, %v536_v10  ;;  %v210_v38 = vadd.f32 %v395_v36, %v536_v10  ;;  %v169_v39 = vpop.f32.mrb[5].mxu0  ;;  %v201_v40 = vpop.f32.mrb[5].mxu1 }
  0xe7   :  { %421 = vpow2.f32 %v362_v32  ;;  %v170_v41 = vadd.f32 %v536_v10, %v169_v39  ;;  %v202_v42 = vadd.f32 %v536_v10, %v201_v40  ;;  %v388_v43 = vpop.f32.mrb[6].mxu0  ;;  %v396_v44 = vpop.f32.mrb[6].mxu1 }
  0xe8   :  { %423 = vpow2.f32 %v352_v33  ;;  %v357_v45 = vmul.f32 -1.442695, %v178_v37  ;;  %v365_v46 = vmul.f32 -1.442695, %v210_v38  ;;  %v181_v47 = vadd.f32 %v388_v43, %v536_v10  ;;  %v172_v48 = vpop.f32.mrb[7].mxu0  ;;  %v204_v49 = vpop.f32.mrb[7].mxu1 }
  0xe9   :  { %425 = vpow2.f32 %v360_v34  ;;  %v355_v50 = vmul.f32 -1.442695, %v170_v41  ;;  %v363_v51 = vmul.f32 -1.442695, %v202_v42  ;;  %v213_v6 = vadd.f32 %v396_v44, %v536_v10 }
  0xea   :  { %427 = vpow2.f32 %v357_v45  ;;  %v358_v52 = vmul.f32 -1.442695, %v181_v47  ;;  %v173_v9 = vadd.f32 %v536_v10, %v172_v48  ;;  %v205_v13 = vadd.f32 %v536_v10, %v204_v49 }
  0xeb   :  { %429 = vpow2.f32 %v365_v46  ;;  %v366_v18 = vmul.f32 -1.442695, %v213_v6 }
  0xec   :  { %v412_v53 = vpop.eup %411  ;;  %431 = vpow2.f32 %v355_v50  ;;  %v356_v21 = vmul.f32 -1.442695, %v173_v9  ;;  %v364_v23 = vmul.f32 -1.442695, %v205_v13 }
  0xed   :  { %v414_v54 = vpop.eup %413  ;;  %v266_v55 = vadd.f32 1.0, %v412_v53  ;;  %433 = vpow2.f32 %v363_v51 }
  0xee   :  { %v416_v56 = vpop.eup %415  ;;  %v274_v57 = vadd.f32 1.0, %v414_v54  ;;  %435 = vpow2.f32 %v358_v52 }
  0xef   :  { %v418_v58 = vpop.eup %417  ;;  %437 = vrcp.f32 %v266_v55  ;;  %v264_v59 = vadd.f32 1.0, %v416_v56 }
  0xf0   :  { %v420_v60 = vpop.eup %419  ;;  %439 = vrcp.f32 %v274_v57  ;;  %v272_v61 = vadd.f32 1.0, %v418_v58 }
  0xf1   :  { %v422_v62 = vpop.eup %421  ;;  %441 = vrcp.f32 %v264_v59  ;;  %v267_v63 = vadd.f32 1.0, %v420_v60 }
  0xf2   :  { %v424_v0 = vpop.eup %423  ;;  %443 = vrcp.f32 %v272_v61  ;;  %v275_v1 = vadd.f32 1.0, %v422_v62 }
  0xf3   :  { %v426_v2 = vpop.eup %425  ;;  %445 = vrcp.f32 %v267_v63  ;;  %v265_v3 = vadd.f32 1.0, %v424_v0 }
  0xf4   :  { %v428_v4 = vpop.eup %427  ;;  %447 = vrcp.f32 %v275_v1  ;;  %v273_v5 = vadd.f32 1.0, %v426_v2 }
  0xf5   :  { %v430_v7 = vpop.eup %429  ;;  %449 = vrcp.f32 %v265_v3  ;;  %v270_v8 = vadd.f32 1.0, %v428_v4 }
  0xf6   :  { %v432_v11 = vpop.eup %431  ;;  %451 = vrcp.f32 %v273_v5  ;;  %v278_v12 = vadd.f32 1.0, %v430_v7 }
  0xf7   :  { %v434_v14 = vpop.eup %433  ;;  %453 = vrcp.f32 %v270_v8  ;;  %v268_v15 = vadd.f32 1.0, %v432_v11 }
  0xf8   :  { %v436_v16 = vpop.eup %435  ;;  %455 = vrcp.f32 %v278_v12  ;;  %v276_v17 = vadd.f32 1.0, %v434_v14 }
  0xf9   :  { %v438_v19 = vpop.eup %437  ;;  %457 = vrcp.f32 %v268_v15  ;;  %v271_v20 = vadd.f32 1.0, %v436_v16 }
  0xfa   :  { %v440_v22 = vpop.eup %439  ;;  %314 = vst [vmem:[%s605_s3 + $0x10] sm:$0xff] %v438_v19  ;;  %459 = vrcp.f32 %v276_v17 }
  0xfb   :  { %v442_v24 = vpop.eup %441  ;;  %322 = vst [vmem:[%s605_s3 + $0x50] sm:$0xff] %v440_v22  ;;  %461 = vrcp.f32 %v271_v20 }
  0xfc   :  { %v444_v10 = vpop.eup %443  ;;  %312 = vst [vmem:[%s605_s3] sm:$0xff] %v442_v24  ;;  %463 = vpow2.f32 %v366_v18 }
  0xfd   :  { %v446_v25 = vpop.eup %445  ;;  %320 = vst [vmem:[%s605_s3 + $0x40] sm:$0xff] %v444_v10  ;;  %465 = vpow2.f32 %v356_v21 }
  0xfe   :  { %v448_v26 = vpop.eup %447  ;;  %315 = vst [vmem:[%s605_s3 + $0x18] sm:$0xff] %v446_v25  ;;  %467 = vpow2.f32 %v364_v23 }
  0xff   :  { %v450_v27 = vpop.eup %449  ;;  %323 = vst [vmem:[%s605_s3 + $0x58] sm:$0xff] %v448_v26 }
 0x100   :  { %v452_v28 = vpop.eup %451  ;;  %313 = vst [vmem:[%s605_s3 + $0x8] sm:$0xff] %v450_v27 }
 0x101   :  { %v454_v29 = vpop.eup %453  ;;  %321 = vst [vmem:[%s605_s3 + $0x48] sm:$0xff] %v452_v28 }
 0x102   :  { %v456_v30 = vpop.eup %455  ;;  %318 = vst [vmem:[%s605_s3 + $0x30] sm:$0xff] %v454_v29 }
 0x103   :  { %v458_v31 = vpop.eup %457  ;;  %326 = vst [vmem:[%s605_s3 + $0x70] sm:$0xff] %v456_v30 }
 0x104   :  { %v460_v32 = vpop.eup %459  ;;  %316 = vst [vmem:[%s605_s3 + $0x20] sm:$0xff] %v458_v31 }
 0x105   :  { %v462_v33 = vpop.eup %461  ;;  %324 = vst [vmem:[%s605_s3 + $0x60] sm:$0xff] %v460_v32 }
 0x106   :  { %v464_v34 = vpop.eup %463  ;;  %319 = vst [vmem:[%s605_s3 + $0x38] sm:$0xff] %v462_v33 }
 0x107   :  { %v466_v35 = vpop.eup %465  ;;  %v279_v36 = vadd.f32 1.0, %v464_v34 }
 0x108   :  { %v468_v37 = vpop.eup %467  ;;  %v269_v38 = vadd.f32 1.0, %v466_v35 }
 0x109   :  { %469 = vrcp.f32 %v279_v36  ;;  %v277_v39 = vadd.f32 1.0, %v468_v37 }
 0x10a   :  { %471 = vrcp.f32 %v269_v38 }
 0x10b   :  { %473 = vrcp.f32 %v277_v39 }
 0x113   :  { %v470_v40 = vpop.eup %469 }
 0x114   :  { %v472_v41 = vpop.eup %471  ;;  %327 = vst [vmem:[%s605_s3 + $0x78] sm:$0xff] %v470_v40 }
 0x115   :  { %v474_v42 = vpop.eup %473  ;;  %317 = vst [vmem:[%s605_s3 + $0x28] sm:$0xff] %v472_v41 }
 0x116   :  { %325 = vst [vmem:[%s605_s3 + $0x68] sm:$0xff] %v474_v42 }

</bundles_post_ra>
